<compile_context>
chip_gen: v5e
topology: v5e:2x2
jax: 0.10.0
libtpu: 0.0.40
codegen_flags: <defaults>
</compile_context>

<pallas_src>
import functools

import jax
import jax.numpy as jnp
from jax.experimental import pallas as pl
from jax.experimental.pallas import tpu as pltpu

_BN_EPS = 1e-5


def _round_up(x, m):
    return (x + m - 1) // m * m


def _conv_bn_relu_kernel(x_ref, w_ref, gamma_ref, beta_ref, o_ref,
                         acc_ref, sum_ref, ssq_ref,
                         *, kh, kw, wp, w_valid, hw_out, count):
    """Fused k x k conv (stride 1, 'same') + BatchNorm(batch stats) + ReLU.

    Grid = (2, N): axis 0 = pass (0: conv + BN-stat accumulation, 1: epilogue),
    axis 1 = image.

    x_ref    : (hw_in, Cin)      bf16  padded image, row-major flattened
    w_ref    : (kh*kw*Cin, Cout) bf16  tap-concatenated conv weight
    gamma_ref: (1, Cout) f32           BN weight
    beta_ref : (1, Cout) f32           BN bias
    o_ref    : (hw_out, Cout)    bf16  width-padded output (wrapper slices pad)
    acc_ref  : (N, hw_out, Cout) f32   persistent pre-BN conv cache (pass 0 -> 1)
    sum_ref  : (1, Cout) f32           persistent per-channel sum
    ssq_ref  : (1, Cout) f32           persistent per-channel sum of squares
    """
    pss = pl.program_id(0)
    img = pl.program_id(1)

    @pl.when(pss == 0)
    def _():
        @pl.when(img == 0)
        def _():
            sum_ref[...] = jnp.zeros_like(sum_ref)
            ssq_ref[...] = jnp.zeros_like(ssq_ref)

        # Row-major flattening turns the (dy, dx) spatial shift into a single
        # static row offset dy*wp + dx.  All taps are concatenated along the
        # contraction dim so the whole conv is ONE MXU matmul (K = kh*kw*Cin).
        if kh * kw == 1:
            slab = x_ref[...]
        else:
            taps = []
            for t in range(kh * kw):
                dy, dx = divmod(t, kw)
                taps.append(x_ref[pl.ds(dy * wp + dx, hw_out), :])
            slab = jnp.concatenate(taps, axis=-1)
        acc = jnp.dot(slab, w_ref[...], preferred_element_type=jnp.float32)
        acc_ref[img] = acc                        # conv computed exactly once

        # Rows whose x-coordinate falls in the width padding are junk; exclude
        # them from the BN statistics (the wrapper slices them off the output).
        if wp == w_valid:
            masked = acc
        else:
            col = jax.lax.broadcasted_iota(jnp.int32, (hw_out, 1), 0) % wp
            masked = acc * (col < w_valid).astype(jnp.float32)
        sum_ref[...] += jnp.sum(masked, axis=0, keepdims=True)
        ssq_ref[...] += jnp.sum(masked * masked, axis=0, keepdims=True)

    @pl.when(pss == 1)
    def _():
        inv_count = 1.0 / count
        mean = sum_ref[...] * inv_count
        var = jnp.maximum(ssq_ref[...] * inv_count - mean * mean, 0.0)
        scale = jax.lax.rsqrt(var + _BN_EPS) * gamma_ref[...]
        shift = beta_ref[...] - mean * scale
        o_ref[...] = jnp.maximum(acc_ref[img] * scale + shift,
                                 0.0).astype(o_ref.dtype)


def conv_bn_relu(x_nhwc, weight, gamma, beta):
    """BasicConv forward: Conv2d(k, stride=1, padding=k//2) + BatchNorm2d
    (training-mode batch statistics) + ReLU.  Returns bf16 NHWC.

    The conv bias the torch module carries is intentionally NOT used: a
    per-channel constant added before training-mode BatchNorm is cancelled
    exactly by the mean subtraction.
    """
    kh, kw, cin, cout = weight.shape
    n, h, w, c = x_nhwc.shape
    assert c == cin and kh == kw
    k = kh
    pd = k // 2
    hp = h + 2 * pd
    # Round the padded width up to a multiple of 8 so the dy*wp tap offsets are
    # sublane aligned (extra columns are zeros, masked from stats, sliced off).
    wp = _round_up(w + 2 * pd, 8)
    extra_w = wp - (w + 2 * pd)
    hw_out = h * wp                      # width-padded output rows per image
    hw_in = hp * wp + (k - 1)            # + slack rows read by the last taps

    # Pad spatially once (no k^2 im2col expansion in HBM), flatten rows, cast
    # the matmul operands to bf16 (accumulation / BN math stay f32 in-kernel).
    xp = jnp.pad(x_nhwc.astype(jnp.bfloat16),
                 ((0, 0), (pd, pd), (pd, pd + extra_w), (0, 0)))
    xp = xp.reshape(n, hp * wp, cin)
    if k > 1:
        xp = jnp.pad(xp, ((0, 0), (0, k - 1), (0, 0)))

    w2 = weight.reshape(k * k * cin, cout).astype(jnp.bfloat16)
    g2 = gamma.reshape(1, cout).astype(jnp.float32)
    b2 = beta.reshape(1, cout).astype(jnp.float32)

    kernel = functools.partial(_conv_bn_relu_kernel, kh=k, kw=k, wp=wp,
                               w_valid=w, hw_out=hw_out, count=float(n * h * w))

    out = pl.pallas_call(
        kernel,
        out_shape=jax.ShapeDtypeStruct((n, hw_out, cout), jnp.bfloat16),
        grid=(2, n),                     # (pass, image); pass 0 = conv + stats
        in_specs=[
            # Pin the input block to the last image during pass 1 (the cached
            # pre-BN acc is used instead), so x is read from HBM exactly once.
            pl.BlockSpec((None, hw_in, cin),
                         lambda pss, i: (i * (1 - pss) + (n - 1) * pss, 0, 0)),
            pl.BlockSpec((k * k * cin, cout), lambda pss, i: (0, 0)),
            pl.BlockSpec((1, cout), lambda pss, i: (0, 0)),
            pl.BlockSpec((1, cout), lambda pss, i: (0, 0)),
        ],
        # Output block index stays 0 during all of pass 0 -> no dead pre-BN
        # writeback; blocks are only copied out as pass 1 advances.
        out_specs=pl.BlockSpec((None, hw_out, cout),
                               lambda pss, i: (pss * i, 0, 0)),
        scratch_shapes=[
            # Per-image pre-BN cache.  Sized for the demo batch; production
            # shapes would tile the image axis or round-trip this block through
            # HBM (input_output_aliases) with a generation-specific VMEM budget.
            pltpu.VMEM((n, hw_out, cout), jnp.float32),
            pltpu.VMEM((1, cout), jnp.float32),
            pltpu.VMEM((1, cout), jnp.float32),
        ],
        compiler_params=pltpu.CompilerParams(
            # Both axes feed the persistent scratch -> "arbitrary".
            dimension_semantics=("arbitrary", "arbitrary"),
            vmem_limit_bytes=32 * 1024 * 1024),
    )(xp, w2, g2, b2)

    # Drop the width-padding columns and restore NHWC.
    return out.reshape(n, h, wp, cout)[:, :, :w, :]


def init_basic_conv(key, cin, cout, k):
    """Deterministic synthetic params for one BasicConv (weights in HWIO)."""
    kw_key, kb_key = jax.random.split(key)
    fan_in = cin * k * k
    bound = 1.0 / jnp.sqrt(fan_in)
    return {
        "w": jax.random.uniform(kw_key, (k, k, cin, cout), jnp.float32,
                                -bound, bound),
        # Conv bias exists in the torch module but is mathematically dead under
        # training-mode BatchNorm; it is kept only so the f32 reference can
        # verify the cancellation.
        "b": jax.random.uniform(kb_key, (cout,), jnp.float32, -bound, bound),
        "gamma": jnp.ones((cout,), jnp.float32),   # BatchNorm2d default weight
        "beta": jnp.zeros((cout,), jnp.float32),   # BatchNorm2d default bias
    }


def init_inception(key, in_channels, block_channels):
    keys = jax.random.split(key, 6)
    return {
        "conv1x1_1": init_basic_conv(keys[0], in_channels, block_channels[0], 1),
        "conv1x1_2": init_basic_conv(keys[1], in_channels, block_channels[1][0], 1),
        "conv3x3_2": init_basic_conv(keys[2], block_channels[1][0],
                                     block_channels[1][1], 3),
        "conv1x1_3": init_basic_conv(keys[3], in_channels, block_channels[2][0], 1),
        "conv5x5_3": init_basic_conv(keys[4], block_channels[2][0],
                                     block_channels[2][1], 5),
        "conv1x1_4": init_basic_conv(keys[5], in_channels, block_channels[3], 1),
    }


def inception_forward(x_nchw, params):
    """InceptionModule.forward.  x_nchw: (N, C, H, W) -> (N, Cout_total, H, W) f32."""
    x = jnp.transpose(x_nchw, (0, 2, 3, 1))            # NCHW -> NHWC

    # --- call 1: the four 1x1 convs that read the same x, fused along Cout ---
    p1, p2 = params["conv1x1_1"], params["conv1x1_2"]
    p3, p4 = params["conv1x1_3"], params["conv1x1_4"]
    c1, c2i = p1["w"].shape[-1], p2["w"].shape[-1]
    c3i, c4 = p3["w"].shape[-1], p4["w"].shape[-1]
    w_stem = jnp.concatenate([p1["w"], p2["w"], p3["w"], p4["w"]], axis=-1)
    g_stem = jnp.concatenate([p1["gamma"], p2["gamma"], p3["gamma"], p4["gamma"]])
    b_stem = jnp.concatenate([p1["beta"], p2["beta"], p3["beta"], p4["beta"]])
    stem = conv_bn_relu(x, w_stem, g_stem, b_stem)     # (N,H,W,c1+c2i+c3i+c4) bf16

    out_1 = stem[..., :c1]                             # conv1x1_1(x)
    stem23 = stem[..., c1:c1 + c2i + c3i]              # conv1x1_2(x) ++ conv1x1_3(x)
    out_4 = stem[..., c1 + c2i + c3i:]                 # conv1x1_4(x)

    # --- call 2: 3x3 and 5x5 branches fused (block-diagonal 5x5 weight) ------
    p33, p55 = params["conv3x3_2"], params["conv5x5_3"]
    c2o, c3o = p33["w"].shape[-1], p55["w"].shape[-1]
    w33 = jnp.pad(p33["w"], ((1, 1), (1, 1), (0, 0), (0, c3o)))  # embed 3x3 in 5x5
    w55 = jnp.pad(p55["w"], ((0, 0), (0, 0), (0, 0), (c2o, 0)))
    w_br = jnp.concatenate([w33, w55], axis=2)         # (5,5, c2i+c3i, c2o+c3o)
    g_br = jnp.concatenate([p33["gamma"], p55["gamma"]])
    b_br = jnp.concatenate([p33["beta"], p55["beta"]])
    out_23 = conv_bn_relu(stem23, w_br, g_br, b_br)    # (N,H,W, c2o+c3o) bf16

    # Reference computes max_pool_4(x) but immediately overwrites it with
    # conv1x1_4(x); the pool branch is dead code and is not computed.
    out = jnp.concatenate([out_1, out_23, out_4], axis=-1)
    return jnp.transpose(out, (0, 3, 1, 2)).astype(jnp.float32)  # NHWC -> NCHW


# ----------------------------- pure-JAX f32 reference -------------------------
def _ref_basic_conv(x_nhwc, p, k):
    pd = k // 2
    y = jax.lax.conv_general_dilated(
        x_nhwc, p["w"], window_strides=(1, 1), padding=[(pd, pd), (pd, pd)],
        dimension_numbers=("NHWC", "HWIO", "NHWC"))
    y = y + p["b"]
    mean = jnp.mean(y, axis=(0, 1, 2))
    var = jnp.var(y, axis=(0, 1, 2))                   # biased, as torch BN training
    y = (y - mean) * jax.lax.rsqrt(var + _BN_EPS) * p["gamma"] + p["beta"]
    return jnp.maximum(y, 0.0)


def _ref_inception(x_nchw, params):
    x = jnp.transpose(x_nchw, (0, 2, 3, 1))
    o1 = _ref_basic_conv(x, params["conv1x1_1"], 1)
    o2 = _ref_basic_conv(_ref_basic_conv(x, params["conv1x1_2"], 1),
                         params["conv3x3_2"], 3)
    o3 = _ref_basic_conv(_ref_basic_conv(x, params["conv1x1_3"], 1),
                         params["conv5x5_3"], 5)
    o4 = _ref_basic_conv(x, params["conv1x1_4"], 1)
    out = jnp.concatenate([o1, o2, o3, o4], axis=-1)
    return jnp.transpose(out, (0, 3, 1, 2))


if __name__ == "__main__":
    key = jax.random.PRNGKey(0)
    k_x, k_p = jax.random.split(key)

    # Small shapes: batch=2, in_channels=4, spatial=16x16.
    in_channels = 4
    block_channels = [8, (4, 8), (4, 8), 8]            # total output channels = 32
    x = jax.random.normal(k_x, (2, in_channels, 16, 16), jnp.float32)
    params = init_inception(k_p, in_channels, block_channels)

    out = jax.jit(inception_forward)(x, params)
    out = jax.block_until_ready(out)

    expected_cout = (block_channels[0] + block_channels[1][1]
                     + block_channels[2][1] + block_channels[3])
    assert out.shape == (2, expected_cout, 16, 16), out.shape
    assert out.dtype == jnp.float32
    assert bool(jnp.all(jnp.isfinite(out)))

    # Tolerance check vs the f32 reference (bf16 MXU operands => not bitwise).
    ref = _ref_inception(x, params)
    err = float(jnp.max(jnp.abs(out - ref)))
    assert err < 0.35, f"max abs error vs reference: {err}"
    print("KERNEL_OK")
</pallas_src>

<mosaic_0001>
module attributes {stable_mosaic.version = 11 : i64} {
  func.func @_conv_bn_relu_kernel(%arg0: i32, %arg1: i32, %arg2: memref<1x256x4xbf16, #tpu.memory_space<vmem>>, %arg3: memref<4x24xbf16, #tpu.memory_space<vmem>>, %arg4: memref<1x24xf32, #tpu.memory_space<vmem>>, %arg5: memref<1x24xf32, #tpu.memory_space<vmem>>, %arg6: memref<1x256x24xbf16, #tpu.memory_space<vmem>>, %arg7: memref<2x256x24xf32, #tpu.memory_space<vmem>>, %arg8: memref<1x24xf32, #tpu.memory_space<vmem>>, %arg9: memref<1x24xf32, #tpu.memory_space<vmem>>) attributes {dimension_semantics = [#tpu.dimension_semantics<arbitrary>, #tpu.dimension_semantics<arbitrary>], iteration_bounds = array<i64: 2, 2>, scalar_prefetch = 0 : i64, scratch_operands = 3 : i64, tpu.core_type = #tpu.core_type<tc>, window_params = [{transform_indices = @transform_0, window_bounds = array<i64: 1, 256, 4>}, {pipeline_mode = #tpu.pipeline_mode<synchronous>, transform_indices = @transform_1, window_bounds = array<i64: 4, 24>}, {pipeline_mode = #tpu.pipeline_mode<synchronous>, transform_indices = @transform_2, window_bounds = array<i64: 1, 24>}, {pipeline_mode = #tpu.pipeline_mode<synchronous>, transform_indices = @transform_3, window_bounds = array<i64: 1, 24>}, {transform_indices = @transform_4, window_bounds = array<i64: 1, 256, 24>}]} {
    %c0_i32 = arith.constant 0 : i32
    %0 = arith.cmpi eq, %arg0, %c0_i32 : i32
    %1 = arith.extui %0 : i1 to i32
    %c0_i32_0 = arith.constant 0 : i32
    %2 = arith.cmpi ne, %1, %c0_i32_0 : i32
    scf.if %2 {
      %c0_i32_2 = arith.constant 0 : i32
      %6 = arith.cmpi eq, %arg1, %c0_i32_2 : i32
      %7 = arith.extui %6 : i1 to i32
      %c0_i32_3 = arith.constant 0 : i32
      %8 = arith.cmpi ne, %7, %c0_i32_3 : i32
      scf.if %8 {
        %cst_20 = arith.constant 0.000000e+00 : f32
        %28 = vector.broadcast %cst_20 : f32 to vector<1x24xf32>
        %c0_21 = arith.constant 0 : index
        %c0_22 = arith.constant 0 : index
        %29 = vector.load %arg8[%c0_21, %c0_22] : memref<1x24xf32, #tpu.memory_space<vmem>>, vector<1x24xf32>
        tpu.vector_store %arg8[%c0_21, %c0_22], %28 {strides = array<i32>} : memref<1x24xf32, #tpu.memory_space<vmem>>, vector<1x24xf32>,
        %cst_23 = arith.constant 0.000000e+00 : f32
        %30 = vector.broadcast %cst_23 : f32 to vector<1x24xf32>
        %c0_24 = arith.constant 0 : index
        %c0_25 = arith.constant 0 : index
        %31 = vector.load %arg9[%c0_24, %c0_25] : memref<1x24xf32, #tpu.memory_space<vmem>>, vector<1x24xf32>
        tpu.vector_store %arg9[%c0_24, %c0_25], %30 {strides = array<i32>} : memref<1x24xf32, #tpu.memory_space<vmem>>, vector<1x24xf32>,
      } else {
      }
      %c0 = arith.constant 0 : index
      %c0_4 = arith.constant 0 : index
      %c0_5 = arith.constant 0 : index
      %9 = vector.load %arg2[%c0, %c0_4, %c0_5] : memref<1x256x4xbf16, #tpu.memory_space<vmem>>, vector<1x256x4xbf16>
      %10 = vector.shape_cast %9 : vector<1x256x4xbf16> to vector<256x4xbf16>
      %c0_6 = arith.constant 0 : index
      %c0_7 = arith.constant 0 : index
      %11 = vector.load %arg3[%c0_6, %c0_7] : memref<4x24xbf16, #tpu.memory_space<vmem>>, vector<4x24xbf16>
      %cst = arith.constant dense<0.000000e+00> : vector<256x24xf32>
      %12 = tpu.matmul %10, %11, %cst {dimension_numbers = #tpu.dot_dimension_numbers<[1], [0], [0], [1], [0, 0, 1, 1], [], []>} : vector<256x4xbf16>, vector<4x24xbf16>, vector<256x24xf32> -> vector<256x24xf32>
      %13 = arith.index_cast %arg1 : i32 to index
      %c0_8 = arith.constant 0 : index
      %c0_9 = arith.constant 0 : index
      %14 = vector.load %arg7[%13, %c0_8, %c0_9] : memref<2x256x24xf32, #tpu.memory_space<vmem>>, vector<1x256x24xf32>
      %15 = vector.shape_cast %14 : vector<1x256x24xf32> to vector<256x24xf32>
      %16 = vector.shape_cast %12 : vector<256x24xf32> to vector<1x256x24xf32>
      tpu.vector_store %arg7[%13, %c0_8, %c0_9], %16 {strides = array<i32>} : memref<2x256x24xf32, #tpu.memory_space<vmem>>, vector<1x256x24xf32>,
      %c0_10 = arith.constant 0 : index
      %c0_11 = arith.constant 0 : index
      %17 = vector.load %arg8[%c0_10, %c0_11] : memref<1x24xf32, #tpu.memory_space<vmem>>, vector<1x24xf32>
      %cst_12 = arith.constant dense<0.000000e+00> : vector<24xf32>
      %18 = vector.multi_reduction <add>, %12, %cst_12 [0] : vector<256x24xf32> to vector<24xf32>
      %19 = vector.shape_cast %18 : vector<24xf32> to vector<1x24xf32>
      %20 = arith.addf %17, %19 : vector<1x24xf32>
      %c0_13 = arith.constant 0 : index
      %c0_14 = arith.constant 0 : index
      %21 = vector.load %arg8[%c0_13, %c0_14] : memref<1x24xf32, #tpu.memory_space<vmem>>, vector<1x24xf32>
      tpu.vector_store %arg8[%c0_13, %c0_14], %20 {strides = array<i32>} : memref<1x24xf32, #tpu.memory_space<vmem>>, vector<1x24xf32>,
      %c0_15 = arith.constant 0 : index
      %c0_16 = arith.constant 0 : index
      %22 = vector.load %arg9[%c0_15, %c0_16] : memref<1x24xf32, #tpu.memory_space<vmem>>, vector<1x24xf32>
      %23 = arith.mulf %12, %12 : vector<256x24xf32>
      %cst_17 = arith.constant dense<0.000000e+00> : vector<24xf32>
      %24 = vector.multi_reduction <add>, %23, %cst_17 [0] : vector<256x24xf32> to vector<24xf32>
      %25 = vector.shape_cast %24 : vector<24xf32> to vector<1x24xf32>
      %26 = arith.addf %22, %25 : vector<1x24xf32>
      %c0_18 = arith.constant 0 : index
      %c0_19 = arith.constant 0 : index
      %27 = vector.load %arg9[%c0_18, %c0_19] : memref<1x24xf32, #tpu.memory_space<vmem>>, vector<1x24xf32>
      tpu.vector_store %arg9[%c0_18, %c0_19], %26 {strides = array<i32>} : memref<1x24xf32, #tpu.memory_space<vmem>>, vector<1x24xf32>,
    } else {
    }
    %c1_i32 = arith.constant 1 : i32
    %3 = arith.cmpi eq, %arg0, %c1_i32 : i32
    %4 = arith.extui %3 : i1 to i32
    %c0_i32_1 = arith.constant 0 : i32
    %5 = arith.cmpi ne, %4, %c0_i32_1 : i32
    scf.if %5 {
      %c0 = arith.constant 0 : index
      %c0_2 = arith.constant 0 : index
      %6 = vector.load %arg8[%c0, %c0_2] : memref<1x24xf32, #tpu.memory_space<vmem>>, vector<1x24xf32>
      %cst = arith.constant 0.001953125 : f32
      %7 = vector.broadcast %cst : f32 to vector<1x24xf32>
      %8 = arith.mulf %6, %7 : vector<1x24xf32>
      %c0_3 = arith.constant 0 : index
      %c0_4 = arith.constant 0 : index
      %9 = vector.load %arg9[%c0_3, %c0_4] : memref<1x24xf32, #tpu.memory_space<vmem>>, vector<1x24xf32>
      %cst_5 = arith.constant 0.001953125 : f32
      %10 = vector.broadcast %cst_5 : f32 to vector<1x24xf32>
      %11 = arith.mulf %9, %10 : vector<1x24xf32>
      %12 = arith.mulf %8, %8 : vector<1x24xf32>
      %13 = arith.subf %11, %12 : vector<1x24xf32>
      %cst_6 = arith.constant 0.000000e+00 : f32
      %14 = vector.broadcast %cst_6 : f32 to vector<1x24xf32>
      %15 = arith.maximumf %13, %14 : vector<1x24xf32>
      %cst_7 = arith.constant 9.99999974E-6 : f32
      %16 = vector.broadcast %cst_7 : f32 to vector<1x24xf32>
      %17 = arith.addf %15, %16 : vector<1x24xf32>
      %18 = math.rsqrt %17 : vector<1x24xf32>
      %c0_8 = arith.constant 0 : index
      %c0_9 = arith.constant 0 : index
      %19 = vector.load %arg4[%c0_8, %c0_9] : memref<1x24xf32, #tpu.memory_space<vmem>>, vector<1x24xf32>
      %20 = arith.mulf %18, %19 : vector<1x24xf32>
      %c0_10 = arith.constant 0 : index
      %c0_11 = arith.constant 0 : index
      %21 = vector.load %arg5[%c0_10, %c0_11] : memref<1x24xf32, #tpu.memory_space<vmem>>, vector<1x24xf32>
      %22 = arith.mulf %8, %20 : vector<1x24xf32>
      %23 = arith.subf %21, %22 : vector<1x24xf32>
      %24 = arith.index_cast %arg1 : i32 to index
      %c0_12 = arith.constant 0 : index
      %c0_13 = arith.constant 0 : index
      %25 = vector.load %arg7[%24, %c0_12, %c0_13] : memref<2x256x24xf32, #tpu.memory_space<vmem>>, vector<1x256x24xf32>
      %26 = vector.shape_cast %25 : vector<1x256x24xf32> to vector<256x24xf32>
      %27 = vector.broadcast %20 : vector<1x24xf32> to vector<256x24xf32>
      %28 = arith.mulf %26, %27 : vector<256x24xf32>
      %29 = vector.broadcast %23 : vector<1x24xf32> to vector<256x24xf32>
      %30 = arith.addf %28, %29 : vector<256x24xf32>
      %cst_14 = arith.constant 0.000000e+00 : f32
      %31 = vector.broadcast %cst_14 : f32 to vector<256x24xf32>
      %32 = arith.maximumf %30, %31 : vector<256x24xf32>
      %33 = arith.truncf %32 : vector<256x24xf32> to vector<256x24xbf16>
      %c0_15 = arith.constant 0 : index
      %c0_16 = arith.constant 0 : index
      %c0_17 = arith.constant 0 : index
      %34 = vector.load %arg6[%c0_15, %c0_16, %c0_17] : memref<1x256x24xbf16, #tpu.memory_space<vmem>>, vector<1x256x24xbf16>
      %35 = vector.shape_cast %34 : vector<1x256x24xbf16> to vector<256x24xbf16>
      %36 = vector.shape_cast %33 : vector<256x24xbf16> to vector<1x256x24xbf16>
      tpu.vector_store %arg6[%c0_15, %c0_16, %c0_17], %36 {strides = array<i32>} : memref<1x256x24xbf16, #tpu.memory_space<vmem>>, vector<1x256x24xbf16>,
    } else {
    }
    return
  }
  func.func @transform_0(%arg0: i32, %arg1: i32) -> (i32, i32, i32) {
    %c1_i32 = arith.constant 1 : i32
    %0 = arith.subi %c1_i32, %arg0 : i32
    %1 = arith.muli %arg1, %0 : i32
    %c1_i32_0 = arith.constant 1 : i32
    %2 = arith.muli %c1_i32_0, %arg0 : i32
    %3 = arith.addi %1, %2 : i32
    %c0_i32 = arith.constant 0 : i32
    %c0_i32_1 = arith.constant 0 : i32
    %c0_i32_2 = arith.constant 0 : i32
    return %3, %c0_i32, %c0_i32_1 : i32, i32, i32
  }
  func.func @transform_1(%arg0: i32, %arg1: i32) -> (i32, i32) {
    %c0_i32 = arith.constant 0 : i32
    %c0_i32_0 = arith.constant 0 : i32
    %c0_i32_1 = arith.constant 0 : i32
    return %c0_i32, %c0_i32_0 : i32, i32
  }
  func.func @transform_2(%arg0: i32, %arg1: i32) -> (i32, i32) {
    %c0_i32 = arith.constant 0 : i32
    %c0_i32_0 = arith.constant 0 : i32
    %c0_i32_1 = arith.constant 0 : i32
    return %c0_i32, %c0_i32_0 : i32, i32
  }
  func.func @transform_3(%arg0: i32, %arg1: i32) -> (i32, i32) {
    %c0_i32 = arith.constant 0 : i32
    %c0_i32_0 = arith.constant 0 : i32
    %c0_i32_1 = arith.constant 0 : i32
    return %c0_i32, %c0_i32_0 : i32, i32
  }
  func.func @transform_4(%arg0: i32, %arg1: i32) -> (i32, i32, i32) {
    %0 = arith.muli %arg0, %arg1 : i32
    %c0_i32 = arith.constant 0 : i32
    %c0_i32_0 = arith.constant 0 : i32
    %c0_i32_1 = arith.constant 0 : i32
    return %0, %c0_i32, %c0_i32_0 : i32, i32, i32
  }
}

module attributes {stable_mosaic.version = 11 : i64} {
  func.func @_conv_bn_relu_kernel(%arg0: i32, %arg1: i32, %arg2: memref<1x484x8xbf16, #tpu.memory_space<vmem>>, %arg3: memref<200x16xbf16, #tpu.memory_space<vmem>>, %arg4: memref<1x16xf32, #tpu.memory_space<vmem>>, %arg5: memref<1x16xf32, #tpu.memory_space<vmem>>, %arg6: memref<1x384x16xbf16, #tpu.memory_space<vmem>>, %arg7: memref<2x384x16xf32, #tpu.memory_space<vmem>>, %arg8: memref<1x16xf32, #tpu.memory_space<vmem>>, %arg9: memref<1x16xf32, #tpu.memory_space<vmem>>) attributes {dimension_semantics = [#tpu.dimension_semantics<arbitrary>, #tpu.dimension_semantics<arbitrary>], iteration_bounds = array<i64: 2, 2>, scalar_prefetch = 0 : i64, scratch_operands = 3 : i64, tpu.core_type = #tpu.core_type<tc>, window_params = [{transform_indices = @transform_0, window_bounds = array<i64: 1, 484, 8>}, {pipeline_mode = #tpu.pipeline_mode<synchronous>, transform_indices = @transform_1, window_bounds = array<i64: 200, 16>}, {pipeline_mode = #tpu.pipeline_mode<synchronous>, transform_indices = @transform_2, window_bounds = array<i64: 1, 16>}, {pipeline_mode = #tpu.pipeline_mode<synchronous>, transform_indices = @transform_3, window_bounds = array<i64: 1, 16>}, {transform_indices = @transform_4, window_bounds = array<i64: 1, 384, 16>}]} {
    %c0_i32 = arith.constant 0 : i32
    %0 = arith.cmpi eq, %arg0, %c0_i32 : i32
    %1 = arith.extui %0 : i1 to i32
    %c0_i32_0 = arith.constant 0 : i32
    %2 = arith.cmpi ne, %1, %c0_i32_0 : i32
    scf.if %2 {
      %c0_i32_2 = arith.constant 0 : i32
      %6 = arith.cmpi eq, %arg1, %c0_i32_2 : i32
      %7 = arith.extui %6 : i1 to i32
      %c0_i32_3 = arith.constant 0 : i32
      %8 = arith.cmpi ne, %7, %c0_i32_3 : i32
      scf.if %8 {
        %cst_73 = arith.constant 0.000000e+00 : f32
        %102 = vector.broadcast %cst_73 : f32 to vector<1x16xf32>
        %c0_74 = arith.constant 0 : index
        %c0_75 = arith.constant 0 : index
        %103 = vector.load %arg8[%c0_74, %c0_75] : memref<1x16xf32, #tpu.memory_space<vmem>>, vector<1x16xf32>
        tpu.vector_store %arg8[%c0_74, %c0_75], %102 {strides = array<i32>} : memref<1x16xf32, #tpu.memory_space<vmem>>, vector<1x16xf32>,
        %cst_76 = arith.constant 0.000000e+00 : f32
        %104 = vector.broadcast %cst_76 : f32 to vector<1x16xf32>
        %c0_77 = arith.constant 0 : index
        %c0_78 = arith.constant 0 : index
        %105 = vector.load %arg9[%c0_77, %c0_78] : memref<1x16xf32, #tpu.memory_space<vmem>>, vector<1x16xf32>
        tpu.vector_store %arg9[%c0_77, %c0_78], %104 {strides = array<i32>} : memref<1x16xf32, #tpu.memory_space<vmem>>, vector<1x16xf32>,
      } else {
      }
      %c0 = arith.constant 0 : index
      %c0_4 = arith.constant 0 : index
      %c0_5 = arith.constant 0 : index
      %9 = vector.load %arg2[%c0, %c0_4, %c0_5] : memref<1x484x8xbf16, #tpu.memory_space<vmem>>, vector<1x384x8xbf16>
      %10 = vector.shape_cast %9 : vector<1x384x8xbf16> to vector<384x8xbf16>
      %c0_6 = arith.constant 0 : index
      %c1 = arith.constant 1 : index
      %c0_7 = arith.constant 0 : index
      %11 = vector.load %arg2[%c0_6, %c1, %c0_7] : memref<1x484x8xbf16, #tpu.memory_space<vmem>>, vector<1x384x8xbf16>
      %12 = vector.shape_cast %11 : vector<1x384x8xbf16> to vector<384x8xbf16>
      %c0_8 = arith.constant 0 : index
      %c2 = arith.constant 2 : index
      %c0_9 = arith.constant 0 : index
      %13 = vector.load %arg2[%c0_8, %c2, %c0_9] : memref<1x484x8xbf16, #tpu.memory_space<vmem>>, vector<1x384x8xbf16>
      %14 = vector.shape_cast %13 : vector<1x384x8xbf16> to vector<384x8xbf16>
      %c0_10 = arith.constant 0 : index
      %c3 = arith.constant 3 : index
      %c0_11 = arith.constant 0 : index
      %15 = vector.load %arg2[%c0_10, %c3, %c0_11] : memref<1x484x8xbf16, #tpu.memory_space<vmem>>, vector<1x384x8xbf16>
      %16 = vector.shape_cast %15 : vector<1x384x8xbf16> to vector<384x8xbf16>
      %c0_12 = arith.constant 0 : index
      %c4 = arith.constant 4 : index
      %c0_13 = arith.constant 0 : index
      %17 = vector.load %arg2[%c0_12, %c4, %c0_13] : memref<1x484x8xbf16, #tpu.memory_space<vmem>>, vector<1x384x8xbf16>
      %18 = vector.shape_cast %17 : vector<1x384x8xbf16> to vector<384x8xbf16>
      %c0_14 = arith.constant 0 : index
      %c24 = arith.constant 24 : index
      %c0_15 = arith.constant 0 : index
      %19 = vector.load %arg2[%c0_14, %c24, %c0_15] : memref<1x484x8xbf16, #tpu.memory_space<vmem>>, vector<1x384x8xbf16>
      %20 = vector.shape_cast %19 : vector<1x384x8xbf16> to vector<384x8xbf16>
      %c0_16 = arith.constant 0 : index
      %c25 = arith.constant 25 : index
      %c0_17 = arith.constant 0 : index
      %21 = vector.load %arg2[%c0_16, %c25, %c0_17] : memref<1x484x8xbf16, #tpu.memory_space<vmem>>, vector<1x384x8xbf16>
      %22 = vector.shape_cast %21 : vector<1x384x8xbf16> to vector<384x8xbf16>
      %c0_18 = arith.constant 0 : index
      %c26 = arith.constant 26 : index
      %c0_19 = arith.constant 0 : index
      %23 = vector.load %arg2[%c0_18, %c26, %c0_19] : memref<1x484x8xbf16, #tpu.memory_space<vmem>>, vector<1x384x8xbf16>
      %24 = vector.shape_cast %23 : vector<1x384x8xbf16> to vector<384x8xbf16>
      %c0_20 = arith.constant 0 : index
      %c27 = arith.constant 27 : index
      %c0_21 = arith.constant 0 : index
      %25 = vector.load %arg2[%c0_20, %c27, %c0_21] : memref<1x484x8xbf16, #tpu.memory_space<vmem>>, vector<1x384x8xbf16>
      %26 = vector.shape_cast %25 : vector<1x384x8xbf16> to vector<384x8xbf16>
      %c0_22 = arith.constant 0 : index
      %c28 = arith.constant 28 : index
      %c0_23 = arith.constant 0 : index
      %27 = vector.load %arg2[%c0_22, %c28, %c0_23] : memref<1x484x8xbf16, #tpu.memory_space<vmem>>, vector<1x384x8xbf16>
      %28 = vector.shape_cast %27 : vector<1x384x8xbf16> to vector<384x8xbf16>
      %c0_24 = arith.constant 0 : index
      %c48 = arith.constant 48 : index
      %c0_25 = arith.constant 0 : index
      %29 = vector.load %arg2[%c0_24, %c48, %c0_25] : memref<1x484x8xbf16, #tpu.memory_space<vmem>>, vector<1x384x8xbf16>
      %30 = vector.shape_cast %29 : vector<1x384x8xbf16> to vector<384x8xbf16>
      %c0_26 = arith.constant 0 : index
      %c49 = arith.constant 49 : index
      %c0_27 = arith.constant 0 : index
      %31 = vector.load %arg2[%c0_26, %c49, %c0_27] : memref<1x484x8xbf16, #tpu.memory_space<vmem>>, vector<1x384x8xbf16>
      %32 = vector.shape_cast %31 : vector<1x384x8xbf16> to vector<384x8xbf16>
      %c0_28 = arith.constant 0 : index
      %c50 = arith.constant 50 : index
      %c0_29 = arith.constant 0 : index
      %33 = vector.load %arg2[%c0_28, %c50, %c0_29] : memref<1x484x8xbf16, #tpu.memory_space<vmem>>, vector<1x384x8xbf16>
      %34 = vector.shape_cast %33 : vector<1x384x8xbf16> to vector<384x8xbf16>
      %c0_30 = arith.constant 0 : index
      %c51 = arith.constant 51 : index
      %c0_31 = arith.constant 0 : index
      %35 = vector.load %arg2[%c0_30, %c51, %c0_31] : memref<1x484x8xbf16, #tpu.memory_space<vmem>>, vector<1x384x8xbf16>
      %36 = vector.shape_cast %35 : vector<1x384x8xbf16> to vector<384x8xbf16>
      %c0_32 = arith.constant 0 : index
      %c52 = arith.constant 52 : index
      %c0_33 = arith.constant 0 : index
      %37 = vector.load %arg2[%c0_32, %c52, %c0_33] : memref<1x484x8xbf16, #tpu.memory_space<vmem>>, vector<1x384x8xbf16>
      %38 = vector.shape_cast %37 : vector<1x384x8xbf16> to vector<384x8xbf16>
      %c0_34 = arith.constant 0 : index
      %c72 = arith.constant 72 : index
      %c0_35 = arith.constant 0 : index
      %39 = vector.load %arg2[%c0_34, %c72, %c0_35] : memref<1x484x8xbf16, #tpu.memory_space<vmem>>, vector<1x384x8xbf16>
      %40 = vector.shape_cast %39 : vector<1x384x8xbf16> to vector<384x8xbf16>
      %c0_36 = arith.constant 0 : index
      %c73 = arith.constant 73 : index
      %c0_37 = arith.constant 0 : index
      %41 = vector.load %arg2[%c0_36, %c73, %c0_37] : memref<1x484x8xbf16, #tpu.memory_space<vmem>>, vector<1x384x8xbf16>
      %42 = vector.shape_cast %41 : vector<1x384x8xbf16> to vector<384x8xbf16>
      %c0_38 = arith.constant 0 : index
      %c74 = arith.constant 74 : index
      %c0_39 = arith.constant 0 : index
      %43 = vector.load %arg2[%c0_38, %c74, %c0_39] : memref<1x484x8xbf16, #tpu.memory_space<vmem>>, vector<1x384x8xbf16>
      %44 = vector.shape_cast %43 : vector<1x384x8xbf16> to vector<384x8xbf16>
      %c0_40 = arith.constant 0 : index
      %c75 = arith.constant 75 : index
      %c0_41 = arith.constant 0 : index
      %45 = vector.load %arg2[%c0_40, %c75, %c0_41] : memref<1x484x8xbf16, #tpu.memory_space<vmem>>, vector<1x384x8xbf16>
      %46 = vector.shape_cast %45 : vector<1x384x8xbf16> to vector<384x8xbf16>
      %c0_42 = arith.constant 0 : index
      %c76 = arith.constant 76 : index
      %c0_43 = arith.constant 0 : index
      %47 = vector.load %arg2[%c0_42, %c76, %c0_43] : memref<1x484x8xbf16, #tpu.memory_space<vmem>>, vector<1x384x8xbf16>
      %48 = vector.shape_cast %47 : vector<1x384x8xbf16> to vector<384x8xbf16>
      %c0_44 = arith.constant 0 : index
      %c96 = arith.constant 96 : index
      %c0_45 = arith.constant 0 : index
      %49 = vector.load %arg2[%c0_44, %c96, %c0_45] : memref<1x484x8xbf16, #tpu.memory_space<vmem>>, vector<1x384x8xbf16>
      %50 = vector.shape_cast %49 : vector<1x384x8xbf16> to vector<384x8xbf16>
      %c0_46 = arith.constant 0 : index
      %c97 = arith.constant 97 : index
      %c0_47 = arith.constant 0 : index
      %51 = vector.load %arg2[%c0_46, %c97, %c0_47] : memref<1x484x8xbf16, #tpu.memory_space<vmem>>, vector<1x384x8xbf16>
      %52 = vector.shape_cast %51 : vector<1x384x8xbf16> to vector<384x8xbf16>
      %c0_48 = arith.constant 0 : index
      %c98 = arith.constant 98 : index
      %c0_49 = arith.constant 0 : index
      %53 = vector.load %arg2[%c0_48, %c98, %c0_49] : memref<1x484x8xbf16, #tpu.memory_space<vmem>>, vector<1x384x8xbf16>
      %54 = vector.shape_cast %53 : vector<1x384x8xbf16> to vector<384x8xbf16>
      %c0_50 = arith.constant 0 : index
      %c99 = arith.constant 99 : index
      %c0_51 = arith.constant 0 : index
      %55 = vector.load %arg2[%c0_50, %c99, %c0_51] : memref<1x484x8xbf16, #tpu.memory_space<vmem>>, vector<1x384x8xbf16>
      %56 = vector.shape_cast %55 : vector<1x384x8xbf16> to vector<384x8xbf16>
      %c0_52 = arith.constant 0 : index
      %c100 = arith.constant 100 : index
      %c0_53 = arith.constant 0 : index
      %57 = vector.load %arg2[%c0_52, %c100, %c0_53] : memref<1x484x8xbf16, #tpu.memory_space<vmem>>, vector<1x384x8xbf16>
      %58 = vector.shape_cast %57 : vector<1x384x8xbf16> to vector<384x8xbf16>
      %59 = tpu.concatenate %10, %12, %14, %16, %18, %20, %22, %24, %26, %28, %30, %32, %34, %36, %38, %40 in 1 : vector<384x8xbf16>, vector<384x8xbf16>, vector<384x8xbf16>, vector<384x8xbf16>, vector<384x8xbf16>, vector<384x8xbf16>, vector<384x8xbf16>, vector<384x8xbf16>, vector<384x8xbf16>, vector<384x8xbf16>, vector<384x8xbf16>, vector<384x8xbf16>, vector<384x8xbf16>, vector<384x8xbf16>, vector<384x8xbf16>, vector<384x8xbf16> -> vector<384x128xbf16>
      %60 = tpu.concatenate %42, %44, %46, %48, %50, %52, %54, %56, %58 in 1 : vector<384x8xbf16>, vector<384x8xbf16>, vector<384x8xbf16>, vector<384x8xbf16>, vector<384x8xbf16>, vector<384x8xbf16>, vector<384x8xbf16>, vector<384x8xbf16>, vector<384x8xbf16> -> vector<384x72xbf16>
      %61 = tpu.concatenate %59, %60 in 1 : vector<384x128xbf16>, vector<384x72xbf16> -> vector<384x200xbf16>
      %c0_54 = arith.constant 0 : index
      %c0_55 = arith.constant 0 : index
      %62 = vector.load %arg3[%c0_54, %c0_55] : memref<200x16xbf16, #tpu.memory_space<vmem>>, vector<200x16xbf16>
      %cst = arith.constant dense<0.000000e+00> : vector<384x16xf32>
      %63 = tpu.matmul %61, %62, %cst {dimension_numbers = #tpu.dot_dimension_numbers<[1], [0], [0], [1], [0, 0, 1, 1], [], []>} : vector<384x200xbf16>, vector<200x16xbf16>, vector<384x16xf32> -> vector<384x16xf32>
      %64 = arith.index_cast %arg1 : i32 to index
      %c0_56 = arith.constant 0 : index
      %c0_57 = arith.constant 0 : index
      %65 = vector.load %arg7[%64, %c0_56, %c0_57] : memref<2x384x16xf32, #tpu.memory_space<vmem>>, vector<1x384x16xf32>
      %66 = vector.shape_cast %65 : vector<1x384x16xf32> to vector<384x16xf32>
      %67 = vector.shape_cast %63 : vector<384x16xf32> to vector<1x384x16xf32>
      tpu.vector_store %arg7[%64, %c0_56, %c0_57], %67 {strides = array<i32>} : memref<2x384x16xf32, #tpu.memory_space<vmem>>, vector<1x384x16xf32>,
      %68 = tpu.iota {dimensions = array<i32: 0>} : vector<384x1xi32>
      %c24_i32 = arith.constant 24 : i32
      %c0_i32_58 = arith.constant 0 : i32
      %69 = arith.cmpi eq, %c24_i32, %c0_i32_58 : i32
      %c1_i32_59 = arith.constant 1 : i32
      %70 = arith.select %69, %c1_i32_59, %c24_i32 : i32
      %71 = vector.broadcast %70 : i32 to vector<384x1xi32>
      %72 = arith.remsi %68, %71 : vector<384x1xi32>
      %c0_i32_60 = arith.constant 0 : i32
      %73 = vector.broadcast %c0_i32_60 : i32 to vector<384x1xi32>
      %74 = arith.cmpi ne, %72, %73 : vector<384x1xi32>
      %c0_i32_61 = arith.constant 0 : i32
      %75 = vector.broadcast %c0_i32_61 : i32 to vector<384x1xi32>
      %76 = arith.cmpi slt, %72, %75 : vector<384x1xi32>
      %c0_i32_62 = arith.constant 0 : i32
      %77 = arith.cmpi slt, %70, %c0_i32_62 : i32
      %78 = vector.broadcast %77 : i1 to vector<384x1xi1>
      %79 = vector.broadcast %78 : vector<384x1xi1> to vector<384x1xi1>
      %80 = arith.xori %76, %79 : vector<384x1xi1>
      %81 = arith.andi %80, %74 : vector<384x1xi1>
      %82 = vector.broadcast %70 : i32 to vector<384x1xi32>
      %83 = arith.addi %72, %82 : vector<384x1xi32>
      %84 = arith.select %81, %83, %72 : vector<384x1xi1>, vector<384x1xi32>
      %c16_i32 = arith.constant 16 : i32
      %85 = vector.broadcast %c16_i32 : i32 to vector<384x1xi32>
      %86 = arith.cmpi slt, %84, %85 : vector<384x1xi32>
      %87 = arith.extui %86 : vector<384x1xi1> to vector<384x1xi32>
      %88 = arith.sitofp %87 : vector<384x1xi32> to vector<384x1xf32>
      %89 = vector.broadcast %88 : vector<384x1xf32> to vector<384x16xf32>
      %90 = arith.mulf %63, %89 : vector<384x16xf32>
      %c0_63 = arith.constant 0 : index
      %c0_64 = arith.constant 0 : index
      %91 = vector.load %arg8[%c0_63, %c0_64] : memref<1x16xf32, #tpu.memory_space<vmem>>, vector<1x16xf32>
      %cst_65 = arith.constant dense<0.000000e+00> : vector<16xf32>
      %92 = vector.multi_reduction <add>, %90, %cst_65 [0] : vector<384x16xf32> to vector<16xf32>
      %93 = vector.shape_cast %92 : vector<16xf32> to vector<1x16xf32>
      %94 = arith.addf %91, %93 : vector<1x16xf32>
      %c0_66 = arith.constant 0 : index
      %c0_67 = arith.constant 0 : index
      %95 = vector.load %arg8[%c0_66, %c0_67] : memref<1x16xf32, #tpu.memory_space<vmem>>, vector<1x16xf32>
      tpu.vector_store %arg8[%c0_66, %c0_67], %94 {strides = array<i32>} : memref<1x16xf32, #tpu.memory_space<vmem>>, vector<1x16xf32>,
      %c0_68 = arith.constant 0 : index
      %c0_69 = arith.constant 0 : index
      %96 = vector.load %arg9[%c0_68, %c0_69] : memref<1x16xf32, #tpu.memory_space<vmem>>, vector<1x16xf32>
      %97 = arith.mulf %90, %90 : vector<384x16xf32>
      %cst_70 = arith.constant dense<0.000000e+00> : vector<16xf32>
      %98 = vector.multi_reduction <add>, %97, %cst_70 [0] : vector<384x16xf32> to vector<16xf32>
      %99 = vector.shape_cast %98 : vector<16xf32> to vector<1x16xf32>
      %100 = arith.addf %96, %99 : vector<1x16xf32>
      %c0_71 = arith.constant 0 : index
      %c0_72 = arith.constant 0 : index
      %101 = vector.load %arg9[%c0_71, %c0_72] : memref<1x16xf32, #tpu.memory_space<vmem>>, vector<1x16xf32>
      tpu.vector_store %arg9[%c0_71, %c0_72], %100 {strides = array<i32>} : memref<1x16xf32, #tpu.memory_space<vmem>>, vector<1x16xf32>,
    } else {
    }
    %c1_i32 = arith.constant 1 : i32
    %3 = arith.cmpi eq, %arg0, %c1_i32 : i32
    %4 = arith.extui %3 : i1 to i32
    %c0_i32_1 = arith.constant 0 : i32
    %5 = arith.cmpi ne, %4, %c0_i32_1 : i32
    scf.if %5 {
      %c0 = arith.constant 0 : index
      %c0_2 = arith.constant 0 : index
      %6 = vector.load %arg8[%c0, %c0_2] : memref<1x16xf32, #tpu.memory_space<vmem>>, vector<1x16xf32>
      %cst = arith.constant 0.001953125 : f32
      %7 = vector.broadcast %cst : f32 to vector<1x16xf32>
      %8 = arith.mulf %6, %7 : vector<1x16xf32>
      %c0_3 = arith.constant 0 : index
      %c0_4 = arith.constant 0 : index
      %9 = vector.load %arg9[%c0_3, %c0_4] : memref<1x16xf32, #tpu.memory_space<vmem>>, vector<1x16xf32>
      %cst_5 = arith.constant 0.001953125 : f32
      %10 = vector.broadcast %cst_5 : f32 to vector<1x16xf32>
      %11 = arith.mulf %9, %10 : vector<1x16xf32>
      %12 = arith.mulf %8, %8 : vector<1x16xf32>
      %13 = arith.subf %11, %12 : vector<1x16xf32>
      %cst_6 = arith.constant 0.000000e+00 : f32
      %14 = vector.broadcast %cst_6 : f32 to vector<1x16xf32>
      %15 = arith.maximumf %13, %14 : vector<1x16xf32>
      %cst_7 = arith.constant 9.99999974E-6 : f32
      %16 = vector.broadcast %cst_7 : f32 to vector<1x16xf32>
      %17 = arith.addf %15, %16 : vector<1x16xf32>
      %18 = math.rsqrt %17 : vector<1x16xf32>
      %c0_8 = arith.constant 0 : index
      %c0_9 = arith.constant 0 : index
      %19 = vector.load %arg4[%c0_8, %c0_9] : memref<1x16xf32, #tpu.memory_space<vmem>>, vector<1x16xf32>
      %20 = arith.mulf %18, %19 : vector<1x16xf32>
      %c0_10 = arith.constant 0 : index
      %c0_11 = arith.constant 0 : index
      %21 = vector.load %arg5[%c0_10, %c0_11] : memref<1x16xf32, #tpu.memory_space<vmem>>, vector<1x16xf32>
      %22 = arith.mulf %8, %20 : vector<1x16xf32>
      %23 = arith.subf %21, %22 : vector<1x16xf32>
      %24 = arith.index_cast %arg1 : i32 to index
      %c0_12 = arith.constant 0 : index
      %c0_13 = arith.constant 0 : index
      %25 = vector.load %arg7[%24, %c0_12, %c0_13] : memref<2x384x16xf32, #tpu.memory_space<vmem>>, vector<1x384x16xf32>
      %26 = vector.shape_cast %25 : vector<1x384x16xf32> to vector<384x16xf32>
      %27 = vector.broadcast %20 : vector<1x16xf32> to vector<384x16xf32>
      %28 = arith.mulf %26, %27 : vector<384x16xf32>
      %29 = vector.broadcast %23 : vector<1x16xf32> to vector<384x16xf32>
      %30 = arith.addf %28, %29 : vector<384x16xf32>
      %cst_14 = arith.constant 0.000000e+00 : f32
      %31 = vector.broadcast %cst_14 : f32 to vector<384x16xf32>
      %32 = arith.maximumf %30, %31 : vector<384x16xf32>
      %33 = arith.truncf %32 : vector<384x16xf32> to vector<384x16xbf16>
      %c0_15 = arith.constant 0 : index
      %c0_16 = arith.constant 0 : index
      %c0_17 = arith.constant 0 : index
      %34 = vector.load %arg6[%c0_15, %c0_16, %c0_17] : memref<1x384x16xbf16, #tpu.memory_space<vmem>>, vector<1x384x16xbf16>
      %35 = vector.shape_cast %34 : vector<1x384x16xbf16> to vector<384x16xbf16>
      %36 = vector.shape_cast %33 : vector<384x16xbf16> to vector<1x384x16xbf16>
      tpu.vector_store %arg6[%c0_15, %c0_16, %c0_17], %36 {strides = array<i32>} : memref<1x384x16xbf16, #tpu.memory_space<vmem>>, vector<1x384x16xbf16>,
    } else {
    }
    return
  }
  func.func @transform_0(%arg0: i32, %arg1: i32) -> (i32, i32, i32) {
    %c1_i32 = arith.constant 1 : i32
    %0 = arith.subi %c1_i32, %arg0 : i32
    %1 = arith.muli %arg1, %0 : i32
    %c1_i32_0 = arith.constant 1 : i32
    %2 = arith.muli %c1_i32_0, %arg0 : i32
    %3 = arith.addi %1, %2 : i32
    %c0_i32 = arith.constant 0 : i32
    %c0_i32_1 = arith.constant 0 : i32
    %c0_i32_2 = arith.constant 0 : i32
    return %3, %c0_i32, %c0_i32_1 : i32, i32, i32
  }
  func.func @transform_1(%arg0: i32, %arg1: i32) -> (i32, i32) {
    %c0_i32 = arith.constant 0 : i32
    %c0_i32_0 = arith.constant 0 : i32
    %c0_i32_1 = arith.constant 0 : i32
    return %c0_i32, %c0_i32_0 : i32, i32
  }
  func.func @transform_2(%arg0: i32, %arg1: i32) -> (i32, i32) {
    %c0_i32 = arith.constant 0 : i32
    %c0_i32_0 = arith.constant 0 : i32
    %c0_i32_1 = arith.constant 0 : i32
    return %c0_i32, %c0_i32_0 : i32, i32
  }
  func.func @transform_3(%arg0: i32, %arg1: i32) -> (i32, i32) {
    %c0_i32 = arith.constant 0 : i32
    %c0_i32_0 = arith.constant 0 : i32
    %c0_i32_1 = arith.constant 0 : i32
    return %c0_i32, %c0_i32_0 : i32, i32
  }
  func.func @transform_4(%arg0: i32, %arg1: i32) -> (i32, i32, i32) {
    %0 = arith.muli %arg0, %arg1 : i32
    %c0_i32 = arith.constant 0 : i32
    %c0_i32_0 = arith.constant 0 : i32
    %c0_i32_1 = arith.constant 0 : i32
    return %0, %c0_i32, %c0_i32_0 : i32, i32, i32
  }
}

</mosaic_0001>

<bundles_post_ra>
// kernel: inception_forward.2
= control target key start
LH: loop header
LB: loop body
LE: loop exit
PB: predicated region body
PF: predicated region fallthrough
CT: control target
= control target key end

     0   :  { %s1243_s15 = smov 0   ;;  %s1245_s16 = smov 0   ;;  %s1787_s0 = inlined_call_operand.vmem [shape: bf16[2,256,4], index: 0, kind: input, shape index: {}]   ;;  %s1788_s1 = inlined_call_operand.vmem [shape: bf16[4,24], index: 1, kind: input, shape index: {}]   ;;  %s1789_s2 = inlined_call_operand.vmem [shape: f32[1,24], index: 2, kind: input, shape index: {}]   ;;  %s1790_s3 = inlined_call_operand.vmem [shape: f32[1,24], index: 3, kind: input, shape index: {}]   ;;  %s1791_s4 = inlined_call_operand.vmem [shape: bf16[2,256,24], index: 4, kind: output, shape index: {}]  }
   0x1   :  { %s1247_s17 = smov 0   ;;  %s1249_s18 = smov 0  }
   0x2   :  { %s1251_s19 = smov 0  }
   0x3 LB: > { %s23_s20 = sadd.s32 1, %s1207_s17  ;;  %s26_s21 = sadd.s32 1, %s1211_s18  ;;  %s1215_s19 = sphi %s1251_s19, %s14_s19   ;;  %s1211_s18 = sphi %s1249_s18, %s1795_s18   ;;  %s1207_s17 = sphi %s1247_s17, %s1794_s17   ;;  %s1203_s16 = sphi %s1245_s16, %s1793_s16   ;;  %s1199_s15 = sphi %s1243_s15, %s1792_s15  }
   0x4   : > { %p24_p0 = scmp.ge.s32.totalorder %s23_s20, 2  ;;  %p1021_p1 = scmp.ge.s32.totalorder %s1215_s19, 1 }
   0x5   : > { %p188_p2 = scmp.lt.s32.totalorder %s1215_s19, 5 }
   0x6   : > { %s1797_s20 = smov (%p24_p0, %s23_s20), 0  ;;  %s1799_s21 = smov (!%p24_p0, %s26_s21), %s1211_s18 }
   0x7   : > { %p189_p3 = pnand %p1021_p1, %p188_p2  ;;  %p28_p4 = scmp.ge.s32.totalorder %s1799_s21, 2 }
   0x8   : > { %s218_s22 = ssub.s32 (!%p189_p3), 1, %s1203_s16  ;;  %s229_s23 = smul.u32 (!%p189_p3), %s1199_s15, %s1203_s16 }
   0x9   : > { %s1801_s21 = smov (%p28_p4, %s1799_s21), 0  ;;  %192 = sbr.rel (%p189_p3) target bundleno = 364 (0x16c), region = 36 }
   0xa   : > { %s219_s24 = smul.u32 (!%p189_p3), %s1199_s15, %s218_s22  ;;  %p230_p5 = scmp.lt.s32.totalorder (!%p189_p3), %s229_s23, 1 }
   0xb   : > { %p1026_p7 = scmp.ne.s32.totalorder (!%p189_p3), %s1203_s16, 0 }
   0xc   : > { %s220_s25 = sadd.s32 (!%p189_p3), %s1203_s16, %s219_s24 }
   0xd   : > { %p221_p6 = scmp.lt.s32.totalorder (!%p189_p3), %s220_s25, 1 }
   0xe   : > { %s1803_s23 = smov (!%p230_p5, %s229_s23), 1  ;;  %240 = sbr.rel (%p1026_p7) target bundleno = 282 (0x11a), region = 40 }
   0xf   : > { %s1805_s25 = smov (!%p221_p6, %s220_s25), 1  ;;  %s1114_s26 = sshll.u32 %s1803_s23, 7 }
  0x10   : > { %s1113_s27 = sshll.u32 %s1805_s25, 7  ;;  %s1285_s30 = scalar_lea.vmem %s1791_s4, %s1114_s26 }
  0x11   : > { %s1290_s7 = scalar_lea.vmem %s1787_s0, %s1113_s27  ;;  %p1027_p8 = scmp.ne.s32.totalorder (!%p1026_p7), %s1199_s15, 0 }
  0x13   : > { %244 = sbr.rel (%p1027_p8) target bundleno = 27 (0x1b), region = 44 }
  0x18   : > { %vm245_vm0 = vcmask 188416   ;;  %v1217_v0 = vmov 0.0  }
  0x19   : > { %246 = vst.msk [vmem:[#allocation3] sm:$0x1] %vm245_vm0, %v1217_v0 }
  0x1a   : > { %247 = vst.msk [vmem:[#allocation4] sm:$0x1] %vm245_vm0, %v1217_v0 }
  0x1b PF: > { %v280_v1 = vld [vmem:[%s1788_s1] sm:$0x3]  ;;  %vm410_vm1 = vcmask 1041408   ;;  %vm361_vm2 = vcmask 31744   ;;  %v1116_v7 = vld [vmem:[%s1290_s7 + $0x8] sm:$0xff]  ;;  %v1117_v11 = vld [vmem:[%s1290_s7 + $0x10] sm:$0xff] }
  0x1c   : > { %v412_v2 = vsel %vm410_vm1, %v280_v1, 0  ;;  %v1115_v3 = vld [vmem:[%s1290_s7] sm:$0xff]  ;;  %v1120_v8 = vld [vmem:[%s1290_s7 + $0x28] sm:$0xff]  ;;  %v1121_v12 = vld [vmem:[%s1290_s7 + $0x30] sm:$0xff]  ;;  %s1108_s10 = sshll.u32 %s1199_s15, 8  ;;  %vm505_vm3 = vcmask 195584  }
  0x1d   : > { %v1119_v4 = vld [vmem:[%s1290_s7 + $0x20] sm:$0xff]  ;;  %421 = vmatpush.bf16.msra.mxu0 %v412_v2  ;;  %1131 = vmatpush.bf16.msra.mxu1 %v412_v2  ;;  %v1124_v9 = vld [vmem:[%s1290_s7 + $0x48] sm:$0xff]  ;;  %v1125_v13 = vld [vmem:[%s1290_s7 + $0x50] sm:$0xff]  ;;  %s1332_s11 = scalar_lea.vmem [#allocation2], %s1108_s10  ;;  %vm609_vm4 = vcmask 188416  }
  0x1e   : > { %v1123_v5 = vld [vmem:[%s1290_s7 + $0x40] sm:$0xff]  ;;  %1132 = vmatpush.bf16.msra.mxu2 %v412_v2  ;;  %1133 = vmatpush.bf16.msra.mxu3 %v412_v2  ;;  %v1128_v10 = vld [vmem:[%s1290_s7 + $0x68] sm:$0xff]  ;;  %v1129_v14 = vld [vmem:[%s1290_s7 + $0x70] sm:$0xff] }
  0x1f   : > { %v1127_v6 = vld [vmem:[%s1290_s7 + $0x60] sm:$0xff]  ;;  %v1118_v15 = vld [vmem:[%s1290_s7 + $0x18] sm:$0xff] }
  0x20   : > { %1092 = vmatmul.msk.bf16.vlgmr.msra.gmra.mxu0 %vm361_vm2, %v1115_v3  ;;  %1096 = vmatmul.msk.bf16.vlgmr.msra.gmra.mxu1 %vm361_vm2, %v1119_v4  ;;  %v1122_v16 = vld [vmem:[%s1290_s7 + $0x38] sm:$0xff] }
  0x21   : > { %1100 = vmatmul.msk.bf16.vlgmr.msra.gmra.mxu2 %vm361_vm2, %v1123_v5  ;;  %1104 = vmatmul.msk.bf16.vlgmr.msra.gmra.mxu3 %vm361_vm2, %v1127_v6  ;;  %v1126_v17 = vld [vmem:[%s1290_s7 + $0x58] sm:$0xff] }
  0x22   : > { %v1130_v18 = vld [vmem:[%s1290_s7 + $0x78] sm:$0xff] }
  0x30   : > { %1093 = vmatmul.msk.bf16.gmra.mxu0 %vm361_vm2, %v1116_v7  ;;  %1097 = vmatmul.msk.bf16.gmra.mxu1 %vm361_vm2, %v1120_v8 }
  0x31   : > { %1101 = vmatmul.msk.bf16.gmra.mxu2 %vm361_vm2, %v1124_v9  ;;  %1105 = vmatmul.msk.bf16.gmra.mxu3 %vm361_vm2, %v1128_v10 }
  0x40   : > { %1094 = vmatmul.msk.bf16.gmra.mxu0 %vm361_vm2, %v1117_v11  ;;  %1098 = vmatmul.msk.bf16.gmra.mxu1 %vm361_vm2, %v1121_v12 }
  0x41   : > { %1102 = vmatmul.msk.bf16.gmra.mxu2 %vm361_vm2, %v1125_v13  ;;  %1106 = vmatmul.msk.bf16.gmra.mxu3 %vm361_vm2, %v1129_v14 }
  0x50   : > { %1095 = vmatmul.msk.bf16.gmra.mxu0 %vm361_vm2, %v1118_v15  ;;  %1099 = vmatmul.msk.bf16.gmra.mxu1 %vm361_vm2, %v1122_v16 }
  0x51   : > { %1103 = vmatmul.msk.bf16.gmra.mxu2 %vm361_vm2, %v1126_v17  ;;  %1107 = vmatmul.msk.bf16.gmra.mxu3 %vm361_vm2, %v1130_v18 }
  0x9d   : > { %v423_v19 = vpop.f32.mrf.mxu0  ;;  %v1330_v20 = vpop.f32.mrf.mxu1 }
  0x9e   : > { %506 = vst.msk [vmem:[%s1332_s11] sm:$0xff] %vm505_vm3, %v423_v19  ;;  %v612_v42 = vmul.f32 %v423_v19, %v423_v19  ;;  %v539_v45 = vsel %vm505_vm3, %v423_v19, 0.0  ;;  %v620_v16 = vmul.f32 %v1330_v20, %v1330_v20 }
  0x9f   : > { %514 = vst.msk [vmem:[%s1332_s11 + $0x40] sm:$0xff] %vm505_vm3, %v1330_v20 }
  0xa0   : > { %v644_v50 = vsel %vm505_vm3, %v612_v42, 0.0 }
  0xa4   : > { %v1339_v21 = vpop.f32.mrf.mxu2  ;;  %v1348_v24 = vpop.f32.mrf.mxu3 }
  0xa5   : > { %v425_v22 = vpop.f32.mrf.mxu0  ;;  %v1341_v23 = vpop.f32.mrf.mxu1  ;;  %522 = vst.msk [vmem:[%s1332_s11 + $0x80] sm:$0xff] %vm505_vm3, %v1339_v21 }
  0xa6   : > { %507 = vst.msk [vmem:[%s1332_s11 + $0x8] sm:$0xff] %vm505_vm3, %v425_v22  ;;  %v613_v40 = vmul.f32 %v425_v22, %v425_v22  ;;  %v540_v43 = vsel %vm505_vm3, %v425_v22, 0.0 }
  0xa7   : > { %515 = vst.msk [vmem:[%s1332_s11 + $0x48] sm:$0xff] %vm505_vm3, %v1341_v23  ;;  %v541_v49 = vadd.f32 %v540_v43, %v539_v45  ;;  %v659_v43 = vsel %vm505_vm3, %v620_v16, 0.0 }
  0xa8   : > { %530 = vst.msk [vmem:[%s1332_s11 + $0xc0] sm:$0xff] %vm505_vm3, %v1348_v24  ;;  %v645_v46 = vsel %vm505_vm3, %v613_v40, 0.0 }
  0xa9   : > { %v646_v55 = vadd.f32 %v645_v46, %v644_v50 }
  0xac   : > { %v1356_v25 = vpop.f32.mrf.mxu2  ;;  %v1365_v28 = vpop.f32.mrf.mxu3 }
  0xad   : > { %v428_v26 = vpop.f32.mrf.mxu0  ;;  %v1358_v27 = vpop.f32.mrf.mxu1  ;;  %523 = vst.msk [vmem:[%s1332_s11 + $0x88] sm:$0xff] %vm505_vm3, %v1356_v25  ;;  %v629_v16 = vmul.f32 %v1356_v25, %v1356_v25 }
  0xae   : > { %508 = vst.msk [vmem:[%s1332_s11 + $0x10] sm:$0xff] %vm505_vm3, %v428_v26  ;;  %v614_v44 = vmul.f32 %v428_v26, %v428_v26  ;;  %v542_v47 = vsel %vm505_vm3, %v428_v26, 0.0  ;;  %v622_v45 = vmul.f32 %v1358_v27, %v1358_v27 }
  0xaf   : > { %516 = vst.msk [vmem:[%s1332_s11 + $0x50] sm:$0xff] %vm505_vm3, %v1358_v27  ;;  %v543_v56 = vadd.f32 %v542_v47, %v541_v49 }
  0xb0   : > { %531 = vst.msk [vmem:[%s1332_s11 + $0xc8] sm:$0xff] %vm505_vm3, %v1365_v28  ;;  %v647_v51 = vsel %vm505_vm3, %v614_v44, 0.0  ;;  %v556_v44 = vsel %vm505_vm3, %v1341_v23, 0.0 }
  0xb1   : > { %v648_v63 = vadd.f32 %v647_v51, %v646_v55 }
  0xb4   : > { %v1373_v29 = vpop.f32.mrf.mxu2  ;;  %v1382_v32 = vpop.f32.mrf.mxu3 }
  0xb5   : > { %v430_v30 = vpop.f32.mrf.mxu0  ;;  %v1375_v31 = vpop.f32.mrf.mxu1  ;;  %524 = vst.msk [vmem:[%s1332_s11 + $0x90] sm:$0xff] %vm505_vm3, %v1373_v29 }
  0xb6   : > { %509 = vst.msk [vmem:[%s1332_s11 + $0x18] sm:$0xff] %vm505_vm3, %v430_v30  ;;  %v615_v48 = vmul.f32 %v430_v30, %v430_v30  ;;  %v544_v52 = vsel %vm505_vm3, %v430_v30, 0.0  ;;  %v554_v30 = vsel %vm505_vm3, %v1330_v20, 0.0  ;;  %v623_v49 = vmul.f32 %v1375_v31, %v1375_v31 }
  0xb7   : > { %517 = vst.msk [vmem:[%s1332_s11 + $0x58] sm:$0xff] %vm505_vm3, %v1375_v31  ;;  %v545_v0 = vadd.f32 %v544_v52, %v543_v56 }
  0xb8   : > { %532 = vst.msk [vmem:[%s1332_s11 + $0xd0] sm:$0xff] %vm505_vm3, %v1382_v32  ;;  %v649_v59 = vsel %vm505_vm3, %v615_v48, 0.0  ;;  %v558_v48 = vsel %vm505_vm3, %v1358_v27, 0.0 }
  0xb9   : > { %v650_v4 = vadd.f32 %v649_v59, %v648_v63  ;;  %v665_v59 = vsel %vm505_vm3, %v623_v49, 0.0 }
  0xbc   : > { %v1390_v33 = vpop.f32.mrf.mxu2  ;;  %v1399_v36 = vpop.f32.mrf.mxu3 }
  0xbd   : > { %v433_v34 = vpop.f32.mrf.mxu0  ;;  %v1392_v35 = vpop.f32.mrf.mxu1  ;;  %525 = vst.msk [vmem:[%s1332_s11 + $0x98] sm:$0xff] %vm505_vm3, %v1390_v33 }
  0xbe   : > { %510 = vst.msk [vmem:[%s1332_s11 + $0x20] sm:$0xff] %vm505_vm3, %v433_v34  ;;  %v616_v53 = vmul.f32 %v433_v34, %v433_v34  ;;  %v546_v60 = vsel %vm505_vm3, %v433_v34, 0.0  ;;  %v621_v34 = vmul.f32 %v1341_v23, %v1341_v23  ;;  %v663_v23 = vsel %vm505_vm3, %v622_v45, 0.0 }
  0xbf   : > { %518 = vst.msk [vmem:[%s1332_s11 + $0x60] sm:$0xff] %vm505_vm3, %v1392_v35  ;;  %v547_v5 = vadd.f32 %v546_v60, %v545_v0  ;;  %v624_v55 = vmul.f32 %v1392_v35, %v1392_v35  ;;  %v562_v60 = vsel %vm505_vm3, %v1392_v35, 0.0 }
  0xc0   : > { %533 = vst.msk [vmem:[%s1332_s11 + $0xd8] sm:$0xff] %vm505_vm3, %v1399_v36  ;;  %v651_v1 = vsel %vm505_vm3, %v616_v53, 0.0  ;;  %v661_v47 = vsel %vm505_vm3, %v621_v34, 0.0  ;;  %v560_v53 = vsel %vm505_vm3, %v1375_v31, 0.0 }
  0xc1   : > { %v652_v8 = vadd.f32 %v651_v1, %v650_v4  ;;  %v667_v0 = vsel %vm505_vm3, %v624_v55, 0.0 }
  0xc4   : > { %v1407_v37 = vpop.f32.mrf.mxu2  ;;  %v1416_v41 = vpop.f32.mrf.mxu3 }
  0xc5   : > { %v435_v38 = vpop.f32.mrf.mxu0  ;;  %v1409_v39 = vpop.f32.mrf.mxu1  ;;  %526 = vst.msk [vmem:[%s1332_s11 + $0xa0] sm:$0xff] %vm505_vm3, %v1407_v37  ;;  %v632_v45 = vmul.f32 %v1407_v37, %v1407_v37 }
  0xc6   : > { %511 = vst.msk [vmem:[%s1332_s11 + $0x28] sm:$0xff] %vm505_vm3, %v435_v38  ;;  %v617_v61 = vmul.f32 %v435_v38, %v435_v38  ;;  %v548_v2 = vsel %vm505_vm3, %v435_v38, 0.0  ;;  %v564_v1 = vsel %vm505_vm3, %v1409_v39, 0.0 }
  0xc7   : > { %519 = vst.msk [vmem:[%s1332_s11 + $0x68] sm:$0xff] %vm505_vm3, %v1409_v39  ;;  %v549_v9 = vadd.f32 %v548_v2, %v547_v5 }
  0xc8   : > { %534 = vst.msk [vmem:[%s1332_s11 + $0xe0] sm:$0xff] %vm505_vm3, %v1416_v41  ;;  %v653_v6 = vsel %vm505_vm3, %v617_v61, 0.0  ;;  %v625_v61 = vmul.f32 %v1409_v39, %v1409_v39 }
  0xc9   : > { %v654_v12 = vadd.f32 %v653_v6, %v652_v8 }
  0xca   : > { %v669_v5 = vsel %vm505_vm3, %v625_v61, 0.0  ;;  %v636_v61 = vmul.f32 %v1348_v24, %v1348_v24 }
  0xcc   : > { %v1431_v54 = vpop.f32.mrf.mxu2  ;;  %v1442_v62 = vpop.f32.mrf.mxu3 }
  0xcd   : > { %v438_v57 = vpop.f32.mrf.mxu0  ;;  %v1433_v58 = vpop.f32.mrf.mxu1  ;;  %527 = vst.msk [vmem:[%s1332_s11 + $0xa8] sm:$0xff] %vm505_vm3, %v1431_v54 }
  0xce   : > { %512 = vst.msk [vmem:[%s1332_s11 + $0x30] sm:$0xff] %vm505_vm3, %v438_v57  ;;  %v618_v3 = vmul.f32 %v438_v57, %v438_v57  ;;  %v550_v7 = vsel %vm505_vm3, %v438_v57, 0.0  ;;  %v626_v2 = vmul.f32 %v1433_v58, %v1433_v58  ;;  %v566_v35 = vsel %vm505_vm3, %v1433_v58, 0.0 }
  0xcf   : > { %520 = vst.msk [vmem:[%s1332_s11 + $0x70] sm:$0xff] %vm505_vm3, %v1433_v58  ;;  %v551_v13 = vadd.f32 %v550_v7, %v549_v9  ;;  %v628_v9 = vmul.f32 %v1339_v21, %v1339_v21 }
  0xd0   : > { %535 = vst.msk [vmem:[%s1332_s11 + $0xe8] sm:$0xff] %vm505_vm3, %v1442_v62  ;;  %v655_v10 = vsel %vm505_vm3, %v618_v3, 0.0 }
  0xd1   : > { %v656_v22 = vadd.f32 %v655_v10, %v654_v12  ;;  %v671_v10 = vsel %vm505_vm3, %v626_v2, 0.0 }
  0xd4   : > { %v1455_v11 = vpop.f32.mrf.mxu2  ;;  %v1465_v19 = vpop.f32.mrf.mxu3 }
  0xd5   : > { %v440_v14 = vpop.f32.mrf.mxu0  ;;  %v460_v15 = vpop.f32.mrf.mxu1  ;;  %528 = vst.msk [vmem:[%s1332_s11 + $0xb0] sm:$0xff] %vm505_vm3, %v1455_v11 }
  0xd6   : > { %513 = vst.msk [vmem:[%s1332_s11 + $0x38] sm:$0xff] %vm505_vm3, %v440_v14  ;;  %v552_v17 = vsel %vm505_vm3, %v440_v14, 0.0  ;;  %v619_v18 = vmul.f32 %v440_v14, %v440_v14  ;;  %v627_v6 = vmul.f32 %v460_v15, %v460_v15  ;;  %v568_v39 = vsel %vm505_vm3, %v460_v15, 0.0 }
  0xd7   : > { %v553_v26 = vadd.f32 %v552_v17, %v551_v13  ;;  %521 = vst.msk [vmem:[%s1332_s11 + $0x78] sm:$0xff] %vm505_vm3, %v460_v15  ;;  %v570_v14 = vsel %vm505_vm3, %v1339_v21, 0.0  ;;  %v630_v15 = vmul.f32 %v1373_v29, %v1373_v29  ;;  %v574_v21 = vsel %vm505_vm3, %v1373_v29, 0.0 }
  0xd8   : > { %v657_v38 = vsel %vm505_vm3, %v619_v18, 0.0  ;;  %536 = vst.msk [vmem:[%s1332_s11 + $0xf0] sm:$0xff] %vm505_vm3, %v1465_v19  ;;  %v673_v58 = vsel %vm505_vm3, %v627_v6, 0.0  ;;  %v578_v29 = vsel %vm505_vm3, %v1407_v37, 0.0  ;;  %v582_v37 = vsel %vm505_vm3, %v1455_v11, 0.0 }
  0xd9   : > { %v555_v40 = vadd.f32 %v554_v30, %v553_v26  ;;  %v658_v42 = vadd.f32 %v657_v38, %v656_v22  ;;  %v675_v22 = vsel %vm505_vm3, %v628_v9, 0.0  ;;  %v572_v26 = vsel %vm505_vm3, %v1356_v25, 0.0 }
  0xda   : > { %v677_v38 = vsel %vm505_vm3, %v629_v16, 0.0  ;;  %v576_v25 = vsel %vm505_vm3, %v1390_v33, 0.0  ;;  %v639_v9 = vmul.f32 %v1399_v36, %v1399_v36 }
  0xdb   : > { %v557_v20 = vadd.f32 %v556_v44, %v555_v40  ;;  %v660_v46 = vadd.f32 %v659_v43, %v658_v42  ;;  %v631_v40 = vmul.f32 %v1390_v33, %v1390_v33  ;;  %v679_v44 = vsel %vm505_vm3, %v630_v15, 0.0 }
  0xdc   : > { %v1487_v50 = vpop.f32.mrf.mxu2  ;;  %v1497_v56 = vpop.f32.mrf.mxu3  ;;  %v580_v33 = vsel %vm505_vm3, %v1431_v54, 0.0  ;;  %v642_v15 = vmul.f32 %v1465_v19, %v1465_v19 }
  0xdd   : > { %v559_v51 = vadd.f32 %v558_v48, %v557_v20  ;;  %v662_v52 = vadd.f32 %v661_v47, %v660_v46  ;;  %529 = vst.msk [vmem:[%s1332_s11 + $0xb8] sm:$0xff] %vm505_vm3, %v1487_v50  ;;  %v681_v47 = vsel %vm505_vm3, %v631_v40, 0.0  ;;  %v633_v48 = vmul.f32 %v1431_v54, %v1431_v54 }
  0xde   : > { %537 = vst.msk [vmem:[%s1332_s11 + $0xf8] sm:$0xff] %vm505_vm3, %v1497_v56 }
  0xdf   : > { %v664_v27 = vadd.f32 %v663_v23, %v662_v52  ;;  %v561_v57 = vadd.f32 %v560_v53, %v559_v51  ;;  %v683_v52 = vsel %vm505_vm3, %v632_v45, 0.0  ;;  %v634_v23 = vmul.f32 %v1455_v11, %v1455_v11 }
  0xe0   : > { %v637_v11 = vmul.f32 %v1365_v28, %v1365_v28 }
  0xe1   : > { %v563_v63 = vadd.f32 %v562_v60, %v561_v57  ;;  %v666_v31 = vadd.f32 %v665_v59, %v664_v27  ;;  %v685_v27 = vsel %vm505_vm3, %v633_v48, 0.0  ;;  %v635_v57 = vmul.f32 %v1487_v50, %v1487_v50 }
  0xe2   : > { %v687_v54 = vsel %vm505_vm3, %v634_v23, 0.0  ;;  %v538_v23 = vld [vmem:[#allocation3] sm:$0x1] }
  0xe3   : > { %v565_v3 = vadd.f32 %v564_v1, %v563_v63  ;;  %v668_v4 = vadd.f32 %v667_v0, %v666_v31  ;;  %v584_v63 = vsel %vm505_vm3, %v1487_v50, 0.0  ;;  %v586_v1 = vsel %vm505_vm3, %v1348_v24, 0.0 }
  0xe4   : > { %v689_v2 = vsel %vm505_vm3, %v635_v57, 0.0  ;;  %v638_v50 = vmul.f32 %v1382_v32, %v1382_v32  ;;  %v590_v24 = vsel %vm505_vm3, %v1382_v32, 0.0  ;;  %v594_v32 = vsel %vm505_vm3, %v1416_v41, 0.0 }
  0xe5   : > { %v567_v7 = vadd.f32 %v566_v35, %v565_v3  ;;  %v670_v8 = vadd.f32 %v669_v5, %v668_v4  ;;  %v691_v5 = vsel %vm505_vm3, %v636_v61, 0.0  ;;  %v588_v35 = vsel %vm505_vm3, %v1365_v28, 0.0 }
  0xe6   : > { %v592_v28 = vsel %vm505_vm3, %v1399_v36, 0.0  ;;  %v596_v36 = vsel %vm505_vm3, %v1442_v62, 0.0 }
  0xe7   : > { %v672_v12 = vadd.f32 %v671_v10, %v670_v8  ;;  %v569_v13 = vadd.f32 %v568_v39, %v567_v7  ;;  %v693_v8 = vsel %vm505_vm3, %v637_v11, 0.0 }
  0xe9   : > { %v571_v17 = vadd.f32 %v570_v14, %v569_v13  ;;  %v674_v18 = vadd.f32 %v673_v58, %v672_v12  ;;  %v695_v12 = vsel %vm505_vm3, %v638_v50, 0.0  ;;  %v640_v13 = vmul.f32 %v1416_v41, %v1416_v41 }
  0xea   : > { %v697_v58 = vsel %vm505_vm3, %v639_v9, 0.0  ;;  %v598_v41 = vsel %vm505_vm3, %v1465_v19, 0.0 }
  0xeb   : > { %v573_v30 = vadd.f32 %v572_v26, %v571_v17  ;;  %v676_v34 = vadd.f32 %v675_v22, %v674_v18  ;;  %v641_v17 = vmul.f32 %v1442_v62, %v1442_v62  ;;  %v699_v26 = vsel %vm505_vm3, %v640_v13, 0.0 }
  0xec   : > { %v600_v62 = vsel %vm505_vm3, %v1497_v56, 0.0 }
  0xed   : > { %v575_v42 = vadd.f32 %v574_v21, %v573_v30  ;;  %v678_v43 = vadd.f32 %v677_v38, %v676_v34  ;;  %v701_v38 = vsel %vm505_vm3, %v641_v17, 0.0  ;;  %v643_v21 = vmul.f32 %v1497_v56, %v1497_v56 }
  0xef   : > { %v680_v20 = vadd.f32 %v679_v44, %v678_v43  ;;  %v577_v46 = vadd.f32 %v576_v25, %v575_v42  ;;  %v703_v43 = vsel %vm505_vm3, %v642_v15, 0.0  ;;  %v705_v45 = vsel %vm505_vm3, %v643_v21, 0.0 }
  0xf1   : > { %v579_v49 = vadd.f32 %v578_v29, %v577_v46  ;;  %v682_v51 = vadd.f32 %v681_v47, %v680_v20 }
  0xf3   : > { %v581_v53 = vadd.f32 %v580_v33, %v579_v49  ;;  %v684_v55 = vadd.f32 %v683_v52, %v682_v51 }
  0xf5   : > { %v686_v59 = vadd.f32 %v685_v27, %v684_v55  ;;  %v583_v60 = vadd.f32 %v582_v37, %v581_v53  ;;  %v611_v27 = vld [vmem:[#allocation4] sm:$0x1] }
  0xf7   : > { %v688_v31 = vadd.f32 %v687_v54, %v686_v59  ;;  %v585_v0 = vadd.f32 %v584_v63, %v583_v60 }
  0xf9   : > { %v587_v3 = vadd.f32 %v586_v1, %v585_v0  ;;  %v690_v4 = vadd.f32 %v689_v2, %v688_v31 }
  0xfb   : > { %v589_v6 = vadd.f32 %v588_v35, %v587_v3  ;;  %v692_v7 = vadd.f32 %v691_v5, %v690_v4 }
  0xfd   : > { %v591_v10 = vadd.f32 %v590_v24, %v589_v6  ;;  %v694_v39 = vadd.f32 %v693_v8, %v692_v7 }
  0xff   : > { %v696_v14 = vadd.f32 %v695_v12, %v694_v39  ;;  %v593_v16 = vadd.f32 %v592_v28, %v591_v10 }
 0x101   : > { %v595_v18 = vadd.f32 %v594_v32, %v593_v16  ;;  %v698_v22 = vadd.f32 %v697_v58, %v696_v14 }
 0x103   : > { %v597_v30 = vadd.f32 %v596_v36, %v595_v18  ;;  %v700_v34 = vadd.f32 %v699_v26, %v698_v22 }
 0x105   : > { %v702_v40 = vadd.f32 %v701_v38, %v700_v34  ;;  %v599_v42 = vadd.f32 %v598_v41, %v597_v30 }
 0x107   : > { %v704_v44 = vadd.f32 %v703_v43, %v702_v40  ;;  %v601_v25 = vadd.f32 %v600_v62, %v599_v42 }
 0x109   : > { %v602_v20 = vrot.slane %v601_v25, 4  ;;  %v706_v46 = vadd.f32 %v705_v45, %v704_v44 }
 0x10b   : > { %v603_v47 = vadd.f32 %v602_v20, %v601_v25  ;;  %v707_v29 = vrot.slane %v706_v46, 4 }
 0x10d   : > { %v604_v48 = vrot.slane %v603_v47, 2  ;;  %v708_v19 = vadd.f32 %v707_v29, %v706_v46 }
 0x10f   : > { %v605_v49 = vadd.f32 %v604_v48, %v603_v47  ;;  %v709_v51 = vrot.slane %v708_v19, 2 }
 0x111   : > { %v606_v52 = vrot.slane %v605_v49, 1  ;;  %v710_v33 = vadd.f32 %v709_v51, %v708_v19 }
 0x113   : > { %v607_v53 = vadd.f32 %v606_v52, %v605_v49  ;;  %v711_v55 = vrot.slane %v710_v33, 1 }
 0x115   : > { %v608_v56 = vadd.f32 %v607_v53, %v538_v23  ;;  %v712_v37 = vadd.f32 %v711_v55, %v710_v33 }
 0x117   : > { %610 = vst.msk [vmem:[#allocation3] sm:$0x1] %vm609_vm4, %v608_v56  ;;  %v713_v57 = vadd.f32 %v712_v37, %v611_v27 }
 0x119   : > { %714 = vst.msk [vmem:[#allocation4] sm:$0x1] %vm609_vm4, %v713_v57 }
 0x11a PF: > { %p1109_p9 = scmp.ne.s32.totalorder %s1203_s16, 1 }
 0x11b   : > { %s1110_s12 = sshll.u32 (!%p1109_p9), %s1199_s15, 8 }
 0x11c   : > { %718 = sbr.rel (%p1109_p9) target bundleno = 364 (0x16c), region = 48  ;;  %s1606_s23 = scalar_lea.vmem (!%p1109_p9), [#allocation2], %s1110_s12 }
 0x121   : > { %v719_v59 = vld [vmem:[#allocation3] sm:$0x1]  ;;  %v721_v60 = vld [vmem:[#allocation4] sm:$0x1]  ;;  %v745_v9 = vld [vmem:[%s1606_s23 + $0x8] sm:$0xff]  ;;  %vm910_vm8 = vcmask 191488  }
 0x122   : > { %v720_v61 = vmul.f32 0.001953125, %v719_v59  ;;  %v722_v54 = vmul.f32 0.001953125, %v721_v60  ;;  %v737_v50 = vld [vmem:[%s1789_s2] sm:$0x1]  ;;  %v746_v10 = vld [vmem:[%s1606_s23 + $0x10] sm:$0xff]  ;;  %v747_v39 = vld [vmem:[%s1606_s23 + $0x18] sm:$0xff] }
 0x123   : > { %v739_v8 = vld [vmem:[%s1790_s3] sm:$0x1]  ;;  %v749_v14 = vld [vmem:[%s1606_s23 + $0x28] sm:$0xff]  ;;  %v750_v16 = vld [vmem:[%s1606_s23 + $0x30] sm:$0xff] }
 0x124   : > { %v723_v63 = vmul.f32 %v720_v61, %v720_v61  ;;  %v744_v24 = vld [vmem:[%s1606_s23] sm:$0xff]  ;;  %v751_v58 = vld [vmem:[%s1606_s23 + $0x38] sm:$0xff]  ;;  %v753_v17 = vld [vmem:[%s1606_s23 + $0x48] sm:$0xff] }
 0x125   : > { %v748_v12 = vld [vmem:[%s1606_s23 + $0x20] sm:$0xff]  ;;  %v754_v18 = vld [vmem:[%s1606_s23 + $0x50] sm:$0xff]  ;;  %v755_v30 = vld [vmem:[%s1606_s23 + $0x58] sm:$0xff] }
 0x126   : > { %v724_v31 = vsub.f32 %v722_v54, %v723_v63  ;;  %v752_v32 = vld [vmem:[%s1606_s23 + $0x40] sm:$0xff]  ;;  %v757_v38 = vld [vmem:[%s1606_s23 + $0x68] sm:$0xff] }
 0x127   : > { %v756_v34 = vld [vmem:[%s1606_s23 + $0x60] sm:$0xff] }
 0x128   : > { %v725_v0 = vmax.f32 %v724_v31, 0.0 }
 0x12a   : > { %v726_v1 = vadd.f32 1e-05, %v725_v0  ;;  %v758_v0 = vld [vmem:[%s1606_s23 + $0x70] sm:$0xff] }
 0x12c   : > { %1175 = vrsqrt.f32 %v726_v1  ;;  %vm733_vm5 = vweird.f32 %v726_v1 }
 0x132   : > { %v1176_v11 = vpop.eup %1175 }
 0x133   : > { %v728_v2 = vmul.f32 %v1176_v11, %v726_v1  ;;  %vm734_vm6 = vweird.f32 %v1176_v11  ;;  %v759_v1 = vld [vmem:[%s1606_s23 + $0x78] sm:$0xff] }
 0x134   : > { %vm735_vm7 = vmor %vm733_vm5, %vm734_vm6 }
 0x135   : > { %v729_v3 = vmul.f32 %v1176_v11, %v728_v2 }
 0x137   : > { %v730_v4 = vmul.f32 0.5, %v729_v3 }
 0x139   : > { %v731_v5 = vsub.f32 1.5, %v730_v4 }
 0x13b   : > { %v732_v35 = vmul.f32 %v1176_v11, %v731_v5 }
 0x13d   : > { %v736_v6 = vsel %vm735_vm7, %v1176_v11, %v732_v35 }
 0x13e   : > { %v738_v7 = vmul.f32 %v737_v50, %v736_v6 }
 0x140   : > { %v740_v28 = vmul.f32 %v738_v7, %v720_v61  ;;  %v1613_v13 = vperm.slane %v738_v7, 0 }
 0x142   : > { %v741_v22 = vsub.f32 %v739_v8, %v740_v28  ;;  %v779_v26 = vmul.f32 %v1613_v13, %v744_v24  ;;  %v780_v36 = vmul.f32 %v1613_v13, %v745_v9  ;;  %v781_v15 = vmul.f32 %v1613_v13, %v746_v10  ;;  %v760_v10 = vld [vmem:[%s1606_s23 + $0x80] sm:$0xff] }
 0x143   : > { %v782_v41 = vmul.f32 %v1613_v13, %v747_v39  ;;  %v783_v21 = vmul.f32 %v1613_v13, %v748_v12  ;;  %v784_v40 = vmul.f32 %v1613_v13, %v749_v14  ;;  %v785_v42 = vmul.f32 %v1613_v13, %v750_v16  ;;  %v761_v39 = vld [vmem:[%s1606_s23 + $0x88] sm:$0xff] }
 0x144   : > { %v1631_v43 = vperm.slane %v741_v22, 0  ;;  %v786_v62 = vmul.f32 %v1613_v13, %v751_v58  ;;  %v787_v44 = vmul.f32 %v1613_v13, %v752_v32  ;;  %v788_v25 = vmul.f32 %v1613_v13, %v753_v17  ;;  %v762_v22 = vld [vmem:[%s1606_s23 + $0x90] sm:$0xff] }
 0x145   : > { %v789_v45 = vmul.f32 %v1613_v13, %v754_v18  ;;  %v790_v20 = vmul.f32 %v1613_v13, %v755_v30  ;;  %v791_v46 = vmul.f32 %v1613_v13, %v756_v34  ;;  %v792_v47 = vmul.f32 %v1613_v13, %v757_v38  ;;  %v764_v38 = vld [vmem:[%s1606_s23 + $0xa0] sm:$0xff] }
 0x146   : > { %v814_v29 = vadd.f32 %v1631_v43, %v779_v26  ;;  %v815_v48 = vadd.f32 %v1631_v43, %v780_v36  ;;  %v816_v19 = vadd.f32 %v1631_v43, %v781_v15  ;;  %v817_v49 = vadd.f32 %v1631_v43, %v782_v41  ;;  %v763_v26 = vld [vmem:[%s1606_s23 + $0x98] sm:$0xff]  ;;  %v765_v41 = vld [vmem:[%s1606_s23 + $0xa8] sm:$0xff] }
 0x147   : > { %v818_v51 = vadd.f32 %v1631_v43, %v783_v21  ;;  %v819_v52 = vadd.f32 %v1631_v43, %v784_v40  ;;  %v820_v33 = vadd.f32 %v1631_v43, %v785_v42  ;;  %v821_v23 = vadd.f32 %v1631_v43, %v786_v62 }
 0x148   : > { %v846_v53 = vmax.f32 %v814_v29, 0.0  ;;  %v847_v55 = vmax.f32 %v815_v48, 0.0  ;;  %v848_v27 = vmax.f32 %v816_v19, 0.0  ;;  %v849_v56 = vmax.f32 %v817_v49, 0.0 }
 0x149   : > { %v850_v37 = vmax.f32 %v818_v51, 0.0  ;;  %v851_v57 = vmax.f32 %v819_v52, 0.0  ;;  %v852_v59 = vmax.f32 %v820_v33, 0.0  ;;  %v853_v60 = vmax.f32 %v821_v23, 0.0 }
 0x14a   : > { %v878_v61 = vpack.c.bf16 %v846_v53, %v846_v53  ;;  %v879_v54 = vpack.c.bf16 %v847_v55, %v847_v55  ;;  %v880_v63 = vpack.c.bf16 %v848_v27, %v848_v27  ;;  %v881_v31 = vpack.c.bf16 %v849_v56, %v849_v56 }
 0x14b   : > { %v882_v11 = vpack.c.bf16 %v850_v37, %v850_v37  ;;  %v883_v2 = vpack.c.bf16 %v851_v57, %v851_v57  ;;  %v884_v3 = vpack.c.bf16 %v852_v59, %v852_v59  ;;  %v885_v4 = vpack.c.bf16 %v853_v60, %v853_v60  ;;  %v768_v37 = vld [vmem:[%s1606_s23 + $0xc0] sm:$0xff]  ;;  %v769_v57 = vld [vmem:[%s1606_s23 + $0xc8] sm:$0xff] }
 0x14c   : > { %911 = vst.msk [vmem:[%s1285_s30] sm:$0xf] %vm910_vm8, %v878_v61  ;;  %v822_v5 = vadd.f32 %v1631_v43, %v787_v44  ;;  %v823_v35 = vadd.f32 %v1631_v43, %v788_v25  ;;  %v824_v50 = vadd.f32 %v1631_v43, %v789_v45  ;;  %v825_v6 = vadd.f32 %v1631_v43, %v790_v20 }
 0x14d   : > { %912 = vst.msk [vmem:[%s1285_s30 + $0x4] sm:$0xf] %vm910_vm8, %v879_v54  ;;  %v826_v7 = vadd.f32 %v1631_v43, %v791_v46  ;;  %v827_v8 = vadd.f32 %v1631_v43, %v792_v47  ;;  %v793_v24 = vmul.f32 %v1613_v13, %v758_v0  ;;  %v794_v9 = vmul.f32 %v1613_v13, %v759_v1  ;;  %v766_v46 = vld [vmem:[%s1606_s23 + $0xb0] sm:$0xff]  ;;  %v767_v47 = vld [vmem:[%s1606_s23 + $0xb8] sm:$0xff] }
 0x14e   : > { %913 = vst.msk [vmem:[%s1285_s30 + $0x8] sm:$0xf] %vm910_vm8, %v880_v63  ;;  %v854_v12 = vmax.f32 %v822_v5, 0.0  ;;  %v855_v28 = vmax.f32 %v823_v35, 0.0  ;;  %v856_v14 = vmax.f32 %v824_v50, 0.0  ;;  %v857_v16 = vmax.f32 %v825_v6, 0.0 }
 0x14f   : > { %914 = vst.msk [vmem:[%s1285_s30 + $0xc] sm:$0xf] %vm910_vm8, %v881_v31  ;;  %v858_v58 = vmax.f32 %v826_v7, 0.0  ;;  %v859_v32 = vmax.f32 %v827_v8, 0.0  ;;  %v828_v17 = vadd.f32 %v1631_v43, %v793_v24  ;;  %v829_v18 = vadd.f32 %v1631_v43, %v794_v9  ;;  %v772_v5 = vld [vmem:[%s1606_s23 + $0xe0] sm:$0xff]  ;;  %v773_v35 = vld [vmem:[%s1606_s23 + $0xe8] sm:$0xff] }
 0x150   : > { %915 = vst.msk [vmem:[%s1285_s30 + $0x10] sm:$0xf] %vm910_vm8, %v882_v11  ;;  %v886_v36 = vpack.c.bf16 %v854_v12, %v854_v12  ;;  %v887_v15 = vpack.c.bf16 %v855_v28, %v855_v28  ;;  %v888_v30 = vpack.c.bf16 %v856_v14, %v856_v14  ;;  %v889_v34 = vpack.c.bf16 %v857_v16, %v857_v16  ;;  %v770_v11 = vld [vmem:[%s1606_s23 + $0xd0] sm:$0xff]  ;;  %v775_v28 = vld [vmem:[%s1606_s23 + $0xf8] sm:$0xff] }
 0x151   : > { %916 = vst.msk [vmem:[%s1285_s30 + $0x14] sm:$0xf] %vm910_vm8, %v883_v2  ;;  %v890_v21 = vpack.c.bf16 %v858_v58, %v858_v58  ;;  %v891_v40 = vpack.c.bf16 %v859_v32, %v859_v32  ;;  %v860_v42 = vmax.f32 %v828_v17, 0.0  ;;  %v861_v62 = vmax.f32 %v829_v18, 0.0  ;;  %v771_v2 = vld [vmem:[%s1606_s23 + $0xd8] sm:$0xff]  ;;  %v774_v12 = vld [vmem:[%s1606_s23 + $0xf0] sm:$0xff] }
 0x152   : > { %917 = vst.msk [vmem:[%s1285_s30 + $0x18] sm:$0xf] %vm910_vm8, %v884_v3  ;;  %v795_v44 = vmul.f32 %v1613_v13, %v760_v10  ;;  %v796_v25 = vmul.f32 %v1613_v13, %v761_v39  ;;  %v797_v45 = vmul.f32 %v1613_v13, %v762_v22  ;;  %v798_v20 = vmul.f32 %v1613_v13, %v763_v26 }
 0x153   : > { %918 = vst.msk [vmem:[%s1285_s30 + $0x1c] sm:$0xf] %vm910_vm8, %v885_v4  ;;  %v892_v29 = vpack.c.bf16 %v860_v42, %v860_v42  ;;  %v893_v48 = vpack.c.bf16 %v861_v62, %v861_v62  ;;  %v799_v19 = vmul.f32 %v1613_v13, %v764_v38  ;;  %v800_v49 = vmul.f32 %v1613_v13, %v765_v41 }
 0x154   : > { %919 = vst.msk [vmem:[%s1285_s30 + $0x20] sm:$0xf] %vm910_vm8, %v886_v36  ;;  %v830_v51 = vadd.f32 %v1631_v43, %v795_v44  ;;  %v831_v52 = vadd.f32 %v1631_v43, %v796_v25  ;;  %v832_v33 = vadd.f32 %v1631_v43, %v797_v45  ;;  %v833_v23 = vadd.f32 %v1631_v43, %v798_v20 }
 0x155   : > { %920 = vst.msk [vmem:[%s1285_s30 + $0x24] sm:$0xf] %vm910_vm8, %v887_v15  ;;  %v834_v53 = vadd.f32 %v1631_v43, %v799_v19  ;;  %v835_v55 = vadd.f32 %v1631_v43, %v800_v49  ;;  %v801_v27 = vmul.f32 %v1613_v13, %v766_v46  ;;  %v802_v56 = vmul.f32 %v1613_v13, %v767_v47 }
 0x156   : > { %921 = vst.msk [vmem:[%s1285_s30 + $0x28] sm:$0xf] %vm910_vm8, %v888_v30  ;;  %v862_v59 = vmax.f32 %v830_v51, 0.0  ;;  %v863_v60 = vmax.f32 %v831_v52, 0.0  ;;  %v864_v61 = vmax.f32 %v832_v33, 0.0  ;;  %v865_v54 = vmax.f32 %v833_v23, 0.0 }
 0x157   : > { %922 = vst.msk [vmem:[%s1285_s30 + $0x2c] sm:$0xf] %vm910_vm8, %v889_v34  ;;  %v866_v63 = vmax.f32 %v834_v53, 0.0  ;;  %v867_v31 = vmax.f32 %v835_v55, 0.0  ;;  %v836_v0 = vadd.f32 %v1631_v43, %v801_v27  ;;  %v837_v1 = vadd.f32 %v1631_v43, %v802_v56 }
 0x158   : > { %923 = vst.msk [vmem:[%s1285_s30 + $0x30] sm:$0xf] %vm910_vm8, %v890_v21  ;;  %v894_v3 = vpack.c.bf16 %v862_v59, %v862_v59  ;;  %v895_v4 = vpack.c.bf16 %v863_v60, %v863_v60  ;;  %v896_v50 = vpack.c.bf16 %v864_v61, %v864_v61  ;;  %v897_v6 = vpack.c.bf16 %v865_v54, %v865_v54 }
 0x159   : > { %924 = vst.msk [vmem:[%s1285_s30 + $0x34] sm:$0xf] %vm910_vm8, %v891_v40  ;;  %v898_v7 = vpack.c.bf16 %v866_v63, %v866_v63  ;;  %v868_v8 = vmax.f32 %v836_v0, 0.0  ;;  %v803_v24 = vmul.f32 %v1613_v13, %v768_v37  ;;  %v804_v9 = vmul.f32 %v1613_v13, %v769_v57 }
 0x15a   : > { %925 = vst.msk [vmem:[%s1285_s30 + $0x38] sm:$0xf] %vm910_vm8, %v892_v29  ;;  %v805_v10 = vmul.f32 %v1613_v13, %v770_v11  ;;  %v806_v39 = vmul.f32 %v1613_v13, %v771_v2  ;;  %v899_v14 = vpack.c.bf16 %v867_v31, %v867_v31  ;;  %v869_v16 = vmax.f32 %v837_v1, 0.0 }
 0x15b   : > { %926 = vst.msk [vmem:[%s1285_s30 + $0x3c] sm:$0xf] %vm910_vm8, %v893_v48  ;;  %v807_v58 = vmul.f32 %v1613_v13, %v772_v5  ;;  %v808_v32 = vmul.f32 %v1613_v13, %v773_v35  ;;  %v838_v17 = vadd.f32 %v1631_v43, %v803_v24  ;;  %v839_v18 = vadd.f32 %v1631_v43, %v804_v9 }
 0x15c   : > { %927 = vst.msk [vmem:[%s1285_s30 + $0x40] sm:$0xf] %vm910_vm8, %v894_v3  ;;  %v840_v22 = vadd.f32 %v1631_v43, %v805_v10  ;;  %v841_v26 = vadd.f32 %v1631_v43, %v806_v39  ;;  %v809_v30 = vmul.f32 %v1613_v13, %v774_v12  ;;  %v810_v34 = vmul.f32 %v1613_v13, %v775_v28 }
 0x15d   : > { %928 = vst.msk [vmem:[%s1285_s30 + $0x44] sm:$0xf] %vm910_vm8, %v895_v4  ;;  %v842_v36 = vadd.f32 %v1631_v43, %v807_v58  ;;  %v843_v15 = vadd.f32 %v1631_v43, %v808_v32  ;;  %v900_v38 = vpack.c.bf16 %v868_v8, %v868_v8  ;;  %v870_v41 = vmax.f32 %v838_v17, 0.0 }
 0x15e   : > { %929 = vst.msk [vmem:[%s1285_s30 + $0x48] sm:$0xf] %vm910_vm8, %v896_v50  ;;  %v871_v21 = vmax.f32 %v839_v18, 0.0  ;;  %v872_v40 = vmax.f32 %v840_v22, 0.0  ;;  %v901_v42 = vpack.c.bf16 %v869_v16, %v869_v16  ;;  %v873_v62 = vmax.f32 %v841_v26, 0.0 }
 0x15f   : > { %930 = vst.msk [vmem:[%s1285_s30 + $0x4c] sm:$0xf] %vm910_vm8, %v897_v6  ;;  %v844_v44 = vadd.f32 %v1631_v43, %v809_v30  ;;  %v845_v25 = vadd.f32 %v1631_v43, %v810_v34  ;;  %v902_v13 = vpack.c.bf16 %v870_v41, %v870_v41  ;;  %v874_v45 = vmax.f32 %v842_v36, 0.0 }
 0x160   : > { %931 = vst.msk [vmem:[%s1285_s30 + $0x50] sm:$0xf] %vm910_vm8, %v898_v7  ;;  %v903_v20 = vpack.c.bf16 %v871_v21, %v871_v21  ;;  %v875_v46 = vmax.f32 %v843_v15, 0.0  ;;  %v904_v47 = vpack.c.bf16 %v872_v40, %v872_v40  ;;  %v905_v43 = vpack.c.bf16 %v873_v62, %v873_v62 }
 0x161   : > { %932 = vst.msk [vmem:[%s1285_s30 + $0x54] sm:$0xf] %vm910_vm8, %v899_v14  ;;  %v876_v29 = vmax.f32 %v844_v44, 0.0  ;;  %v877_v48 = vmax.f32 %v845_v25, 0.0  ;;  %v906_v19 = vpack.c.bf16 %v874_v45, %v874_v45 }
 0x162   : > { %933 = vst.msk [vmem:[%s1285_s30 + $0x58] sm:$0xf] %vm910_vm8, %v900_v38  ;;  %v907_v49 = vpack.c.bf16 %v875_v46, %v875_v46 }
 0x163   : > { %934 = vst.msk [vmem:[%s1285_s30 + $0x5c] sm:$0xf] %vm910_vm8, %v901_v42  ;;  %v908_v51 = vpack.c.bf16 %v876_v29, %v876_v29  ;;  %v909_v52 = vpack.c.bf16 %v877_v48, %v877_v48 }
 0x164   : > { %935 = vst.msk [vmem:[%s1285_s30 + $0x60] sm:$0xf] %vm910_vm8, %v902_v13 }
 0x165   : > { %936 = vst.msk [vmem:[%s1285_s30 + $0x64] sm:$0xf] %vm910_vm8, %v903_v20 }
 0x166   : > { %937 = vst.msk [vmem:[%s1285_s30 + $0x68] sm:$0xf] %vm910_vm8, %v904_v47 }
 0x167   : > { %938 = vst.msk [vmem:[%s1285_s30 + $0x6c] sm:$0xf] %vm910_vm8, %v905_v43 }
 0x168   : > { %939 = vst.msk [vmem:[%s1285_s30 + $0x70] sm:$0xf] %vm910_vm8, %v906_v19 }
 0x169   : > { %940 = vst.msk [vmem:[%s1285_s30 + $0x74] sm:$0xf] %vm910_vm8, %v907_v49 }
 0x16a   : > { %941 = vst.msk [vmem:[%s1285_s30 + $0x78] sm:$0xf] %vm910_vm8, %v908_v51 }
 0x16b   : > { %942 = vst.msk [vmem:[%s1285_s30 + $0x7c] sm:$0xf] %vm910_vm8, %v909_v52 }
 0x16c PF: > { %s14_s19 = sadd.s32 1, %s1215_s19   ;;  %s1792_s15 = smov %s1207_s17 }
 0x16d   : > { %p11_p10 = scmp.ge.s32.totalorder %s14_s19, 6   ;;  %s1793_s16 = smov %s1211_s18 }
 0x16e   : > { %s1794_s17 = smov %s1797_s20  ;;  %s1795_s18 = smov %s1801_s21 }
 0x16f   :  { %13 = sbr.rel (!%p11_p10) target bundleno = 3 (0x3), region = 80 }

// kernel: inception_forward.3
= control target key start
LH: loop header
LB: loop body
LE: loop exit
PB: predicated region body
PF: predicated region fallthrough
CT: control target
= control target key end

     0   :  { %s7832_s15 = smov 0   ;;  %s7834_s16 = smov 0   ;;  %s14817_s0 = inlined_call_operand.vmem [shape: bf16[2,484,8], index: 0, kind: input, shape index: {}]   ;;  %s14818_s1 = inlined_call_operand.vmem [shape: bf16[200,16], index: 1, kind: input, shape index: {}]   ;;  %s14819_s2 = inlined_call_operand.vmem [shape: f32[1,16], index: 2, kind: input, shape index: {}]   ;;  %s14820_s3 = inlined_call_operand.vmem [shape: f32[1,16], index: 3, kind: input, shape index: {}]   ;;  %s14821_s4 = inlined_call_operand.vmem [shape: bf16[2,384,16], index: 4, kind: output, shape index: {}]  }
   0x1   :  { %s7836_s17 = smov 0   ;;  %s7838_s18 = smov 0  }
   0x2   :  { %s7840_s19 = smov 0  }
   0x3 LB: > { %s23_s20 = sadd.s32 1, %s7779_s17  ;;  %s26_s21 = sadd.s32 1, %s7783_s18  ;;  %s7787_s19 = sphi %s7840_s19, %s14_s19   ;;  %s7783_s18 = sphi %s7838_s18, %s16576_s18   ;;  %s7779_s17 = sphi %s7836_s17, %s16575_s17   ;;  %s7775_s16 = sphi %s7834_s16, %s16574_s16   ;;  %s7771_s15 = sphi %s7832_s15, %s16573_s15  }
   0x4   : > { %p24_p0 = scmp.ge.s32.totalorder %s23_s20, 2  ;;  %p7150_p1 = scmp.ge.s32.totalorder %s7787_s19, 1 }
   0x5   : > { %p188_p2 = scmp.lt.s32.totalorder %s7787_s19, 5 }
   0x6   : > { %s16578_s20 = smov (%p24_p0, %s23_s20), 0  ;;  %s16580_s21 = smov (!%p24_p0, %s26_s21), %s7783_s18 }
   0x7   : > { %p189_p3 = pnand %p7150_p1, %p188_p2  ;;  %p28_p4 = scmp.ge.s32.totalorder %s16580_s21, 2 }
   0x8   : > { %s218_s22 = ssub.s32 (!%p189_p3), 1, %s7775_s16  ;;  %s229_s23 = smul.u32 (!%p189_p3), %s7771_s15, %s7775_s16 }
   0x9   : > { %s16582_s21 = smov (%p28_p4, %s16580_s21), 0  ;;  %192 = sbr.rel (%p189_p3) target bundleno = 1997 (0x7cd), region = 36 }
   0xa   : > { %s219_s24 = smul.u32 (!%p189_p3), %s7771_s15, %s218_s22  ;;  %p230_p5 = scmp.lt.s32.totalorder (!%p189_p3), %s229_s23, 1 }
   0xb   : > { %p7153_p7 = scmp.ne.s32.totalorder (!%p189_p3), %s7775_s16, 0 }
   0xc   : > { %s220_s25 = sadd.s32 (!%p189_p3), %s7775_s16, %s219_s24 }
   0xd   : > { %p221_p6 = scmp.lt.s32.totalorder (!%p189_p3), %s220_s25, 1 }
   0xe   : > { %s16584_s23 = smov (!%p230_p5, %s229_s23), 1  ;;  %240 = sbr.rel (%p7153_p7) target bundleno = 1899 (0x76b), region = 40 }
   0xf   : > { %s16586_s25 = smov (!%p221_p6, %s220_s25), 1  ;;  %s7583_s26 = smul.u32 192, %s16584_s23 }
  0x10   : > { %s7582_s27 = smul.u32 244, %s16586_s25 }
  0x11   : > { %s7874_s30 = scalar_lea.vmem %s14821_s4, %s7583_s26 }
  0x12   : > { %s7879_s7 = scalar_lea.vmem %s14817_s0, %s7582_s27 }
  0x13   : > { %p7154_p8 = scmp.ne.s32.totalorder %s7771_s15, 0 }
  0x15   : > { %244 = sbr.rel (%p7154_p8) target bundleno = 29 (0x1d), region = 44 }
  0x1a   : > { %vm245_vm0 = vcmask 122880   ;;  %v7789_v0 = vmov 0.0  }
  0x1b   : > { %246 = vst.msk [vmem:[#allocation3] sm:$0x1] %vm245_vm0, %v7789_v0 }
  0x1c   : > { %247 = vst.msk [vmem:[#allocation4] sm:$0x1] %vm245_vm0, %v7789_v0 }
  0x1d PF: > { %v7884_v1 = vld [vmem:[%s7879_s7 + $0x20] sm:$0xff]   ;;  %v7887_v2 = vld [vmem:[%s7879_s7 + $0x28] sm:$0xff]   ;;  %vm15151_vm1 = vsmask.f32 7424  ;;  %v7890_v3 = vld [vmem:[%s7879_s7 + $0x10] sm:$0xff]   ;;  %s7790_s8 = smov 8  }
  0x1e   : > { %v14822_v4 = vshll.u32 %v7884_v1, 16  ;;  %v14823_v5 = vshrl.u32 %v7884_v1, 16  ;;  %v14824_v6 = vshll.u32 %v7887_v2, 16  ;;  %v7896_v7 = vld [vmem:[%s7879_s7 + $0x18] sm:$0xff]   ;;  %v14830_v8 = vshll.u32 %v7890_v3, 16  ;;  %v7900_v9 = vld [vmem:[%s7879_s7] sm:$0xff]  }
  0x1f   : > { %v14831_v10 = vshrl.u32 %v7890_v3, 16  ;;  %v14828_v11 = vshll.u32 %v7896_v7, 16  ;;  %v7905_v12 = vld [vmem:[%s7879_s7 + $0x8] sm:$0xff]   ;;  %v453_v13 = vshrl.u32 %v7900_v9, 16  ;;  %v455_v14 = vshll.u32 %v7900_v9, 16  ;;  %v7910_v15 = vld [vmem:[%s7879_s7 + $0x30] sm:$0xff]  }
  0x20   : > { %v486_v16 = vrot.slane %v14822_v4, 1  ;;  %v494_v17 = vrot.slane %v14824_v6, 1  ;;  %v470_v18 = vrot.slane %v14830_v8, 1  ;;  %v14826_v19 = vshll.u32 %v7905_v12, 16  ;;  %v7934_v30 = vld [vmem:[%s7879_s7 + $0x40] sm:$0xff]   ;;  %v7937_v31 = vld [vmem:[%s7879_s7 + $0x38] sm:$0xff]  }
  0x21   : > { %v478_v20 = vrot.slane %v14828_v11, 1  ;;  %v457_v21 = vrot.slane %v455_v14, 1  ;;  %v14825_v22 = vshrl.u32 %v7887_v2, 16  ;;  %v7923_v23 = vshll.u32 %v7910_v15, 16  ;;  %v7962_v41 = vld [vmem:[%s7879_s7 + $0x48] sm:$0xff]   ;;  %v7984_v49 = vld [vmem:[%s7879_s7 + $0x58] sm:$0xff]  }
  0x22   : > { %v490_v24 = vor.u32 %v14823_v5, %v486_v16  ;;  %v474_v25 = vor.u32 %v14831_v10, %v470_v18  ;;  %v462_v26 = vrot.slane %v14826_v19, 1  ;;  %v14829_v27 = vshrl.u32 %v7896_v7, 16  ;;  %v7991_v52 = vld [vmem:[%s7879_s7 + $0x50] sm:$0xff]   ;;  %v8006_v57 = vld [vmem:[%s7879_s7 + $0x60] sm:$0xff]   ;;  %s7791_s9 = smov 16   ;;  %s7792_s10 = smov 24  }
  0x23   : > { %15176 = vst [vmem:[#allocation5_spill] sm:$0xff] %v7923_v23  ;;  %v458_v28 = vor.u32 %v457_v21, %v453_v13  ;;  %v14827_v29 = vshrl.u32 %v7905_v12, 16  ;;  %v498_v35 = vor.u32 %v14825_v22, %v494_v17  ;;  %v502_v36 = vrot.slane %v7923_v23, 1  ;;  %v8103_v4 = vld [vmem:[%s7879_s7 + $0x90] sm:$0xff]   ;;  %v8127_v10 = vld [vmem:[%s7879_s7 + $0xa0] sm:$0xff]   ;;  %s7793_s11 = smov 32  }
  0x24   : > { %v7940_v32 = vsel %vm15151_vm1, %v490_v24, %v494_v17  ;;  %v479_v33 = vsel %vm15151_vm1, %v474_v25, %v478_v20  ;;  %v482_v37 = vor.u32 %v14829_v27, %v478_v20  ;;  %v7954_v38 = vshll.u32 %v7934_v30, 16  ;;  %v8040_v20 = vld [vmem:[%s7879_s7 + $0x68] sm:$0xff]   ;;  %s7794_s12 = smov 40   ;;  %s7795_s13 = smov 48  }
  0x25   : > { %15177 = vst [vmem:[#allocation6_spill] sm:$0xff] %v7940_v32  ;;  %656 = vrot.lane.b32.xlu2 %v7940_v32, %s7790_s8  ;;  %652 = vrot.lane.b32.xlu1 %v479_v33, %s7790_s8  ;;  %v463_v34 = vsel %vm15151_vm1, %v458_v28, %v462_v26  ;;  %v7957_v39 = vshll.u32 %v7937_v31, 16  ;;  %v466_v40 = vor.u32 %v14827_v29, %v462_v26  ;;  %v7971_v44 = vshrl.u32 %v7934_v30, 16  ;;  %v8052_v26 = vld [vmem:[%s7879_s7 + $0x78] sm:$0xff]   ;;  %s7796_s14 = smov 56   ;;  %s7797_s22 = smov 64  }
  0x26   : > { %648 = vrot.lane.b32.xlu0 %v463_v34, %s7790_s8  ;;  %15178 = vst [vmem:[#allocation7_spill] sm:$0xff] %v7954_v38  ;;  %v7965_v42 = vsel %vm15151_vm1, %v498_v35, %v502_v36  ;;  %v7968_v43 = vsel %vm15151_vm1, %v482_v37, %v486_v16  ;;  %v518_v45 = vrot.slane %v7954_v38, 1  ;;  %v7975_v46 = vshll.u32 %v7962_v41, 16  ;;  %s7798_s23 = smov 72   ;;  %s7799_s24 = smov 80  }
  0x27   : > { %15179 = vst [vmem:[#allocation8_spill] sm:$0xff] %v7957_v39  ;;  %v7978_v47 = vrot.slane %v7957_v39, 1  ;;  %v7981_v48 = vshrl.u32 %v7937_v31, 16  ;;  %v471_v50 = vsel %vm15151_vm1, %v466_v40, %v470_v18  ;;  %v7988_v51 = vshrl.u32 %v7910_v15, 16  ;;  %v8037_v18 = vld [vmem:[%s7879_s7 + $0x70] sm:$0xff]   ;;  %s7800_s25 = smov 88  }
  0x28   : > { %15180 = vst [vmem:[#allocation9_spill] sm:$0xff] %v7965_v42  ;;  %v7998_v53 = vshll.u32 %v7984_v49, 16  ;;  %v522_v54 = vor.u32 %v7971_v44, %v518_v45  ;;  %v526_v55 = vrot.slane %v7975_v46, 1  ;;  %v8009_v58 = vshll.u32 %v7991_v52, 16  ;;  %s7801_s26 = smov 96   ;;  %s7802_s27 = smov 104  }
  0x29   : > { %15181 = vst [vmem:[#allocation10_spill] sm:$0xff] %v7968_v43  ;;  %v514_v56 = vor.u32 %v7981_v48, %v7978_v47  ;;  %v506_v59 = vor.u32 %v7988_v51, %v502_v36  ;;  %v8014_v61 = vshrl.u32 %v7984_v49, 16  ;;  %v8017_v62 = vshll.u32 %v8006_v57, 16  ;;  %s7803_s28 = smov 112   ;;  %s7804_s29 = smov 120  }
  0x2a   : > { %15182 = vst [vmem:[#allocation11_spill] sm:$0xff] %v7971_v44  ;;  %v542_v60 = vrot.slane %v7998_v53, 1  ;;  %v8020_v63 = vsel %vm15151_vm1, %v522_v54, %v526_v55  ;;  %v534_v13 = vrot.slane %v8009_v58, 1  ;;  %v8027_v14 = vshrl.u32 %v7991_v52, 16 }
  0x2b   : > { %15183 = vst [vmem:[#allocation12_spill] sm:$0xff] %v7975_v46  ;;  %v8023_v0 = vsel %vm15151_vm1, %v514_v56, %v518_v45  ;;  %v8031_v16 = vsel %vm15151_vm1, %v506_v59, %v7978_v47  ;;  %v8034_v17 = vshrl.u32 %v7962_v41, 16  ;;  %v550_v24 = vrot.slane %v8017_v62, 1 }
  0x2c   : > { %15184 = vst [vmem:[#allocation13_spill] sm:$0xff] %v7978_v47  ;;  %v546_v21 = vor.u32 %v8014_v61, %v542_v60  ;;  %v538_v25 = vor.u32 %v8027_v14, %v534_v13  ;;  %v8055_v28 = vshll.u32 %v8037_v18, 16  ;;  %v8058_v33 = vshll.u32 %v8040_v20, 16 }
  0x2d   : > { %15185 = vst [vmem:[#allocation14_spill] sm:$0xff] %v7981_v48  ;;  %658 = vrot.lane.b32.xlu2 %v7965_v42, %s7790_s8  ;;  %654 = vrot.lane.b32.xlu1 %v7968_v43, %s7790_s8  ;;  %v530_v34 = vor.u32 %v8034_v17, %v526_v55  ;;  %v8065_v36 = vshrl.u32 %v8037_v18, 16  ;;  %v8068_v37 = vshll.u32 %v8052_v26, 16  ;;  %v8076_v54 = vshrl.u32 %v8040_v20, 16  ;;  %v8079_v55 = vld [vmem:[%s7879_s7 + $0x88] sm:$0xff]  }
  0x2e   : > { %15186 = vst [vmem:[#allocation15_spill] sm:$0xff] %v7988_v51  ;;  %650 = vrot.lane.b32.xlu0 %v471_v50, %s7790_s8  ;;  %v8062_v35 = vsel %vm15151_vm1, %v546_v21, %v550_v24  ;;  %v8071_v40 = vsel %vm15151_vm1, %v538_v25, %v542_v60  ;;  %v566_v45 = vrot.slane %v8055_v28, 1  ;;  %v558_v50 = vrot.slane %v8058_v33, 1  ;;  %v8088_v21 = vld [vmem:[%s7879_s7 + $0x80] sm:$0xff]  }
  0x2f   : > { %15187 = vst [vmem:[#allocation16_spill] sm:$0xff] %v7998_v53  ;;  %v8082_v56 = vsel %vm15151_vm1, %v530_v34, %v534_v13  ;;  %v8085_v59 = vshrl.u32 %v8006_v57, 16  ;;  %v8095_v60 = vshll.u32 %v8079_v55, 16  ;;  %v574_v25 = vrot.slane %v8068_v37, 1 }
  0x30   : > { %15188 = vst [vmem:[#allocation17_spill] sm:$0xff] %v8009_v58  ;;  %v570_v13 = vor.u32 %v8065_v36, %v566_v45  ;;  %v562_v34 = vor.u32 %v8076_v54, %v558_v50  ;;  %v8106_v5 = vshll.u32 %v8088_v21, 16  ;;  %v8111_v19 = vshrl.u32 %v8079_v55, 16 }
  0x31   : > { %15189 = vst [vmem:[#allocation18_spill] sm:$0xff] %v8014_v61  ;;  %v554_v6 = vor.u32 %v8085_v59, %v550_v24  ;;  %v590_v22 = vrot.slane %v8095_v60, 1  ;;  %v8114_v29 = vshll.u32 %v8103_v4, 16  ;;  %v8124_v24 = vshrl.u32 %v8088_v21, 16 }
  0x32   : > { %15190 = vst [vmem:[#allocation19_spill] sm:$0xff] %v8017_v62  ;;  %v8117_v11 = vsel %vm15151_vm1, %v570_v13, %v574_v25  ;;  %v8120_v27 = vsel %vm15151_vm1, %v562_v34, %v566_v45  ;;  %v582_v8 = vrot.slane %v8106_v5, 1  ;;  %v8145_v34 = vshll.u32 %v8127_v10, 16 }
  0x33   : > { %15191 = vst [vmem:[#allocation20_spill] sm:$0xff] %v8020_v63  ;;  %v8130_v47 = vsel %vm15151_vm1, %v554_v6, %v558_v50  ;;  %v594_v45 = vor.u32 %v8111_v19, %v590_v22  ;;  %v598_v13 = vrot.slane %v8114_v29, 1  ;;  %v8151_v50 = vld [vmem:[%s7879_s7 + $0xa8] sm:$0xff]   ;;  %vm15152_vm2 = vcmask 1046528  }
  0x34   : > { %15192 = vst [vmem:[#allocation21_spill] sm:$0xff] %v8023_v0  ;;  %v586_v6 = vor.u32 %v8124_v24, %v582_v8  ;;  %vm15146_vm3 = vsmask.f32 6400  ;;  %vm961_vm4 = vcmask 1045504   ;;  %vm2141_vm5 = vcmask 64512  }
  0x35   : > { %15193 = vst [vmem:[#allocation22_spill] sm:$0xff] %v8027_v14  ;;  %664 = vrot.lane.b32.xlu2 %v8020_v63, %s7790_s8  ;;  %662 = vrot.lane.b32.xlu1 %v8023_v0, %s7790_s8  ;;  %v614_v0 = vrot.slane %v8145_v34, 1  ;;  %v8163_v63 = vshrl.u32 %v8127_v10, 16  ;;  %vm2190_vm6 = vcmask 130048   ;;  %vm2239_vm7 = vcmask 195584  }
  0x36   : > { %15194 = vst [vmem:[#allocation23_spill] sm:$0xff] %v8031_v16  ;;  %660 = vrot.lane.b32.xlu0 %v8031_v16, %s7790_s8  ;;  %v8159_v16 = vsel %vm15151_vm1, %v594_v45, %v598_v13  ;;  %v8169_v43 = vsel %vm15151_vm1, %v586_v6, %v590_v22  ;;  %vm2288_vm8 = vcmask 261120   ;;  %vm2337_vm9 = vcmask 326656  }
  0x37   : > { %15195 = vst [vmem:[#allocation24_spill] sm:$0xff] %v8034_v17  ;;  %v618_v22 = vor.u32 %v8163_v63, %v614_v0  ;;  %vm2386_vm10 = vcmask 392192   ;;  %vm2435_vm11 = vcmask 457728   ;;  %vm2484_vm12 = vcmask 523264  }
  0x38   : > { %15196 = vst [vmem:[#allocation25_spill] sm:$0xff] %v8055_v28  ;;  %vm2533_vm13 = vcmask 588800   ;;  %vm2582_vm14 = vcmask 654336   ;;  %vm2631_vm15 = vcmask 719872   ;;  %vm15147_vm0 = vcmask 785408  }
  0x39   : > { %15197 = vst [vmem:[#allocation26_spill] sm:$0xff] %v8058_v33 }
  0x3a   : > { %15198 = vst [vmem:[#allocation27_spill] sm:$0xff] %v8062_v35 }
  0x3b   : > { %15199 = vst [vmem:[#allocation28_spill] sm:$0xff] %v8065_v36 }
  0x3c   : > { %15200 = vst [vmem:[#allocation29_spill] sm:$0xff] %v8068_v37 }
  0x3d   : > { %15201 = vst [vmem:[#allocation30_spill] sm:$0xff] %v8071_v40  ;;  %670 = vrot.lane.b32.xlu2 %v8062_v35, %s7790_s8  ;;  %668 = vrot.lane.b32.xlu1 %v8071_v40, %s7790_s8  ;;  %v8136_v40 = vld [vmem:[%s7879_s7 + $0x98] sm:$0xff]   ;;  %v296_v35 = vld [vmem:[%s7879_s7 + $0xc0] sm:$0x1] }
  0x3e   : > { %15202 = vst [vmem:[#allocation31_spill] sm:$0xff] %v8076_v54  ;;  %666 = vrot.lane.b32.xlu0 %v8082_v56, %s7790_s8  ;;  %v8173_v42 = vshrl.u32 %v8136_v40, 16  ;;  %v449_v45 = vunpack.c.l.b16 %v296_v35 }
  0x3f   : > { %15203 = vst [vmem:[#allocation32_spill] sm:$0xff] %v8082_v56  ;;  %v8133_v56 = vshrl.u32 %v8052_v26, 16 }
  0x40   : > { %15204 = vst [vmem:[#allocation33_spill] sm:$0xff] %v8085_v59 }
  0x41   : > { %15205 = vst [vmem:[#allocation34_spill] sm:$0xff] %v8095_v60 }
  0x42   : > { %15206 = vst [vmem:[#allocation35_spill] sm:$0xff] %v8106_v5 }
  0x43   : > { %15207 = vst [vmem:[#allocation36_spill] sm:$0xff] %v8111_v19 }
  0x44   : > { %15208 = vst [vmem:[#allocation37_spill] sm:$0xff] %v8114_v29 }
  0x45   : > { %15209 = vst [vmem:[#allocation38_spill] sm:$0xff] %v8117_v11  ;;  %676 = vrot.lane.b32.xlu2 %v8117_v11, %s7790_s8  ;;  %674 = vrot.lane.b32.xlu1 %v8120_v27, %s7790_s8  ;;  %v8154_v11 = vshll.u32 %v8136_v40, 16 }
  0x46   : > { %15210 = vst [vmem:[#allocation39_spill] sm:$0xff] %v8120_v27  ;;  %672 = vrot.lane.b32.xlu0 %v8130_v47, %s7790_s8  ;;  %v578_v27 = vor.u32 %v8133_v56, %v574_v25  ;;  %v8176_v25 = vld [vmem:[%s7879_s7 + $0xb8] sm:$0xff]  }
  0x47   : > { %15211 = vst [vmem:[#allocation40_spill] sm:$0xff] %v8124_v24  ;;  %v606_v32 = vrot.slane %v8154_v11, 1  ;;  %v8185_v24 = vld [vmem:[%s7879_s7 + $0xb0] sm:$0xff]   ;;  %v8194_v35 = vshll.u32 %v8176_v25, 16 }
  0x48   : > { %15212 = vst [vmem:[#allocation41_spill] sm:$0xff] %v8130_v47  ;;  %v8166_v47 = vshll.u32 %v8151_v50, 16  ;;  %v8179_v5 = vsel %vm15151_vm1, %v578_v27, %v582_v8  ;;  %v8199_v27 = vpack.c.b16 %v449_v45, %v449_v45 }
  0x49   : > { %15213 = vst [vmem:[#allocation42_spill] sm:$0xff] %v8133_v56  ;;  %v610_v8 = vor.u32 %v8173_v42, %v606_v32 }
  0x4a   : > { %15214 = vst [vmem:[#allocation43_spill] sm:$0xff] %v8136_v40  ;;  %v622_v6 = vrot.slane %v8166_v47, 1 }
  0x4b   : > { %15215 = vst [vmem:[#allocation44_spill] sm:$0xff] %v8145_v34  ;;  %v8182_v34 = vshrl.u32 %v8103_v4, 16  ;;  %v8213_v29 = vsel %vm15151_vm1, %v610_v8, %v614_v0 }
  0x4c   : > { %15216 = vst [vmem:[#allocation45_spill] sm:$0xff] %v8151_v50 }
  0x4d   : > { %15217 = vst [vmem:[#allocation46_spill] sm:$0xff] %v8154_v11  ;;  %682 = vrot.lane.b32.xlu2 %v8159_v16, %s7790_s8  ;;  %680 = vrot.lane.b32.xlu1 %v8169_v43, %s7790_s8  ;;  %v8206_v11 = vsel %vm15151_vm1, %v618_v22, %v622_v6  ;;  %v8224_v22 = vshrl.u32 %v8151_v50, 16 }
  0x4e   : > { %15218 = vst [vmem:[#allocation47_spill] sm:$0xff] %v8159_v16  ;;  %678 = vrot.lane.b32.xlu0 %v8179_v5, %s7790_s8  ;;  %v8202_v16 = vshll.u32 %v8185_v24, 16 }
  0x4f   : > { %15219 = vst [vmem:[#allocation48_spill] sm:$0xff] %v8163_v63  ;;  %v8210_v63 = vshrl.u32 %v8176_v25, 16 }
  0x50   : > { %15220 = vst [vmem:[#allocation49_spill] sm:$0xff] %v8166_v47  ;;  %v638_v47 = vrot.slane %v8194_v35, 1  ;;  %v630_v45 = vrot.slane %v8202_v16, 1 }
  0x51   : > { %15221 = vst [vmem:[#allocation50_spill] sm:$0xff] %v8169_v43  ;;  %v602_v43 = vor.u32 %v8182_v34, %v598_v13 }
  0x52   : > { %15222 = vst [vmem:[#allocation51_spill] sm:$0xff] %v8173_v42  ;;  %v8218_v42 = vshrl.u32 %v8185_v24, 16  ;;  %v8234_v0 = vor.u32 %v8210_v63, %v638_v47 }
  0x53   : > { %15223 = vst [vmem:[#allocation52_spill] sm:$0xff] %v8176_v25  ;;  %v8221_v13 = vsel %vm15151_vm1, %v602_v43, %v606_v32  ;;  %v626_v43 = vor.u32 %v8224_v22, %v622_v6  ;;  %v701_v6 = vrot.slane %v7905_v12, 1 }
  0x54   : > { %15224 = vst [vmem:[#allocation53_spill] sm:$0xff] %v8179_v5  ;;  %v644_v5 = vshll.u32 %v8199_v27, 16  ;;  %v634_v32 = vor.u32 %v8218_v42, %v630_v45 }
  0x55   : > { %15225 = vst [vmem:[#allocation54_spill] sm:$0xff] %v8182_v34  ;;  %688 = vrot.lane.b32.xlu2 %v8206_v11, %s7790_s8  ;;  %686 = vrot.lane.b32.xlu1 %v8213_v29, %s7790_s8 }
  0x56   : > { %15226 = vst [vmem:[#allocation55_spill] sm:$0xff] %v8185_v24  ;;  %684 = vrot.lane.b32.xlu0 %v8221_v13, %s7790_s8  ;;  %v646_v8 = vrot.slane %v644_v5, 1  ;;  %v8242_v60 = vsel %vm15151_vm1, %v634_v32, %v638_v47  ;;  %v703_v5 = vrot.slane %v7890_v3, 1  ;;  %v705_v47 = vrot.slane %v7896_v7, 1 }
  0x57   : > { %15227 = vst [vmem:[#allocation56_spill] sm:$0xff] %v8194_v35  ;;  %v297_v35 = vld [vmem:[%s7879_s7] sm:$0xe]  ;;  %v711_v32 = vrot.slane %v7910_v15, 1 }
  0x58   : > { %15228 = vst [vmem:[#allocation57_spill] sm:$0xff] %v8202_v16  ;;  %v14889_v16 = vunpack.c.h.b16 %v7900_v9  ;;  %v697_v34 = vunpack.c.l.b16 %v297_v35 }
  0x59   : > { %15229 = vst [vmem:[#allocation58_spill] sm:$0xff] %v8206_v11  ;;  %v647_v11 = vsel %vm15151_vm1, %v8234_v0, %v646_v8  ;;  %v709_v8 = vrot.slane %v7887_v2, 1 }
  0x5a   : > { %15230 = vst [vmem:[#allocation59_spill] sm:$0xff] %v8210_v63 }
  0x5b   : > { %15231 = vst [vmem:[#allocation60_spill] sm:$0xff] %v8213_v29  ;;  %v8245_v29 = vsel %vm15151_vm1, %v626_v43, %v630_v45  ;;  %v704_v45 = vsel %vm15152_vm2, %v701_v6, %v703_v5  ;;  %v8269_v43 = vrot.slane %v7884_v1, 1 }
  0x5c   : > { %15232 = vst [vmem:[#allocation61_spill] sm:$0xff] %v8218_v42 }
  0x5d   : > { %15233 = vst [vmem:[#allocation62_spill] sm:$0xff] %v8221_v13  ;;  %v8249_v13 = vpack.c.b16 %v14889_v16, %v697_v34  ;;  %694 = vrot.lane.b32.xlu2 %v647_v11, %s7790_s8  ;;  %692 = vrot.lane.b32.xlu1 %v8242_v60, %s7790_s8  ;;  %v706_v34 = vsel %vm15152_vm2, %v703_v5, %v705_v47 }
  0x5e   : > { %15234 = vst [vmem:[#allocation63_spill] sm:$0xff] %v8224_v22  ;;  %690 = vrot.lane.b32.xlu0 %v8245_v29, %s7790_s8  ;;  %v8272_v16 = vsel %vm15152_vm2, %v709_v8, %v711_v32  ;;  %v8276_v5 = vsel %vm15152_vm2, %v8269_v43, %v709_v8 }
  0x5f   : > { %15235 = vst [vmem:[#allocation64_spill] sm:$0xff] %v8234_v0  ;;  %v700_v35 = vrot.slane %v8249_v13, 1 }
  0x60   : > { %15236 = vst [vmem:[#allocation65_spill] sm:$0xff] %v8242_v60 }
  0x61   : > { %15237 = vst [vmem:[#allocation66_spill] sm:$0xff] %v8245_v29  ;;  %v702_v11 = vsel %vm15152_vm2, %v700_v35, %v701_v6  ;;  %v708_v6 = vsel %vm15152_vm2, %v705_v47, %v8269_v43  ;;  %v715_v35 = vrot.slane %v7934_v30, 1  ;;  %v15265_v29 = vshll.u32 %v7890_v3, 16 }
  0x62   : > { %15238 = vst [vmem:[#allocation67_spill] sm:$0xff] %v8269_v43 }
  0x63   : > { %15239 = vst [vmem:[#allocation68_spill] sm:$0xff] %v8272_v16  ;;  %v814_v60 = vrot.slane %v15265_v29, 2 }
  0x64   : > { %15240 = vst [vmem:[#allocation69_spill] sm:$0xff] %v8276_v5 }
  0x65   : > { %753 = vrot.lane.b32.xlu2 %v706_v34, %s7791_s9  ;;  %751 = vrot.lane.b32.xlu1 %v704_v45, %s7791_s9  ;;  %v717_v34 = vrot.slane %v7962_v41, 1  ;;  %v8288_v45 = vrot.slane %v7937_v31, 1 }
  0x66   : > { %749 = vrot.lane.b32.xlu0 %v702_v11, %s7791_s9 }
  0x67   : > { %15241 = vst [vmem:[#allocation70_spill] sm:$0xff] %v8288_v45  ;;  %v8291_v11 = vsel %vm15152_vm2, %v715_v35, %v717_v34  ;;  %v8295_v47 = vsel %vm15152_vm2, %v8288_v45, %v715_v35  ;;  %v8299_v8 = vsel %vm15152_vm2, %v711_v32, %v8288_v45  ;;  %v719_v35 = vrot.slane %v7991_v52, 1 }
  0x68   : > { %15242 = vst [vmem:[#allocation71_spill] sm:$0xff] %v8291_v11 }
  0x69   : > { %15243 = vst [vmem:[#allocation72_spill] sm:$0xff] %v8295_v47  ;;  %v8317_v45 = vsel %vm15152_vm2, %v717_v34, %v719_v35 }
  0x6a   : > { %15244 = vst [vmem:[#allocation73_spill] sm:$0xff] %v8299_v8 }
  0x6b   : > { %15247 = vst [vmem:[#allocation76_spill] sm:$0xff] %v8317_v45 }
  0x6d   : > { %759 = vrot.lane.b32.xlu2 %v8272_v16, %s7791_s9  ;;  %757 = vrot.lane.b32.xlu1 %v8276_v5, %s7791_s9  ;;  %v723_v5 = vrot.slane %v8006_v57, 1 }
  0x6e   : > { %755 = vrot.lane.b32.xlu0 %v708_v6, %s7791_s9  ;;  %v721_v6 = vrot.slane %v7984_v49, 1 }
  0x70   : > { %v8311_v16 = vsel %vm15152_vm2, %v721_v6, %v723_v5  ;;  %v8314_v32 = vsel %vm15152_vm2, %v719_v35, %v721_v6 }
  0x71   : > { %15245 = vst [vmem:[#allocation74_spill] sm:$0xff] %v8311_v16 }
  0x72   : > { %15246 = vst [vmem:[#allocation75_spill] sm:$0xff] %v8314_v32 }
  0x75   : > { %765 = vrot.lane.b32.xlu2 %v8291_v11, %s7791_s9  ;;  %763 = vrot.lane.b32.xlu1 %v8295_v47, %s7791_s9  ;;  %v729_v47 = vrot.slane %v8052_v26, 1  ;;  %v725_v11 = vrot.slane %v8040_v20, 1 }
  0x76   : > { %761 = vrot.lane.b32.xlu0 %v8299_v8, %s7791_s9  ;;  %v727_v8 = vrot.slane %v8037_v18, 1 }
  0x78   : > { %v8331_v34 = vsel %vm15152_vm2, %v727_v8, %v729_v47  ;;  %v8334_v35 = vsel %vm15152_vm2, %v725_v11, %v727_v8 }
  0x79   : > { %15249 = vst [vmem:[#allocation78_spill] sm:$0xff] %v8331_v34 }
  0x7a   : > { %15250 = vst [vmem:[#allocation79_spill] sm:$0xff] %v8334_v35 }
  0x7d   : > { %771 = vrot.lane.b32.xlu2 %v8311_v16, %s7791_s9  ;;  %769 = vrot.lane.b32.xlu1 %v8314_v32, %s7791_s9  ;;  %v8337_v16 = vsel %vm15152_vm2, %v723_v5, %v725_v11  ;;  %v731_v32 = vrot.slane %v8088_v21, 1 }
  0x7e   : > { %767 = vrot.lane.b32.xlu0 %v8317_v45, %s7791_s9  ;;  %15251 = vst [vmem:[#allocation80_spill] sm:$0xff] %v8337_v16  ;;  %v735_v45 = vrot.slane %v8103_v4, 1 }
  0x7f   : > { %v8328_v6 = vpop.permute.xlu2 %656 }
  0x80   : > { %15248 = vst [vmem:[#allocation77_spill] sm:$0xff] %v8328_v6  ;;  %v733_v6 = vrot.slane %v8079_v55, 1 }
  0x82   : > { %v8351_v5 = vsel %vm15152_vm2, %v733_v6, %v735_v45  ;;  %v8354_v11 = vsel %vm15152_vm2, %v731_v32, %v733_v6 }
  0x83   : > { %15253 = vst [vmem:[#allocation82_spill] sm:$0xff] %v8351_v5 }
  0x84   : > { %15254 = vst [vmem:[#allocation83_spill] sm:$0xff] %v8354_v11 }
  0x85   : > { %777 = vrot.lane.b32.xlu2 %v8331_v34, %s7791_s9  ;;  %775 = vrot.lane.b32.xlu1 %v8334_v35, %s7791_s9  ;;  %v8357_v34 = vsel %vm15152_vm2, %v729_v47, %v731_v32  ;;  %v737_v35 = vrot.slane %v8136_v40, 1  ;;  %v15269_v40 = vshll.u32 %v7905_v12, 16 }
  0x86   : > { %773 = vrot.lane.b32.xlu0 %v8337_v16, %s7791_s9  ;;  %15255 = vst [vmem:[#allocation84_spill] sm:$0xff] %v8357_v34  ;;  %v741_v16 = vrot.slane %v8151_v50, 1 }
  0x87   : > { %v8348_v8 = vpop.permute.xlu2 %658 }
  0x88   : > { %15252 = vst [vmem:[#allocation81_spill] sm:$0xff] %v8348_v8  ;;  %v739_v8 = vrot.slane %v8127_v10, 1 }
  0x8a   : > { %v8371_v47 = vsel %vm15152_vm2, %v739_v8, %v741_v16  ;;  %v8374_v32 = vsel %vm15152_vm2, %v737_v35, %v739_v8  ;;  %v743_v8 = vrot.slane %v8185_v24, 1  ;;  %v15267_v24 = vshll.u32 %v7896_v7, 16 }
  0x8b   : > { %15257 = vst [vmem:[#allocation86_spill] sm:$0xff] %v8371_v47 }
  0x8c   : > { %15258 = vst [vmem:[#allocation87_spill] sm:$0xff] %v8374_v32  ;;  %v8417_v29 = vsel %vm15152_vm2, %v741_v16, %v743_v8 }
  0x8d   : > { %783 = vrot.lane.b32.xlu2 %v8351_v5, %s7791_s9  ;;  %781 = vrot.lane.b32.xlu1 %v8354_v11, %s7791_s9  ;;  %v8377_v5 = vsel %vm15152_vm2, %v735_v45, %v737_v35  ;;  %v802_v35 = vshrl.u32 %v8249_v13, 16  ;;  %15271 = vst [vmem:[#allocation94_spill] sm:$0xff] %v8417_v29 }
  0x8e   : > { %779 = vrot.lane.b32.xlu0 %v8357_v34, %s7791_s9  ;;  %15259 = vst [vmem:[#allocation88_spill] sm:$0xff] %v8377_v5  ;;  %v747_v34 = vrot.slane %v8199_v27, 1  ;;  %v15266_v27 = vshrl.u32 %v7896_v7, 16 }
  0x8f   : > { %v8368_v6 = vpop.permute.xlu2 %664 }
  0x90   : > { %15256 = vst [vmem:[#allocation85_spill] sm:$0xff] %v8368_v6  ;;  %v8386_v6 = vrot.slane %v8176_v25, 1  ;;  %v817_v0 = vrot.slane %v15266_v27, 1  ;;  %v804_v27 = vrot.slane %v802_v35, 1  ;;  %v15275_v35 = vshrl.u32 %v7887_v2, 16 }
  0x92   : > { %15260 = vst [vmem:[#allocation89_spill] sm:$0xff] %v8386_v6 }
  0x95   : > { %789 = vrot.lane.b32.xlu2 %v8371_v47, %s7791_s9  ;;  %787 = vrot.lane.b32.xlu1 %v8374_v32, %s7791_s9  ;;  %v805_v47 = vshll.u32 %v8249_v13, 16  ;;  %v15264_v32 = vshrl.u32 %v7890_v3, 16  ;;  %v810_v13 = vrot.slane %v15269_v40, 2 }
  0x96   : > { %785 = vrot.lane.b32.xlu0 %v8377_v5, %s7791_s9 }
  0x97   : > { %v8390_v11 = vpop.permute.xlu2 %670  ;;  %v8392_v45 = vpop.permute.xlu1 %652  ;;  %v813_v5 = vrot.slane %v15264_v32, 1  ;;  %v8414_v32 = vsel %vm15152_vm2, %v743_v8, %v8386_v6  ;;  %v807_v50 = vrot.slane %v805_v47, 2 }
  0x98   : > { %15261 = vst [vmem:[#allocation90_spill] sm:$0xff] %v8390_v11  ;;  %v8396_v43 = vpop.permute.xlu0 %648  ;;  %v818_v11 = vrot.slane %v15267_v24, 2 }
  0x99   : > { %15262 = vst [vmem:[#allocation91_spill] sm:$0xff] %v8392_v45  ;;  %v15268_v45 = vshrl.u32 %v7905_v12, 16  ;;  %v815_v24 = vor.u32 %v814_v60, %v813_v5  ;;  %v808_v16 = vor.u32 %v807_v50, %v804_v27  ;;  %v825_v60 = vrot.slane %v15275_v35, 1 }
  0x9a   : > { %15263 = vst [vmem:[#allocation92_spill] sm:$0xff] %v8396_v43  ;;  %v748_v43 = vsel %vm15152_vm2, %v8386_v6, %v747_v34  ;;  %v829_v5 = vrot.slane %v7988_v51, 1  ;;  %v15278_v50 = vshll.u32 %v7884_v1, 16 }
  0x9b   : > { %v809_v25 = vrot.slane %v15268_v45, 1  ;;  %15270 = vst [vmem:[#allocation93_spill] sm:$0xff] %v8414_v32  ;;  %v819_v45 = vor.u32 %v818_v11, %v817_v0  ;;  %v830_v11 = vrot.slane %v7923_v23, 2 }
  0x9c   : > { %v822_v27 = vrot.slane %v15278_v50, 2  ;;  %v837_v50 = vrot.slane %v7971_v44, 1 }
  0x9d   : > { %795 = vrot.lane.b32.xlu2 %v748_v43, %s7791_s9  ;;  %793 = vrot.lane.b32.xlu1 %v8414_v32, %s7791_s9  ;;  %v811_v40 = vor.u32 %v810_v13, %v809_v25  ;;  %v820_v47 = vsel %vm15146_vm3, %v815_v24, %v819_v45  ;;  %v15276_v25 = vshll.u32 %v7887_v2, 16  ;;  %v15277_v13 = vshrl.u32 %v7884_v1, 16 }
  0x9e   : > { %791 = vrot.lane.b32.xlu0 %v8417_v29, %s7791_s9  ;;  %v831_v35 = vor.u32 %v830_v11, %v829_v5 }
  0x9f   : > { %v8424_v34 = vpop.permute.xlu2 %676  ;;  %v8426_v6 = vpop.permute.xlu1 %654  ;;  %v816_v43 = vsel %vm15146_vm3, %v811_v40, %v815_v24  ;;  %v826_v0 = vrot.slane %v15276_v25, 2 }
  0xa0   : > { %15272 = vst [vmem:[#allocation95_spill] sm:$0xff] %v8424_v34  ;;  %v8428_v8 = vpop.permute.xlu0 %650  ;;  %v821_v34 = vrot.slane %v15277_v13, 1 }
  0xa1   : > { %15273 = vst [vmem:[#allocation96_spill] sm:$0xff] %v8426_v6  ;;  %v812_v6 = vsel %vm15146_vm3, %v808_v16, %v811_v40  ;;  %v827_v24 = vor.u32 %v826_v0, %v825_v60  ;;  %v838_v40 = vrot.slane %v7954_v38, 2  ;;  %v841_v16 = vrot.slane %v8034_v17, 1 }
  0xa2   : > { %15274 = vst [vmem:[#allocation97_spill] sm:$0xff] %v8428_v8  ;;  %v8446_v25 = vor.u32 %v822_v27, %v821_v34  ;;  %v8917_v8 = vld [vmem:[%s7879_s7 + $0x54] sm:$0xff]  }
  0xa3   : > { %v8461_v34 = vsel %vm15146_vm3, %v827_v24, %v831_v35  ;;  %v839_v5 = vor.u32 %v838_v40, %v837_v50  ;;  %v849_v50 = vrot.slane %v8014_v61, 1  ;;  %v850_v40 = vrot.slane %v7998_v53, 2 }
  0xa4   : > { %v8465_v60 = vsel %vm15146_vm3, %v8446_v25, %v827_v24  ;;  %v824_v0 = vsel %vm15146_vm3, %v819_v45, %v8446_v25 }
  0xa5   : > { %914 = vrot.lane.b32.xlu2 %v820_v47, %s7792_s10  ;;  %912 = vrot.lane.b32.xlu1 %v816_v43, %s7792_s10  ;;  %v842_v47 = vrot.slane %v7975_v46, 2  ;;  %v834_v43 = vrot.slane %v7957_v39, 2 }
  0xa6   : > { %910 = vrot.lane.b32.xlu0 %v812_v6, %s7792_s10  ;;  %v833_v6 = vrot.slane %v7981_v48, 1  ;;  %v889_v48 = vrot.slane %v8224_v22, 1 }
  0xa7   : > { %v8448_v23 = vpop.permute.xlu2 %682  ;;  %v8450_v51 = vpop.permute.xlu1 %662  ;;  %v843_v11 = vor.u32 %v842_v47, %v841_v16  ;;  %v853_v16 = vrot.slane %v8085_v59, 1  ;;  %v854_v47 = vrot.slane %v8017_v62, 2 }
  0xa8   : > { %15279 = vst [vmem:[#allocation98_spill] sm:$0xff] %v8448_v23  ;;  %v8452_v13 = vpop.permute.xlu0 %660  ;;  %v8473_v27 = vor.u32 %v834_v43, %v833_v6  ;;  %v845_v6 = vrot.slane %v8027_v14, 1  ;;  %v846_v43 = vrot.slane %v8009_v58, 2  ;;  %v865_v58 = vrot.slane %v8133_v56, 1  ;;  %v298_v23 = vld [vmem:[%s7879_s7 + $0xc0] sm:$0x3] }
  0xa9   : > { %15280 = vst [vmem:[#allocation99_spill] sm:$0xff] %v8450_v51  ;;  %v8483_v45 = vsel %vm15146_vm3, %v839_v5, %v843_v11  ;;  %v855_v59 = vor.u32 %v854_v47, %v853_v16  ;;  %v866_v14 = vrot.slane %v8068_v37, 2 }
  0xaa   : > { %15281 = vst [vmem:[#allocation100_spill] sm:$0xff] %v8452_v13  ;;  %v8487_v38 = vsel %vm15146_vm3, %v8473_v27, %v839_v5  ;;  %v851_v5 = vor.u32 %v850_v40, %v849_v50  ;;  %v847_v62 = vor.u32 %v846_v43, %v845_v6  ;;  %v858_v50 = vrot.slane %v8058_v33, 2  ;;  %v15302_v33 = vld [vmem:[#allocation40_spill] sm:$0xff] }
  0xab   : > { %15282 = vst [vmem:[#allocation101_spill] sm:$0xff] %v8473_v27  ;;  %v867_v43 = vor.u32 %v866_v14, %v865_v58  ;;  %v15300_v14 = vld [vmem:[#allocation54_spill] sm:$0xff] }
  0xac   : > { %15286 = vst [vmem:[#allocation105_spill] sm:$0xff] %v8483_v45  ;;  %v8518_v40 = vsel %vm15146_vm3, %v851_v5, %v855_v59  ;;  %v8521_v16 = vsel %vm15146_vm3, %v847_v62, %v851_v5  ;;  %v8524_v47 = vsel %vm15146_vm3, %v843_v11, %v847_v62 }
  0xad   : > { %920 = vrot.lane.b32.xlu2 %v8461_v34, %s7792_s10  ;;  %918 = vrot.lane.b32.xlu1 %v8465_v60, %s7792_s10  ;;  %15287 = vst [vmem:[#allocation106_spill] sm:$0xff] %v8487_v38 }
  0xae   : > { %916 = vrot.lane.b32.xlu0 %v824_v0, %s7792_s10  ;;  %v8497_v0 = vsel %vm15146_vm3, %v831_v35, %v8473_v27  ;;  %v861_v35 = vrot.slane %v8065_v36, 1  ;;  %15291 = vst [vmem:[#allocation110_spill] sm:$0xff] %v8518_v40  ;;  %v15309_v27 = vld [vmem:[#allocation44_spill] sm:$0xff] }
  0xaf   : > { %v8476_v46 = vpop.permute.xlu2 %688  ;;  %v8478_v17 = vpop.permute.xlu1 %668  ;;  %15292 = vst [vmem:[#allocation111_spill] sm:$0xff] %v8521_v16  ;;  %v886_v39 = vrot.slane %v15309_v27, 2 }
  0xb0   : > { %15283 = vst [vmem:[#allocation102_spill] sm:$0xff] %v8476_v46  ;;  %v8480_v24 = vpop.permute.xlu0 %666  ;;  %v862_v46 = vrot.slane %v8055_v28, 2 }
  0xb1   : > { %15284 = vst [vmem:[#allocation103_spill] sm:$0xff] %v8478_v17 }
  0xb2   : > { %15285 = vst [vmem:[#allocation104_spill] sm:$0xff] %v8480_v24  ;;  %v857_v24 = vrot.slane %v8076_v54, 1  ;;  %v863_v6 = vor.u32 %v862_v46, %v861_v35  ;;  %v873_v46 = vrot.slane %v8111_v19, 1  ;;  %v15299_v35 = vld [vmem:[#allocation34_spill] sm:$0xff]  ;;  %v869_v54 = vrot.slane %v15302_v33, 1 }
  0xb3   : > { %15293 = vst [vmem:[#allocation112_spill] sm:$0xff] %v8524_v47  ;;  %v874_v58 = vrot.slane %v15299_v35, 2  ;;  %v798_v19 = vunpack.c.l.b16 %v298_v23 }
  0xb4   : > { %v859_v37 = vor.u32 %v858_v50, %v857_v24  ;;  %v8539_v62 = vsel %vm15146_vm3, %v863_v6, %v867_v43  ;;  %v877_v24 = vrot.slane %v15300_v14, 1  ;;  %v15301_v50 = vld [vmem:[#allocation37_spill] sm:$0xff] }
  0xb5   : > { %926 = vrot.lane.b32.xlu2 %v8483_v45, %s7792_s10  ;;  %924 = vrot.lane.b32.xlu1 %v8487_v38, %s7792_s10  ;;  %15297 = vst [vmem:[#allocation116_spill] sm:$0xff] %v8539_v62  ;;  %v878_v36 = vrot.slane %v15301_v50, 2 }
  0xb6   : > { %922 = vrot.lane.b32.xlu0 %v8497_v0, %s7792_s10  ;;  %v8542_v11 = vsel %vm15146_vm3, %v859_v37, %v863_v6  ;;  %v8551_v51 = vsel %vm15146_vm3, %v855_v59, %v859_v37  ;;  %v875_v6 = vor.u32 %v874_v58, %v873_v46  ;;  %v15308_v59 = vld [vmem:[#allocation48_spill] sm:$0xff]  ;;  %v15312_v46 = vld [vmem:[#allocation46_spill] sm:$0xff] }
  0xb7   : > { %v8505_v53 = vpop.permute.xlu2 %694  ;;  %v8507_v61 = vpop.permute.xlu1 %674  ;;  %15298 = vst [vmem:[#allocation117_spill] sm:$0xff] %v8542_v11  ;;  %v879_v35 = vor.u32 %v878_v36, %v877_v24  ;;  %v885_v14 = vrot.slane %v15308_v59, 1  ;;  %v882_v36 = vrot.slane %v15312_v46, 2  ;;  %v893_v46 = vrot.slane %v8218_v42, 1 }
  0xb8   : > { %15288 = vst [vmem:[#allocation107_spill] sm:$0xff] %v8505_v53  ;;  %v8509_v17 = vpop.permute.xlu0 %672  ;;  %v15303_v53 = vld [vmem:[#allocation35_spill] sm:$0xff] }
  0xb9   : > { %15289 = vst [vmem:[#allocation108_spill] sm:$0xff] %v8507_v61  ;;  %v870_v44 = vrot.slane %v15303_v53, 2  ;;  %v8573_v23 = vsel %vm15146_vm3, %v875_v6, %v879_v35  ;;  %v887_v24 = vor.u32 %v886_v39, %v885_v14 }
  0xba   : > { %15290 = vst [vmem:[#allocation109_spill] sm:$0xff] %v8509_v17 }
  0xbb   : > { %15304 = vst [vmem:[#allocation118_spill] sm:$0xff] %v8551_v51  ;;  %v871_v50 = vor.u32 %v870_v44, %v869_v54  ;;  %v8578_v54 = vpack.c.b16 %v798_v19, %v798_v19 }
  0xbc   : > { %15313 = vst [vmem:[#allocation122_spill] sm:$0xff] %v8573_v23 }
  0xbd   : > { %932 = vrot.lane.b32.xlu2 %v8518_v40, %s7792_s10  ;;  %930 = vrot.lane.b32.xlu1 %v8521_v16, %s7792_s10  ;;  %v8576_v44 = vsel %vm15146_vm3, %v871_v50, %v875_v6  ;;  %v8581_v58 = vsel %vm15146_vm3, %v867_v43, %v871_v50  ;;  %v902_v6 = vshrl.u32 %v8578_v54, 16  ;;  %v905_v19 = vshll.u32 %v8578_v54, 16 }
  0xbe   : > { %928 = vrot.lane.b32.xlu0 %v8524_v47, %s7792_s10  ;;  %15314 = vst [vmem:[#allocation123_spill] sm:$0xff] %v8576_v44 }
  0xbf   : > { %v8532_v56 = vpop.permute.xlu2 %753  ;;  %v8534_v5 = vpop.permute.xlu1 %680  ;;  %15315 = vst [vmem:[#allocation124_spill] sm:$0xff] %v8581_v58  ;;  %v904_v14 = vrot.slane %v902_v6, 1 }
  0xc0   : > { %15294 = vst [vmem:[#allocation113_spill] sm:$0xff] %v8532_v56  ;;  %v8536_v28 = vpop.permute.xlu0 %678 }
  0xc1   : > { %15295 = vst [vmem:[#allocation114_spill] sm:$0xff] %v8534_v5  ;;  %v15310_v5 = vld [vmem:[#allocation49_spill] sm:$0xff] }
  0xc2   : > { %15296 = vst [vmem:[#allocation115_spill] sm:$0xff] %v8536_v28  ;;  %v890_v13 = vrot.slane %v15310_v5, 2  ;;  %v15311_v28 = vld [vmem:[#allocation51_spill] sm:$0xff] }
  0xc3   : > { %v881_v61 = vrot.slane %v15311_v28, 1  ;;  %v15322_v28 = vld [vmem:[#allocation57_spill] sm:$0xff] }
  0xc4   : > { %v891_v5 = vor.u32 %v890_v13, %v889_v48  ;;  %v897_v48 = vrot.slane %v8210_v63, 1 }
  0xc5   : > { %938 = vrot.lane.b32.xlu2 %v8539_v62, %s7792_s10  ;;  %936 = vrot.lane.b32.xlu1 %v8542_v11, %s7792_s10  ;;  %v883_v22 = vor.u32 %v882_v36, %v881_v61  ;;  %v15321_v61 = vld [vmem:[#allocation56_spill] sm:$0xff]  ;;  %v907_v36 = vrot.slane %v905_v19, 2 }
  0xc6   : > { %934 = vrot.lane.b32.xlu0 %v8551_v51, %s7792_s10  ;;  %v8598_v59 = vsel %vm15146_vm3, %v887_v24, %v891_v5  ;;  %v898_v13 = vrot.slane %v15321_v61, 2 }
  0xc7   : > { %v8560_v33 = vpop.permute.xlu2 %759  ;;  %v8562_v53 = vpop.permute.xlu1 %686  ;;  %15319 = vst [vmem:[#allocation128_spill] sm:$0xff] %v8598_v59  ;;  %v8601_v39 = vsel %vm15146_vm3, %v883_v22, %v887_v24  ;;  %v908_v6 = vor.u32 %v907_v36, %v904_v14 }
  0xc8   : > { %15305 = vst [vmem:[#allocation119_spill] sm:$0xff] %v8560_v33  ;;  %v8564_v37 = vpop.permute.xlu0 %684  ;;  %v8617_v24 = vor.u32 %v898_v13, %v897_v48  ;;  %v15330_v48 = vunpack.c.h.b16 %v7900_v9  ;;  %v963_v13 = vrot.slane %v7905_v12, 2 }
  0xc9   : > { %15306 = vst [vmem:[#allocation120_spill] sm:$0xff] %v8562_v53  ;;  %v894_v53 = vrot.slane %v15322_v28, 2 }
  0xca   : > { %15307 = vst [vmem:[#allocation121_spill] sm:$0xff] %v8564_v37  ;;  %v909_v28 = vsel %vm15146_vm3, %v8617_v24, %v908_v6 }
  0xcb   : > { %15320 = vst [vmem:[#allocation129_spill] sm:$0xff] %v8601_v39  ;;  %v895_v19 = vor.u32 %v894_v53, %v893_v46  ;;  %v965_v46 = vrot.slane %v7890_v3, 2  ;;  %v971_v3 = vrot.slane %v7887_v2, 2 }
  0xcc   : > { %15324 = vst [vmem:[#allocation131_spill] sm:$0xff] %v8617_v24 }
  0xcd   : > { %944 = vrot.lane.b32.xlu2 %v8573_v23, %s7792_s10  ;;  %942 = vrot.lane.b32.xlu1 %v8576_v44, %s7792_s10  ;;  %v8629_v42 = vsel %vm15146_vm3, %v895_v19, %v8617_v24  ;;  %v966_v6 = vsel %vm961_vm4, %v963_v13, %v965_v46 }
  0xce   : > { %940 = vrot.lane.b32.xlu0 %v8581_v58, %s7792_s10  ;;  %15328 = vst [vmem:[#allocation135_spill] sm:$0xff] %v8629_v42 }
  0xcf   : > { %v8591_v27 = vpop.permute.xlu2 %765  ;;  %v8593_v43 = vpop.permute.xlu1 %692 }
  0xd0   : > { %15316 = vst [vmem:[#allocation125_spill] sm:$0xff] %v8591_v27  ;;  %v8595_v50 = vpop.permute.xlu0 %690  ;;  %v8632_v27 = vsel %vm15146_vm3, %v891_v5, %v895_v19 }
  0xd1   : > { %15317 = vst [vmem:[#allocation126_spill] sm:$0xff] %v8593_v43  ;;  %v8608_v43 = vsel %vm15146_vm3, %v879_v35, %v883_v22 }
  0xd2   : > { %15318 = vst [vmem:[#allocation127_spill] sm:$0xff] %v8595_v50  ;;  %v299_v50 = vld [vmem:[%s7879_s7] sm:$0xc] }
  0xd3   : > { %15323 = vst [vmem:[#allocation130_spill] sm:$0xff] %v8608_v43  ;;  %v959_v22 = vunpack.c.l.b16 %v299_v50  ;;  %v967_v50 = vrot.slane %v7896_v7, 2 }
  0xd4   : > { %15329 = vst [vmem:[#allocation136_spill] sm:$0xff] %v8632_v27 }
  0xd5   : > { %950 = vrot.lane.b32.xlu2 %v8598_v59, %s7792_s10  ;;  %948 = vrot.lane.b32.xlu1 %v8601_v39, %s7792_s10  ;;  %v960_v53 = vpack.c.b16 %v15330_v48, %v959_v22  ;;  %v973_v22 = vrot.slane %v7910_v15, 2  ;;  %v8659_v48 = vrot.slane %v7884_v1, 2  ;;  %v977_v1 = vrot.slane %v7934_v30, 2 }
  0xd6   : > { %946 = vrot.lane.b32.xlu0 %v8608_v43, %s7792_s10  ;;  %v979_v15 = vrot.slane %v7962_v41, 2  ;;  %v983_v30 = vrot.slane %v7984_v49, 2  ;;  %v985_v41 = vrot.slane %v8006_v57, 2  ;;  %v989_v49 = vrot.slane %v8037_v18, 2 }
  0xd7   : > { %v8619_v61 = vpop.permute.xlu2 %771  ;;  %v8621_v63 = vpop.permute.xlu1 %751  ;;  %v962_v9 = vrot.slane %v960_v53, 2  ;;  %15334 = vst [vmem:[#allocation140_spill] sm:$0xff] %v8659_v48  ;;  %v970_v2 = vsel %vm961_vm4, %v967_v50, %v8659_v48  ;;  %v987_v57 = vrot.slane %v8040_v20, 2  ;;  %v995_v18 = vrot.slane %v8079_v55, 2  ;;  %v15364_v55 = vld [vmem:[#allocation45_spill] sm:$0xff] }
  0xd8   : > { %15325 = vst [vmem:[#allocation132_spill] sm:$0xff] %v8619_v61  ;;  %v8623_v35 = vpop.permute.xlu0 %749  ;;  %v997_v20 = vrot.slane %v8103_v4, 2  ;;  %v1001_v4 = vrot.slane %v8127_v10, 2  ;;  %v15372_v10 = vld [vmem:[#allocation52_spill] sm:$0xff] }
  0xd9   : > { %15326 = vst [vmem:[#allocation133_spill] sm:$0xff] %v8621_v63  ;;  %v964_v19 = vsel %vm961_vm4, %v962_v9, %v963_v13  ;;  %v8668_v13 = vsel %vm961_vm4, %v971_v3, %v973_v22  ;;  %v8672_v9 = vsel %vm961_vm4, %v8659_v48, %v971_v3 }
  0xda   : > { %15327 = vst [vmem:[#allocation134_spill] sm:$0xff] %v8623_v35  ;;  %v8935_v35 = vld [vmem:[%s7879_s7 + $0x74] sm:$0xff]  }
  0xdb   : > { %15338 = vst [vmem:[#allocation144_spill] sm:$0xff] %v8668_v13 }
  0xdc   : > { %15339 = vst [vmem:[#allocation145_spill] sm:$0xff] %v8672_v9 }
  0xdd   : > { %956 = vrot.lane.b32.xlu2 %v909_v28, %s7792_s10  ;;  %954 = vrot.lane.b32.xlu1 %v8629_v42, %s7792_s10  ;;  %v968_v28 = vsel %vm961_vm4, %v965_v46, %v967_v50  ;;  %v8691_v50 = vsel %vm961_vm4, %v977_v1, %v979_v15 }
  0xde   : > { %952 = vrot.lane.b32.xlu0 %v8632_v27, %s7792_s10  ;;  %15343 = vst [vmem:[#allocation149_spill] sm:$0xff] %v8691_v50 }
  0xdf   : > { %v8644_v14 = vpop.permute.xlu2 %777  ;;  %v8646_v5 = vpop.permute.xlu1 %757 }
  0xe0   : > { %15331 = vst [vmem:[#allocation137_spill] sm:$0xff] %v8644_v14  ;;  %v8648_v36 = vpop.permute.xlu0 %755 }
  0xe1   : > { %15332 = vst [vmem:[#allocation138_spill] sm:$0xff] %v8646_v5 }
  0xe2   : > { %15333 = vst [vmem:[#allocation139_spill] sm:$0xff] %v8648_v36  ;;  %v7643_v36 = vld [vmem:[%s7879_s7 + $0x10] sm:$0xff]  }
  0xe5   : > { %1015 = vrot.lane.b32.xlu2 %v968_v28, %s7793_s11  ;;  %1013 = vrot.lane.b32.xlu1 %v966_v6, %s7793_s11  ;;  %v975_v28 = vrot.slane %v7937_v31, 2 }
  0xe6   : > { %1011 = vrot.lane.b32.xlu0 %v964_v19, %s7793_s11 }
  0xe7   : > { %v8661_v53 = vpop.permute.xlu2 %783  ;;  %v8663_v61 = vpop.permute.xlu1 %763  ;;  %v8694_v37 = vsel %vm961_vm4, %v975_v28, %v977_v1 }
  0xe8   : > { %15335 = vst [vmem:[#allocation141_spill] sm:$0xff] %v8661_v53  ;;  %v8665_v46 = vpop.permute.xlu0 %761  ;;  %v8742_v53 = vsel %vm961_vm4, %v987_v57, %v989_v49 }
  0xe9   : > { %15336 = vst [vmem:[#allocation142_spill] sm:$0xff] %v8663_v61 }
  0xea   : > { %15337 = vst [vmem:[#allocation143_spill] sm:$0xff] %v8665_v46  ;;  %v8745_v46 = vsel %vm961_vm4, %v985_v41, %v987_v57  ;;  %v8763_v57 = vsel %vm961_vm4, %v995_v18, %v997_v20 }
  0xeb   : > { %15344 = vst [vmem:[#allocation150_spill] sm:$0xff] %v8694_v37 }
  0xec   : > { %15356 = vst [vmem:[#allocation162_spill] sm:$0xff] %v8742_v53 }
  0xed   : > { %1021 = vrot.lane.b32.xlu2 %v8668_v13, %s7793_s11  ;;  %1019 = vrot.lane.b32.xlu1 %v8672_v9, %s7793_s11  ;;  %15357 = vst [vmem:[#allocation163_spill] sm:$0xff] %v8745_v46 }
  0xee   : > { %1017 = vrot.lane.b32.xlu0 %v970_v2, %s7793_s11  ;;  %v8697_v2 = vsel %vm961_vm4, %v973_v22, %v975_v28  ;;  %v8715_v28 = vsel %vm961_vm4, %v983_v30, %v985_v41  ;;  %15361 = vst [vmem:[#allocation167_spill] sm:$0xff] %v8763_v57 }
  0xef   : > { %v8684_v6 = vpop.permute.xlu2 %789  ;;  %v8686_v19 = vpop.permute.xlu1 %769  ;;  %15345 = vst [vmem:[#allocation151_spill] sm:$0xff] %v8697_v2 }
  0xf0   : > { %15340 = vst [vmem:[#allocation146_spill] sm:$0xff] %v8684_v6  ;;  %v8688_v3 = vpop.permute.xlu0 %767 }
  0xf1   : > { %15341 = vst [vmem:[#allocation147_spill] sm:$0xff] %v8686_v19  ;;  %v981_v19 = vrot.slane %v7991_v52, 2  ;;  %v991_v52 = vrot.slane %v8052_v26, 2  ;;  %v993_v26 = vrot.slane %v8088_v21, 2  ;;  %v1003_v21 = vrot.slane %v15364_v55, 2  ;;  %v15374_v55 = vld [vmem:[#allocation55_spill] sm:$0xff] }
  0xf2   : > { %15342 = vst [vmem:[#allocation148_spill] sm:$0xff] %v8688_v3 }
  0xf3   : > { %15349 = vst [vmem:[#allocation155_spill] sm:$0xff] %v8715_v28  ;;  %v8718_v3 = vsel %vm961_vm4, %v981_v19, %v983_v30  ;;  %v8721_v61 = vsel %vm961_vm4, %v979_v15, %v981_v19  ;;  %v8739_v19 = vsel %vm961_vm4, %v989_v49, %v991_v52  ;;  %v8769_v33 = vsel %vm961_vm4, %v991_v52, %v993_v26 }
  0xf4   : > { %15350 = vst [vmem:[#allocation156_spill] sm:$0xff] %v8718_v3 }
  0xf5   : > { %1027 = vrot.lane.b32.xlu2 %v8691_v50, %s7793_s11  ;;  %1025 = vrot.lane.b32.xlu1 %v8694_v37, %s7793_s11  ;;  %15351 = vst [vmem:[#allocation157_spill] sm:$0xff] %v8721_v61  ;;  %v9017_v50 = vld [vmem:[%s7879_s7 + $0xb4] sm:$0xff]  }
  0xf6   : > { %1023 = vrot.lane.b32.xlu0 %v8697_v2, %s7793_s11  ;;  %15355 = vst [vmem:[#allocation161_spill] sm:$0xff] %v8739_v19 }
  0xf7   : > { %v8708_v1 = vpop.permute.xlu2 %795  ;;  %v8710_v6 = vpop.permute.xlu1 %775  ;;  %15363 = vst [vmem:[#allocation169_spill] sm:$0xff] %v8769_v33 }
  0xf8   : > { %15346 = vst [vmem:[#allocation152_spill] sm:$0xff] %v8708_v1  ;;  %v8712_v22 = vpop.permute.xlu0 %773 }
  0xf9   : > { %15347 = vst [vmem:[#allocation153_spill] sm:$0xff] %v8710_v6 }
  0xfa   : > { %15348 = vst [vmem:[#allocation154_spill] sm:$0xff] %v8712_v22  ;;  %v8844_v22 = vld [vmem:[%s7879_s7 + $0x14] sm:$0xff]  }
  0xfb   : > { %v15411_v37 = vshll.u32 %v8844_v22, 16 }
  0xfd   : > { %1033 = vrot.lane.b32.xlu2 %v8715_v28, %s7793_s11  ;;  %1031 = vrot.lane.b32.xlu1 %v8718_v3, %s7793_s11  ;;  %v9009_v28 = vld [vmem:[%s7879_s7 + $0xbc] sm:$0xff]  }
  0xfe   : > { %1029 = vrot.lane.b32.xlu0 %v8721_v61, %s7793_s11 }
  0xff   : > { %v8732_v30 = vpop.permute.xlu2 %914  ;;  %v8734_v1 = vpop.permute.xlu1 %781 }
 0x100   : > { %15352 = vst [vmem:[#allocation158_spill] sm:$0xff] %v8732_v30  ;;  %v8736_v15 = vpop.permute.xlu0 %779 }
 0x101   : > { %15353 = vst [vmem:[#allocation159_spill] sm:$0xff] %v8734_v1 }
 0x102   : > { %15354 = vst [vmem:[#allocation160_spill] sm:$0xff] %v8736_v15  ;;  %v8766_v15 = vsel %vm961_vm4, %v993_v26, %v995_v18  ;;  %v8787_v26 = vsel %vm961_vm4, %v1001_v4, %v1003_v21 }
 0x103   : > { %15362 = vst [vmem:[#allocation168_spill] sm:$0xff] %v8766_v15 }
 0x104   : > { %15369 = vst [vmem:[#allocation171_spill] sm:$0xff] %v8787_v26 }
 0x105   : > { %1039 = vrot.lane.b32.xlu2 %v8739_v19, %s7793_s11  ;;  %1037 = vrot.lane.b32.xlu1 %v8742_v53, %s7793_s11 }
 0x106   : > { %1035 = vrot.lane.b32.xlu0 %v8745_v46, %s7793_s11 }
 0x107   : > { %v8756_v49 = vpop.permute.xlu2 %920  ;;  %v8758_v1 = vpop.permute.xlu1 %787 }
 0x108   : > { %15358 = vst [vmem:[#allocation164_spill] sm:$0xff] %v8756_v49  ;;  %v8760_v41 = vpop.permute.xlu0 %785 }
 0x109   : > { %15359 = vst [vmem:[#allocation165_spill] sm:$0xff] %v8758_v1  ;;  %v15365_v1 = vld [vmem:[#allocation43_spill] sm:$0xff] }
 0x10a   : > { %15360 = vst [vmem:[#allocation166_spill] sm:$0xff] %v8760_v41  ;;  %v999_v41 = vrot.slane %v15365_v1, 2  ;;  %v8802_v1 = vrot.slane %v15372_v10, 2 }
 0x10c   : > { %v8790_v5 = vsel %vm961_vm4, %v999_v41, %v1001_v4  ;;  %v8793_v14 = vsel %vm961_vm4, %v997_v20, %v999_v41  ;;  %15373 = vst [vmem:[#allocation52_spill] sm:$0xff] %v8802_v1  ;;  %v1009_v4 = vrot.slane %v8578_v54, 2  ;;  %v8825_v54 = vunpack.c.h.b16 %v7896_v7 }
 0x10d   : > { %1045 = vrot.lane.b32.xlu2 %v8763_v57, %s7793_s11  ;;  %1043 = vrot.lane.b32.xlu1 %v8766_v15, %s7793_s11  ;;  %15370 = vst [vmem:[#allocation172_spill] sm:$0xff] %v8790_v5  ;;  %v8984_v15 = vld [vmem:[%s7879_s7 + $0x9c] sm:$0xff]  }
 0x10e   : > { %1041 = vrot.lane.b32.xlu0 %v8769_v33, %s7793_s11  ;;  %15371 = vst [vmem:[#allocation173_spill] sm:$0xff] %v8793_v14  ;;  %v8981_v33 = vld [vmem:[%s7879_s7 + $0xc8] sm:$0xf] }
 0x10f   : > { %v8780_v18 = vpop.permute.xlu2 %926  ;;  %v8782_v49 = vpop.permute.xlu1 %793  ;;  %v15408_v53 = vunpack.c.l.b16 %v8981_v33 }
 0x110   : > { %15366 = vst [vmem:[#allocation45_spill] sm:$0xff] %v8780_v18  ;;  %v8784_v52 = vpop.permute.xlu0 %791  ;;  %v1010_v18 = vsel %vm961_vm4, %v8802_v1, %v1009_v4  ;;  %v7302_v4 = vunpack.c.h.b16 %v7905_v12  ;;  %v7644_v12 = vld [vmem:[%s7879_s7 + $0x30] sm:$0xff]  }
 0x111   : > { %15367 = vst [vmem:[#allocation43_spill] sm:$0xff] %v8782_v49  ;;  %v1005_v49 = vrot.slane %v15374_v55, 2  ;;  %v7642_v55 = vld [vmem:[%s7879_s7 + $0x20] sm:$0xff]  }
 0x112   : > { %15368 = vst [vmem:[#allocation170_spill] sm:$0xff] %v8784_v52 }
 0x113   : > { %v8816_v6 = vsel %vm961_vm4, %v1005_v49, %v8802_v1  ;;  %v8819_v10 = vsel %vm961_vm4, %v1003_v21, %v1005_v49  ;;  %v8832_v49 = vunpack.c.l.b16 %v7643_v36  ;;  %v8854_v36 = vunpack.c.h.b16 %v7644_v12  ;;  %v8959_v1 = vld [vmem:[%s7879_s7 + $0x84] sm:$0xff]  }
 0x114   : > { %15378 = vst [vmem:[#allocation176_spill] sm:$0xff] %v8816_v6 }
 0x115   : > { %1051 = vrot.lane.b32.xlu2 %v8787_v26, %s7793_s11  ;;  %1049 = vrot.lane.b32.xlu1 %v8790_v5, %s7793_s11  ;;  %15379 = vst [vmem:[#allocation177_spill] sm:$0xff] %v8819_v10  ;;  %v8847_v56 = vpack.c.b16 %v8832_v49, %v7302_v4  ;;  %v7645_v4 = vld [vmem:[%s7879_s7 + $0x28] sm:$0xff]   ;;  %v7426_v26 = vld [vmem:[%s7879_s7 + $0xc0] sm:$0xff]  }
 0x116   : > { %1047 = vrot.lane.b32.xlu0 %v8793_v14, %s7793_s11  ;;  %15383 = vst [vmem:[#allocation181_spill] sm:$0xff] %v8854_v36  ;;  %v8974_v14 = vld [vmem:[%s7879_s7 + $0xac] sm:$0xff]   ;;  %v8977_v5 = vld [vmem:[%s7879_s7 + $0xa4] sm:$0xff]   ;;  %v7394_v57 = vunpack.c.h.b16 %v7426_v26 }
 0x117   : > { %v8806_v20 = vpop.permute.xlu2 %932  ;;  %v8808_v41 = vpop.permute.xlu1 %912 }
 0x118   : > { %15375 = vst [vmem:[#allocation55_spill] sm:$0xff] %v8806_v20  ;;  %v8810_v52 = vpop.permute.xlu0 %910  ;;  %v7313_v20 = vunpack.c.l.b16 %v7642_v55  ;;  %v9004_v19 = vpack.c.b16 %v15408_v53, %v7394_v57 }
 0x119   : > { %15376 = vst [vmem:[#allocation174_spill] sm:$0xff] %v8808_v41 }
 0x11a   : > { %15377 = vst [vmem:[#allocation175_spill] sm:$0xff] %v8810_v52  ;;  %v8841_v7 = vpack.c.b16 %v7313_v20, %v8825_v54  ;;  %v7314_v20 = vunpack.c.h.b16 %v7642_v55  ;;  %v8932_v52 = vld [vmem:[%s7879_s7 + $0x7c] sm:$0xff]  }
 0x11b   : > { %15409 = vst [vmem:[#allocation206_spill] sm:$0xff] %v9004_v19 }
 0x11c   : > { %v15410_v61 = vshll.u32 %v8841_v7, 16 }
 0x11d   : > { %1057 = vrot.lane.b32.xlu2 %v1010_v18, %s7793_s11  ;;  %1055 = vrot.lane.b32.xlu1 %v8816_v6, %s7793_s11  ;;  %v8956_v6 = vld [vmem:[%s7879_s7 + $0x8c] sm:$0xff]  }
 0x11e   : > { %1053 = vrot.lane.b32.xlu0 %v8819_v10, %s7793_s11  ;;  %v8953_v10 = vld [vmem:[%s7879_s7 + $0x94] sm:$0xff]   ;;  %v1158_v3 = vrot.slane %v15410_v61, 1 }
 0x11f   : > { %v8834_v21 = vpop.permute.xlu2 %938  ;;  %v8836_v18 = vpop.permute.xlu1 %918 }
 0x120   : > { %15380 = vst [vmem:[#allocation178_spill] sm:$0xff] %v8834_v21  ;;  %v8838_v30 = vpop.permute.xlu0 %916  ;;  %v8860_v21 = vunpack.c.l.b16 %v7645_v4 }
 0x121   : > { %15381 = vst [vmem:[#allocation179_spill] sm:$0xff] %v8836_v18  ;;  %v7325_v18 = vunpack.c.l.b16 %v7937_v31  ;;  %v8872_v31 = vld [vmem:[%s7879_s7 + $0x2c] sm:$0xff]  }
 0x122   : > { %15382 = vst [vmem:[#allocation180_spill] sm:$0xff] %v8838_v30  ;;  %v8875_v63 = vpack.c.b16 %v8860_v21, %v7314_v20  ;;  %v8890_v20 = vld [vmem:[%s7879_s7 + $0x4c] sm:$0xff]  }
 0x123   : > { %15384 = vst [vmem:[#allocation182_spill] sm:$0xff] %v8860_v21  ;;  %v8869_v12 = vpack.c.b16 %v7325_v18, %v8854_v36  ;;  %v8914_v36 = vld [vmem:[%s7879_s7 + $0x5c] sm:$0xff]   ;;  %v8938_v21 = vld [vmem:[%s7879_s7 + $0x6c] sm:$0xff]  }
 0x124   : > { %15389 = vst [vmem:[#allocation187_spill] sm:$0xff] %v8875_v63  ;;  %v14999_v2 = vshll.u32 %v8875_v63, 16 }
 0x125   : > { %1093 = vrot.lane.b32.xlu2 %v8841_v7, %s7794_s12  ;;  %1091 = vrot.lane.b32.xlu1 %v8844_v22, %s7794_s12  ;;  %15388 = vst [vmem:[#allocation186_spill] sm:$0xff] %v8869_v12  ;;  %v15007_v9 = vshll.u32 %v8869_v12, 16  ;;  %v15008_v42 = vshrl.u32 %v8869_v12, 16 }
 0x126   : > { %1089 = vrot.lane.b32.xlu0 %v8847_v56, %s7794_s12  ;;  %v1166_v57 = vrot.slane %v14999_v2, 1 }
 0x127   : > { %v8862_v30 = vpop.permute.xlu2 %944  ;;  %v8864_v17 = vpop.permute.xlu1 %924 }
 0x128   : > { %15385 = vst [vmem:[#allocation183_spill] sm:$0xff] %v8862_v30  ;;  %v8866_v41 = vpop.permute.xlu0 %922  ;;  %v8896_v30 = vld [vmem:[%s7879_s7 + $0x3c] sm:$0xff]  }
 0x129   : > { %15386 = vst [vmem:[#allocation184_spill] sm:$0xff] %v8864_v17  ;;  %v8893_v17 = vld [vmem:[%s7879_s7 + $0x44] sm:$0xff]   ;;  %v15009_v24 = vshll.u32 %v8896_v30, 16 }
 0x12a   : > { %15387 = vst [vmem:[#allocation185_spill] sm:$0xff] %v8866_v41  ;;  %v8911_v41 = vld [vmem:[%s7879_s7 + $0x64] sm:$0xff]  }
 0x12d   : > { %1099 = vrot.lane.b32.xlu2 %v8869_v12, %s7794_s12  ;;  %1097 = vrot.lane.b32.xlu1 %v8872_v31, %s7794_s12 }
 0x12e   : > { %1095 = vrot.lane.b32.xlu0 %v8875_v63, %s7794_s12 }
 0x12f   : > { %v8883_v55 = vpop.permute.xlu2 %950  ;;  %v8885_v18 = vpop.permute.xlu1 %930 }
 0x130   : > { %15390 = vst [vmem:[#allocation188_spill] sm:$0xff] %v8883_v55  ;;  %v8887_v4 = vpop.permute.xlu0 %928 }
 0x131   : > { %15391 = vst [vmem:[#allocation189_spill] sm:$0xff] %v8885_v18 }
 0x132   : > { %15392 = vst [vmem:[#allocation190_spill] sm:$0xff] %v8887_v4 }
 0x135   : > { %1105 = vrot.lane.b32.xlu2 %v8890_v20, %s7794_s12  ;;  %1103 = vrot.lane.b32.xlu1 %v8893_v17, %s7794_s12 }
 0x136   : > { %1101 = vrot.lane.b32.xlu0 %v8896_v30, %s7794_s12 }
 0x137   : > { %v8904_v18 = vpop.permute.xlu2 %956  ;;  %v8906_v55 = vpop.permute.xlu1 %936 }
 0x138   : > { %15393 = vst [vmem:[#allocation191_spill] sm:$0xff] %v8904_v18  ;;  %v8908_v4 = vpop.permute.xlu0 %934 }
 0x139   : > { %15394 = vst [vmem:[#allocation192_spill] sm:$0xff] %v8906_v55 }
 0x13a   : > { %15395 = vst [vmem:[#allocation193_spill] sm:$0xff] %v8908_v4 }
 0x13d   : > { %1111 = vrot.lane.b32.xlu2 %v8911_v41, %s7794_s12  ;;  %1109 = vrot.lane.b32.xlu1 %v8914_v36, %s7794_s12 }
 0x13e   : > { %1107 = vrot.lane.b32.xlu0 %v8917_v8, %s7794_s12 }
 0x13f   : > { %v8925_v18 = vpop.permute.xlu2 %1015  ;;  %v8927_v55 = vpop.permute.xlu1 %942 }
 0x140   : > { %15396 = vst [vmem:[#allocation194_spill] sm:$0xff] %v8925_v18  ;;  %v8929_v4 = vpop.permute.xlu0 %940 }
 0x141   : > { %15397 = vst [vmem:[#allocation195_spill] sm:$0xff] %v8927_v55 }
 0x142   : > { %15398 = vst [vmem:[#allocation196_spill] sm:$0xff] %v8929_v4 }
 0x145   : > { %1117 = vrot.lane.b32.xlu2 %v8932_v52, %s7794_s12  ;;  %1115 = vrot.lane.b32.xlu1 %v8935_v35, %s7794_s12 }
 0x146   : > { %1113 = vrot.lane.b32.xlu0 %v8938_v21, %s7794_s12 }
 0x147   : > { %v8946_v55 = vpop.permute.xlu2 %1021  ;;  %v8948_v4 = vpop.permute.xlu1 %948 }
 0x148   : > { %15399 = vst [vmem:[#allocation197_spill] sm:$0xff] %v8946_v55  ;;  %v8950_v18 = vpop.permute.xlu0 %946 }
 0x149   : > { %15400 = vst [vmem:[#allocation198_spill] sm:$0xff] %v8948_v4 }
 0x14a   : > { %15401 = vst [vmem:[#allocation199_spill] sm:$0xff] %v8950_v18 }
 0x14d   : > { %1123 = vrot.lane.b32.xlu2 %v8953_v10, %s7794_s12  ;;  %1121 = vrot.lane.b32.xlu1 %v8956_v6, %s7794_s12 }
 0x14e   : > { %1119 = vrot.lane.b32.xlu0 %v8959_v1, %s7794_s12 }
 0x14f   : > { %v8967_v55 = vpop.permute.xlu2 %1027  ;;  %v8969_v4 = vpop.permute.xlu1 %954 }
 0x150   : > { %15402 = vst [vmem:[#allocation200_spill] sm:$0xff] %v8967_v55  ;;  %v8971_v18 = vpop.permute.xlu0 %952 }
 0x151   : > { %15403 = vst [vmem:[#allocation201_spill] sm:$0xff] %v8969_v4  ;;  %v14998_v4 = vshrl.u32 %v8841_v7, 16 }
 0x152   : > { %15404 = vst [vmem:[#allocation202_spill] sm:$0xff] %v8971_v18  ;;  %v1143_v18 = vshll.u32 %v8847_v56, 16 }
 0x153   : > { %v1162_v61 = vor.u32 %v14998_v4, %v1158_v3 }
 0x154   : > { %v1145_v53 = vrot.slane %v1143_v18, 1 }
 0x155   : > { %1129 = vrot.lane.b32.xlu2 %v8974_v14, %s7794_s12  ;;  %1127 = vrot.lane.b32.xlu1 %v8977_v5, %s7794_s12  ;;  %v1167_v4 = vsel %vm15151_vm1, %v1162_v61, %v1166_v57  ;;  %v15011_v61 = vshll.u32 %v8890_v20, 16 }
 0x156   : > { %1125 = vrot.lane.b32.xlu0 %v8984_v15, %s7794_s12 }
 0x157   : > { %v8996_v55 = vpop.permute.xlu2 %1033  ;;  %v8998_v26 = vpop.permute.xlu1 %1013 }
 0x158   : > { %15405 = vst [vmem:[#allocation203_spill] sm:$0xff] %v8996_v55  ;;  %v9000_v46 = vpop.permute.xlu0 %1011  ;;  %v1150_v55 = vrot.slane %v15411_v37, 1 }
 0x159   : > { %15406 = vst [vmem:[#allocation204_spill] sm:$0xff] %v8998_v26  ;;  %v15000_v26 = vshrl.u32 %v8844_v22, 16 }
 0x15a   : > { %15407 = vst [vmem:[#allocation205_spill] sm:$0xff] %v9000_v46  ;;  %v1141_v46 = vshrl.u32 %v8847_v56, 16  ;;  %v15006_v56 = vshll.u32 %v8872_v31, 16 }
 0x15b   : > { %v1154_v37 = vor.u32 %v15000_v26, %v1150_v55  ;;  %v1182_v26 = vrot.slane %v15007_v9, 1 }
 0x15c   : > { %v1146_v48 = vor.u32 %v1145_v53, %v1141_v46  ;;  %v9048_v43 = vrot.slane %v15006_v56, 1  ;;  %v15013_v53 = vshrl.u32 %v8875_v63, 16  ;;  %v1190_v56 = vrot.slane %v15009_v24, 1 }
 0x15d   : > { %1135 = vrot.lane.b32.xlu2 %v9004_v19, %s7794_s12  ;;  %1133 = vrot.lane.b32.xlu1 %v9009_v28, %s7794_s12  ;;  %v1159_v2 = vsel %vm15151_vm1, %v1154_v37, %v1158_v3  ;;  %v15012_v3 = vshll.u32 %v8893_v17, 16  ;;  %v1186_v37 = vor.u32 %v15008_v42, %v1182_v26  ;;  %v15014_v42 = vshrl.u32 %v8890_v20, 16 }
 0x15e   : > { %1131 = vrot.lane.b32.xlu0 %v9017_v50, %s7794_s12  ;;  %15415 = vst [vmem:[#allocation210_spill] sm:$0xff] %v9048_v43  ;;  %v1151_v46 = vsel %vm15151_vm1, %v1146_v48, %v1150_v55  ;;  %v15015_v24 = vshll.u32 %v8917_v8, 16 }
 0x15f   : > { %v9034_v18 = vpop.permute.xlu2 %1039  ;;  %v9036_v13 = vpop.permute.xlu1 %1019 }
 0x160   : > { %15412 = vst [vmem:[#allocation207_spill] sm:$0xff] %v9034_v18  ;;  %v9038_v27 = vpop.permute.xlu0 %1017  ;;  %v1198_v18 = vrot.slane %v15012_v3, 1 }
 0x161   : > { %15413 = vst [vmem:[#allocation208_spill] sm:$0xff] %v9036_v13  ;;  %v15010_v13 = vshrl.u32 %v8872_v31, 16 }
 0x162   : > { %15414 = vst [vmem:[#allocation209_spill] sm:$0xff] %v9038_v27 }
 0x163   : > { %v1178_v48 = vor.u32 %v15010_v13, %v9048_v43  ;;  %v15016_v13 = vshrl.u32 %v8893_v17, 16 }
 0x165   : > { %1340 = vrot.lane.b32.xlu2 %v1167_v4, %s7795_s13  ;;  %1338 = vrot.lane.b32.xlu1 %v1159_v2, %s7795_s13  ;;  %v1170_v2 = vor.u32 %v15013_v53, %v1166_v57 }
 0x166   : > { %1336 = vrot.lane.b32.xlu0 %v1151_v46, %s7795_s13  ;;  %v1206_v46 = vrot.slane %v15011_v61, 1 }
 0x167   : > { %v9065_v55 = vpop.permute.xlu2 %1045  ;;  %v9067_v9 = vpop.permute.xlu1 %1025  ;;  %v1175_v57 = vsel %vm15151_vm1, %v1170_v2, %v9048_v43  ;;  %v15021_v2 = vshrl.u32 %v8911_v41, 16  ;;  %v15515_v43 = vshll.u32 %v8844_v22, 16 }
 0x168   : > { %15416 = vst [vmem:[#allocation211_spill] sm:$0xff] %v9065_v55  ;;  %v9071_v4 = vpop.permute.xlu0 %1023  ;;  %v9081_v55 = vsel %vm15151_vm1, %v1186_v37, %v1190_v56  ;;  %v1210_v3 = vor.u32 %v15014_v42, %v1206_v46  ;;  %v1214_v37 = vrot.slane %v15015_v24, 1 }
 0x169   : > { %15417 = vst [vmem:[#allocation212_spill] sm:$0xff] %v9067_v9  ;;  %v9084_v9 = vsel %vm15151_vm1, %v1178_v48, %v1182_v26  ;;  %v1202_v26 = vor.u32 %v15016_v13, %v1198_v18  ;;  %v15018_v48 = vshll.u32 %v8911_v41, 16 }
 0x16a   : > { %15418 = vst [vmem:[#allocation213_spill] sm:$0xff] %v9071_v4  ;;  %v15423_v4 = vshrl.u32 %v8896_v30, 16  ;;  %v9111_v24 = vsel %vm15151_vm1, %v1210_v3, %v1214_v37  ;;  %v15026_v3 = vshrl.u32 %v8917_v8, 16 }
 0x16b   : > { %15419 = vst [vmem:[#allocation214_spill] sm:$0xff] %v9081_v55  ;;  %v9114_v13 = vsel %vm15151_vm1, %v1202_v26, %v1206_v46 }
 0x16c   : > { %15420 = vst [vmem:[#allocation215_spill] sm:$0xff] %v9084_v9  ;;  %v1194_v27 = vor.u32 %v15423_v4, %v1190_v56  ;;  %v15025_v56 = vshrl.u32 %v8914_v36, 16 }
 0x16d   : > { %1346 = vrot.lane.b32.xlu2 %v9081_v55, %s7795_s13  ;;  %1344 = vrot.lane.b32.xlu1 %v9084_v9, %s7795_s13  ;;  %15425 = vst [vmem:[#allocation219_spill] sm:$0xff] %v9111_v24 }
 0x16e   : > { %1342 = vrot.lane.b32.xlu0 %v1175_v57, %s7795_s13  ;;  %15426 = vst [vmem:[#allocation220_spill] sm:$0xff] %v9114_v13  ;;  %v1230_v57 = vrot.slane %v15018_v48, 1  ;;  %v9124_v4 = vsel %vm15151_vm1, %v1194_v27, %v1198_v18 }
 0x16f   : > { %v9102_v53 = vpop.permute.xlu2 %1051  ;;  %v9104_v61 = vpop.permute.xlu1 %1031  ;;  %15428 = vst [vmem:[#allocation221_spill] sm:$0xff] %v9124_v4 }
 0x170   : > { %15421 = vst [vmem:[#allocation216_spill] sm:$0xff] %v9102_v53  ;;  %v9108_v42 = vpop.permute.xlu0 %1029  ;;  %v15023_v53 = vshll.u32 %v8938_v21, 16 }
 0x171   : > { %15422 = vst [vmem:[#allocation217_spill] sm:$0xff] %v9104_v61  ;;  %v15427_v61 = vshll.u32 %v8914_v36, 16 }
 0x172   : > { %15424 = vst [vmem:[#allocation218_spill] sm:$0xff] %v9108_v42  ;;  %v1238_v27 = vrot.slane %v15023_v53, 1  ;;  %v1218_v42 = vor.u32 %v15026_v3, %v1214_v37  ;;  %v15433_v53 = vshll.u32 %v8935_v35, 16 }
 0x173   : > { %v1222_v9 = vrot.slane %v15427_v61, 1  ;;  %v1234_v61 = vor.u32 %v15021_v2, %v1230_v57  ;;  %v15027_v2 = vshrl.u32 %v8932_v52, 16 }
 0x174   : > { %v1246_v55 = vrot.slane %v15433_v53, 1 }
 0x175   : > { %1352 = vrot.lane.b32.xlu2 %v9111_v24, %s7795_s13  ;;  %1350 = vrot.lane.b32.xlu1 %v9114_v13, %s7795_s13  ;;  %v1226_v18 = vor.u32 %v15025_v56, %v1222_v9  ;;  %v15028_v24 = vshll.u32 %v8959_v1, 16  ;;  %v15029_v56 = vshrl.u32 %v8935_v35, 16  ;;  %v9163_v37 = vsel %vm15151_vm1, %v1218_v42, %v1222_v9 }
 0x176   : > { %1348 = vrot.lane.b32.xlu0 %v9124_v4, %s7795_s13  ;;  %v15432_v4 = vshll.u32 %v8932_v52, 16  ;;  %15436 = vst [vmem:[#allocation227_spill] sm:$0xff] %v9163_v37  ;;  %v15033_v42 = vshll.u32 %v8953_v10, 16  ;;  %v15037_v9 = vshrl.u32 %v8953_v10, 16 }
 0x177   : > { %v9141_v48 = vpop.permute.xlu2 %1057  ;;  %v9143_v46 = vpop.permute.xlu1 %1037 }
 0x178   : > { %15429 = vst [vmem:[#allocation222_spill] sm:$0xff] %v9141_v48  ;;  %v9147_v26 = vpop.permute.xlu0 %1035  ;;  %v1254_v13 = vrot.slane %v15432_v4, 1  ;;  %v9157_v48 = vsel %vm15151_vm1, %v1234_v61, %v1238_v27  ;;  %v15032_v4 = vshrl.u32 %v8938_v21, 16  ;;  %v1262_v61 = vrot.slane %v15028_v24, 1 }
 0x179   : > { %15430 = vst [vmem:[#allocation223_spill] sm:$0xff] %v9143_v46  ;;  %v9160_v46 = vsel %vm15151_vm1, %v1226_v18, %v1230_v57  ;;  %v1250_v57 = vor.u32 %v15029_v56, %v1246_v55 }
 0x17a   : > { %15431 = vst [vmem:[#allocation224_spill] sm:$0xff] %v9147_v26  ;;  %v1258_v53 = vor.u32 %v15027_v2, %v1254_v13  ;;  %v1242_v2 = vor.u32 %v15032_v4, %v1238_v27  ;;  %v15040_v27 = vshrl.u32 %v8956_v6, 16 }
 0x17b   : > { %15434 = vst [vmem:[#allocation225_spill] sm:$0xff] %v9157_v48  ;;  %v9192_v56 = vsel %vm15151_vm1, %v1250_v57, %v1254_v13  ;;  %v303_v57 = vld [vmem:[%s7879_s7 + $0xcc] sm:$0x1] }
 0x17c   : > { %15435 = vst [vmem:[#allocation226_spill] sm:$0xff] %v9160_v46  ;;  %v9189_v24 = vsel %vm15151_vm1, %v1258_v53, %v1262_v61  ;;  %v9202_v4 = vsel %vm15151_vm1, %v1242_v2, %v1246_v55  ;;  %v15041_v53 = vshrl.u32 %v8959_v1, 16 }
 0x17d   : > { %1358 = vrot.lane.b32.xlu2 %v9157_v48, %s7795_s13  ;;  %1356 = vrot.lane.b32.xlu1 %v9160_v46, %s7795_s13  ;;  %15440 = vst [vmem:[#allocation231_spill] sm:$0xff] %v9189_v24  ;;  %v15448_v48 = vshll.u32 %v8977_v5, 16 }
 0x17e   : > { %1354 = vrot.lane.b32.xlu0 %v9163_v37, %s7795_s13  ;;  %15441 = vst [vmem:[#allocation232_spill] sm:$0xff] %v9192_v56  ;;  %v1278_v37 = vrot.slane %v15033_v42, 1 }
 0x17f   : > { %v9180_v18 = vpop.permute.xlu2 %1093  ;;  %v9182_v3 = vpop.permute.xlu1 %1043  ;;  %15443 = vst [vmem:[#allocation233_spill] sm:$0xff] %v9202_v4 }
 0x180   : > { %15437 = vst [vmem:[#allocation228_spill] sm:$0xff] %v9180_v18  ;;  %v9186_v26 = vpop.permute.xlu0 %1041  ;;  %v15038_v18 = vshll.u32 %v8984_v15, 16 }
 0x181   : > { %15438 = vst [vmem:[#allocation229_spill] sm:$0xff] %v9182_v3  ;;  %v15442_v3 = vshll.u32 %v8956_v6, 16 }
 0x182   : > { %15439 = vst [vmem:[#allocation230_spill] sm:$0xff] %v9186_v26  ;;  %v1286_v55 = vrot.slane %v15038_v18, 1  ;;  %v1266_v26 = vor.u32 %v15041_v53, %v1262_v61  ;;  %v15043_v18 = vshll.u32 %v9017_v50, 16  ;;  %v1138_v53 = vunpack.c.l.b16 %v303_v57 }
 0x183   : > { %v1270_v46 = vrot.slane %v15442_v3, 1  ;;  %v1282_v3 = vor.u32 %v15037_v9, %v1278_v37  ;;  %v15042_v9 = vshrl.u32 %v8974_v14, 16  ;;  %v15051_v57 = vshrl.u32 %v9004_v19, 16 }
 0x185   : > { %1364 = vrot.lane.b32.xlu2 %v9189_v24, %s7795_s13  ;;  %1362 = vrot.lane.b32.xlu1 %v9192_v56, %s7795_s13  ;;  %v1274_v2 = vor.u32 %v15040_v27, %v1270_v46  ;;  %v1294_v27 = vrot.slane %v15448_v48, 1 }
 0x186   : > { %1360 = vrot.lane.b32.xlu0 %v9202_v4, %s7795_s13  ;;  %v15447_v4 = vshll.u32 %v8974_v14, 16 }
 0x187   : > { %v9219_v42 = vpop.permute.xlu2 %1099  ;;  %v9221_v13 = vpop.permute.xlu1 %1049  ;;  %v9239_v61 = vsel %vm15151_vm1, %v1274_v2, %v1278_v37 }
 0x188   : > { %15444 = vst [vmem:[#allocation234_spill] sm:$0xff] %v9219_v42  ;;  %v9226_v56 = vpop.permute.xlu0 %1047  ;;  %v1302_v24 = vrot.slane %v15447_v4, 1  ;;  %v15045_v42 = vshrl.u32 %v8977_v5, 16 }
 0x189   : > { %15445 = vst [vmem:[#allocation235_spill] sm:$0xff] %v9221_v13  ;;  %v9236_v13 = vsel %vm15151_vm1, %v1282_v3, %v1286_v55  ;;  %v1310_v3 = vrot.slane %v15043_v18, 1 }
 0x18a   : > { %15446 = vst [vmem:[#allocation236_spill] sm:$0xff] %v9226_v56  ;;  %v9242_v56 = vsel %vm15151_vm1, %v1266_v26, %v1270_v46  ;;  %v1306_v48 = vor.u32 %v15042_v9, %v1302_v24  ;;  %v1298_v37 = vor.u32 %v15045_v42, %v1294_v27  ;;  %v9258_v26 = vpack.c.b16 %v1138_v53, %v1138_v53 }
 0x18b   : > { %15449 = vst [vmem:[#allocation237_spill] sm:$0xff] %v9236_v13  ;;  %v15454_v9 = vshrl.u32 %v8984_v15, 16  ;;  %v15458_v53 = vshll.u32 %v9004_v19, 16 }
 0x18c   : > { %15450 = vst [vmem:[#allocation238_spill] sm:$0xff] %v9239_v61  ;;  %v9270_v42 = vsel %vm15151_vm1, %v1306_v48, %v1310_v3  ;;  %v9273_v46 = vsel %vm15151_vm1, %v1298_v37, %v1302_v24  ;;  %v15053_v48 = vshrl.u32 %v9017_v50, 16 }
 0x18d   : > { %15451 = vst [vmem:[#allocation239_spill] sm:$0xff] %v9242_v56  ;;  %1370 = vrot.lane.b32.xlu2 %v9236_v13, %s7795_s13  ;;  %1368 = vrot.lane.b32.xlu1 %v9239_v61, %s7795_s13  ;;  %v1290_v18 = vor.u32 %v15454_v9, %v1286_v55  ;;  %v15052_v9 = vshrl.u32 %v9009_v28, 16 }
 0x18e   : > { %1366 = vrot.lane.b32.xlu0 %v9242_v56, %s7795_s13  ;;  %15456 = vst [vmem:[#allocation243_spill] sm:$0xff] %v9270_v42  ;;  %v1326_v56 = vrot.slane %v15458_v53, 1  ;;  %v1314_v53 = vor.u32 %v15053_v48, %v1310_v3  ;;  %v1392_v3 = vrot.slane %v8875_v63, 1 }
 0x18f   : > { %v9261_v2 = vpop.permute.xlu2 %1105  ;;  %v9263_v4 = vpop.permute.xlu1 %1055  ;;  %15457 = vst [vmem:[#allocation244_spill] sm:$0xff] %v9273_v46  ;;  %v9283_v55 = vsel %vm15151_vm1, %v1290_v18, %v1294_v27 }
 0x190   : > { %15452 = vst [vmem:[#allocation240_spill] sm:$0xff] %v9261_v2  ;;  %v9267_v61 = vpop.permute.xlu0 %1053  ;;  %v1332_v2 = vshll.u32 %v9258_v26, 16  ;;  %v9295_v24 = vor.u32 %v15051_v57, %v1326_v56 }
 0x191   : > { %15453 = vst [vmem:[#allocation241_spill] sm:$0xff] %v9263_v4  ;;  %v15459_v4 = vshll.u32 %v9009_v28, 16 }
 0x192   : > { %15455 = vst [vmem:[#allocation242_spill] sm:$0xff] %v9267_v61  ;;  %v304_v61 = vld [vmem:[%s7879_s7 + $0xc] sm:$0xe] }
 0x193   : > { %v1318_v13 = vrot.slane %v15459_v4, 1  ;;  %15460 = vst [vmem:[#allocation245_spill] sm:$0xff] %v9283_v55  ;;  %v1334_v4 = vrot.slane %v1332_v2, 1 }
 0x194   : > { %15461 = vst [vmem:[#allocation246_spill] sm:$0xff] %v9295_v24 }
 0x195   : > { %1376 = vrot.lane.b32.xlu2 %v9270_v42, %s7795_s13  ;;  %1374 = vrot.lane.b32.xlu1 %v9273_v46, %s7795_s13  ;;  %v1322_v18 = vor.u32 %v15052_v9, %v1318_v13  ;;  %v1385_v42 = vunpack.c.l.b16 %v304_v61  ;;  %v9313_v2 = vsel %vm15151_vm1, %v1314_v53, %v1318_v13  ;;  %v1390_v61 = vrot.slane %v8841_v7, 1 }
 0x196   : > { %1372 = vrot.lane.b32.xlu0 %v9283_v55, %s7795_s13  ;;  %v1335_v55 = vsel %vm15151_vm1, %v9295_v24, %v1334_v4  ;;  %15466 = vst [vmem:[#allocation251_spill] sm:$0xff] %v9313_v2  ;;  %v15513_v24 = vshll.u32 %v8875_v63, 16 }
 0x197   : > { %v9299_v27 = vpop.permute.xlu2 %1111  ;;  %v9301_v37 = vpop.permute.xlu1 %1091  ;;  %v9310_v57 = vsel %vm15151_vm1, %v1322_v18, %v1326_v56  ;;  %v9316_v9 = vpack.c.b16 %v8832_v49, %v1385_v42  ;;  %v1388_v56 = vrot.slane %v8844_v22, 1 }
 0x198   : > { %15462 = vst [vmem:[#allocation247_spill] sm:$0xff] %v9299_v27  ;;  %v9305_v46 = vpop.permute.xlu0 %1089  ;;  %v1396_v27 = vrot.slane %v8869_v12, 1 }
 0x199   : > { %15463 = vst [vmem:[#allocation248_spill] sm:$0xff] %v9301_v37  ;;  %v1387_v42 = vrot.slane %v9316_v9, 1  ;;  %v1391_v53 = vsel %vm15152_vm2, %v1388_v56, %v1390_v61 }
 0x19a   : > { %15464 = vst [vmem:[#allocation249_spill] sm:$0xff] %v9305_v46 }
 0x19b   : > { %15465 = vst [vmem:[#allocation250_spill] sm:$0xff] %v9310_v57  ;;  %v1389_v48 = vsel %vm15152_vm2, %v1387_v42, %v1388_v56 }
 0x19d   : > { %1382 = vrot.lane.b32.xlu2 %v1335_v55, %s7795_s13  ;;  %1380 = vrot.lane.b32.xlu1 %v9310_v57, %s7795_s13  ;;  %v1393_v55 = vsel %vm15152_vm2, %v1390_v61, %v1392_v3 }
 0x19e   : > { %1378 = vrot.lane.b32.xlu0 %v9313_v2, %s7795_s13 }
 0x19f   : > { %v9326_v4 = vpop.permute.xlu2 %1117  ;;  %v9328_v13 = vpop.permute.xlu1 %1097 }
 0x1a0   : > { %15467 = vst [vmem:[#allocation252_spill] sm:$0xff] %v9326_v4  ;;  %v9331_v18 = vpop.permute.xlu0 %1095  ;;  %v9342_v4 = vrot.slane %v8872_v31, 1 }
 0x1a1   : > { %15468 = vst [vmem:[#allocation253_spill] sm:$0xff] %v9328_v13  ;;  %v1398_v13 = vrot.slane %v8896_v30, 1 }
 0x1a2   : > { %15469 = vst [vmem:[#allocation254_spill] sm:$0xff] %v9331_v18  ;;  %v9355_v42 = vsel %vm15152_vm2, %v9342_v4, %v1396_v27 }
 0x1a3   : > { %15470 = vst [vmem:[#allocation255_spill] sm:$0xff] %v9342_v4  ;;  %v9351_v56 = vsel %vm15152_vm2, %v1396_v27, %v1398_v13 }
 0x1a4   : > { %15474 = vst [vmem:[#allocation259_spill] sm:$0xff] %v9351_v56 }
 0x1a5   : > { %1440 = vrot.lane.b32.xlu2 %v1393_v55, %s7796_s14  ;;  %1438 = vrot.lane.b32.xlu1 %v1391_v53, %s7796_s14  ;;  %15475 = vst [vmem:[#allocation260_spill] sm:$0xff] %v9355_v42  ;;  %v1402_v55 = vrot.slane %v8890_v20, 1  ;;  %v1404_v53 = vrot.slane %v8917_v8, 1 }
 0x1a6   : > { %1436 = vrot.lane.b32.xlu0 %v1389_v48, %s7796_s14  ;;  %v1395_v48 = vsel %vm15152_vm2, %v1392_v3, %v9342_v4  ;;  %v15511_v4 = vshll.u32 %v8841_v7, 16 }
 0x1a7   : > { %v9344_v18 = vpop.permute.xlu2 %1123  ;;  %v9346_v37 = vpop.permute.xlu1 %1103  ;;  %v9374_v3 = vsel %vm15152_vm2, %v1402_v55, %v1404_v53 }
 0x1a8   : > { %15471 = vst [vmem:[#allocation256_spill] sm:$0xff] %v9344_v18  ;;  %v9348_v61 = vpop.permute.xlu0 %1101  ;;  %v1500_v2 = vrot.slane %v15511_v4, 2 }
 0x1a9   : > { %15472 = vst [vmem:[#allocation257_spill] sm:$0xff] %v9346_v37  ;;  %v1400_v37 = vrot.slane %v8893_v17, 1 }
 0x1aa   : > { %15473 = vst [vmem:[#allocation258_spill] sm:$0xff] %v9348_v61 }
 0x1ab   : > { %15479 = vst [vmem:[#allocation264_spill] sm:$0xff] %v9374_v3 }
 0x1ad   : > { %1446 = vrot.lane.b32.xlu2 %v9351_v56, %s7796_s14  ;;  %1444 = vrot.lane.b32.xlu1 %v9355_v42, %s7796_s14  ;;  %v9377_v56 = vsel %vm15152_vm2, %v1400_v37, %v1402_v55 }
 0x1ae   : > { %1442 = vrot.lane.b32.xlu0 %v1395_v48, %s7796_s14  ;;  %15480 = vst [vmem:[#allocation265_spill] sm:$0xff] %v9377_v56  ;;  %v9380_v48 = vsel %vm15152_vm2, %v1398_v13, %v1400_v37 }
 0x1af   : > { %v9367_v18 = vpop.permute.xlu2 %1129  ;;  %v9369_v27 = vpop.permute.xlu1 %1109  ;;  %15481 = vst [vmem:[#allocation266_spill] sm:$0xff] %v9380_v48 }
 0x1b0   : > { %15476 = vst [vmem:[#allocation261_spill] sm:$0xff] %v9367_v18  ;;  %v9371_v61 = vpop.permute.xlu0 %1107  ;;  %v1410_v18 = vrot.slane %v8938_v21, 1 }
 0x1b1   : > { %15477 = vst [vmem:[#allocation262_spill] sm:$0xff] %v9369_v27  ;;  %v1408_v27 = vrot.slane %v8911_v41, 1 }
 0x1b2   : > { %15478 = vst [vmem:[#allocation263_spill] sm:$0xff] %v9371_v61  ;;  %v1406_v61 = vrot.slane %v8914_v36, 1 }
 0x1b3   : > { %v9398_v13 = vsel %vm15152_vm2, %v1408_v27, %v1410_v18 }
 0x1b4   : > { %15485 = vst [vmem:[#allocation270_spill] sm:$0xff] %v9398_v13 }
 0x1b5   : > { %1452 = vrot.lane.b32.xlu2 %v9374_v3, %s7796_s14  ;;  %1450 = vrot.lane.b32.xlu1 %v9377_v56, %s7796_s14  ;;  %v9401_v3 = vsel %vm15152_vm2, %v1406_v61, %v1408_v27 }
 0x1b6   : > { %1448 = vrot.lane.b32.xlu0 %v9380_v48, %s7796_s14  ;;  %15486 = vst [vmem:[#allocation271_spill] sm:$0xff] %v9401_v3  ;;  %v9404_v48 = vsel %vm15152_vm2, %v1404_v53, %v1406_v61 }
 0x1b7   : > { %v9391_v55 = vpop.permute.xlu2 %1135  ;;  %v9393_v42 = vpop.permute.xlu1 %1115  ;;  %15487 = vst [vmem:[#allocation272_spill] sm:$0xff] %v9404_v48 }
 0x1b8   : > { %15482 = vst [vmem:[#allocation267_spill] sm:$0xff] %v9391_v55  ;;  %v9395_v37 = vpop.permute.xlu0 %1113  ;;  %v1414_v55 = vrot.slane %v8932_v52, 1 }
 0x1b9   : > { %15483 = vst [vmem:[#allocation268_spill] sm:$0xff] %v9393_v42  ;;  %v1416_v42 = vrot.slane %v8959_v1, 1 }
 0x1ba   : > { %15484 = vst [vmem:[#allocation269_spill] sm:$0xff] %v9395_v37  ;;  %v1412_v37 = vrot.slane %v8935_v35, 1 }
 0x1bb   : > { %v9422_v53 = vsel %vm15152_vm2, %v1414_v55, %v1416_v42 }
 0x1bc   : > { %15491 = vst [vmem:[#allocation276_spill] sm:$0xff] %v9422_v53 }
 0x1bd   : > { %1458 = vrot.lane.b32.xlu2 %v9398_v13, %s7796_s14  ;;  %1456 = vrot.lane.b32.xlu1 %v9401_v3, %s7796_s14  ;;  %v9425_v13 = vsel %vm15152_vm2, %v1412_v37, %v1414_v55  ;;  %v1418_v3 = vrot.slane %v8956_v6, 1 }
 0x1be   : > { %1454 = vrot.lane.b32.xlu0 %v9404_v48, %s7796_s14  ;;  %15492 = vst [vmem:[#allocation277_spill] sm:$0xff] %v9425_v13  ;;  %v9428_v48 = vsel %vm15152_vm2, %v1410_v18, %v1412_v37 }
 0x1bf   : > { %v9415_v27 = vpop.permute.xlu2 %1340  ;;  %v9417_v56 = vpop.permute.xlu1 %1121  ;;  %15493 = vst [vmem:[#allocation278_spill] sm:$0xff] %v9428_v48 }
 0x1c0   : > { %15488 = vst [vmem:[#allocation273_spill] sm:$0xff] %v9415_v27  ;;  %v9419_v61 = vpop.permute.xlu0 %1119 }
 0x1c1   : > { %15489 = vst [vmem:[#allocation274_spill] sm:$0xff] %v9417_v56  ;;  %v1420_v56 = vrot.slane %v8953_v10, 1 }
 0x1c2   : > { %15490 = vst [vmem:[#allocation275_spill] sm:$0xff] %v9419_v61  ;;  %v1422_v61 = vrot.slane %v8984_v15, 1 }
 0x1c4   : > { %v9446_v37 = vsel %vm15152_vm2, %v1420_v56, %v1422_v61 }
 0x1c5   : > { %1464 = vrot.lane.b32.xlu2 %v9422_v53, %s7796_s14  ;;  %1462 = vrot.lane.b32.xlu1 %v9425_v13, %s7796_s14  ;;  %15497 = vst [vmem:[#allocation282_spill] sm:$0xff] %v9446_v37  ;;  %v9449_v53 = vsel %vm15152_vm2, %v1418_v3, %v1420_v56 }
 0x1c6   : > { %1460 = vrot.lane.b32.xlu0 %v9428_v48, %s7796_s14  ;;  %15498 = vst [vmem:[#allocation283_spill] sm:$0xff] %v9449_v53  ;;  %v9452_v48 = vsel %vm15152_vm2, %v1416_v42, %v1418_v3 }
 0x1c7   : > { %v9439_v55 = vpop.permute.xlu2 %1346  ;;  %v9441_v27 = vpop.permute.xlu1 %1127  ;;  %15499 = vst [vmem:[#allocation284_spill] sm:$0xff] %v9452_v48 }
 0x1c8   : > { %15494 = vst [vmem:[#allocation279_spill] sm:$0xff] %v9439_v55  ;;  %v9443_v18 = vpop.permute.xlu0 %1125  ;;  %v1424_v55 = vrot.slane %v8977_v5, 1 }
 0x1c9   : > { %15495 = vst [vmem:[#allocation280_spill] sm:$0xff] %v9441_v27  ;;  %v1426_v27 = vrot.slane %v8974_v14, 1 }
 0x1ca   : > { %15496 = vst [vmem:[#allocation281_spill] sm:$0xff] %v9443_v18  ;;  %v1428_v18 = vrot.slane %v9017_v50, 1 }
 0x1cc   : > { %v9470_v3 = vsel %vm15152_vm2, %v1426_v27, %v1428_v18 }
 0x1cd   : > { %1470 = vrot.lane.b32.xlu2 %v9446_v37, %s7796_s14  ;;  %1468 = vrot.lane.b32.xlu1 %v9449_v53, %s7796_s14  ;;  %15503 = vst [vmem:[#allocation288_spill] sm:$0xff] %v9470_v3  ;;  %v9473_v37 = vsel %vm15152_vm2, %v1424_v55, %v1426_v27  ;;  %v1430_v27 = vrot.slane %v9009_v28, 1 }
 0x1ce   : > { %1466 = vrot.lane.b32.xlu0 %v9452_v48, %s7796_s14  ;;  %15504 = vst [vmem:[#allocation289_spill] sm:$0xff] %v9473_v37  ;;  %v9476_v48 = vsel %vm15152_vm2, %v1422_v61, %v1424_v55  ;;  %v1488_v55 = vshrl.u32 %v9316_v9, 16 }
 0x1cf   : > { %v9463_v56 = vpop.permute.xlu2 %1352  ;;  %v9465_v13 = vpop.permute.xlu1 %1133  ;;  %15505 = vst [vmem:[#allocation290_spill] sm:$0xff] %v9476_v48  ;;  %v9516_v4 = vsel %vm15152_vm2, %v1428_v18, %v1430_v27 }
 0x1d0   : > { %15500 = vst [vmem:[#allocation285_spill] sm:$0xff] %v9463_v56  ;;  %v9467_v42 = vpop.permute.xlu0 %1131 }
 0x1d1   : > { %15501 = vst [vmem:[#allocation286_spill] sm:$0xff] %v9465_v13  ;;  %v9485_v13 = vrot.slane %v9004_v19, 1 }
 0x1d2   : > { %15502 = vst [vmem:[#allocation287_spill] sm:$0xff] %v9467_v42  ;;  %v1434_v42 = vrot.slane %v9258_v26, 1  ;;  %v15512_v26 = vshrl.u32 %v8875_v63, 16 }
 0x1d3   : > { %15506 = vst [vmem:[#allocation291_spill] sm:$0xff] %v9485_v13 }
 0x1d4   : > { %v1503_v57 = vrot.slane %v15512_v26, 1  ;;  %15517 = vst [vmem:[#allocation296_spill] sm:$0xff] %v9516_v4  ;;  %v1490_v26 = vrot.slane %v1488_v55, 1 }
 0x1d5   : > { %1476 = vrot.lane.b32.xlu2 %v9470_v3, %s7796_s14  ;;  %1474 = vrot.lane.b32.xlu1 %v9473_v37, %s7796_s14  ;;  %v1491_v3 = vshll.u32 %v9316_v9, 16  ;;  %v15510_v37 = vshrl.u32 %v8841_v7, 16  ;;  %v1496_v9 = vrot.slane %v15515_v43, 2 }
 0x1d6   : > { %1472 = vrot.lane.b32.xlu0 %v9476_v48, %s7796_s14 }
 0x1d7   : > { %v9489_v56 = vpop.permute.xlu2 %1358  ;;  %v9491_v61 = vpop.permute.xlu1 %1338  ;;  %v1499_v48 = vrot.slane %v15510_v37, 1  ;;  %v9513_v37 = vsel %vm15152_vm2, %v1430_v27, %v9485_v13  ;;  %v1493_v39 = vrot.slane %v1491_v3, 2  ;;  %v15521_v27 = vshrl.u32 %v8869_v12, 16 }
 0x1d8   : > { %15507 = vst [vmem:[#allocation292_spill] sm:$0xff] %v9489_v56  ;;  %v9495_v53 = vpop.permute.xlu0 %1336  ;;  %v1504_v56 = vrot.slane %v15513_v24, 2 }
 0x1d9   : > { %15508 = vst [vmem:[#allocation293_spill] sm:$0xff] %v9491_v61  ;;  %v15514_v61 = vshrl.u32 %v8844_v22, 16  ;;  %v1501_v24 = vor.u32 %v1500_v2, %v1499_v48  ;;  %v1511_v55 = vrot.slane %v15521_v27, 1  ;;  %v15523_v2 = vshrl.u32 %v8896_v30, 16 }
 0x1da   : > { %15509 = vst [vmem:[#allocation294_spill] sm:$0xff] %v9495_v53  ;;  %v1435_v53 = vsel %vm15152_vm2, %v9485_v13, %v1434_v42  ;;  %v1505_v22 = vor.u32 %v1504_v56, %v1503_v57  ;;  %v1494_v13 = vor.u32 %v1493_v39, %v1490_v26  ;;  %v15522_v57 = vshll.u32 %v8869_v12, 16 }
 0x1db   : > { %v1495_v46 = vrot.slane %v15514_v61, 1  ;;  %15516 = vst [vmem:[#allocation295_spill] sm:$0xff] %v9513_v37  ;;  %v1515_v48 = vrot.slane %v15523_v2, 1  ;;  %v15524_v56 = vshll.u32 %v8896_v30, 16  ;;  %v15525_v39 = vshrl.u32 %v8872_v31, 16 }
 0x1dc   : > { %v1506_v3 = vsel %vm15146_vm3, %v1501_v24, %v1505_v22 }
 0x1dd   : > { %1482 = vrot.lane.b32.xlu2 %v1435_v53, %s7796_s14  ;;  %1480 = vrot.lane.b32.xlu1 %v9513_v37, %s7796_s14  ;;  %v1497_v43 = vor.u32 %v1496_v9, %v1495_v46  ;;  %v1512_v46 = vrot.slane %v15522_v57, 2  ;;  %v1516_v9 = vrot.slane %v15524_v56, 2  ;;  %v1507_v26 = vrot.slane %v15525_v39, 1 }
 0x1de   : > { %1478 = vrot.lane.b32.xlu0 %v9516_v4, %s7796_s14  ;;  %v15526_v4 = vshll.u32 %v8872_v31, 16  ;;  %v15531_v31 = vshrl.u32 %v8890_v20, 16 }
 0x1df   : > { %v9523_v42 = vpop.permute.xlu2 %1364  ;;  %v9525_v61 = vpop.permute.xlu1 %1344  ;;  %v1502_v53 = vsel %vm15146_vm3, %v1497_v43, %v1501_v24  ;;  %v1498_v24 = vsel %vm15146_vm3, %v1494_v13, %v1497_v43  ;;  %v1513_v27 = vor.u32 %v1512_v46, %v1511_v55  ;;  %v1517_v57 = vor.u32 %v1516_v9, %v1515_v48 }
 0x1e0   : > { %15518 = vst [vmem:[#allocation297_spill] sm:$0xff] %v9523_v42  ;;  %v9527_v18 = vpop.permute.xlu0 %1342  ;;  %v1508_v37 = vrot.slane %v15526_v4, 2  ;;  %v1523_v13 = vrot.slane %v15531_v31, 1  ;;  %v15532_v4 = vshll.u32 %v8890_v20, 16  ;;  %v15534_v55 = vshll.u32 %v8917_v8, 16 }
 0x1e1   : > { %15519 = vst [vmem:[#allocation298_spill] sm:$0xff] %v9525_v61  ;;  %v15536_v9 = vshll.u32 %v8893_v17, 16 }
 0x1e2   : > { %15520 = vst [vmem:[#allocation299_spill] sm:$0xff] %v9527_v18  ;;  %v9547_v2 = vor.u32 %v1508_v37, %v1507_v26  ;;  %v1524_v43 = vrot.slane %v15532_v4, 2  ;;  %v1528_v46 = vrot.slane %v15534_v55, 2  ;;  %v15535_v37 = vshrl.u32 %v8893_v17, 16 }
 0x1e3   : > { %v1520_v26 = vrot.slane %v15536_v9, 2 }
 0x1e4   : > { %15527 = vst [vmem:[#allocation300_spill] sm:$0xff] %v9547_v2  ;;  %v1519_v48 = vrot.slane %v15535_v37, 1  ;;  %v9572_v31 = vsel %vm15146_vm3, %v9547_v2, %v1513_v27  ;;  %v1510_v20 = vsel %vm15146_vm3, %v1505_v22, %v9547_v2  ;;  %v1525_v4 = vor.u32 %v1524_v43, %v1523_v13 }
 0x1e5   : > { %1600 = vrot.lane.b32.xlu2 %v1506_v3, %s7797_s22  ;;  %1598 = vrot.lane.b32.xlu1 %v1502_v53, %s7797_s22  ;;  %v15533_v3 = vshrl.u32 %v8917_v8, 16  ;;  %15538 = vst [vmem:[#allocation305_spill] sm:$0xff] %v9572_v31  ;;  %v15545_v13 = vshll.u32 %v8911_v41, 16 }
 0x1e6   : > { %1596 = vrot.lane.b32.xlu0 %v1498_v24, %s7797_s22  ;;  %v9568_v24 = vsel %vm15146_vm3, %v1513_v27, %v1517_v57  ;;  %v1521_v17 = vor.u32 %v1520_v26, %v1519_v48  ;;  %v15547_v48 = vshll.u32 %v8938_v21, 16 }
 0x1e7   : > { %v9549_v56 = vpop.permute.xlu2 %1370  ;;  %v9551_v61 = vpop.permute.xlu1 %1350  ;;  %v1527_v53 = vrot.slane %v15533_v3, 1  ;;  %15537 = vst [vmem:[#allocation304_spill] sm:$0xff] %v9568_v24  ;;  %v1536_v43 = vrot.slane %v15545_v13, 2 }
 0x1e8   : > { %15528 = vst [vmem:[#allocation301_spill] sm:$0xff] %v9549_v56  ;;  %v9553_v39 = vpop.permute.xlu0 %1348  ;;  %v9591_v22 = vsel %vm15146_vm3, %v1521_v17, %v1525_v4  ;;  %v1540_v26 = vrot.slane %v15547_v48, 2 }
 0x1e9   : > { %15529 = vst [vmem:[#allocation302_spill] sm:$0xff] %v9551_v61  ;;  %v1529_v3 = vor.u32 %v1528_v46, %v1527_v53  ;;  %v15546_v53 = vshrl.u32 %v8938_v21, 16 }
 0x1ea   : > { %15530 = vst [vmem:[#allocation303_spill] sm:$0xff] %v9553_v39 }
 0x1eb   : > { %v9588_v9 = vsel %vm15146_vm3, %v1525_v4, %v1529_v3  ;;  %15543 = vst [vmem:[#allocation310_spill] sm:$0xff] %v9591_v22  ;;  %v1539_v46 = vrot.slane %v15546_v53, 1  ;;  %v9606_v4 = vsel %vm15146_vm3, %v1517_v57, %v1521_v17  ;;  %v15554_v57 = vshrl.u32 %v8932_v52, 16 }
 0x1ec   : > { %15542 = vst [vmem:[#allocation309_spill] sm:$0xff] %v9588_v9 }
 0x1ed   : > { %1606 = vrot.lane.b32.xlu2 %v9568_v24, %s7797_s22  ;;  %1604 = vrot.lane.b32.xlu1 %v9572_v31, %s7797_s22  ;;  %v15544_v24 = vshrl.u32 %v8911_v41, 16  ;;  %15550 = vst [vmem:[#allocation311_spill] sm:$0xff] %v9606_v4  ;;  %v1547_v17 = vrot.slane %v15554_v57, 1 }
 0x1ee   : > { %1602 = vrot.lane.b32.xlu0 %v1510_v20, %s7797_s22  ;;  %v15548_v20 = vshrl.u32 %v8914_v36, 16 }
 0x1ef   : > { %v9581_v55 = vpop.permute.xlu2 %1376  ;;  %v9583_v37 = vpop.permute.xlu1 %1356  ;;  %v1535_v61 = vrot.slane %v15544_v24, 1  ;;  %v1541_v24 = vor.u32 %v1540_v26, %v1539_v46 }
 0x1f0   : > { %15539 = vst [vmem:[#allocation306_spill] sm:$0xff] %v9581_v55  ;;  %v9585_v27 = vpop.permute.xlu0 %1354  ;;  %v15549_v55 = vshll.u32 %v8914_v36, 16 }
 0x1f1   : > { %15540 = vst [vmem:[#allocation307_spill] sm:$0xff] %v9583_v37  ;;  %v1531_v37 = vrot.slane %v15548_v20, 1  ;;  %v1537_v41 = vor.u32 %v1536_v43, %v1535_v61  ;;  %v15559_v43 = vshll.u32 %v8935_v35, 16 }
 0x1f2   : > { %15541 = vst [vmem:[#allocation308_spill] sm:$0xff] %v9585_v27  ;;  %v1532_v27 = vrot.slane %v15549_v55, 2  ;;  %v15555_v55 = vshll.u32 %v8932_v52, 16 }
 0x1f3   : > { %v1544_v46 = vrot.slane %v15559_v43, 2  ;;  %v9633_v26 = vsel %vm15146_vm3, %v1537_v41, %v1541_v24 }
 0x1f4   : > { %v1533_v13 = vor.u32 %v1532_v27, %v1531_v37  ;;  %v1548_v20 = vrot.slane %v15555_v55, 2  ;;  %v15558_v37 = vshrl.u32 %v8935_v35, 16  ;;  %15560 = vst [vmem:[#allocation315_spill] sm:$0xff] %v9633_v26 }
 0x1f5   : > { %1612 = vrot.lane.b32.xlu2 %v9588_v9, %s7797_s22  ;;  %1610 = vrot.lane.b32.xlu1 %v9591_v22, %s7797_s22  ;;  %v15556_v9 = vshrl.u32 %v8959_v1, 16 }
 0x1f6   : > { %1608 = vrot.lane.b32.xlu0 %v9606_v4, %s7797_s22  ;;  %v15557_v4 = vshll.u32 %v8959_v1, 16  ;;  %v1543_v27 = vrot.slane %v15558_v37, 1  ;;  %v9636_v57 = vsel %vm15146_vm3, %v1533_v13, %v1537_v41  ;;  %v9639_v52 = vsel %vm15146_vm3, %v1529_v3, %v1533_v13 }
 0x1f7   : > { %v9614_v53 = vpop.permute.xlu2 %1382  ;;  %v9616_v48 = vpop.permute.xlu1 %1362  ;;  %v1551_v22 = vrot.slane %v15556_v9, 1  ;;  %15561 = vst [vmem:[#allocation316_spill] sm:$0xff] %v9636_v57  ;;  %v1549_v9 = vor.u32 %v1548_v20, %v1547_v17  ;;  %v15568_v17 = vshrl.u32 %v8953_v10, 16 }
 0x1f8   : > { %15551 = vst [vmem:[#allocation312_spill] sm:$0xff] %v9614_v53  ;;  %v9618_v36 = vpop.permute.xlu0 %1360  ;;  %v1552_v61 = vrot.slane %v15557_v4, 2  ;;  %v1545_v35 = vor.u32 %v1544_v46, %v1543_v27  ;;  %v15570_v27 = vshrl.u32 %v8984_v15, 16  ;;  %v15571_v46 = vshll.u32 %v8984_v15, 16 }
 0x1f9   : > { %15552 = vst [vmem:[#allocation313_spill] sm:$0xff] %v9616_v48  ;;  %v1559_v20 = vrot.slane %v15568_v17, 1  ;;  %v15573_v53 = vshll.u32 %v8956_v6, 16 }
 0x1fa   : > { %15553 = vst [vmem:[#allocation314_spill] sm:$0xff] %v9618_v36  ;;  %v1553_v4 = vor.u32 %v1552_v61, %v1551_v22  ;;  %v9657_v13 = vsel %vm15146_vm3, %v1545_v35, %v1549_v9  ;;  %v15569_v22 = vshll.u32 %v8953_v10, 16  ;;  %v1563_v43 = vrot.slane %v15570_v27, 1 }
 0x1fb   : > { %15562 = vst [vmem:[#allocation317_spill] sm:$0xff] %v9639_v52  ;;  %v1556_v56 = vrot.slane %v15573_v53, 2  ;;  %v15578_v53 = vshrl.u32 %v8974_v14, 16 }
 0x1fc   : > { %v9654_v3 = vsel %vm15146_vm3, %v1549_v9, %v1553_v4  ;;  %15567 = vst [vmem:[#allocation322_spill] sm:$0xff] %v9657_v13  ;;  %v1560_v61 = vrot.slane %v15569_v22, 2  ;;  %v9672_v9 = vsel %vm15146_vm3, %v1541_v24, %v1545_v35 }
 0x1fd   : > { %1618 = vrot.lane.b32.xlu2 %v9633_v26, %s7797_s22  ;;  %1616 = vrot.lane.b32.xlu1 %v9636_v57, %s7797_s22  ;;  %15566 = vst [vmem:[#allocation321_spill] sm:$0xff] %v9654_v3  ;;  %v1564_v26 = vrot.slane %v15571_v46, 2  ;;  %v15572_v57 = vshrl.u32 %v8956_v6, 16  ;;  %v1571_v35 = vrot.slane %v15578_v53, 1  ;;  %v15579_v46 = vshll.u32 %v8974_v14, 16 }
 0x1fe   : > { %1614 = vrot.lane.b32.xlu0 %v9639_v52, %s7797_s22  ;;  %15574 = vst [vmem:[#allocation323_spill] sm:$0xff] %v9672_v9  ;;  %v1561_v10 = vor.u32 %v1560_v61, %v1559_v20  ;;  %v15581_v20 = vshll.u32 %v9017_v50, 16 }
 0x1ff   : > { %v9647_v55 = vpop.permute.xlu2 %1440  ;;  %v9649_v41 = vpop.permute.xlu1 %1368  ;;  %v1555_v52 = vrot.slane %v15572_v57, 1  ;;  %v1565_v17 = vor.u32 %v1564_v26, %v1563_v43 }
 0x200   : > { %15563 = vst [vmem:[#allocation318_spill] sm:$0xff] %v9647_v55  ;;  %v9651_v37 = vpop.permute.xlu0 %1366  ;;  %v1576_v26 = vrot.slane %v15581_v20, 2 }
 0x201   : > { %15564 = vst [vmem:[#allocation319_spill] sm:$0xff] %v9649_v41  ;;  %v305_v41 = vld [vmem:[%s7879_s7 + $0xcc] sm:$0x3]  ;;  %v1557_v22 = vor.u32 %v1556_v56, %v1555_v52  ;;  %v15582_v56 = vshrl.u32 %v8977_v5, 16  ;;  %v9700_v43 = vsel %vm15146_vm3, %v1561_v10, %v1565_v17 }
 0x202   : > { %15565 = vst [vmem:[#allocation320_spill] sm:$0xff] %v9651_v37  ;;  %v1485_v57 = vunpack.c.l.b16 %v305_v41  ;;  %v15583_v41 = vshll.u32 %v8977_v5, 16 }
 0x203   : > { %v1567_v52 = vrot.slane %v15582_v56, 1  ;;  %15584 = vst [vmem:[#allocation327_spill] sm:$0xff] %v9700_v43  ;;  %v9703_v53 = vsel %vm15146_vm3, %v1557_v22, %v1561_v10 }
 0x204   : > { %v1568_v61 = vrot.slane %v15583_v41, 2  ;;  %15585 = vst [vmem:[#allocation328_spill] sm:$0xff] %v9703_v53  ;;  %v9705_v14 = vpack.c.b16 %v1485_v57, %v1485_v57 }
 0x205   : > { %1624 = vrot.lane.b32.xlu2 %v9654_v3, %s7797_s22  ;;  %1622 = vrot.lane.b32.xlu1 %v9657_v13, %s7797_s22  ;;  %v1572_v3 = vrot.slane %v15579_v46, 2  ;;  %v15580_v13 = vshrl.u32 %v9017_v50, 16  ;;  %v9708_v46 = vsel %vm15146_vm3, %v1553_v4, %v1557_v22 }
 0x206   : > { %1620 = vrot.lane.b32.xlu0 %v9672_v9, %s7797_s22  ;;  %15586 = vst [vmem:[#allocation329_spill] sm:$0xff] %v9708_v46  ;;  %v1569_v20 = vor.u32 %v1568_v61, %v1567_v52  ;;  %v1588_v10 = vshrl.u32 %v9705_v14, 16  ;;  %v1591_v57 = vshll.u32 %v9705_v14, 16  ;;  %v15594_v9 = vshrl.u32 %v9009_v28, 16 }
 0x207   : > { %v9681_v27 = vpop.permute.xlu2 %1446  ;;  %v9683_v6 = vpop.permute.xlu1 %1374  ;;  %v1575_v39 = vrot.slane %v15580_v13, 1  ;;  %v1573_v13 = vor.u32 %v1572_v3, %v1571_v35  ;;  %v15592_v3 = vshrl.u32 %v9004_v19, 16 }
 0x208   : > { %15575 = vst [vmem:[#allocation324_spill] sm:$0xff] %v9681_v27  ;;  %v9685_v24 = vpop.permute.xlu0 %1372  ;;  %v1590_v61 = vrot.slane %v1588_v10, 1  ;;  %v7672_v27 = vld [vmem:[%s7879_s7 + $0x80] sm:$0xff]  }
 0x209   : > { %15576 = vst [vmem:[#allocation325_spill] sm:$0xff] %v9683_v6  ;;  %v1577_v5 = vor.u32 %v1576_v26, %v1575_v39  ;;  %v9728_v39 = vsel %vm15146_vm3, %v1569_v20, %v1573_v13  ;;  %v1583_v35 = vrot.slane %v15592_v3, 1  ;;  %v15593_v26 = vshll.u32 %v9004_v19, 16  ;;  %v306_v6 = vld [vmem:[%s7879_s7 + $0xc] sm:$0xc] }
 0x20a   : > { %15577 = vst [vmem:[#allocation326_spill] sm:$0xff] %v9685_v24 }
 0x20b   : > { %v9725_v41 = vsel %vm15146_vm3, %v1573_v13, %v1577_v5  ;;  %15591 = vst [vmem:[#allocation334_spill] sm:$0xff] %v9728_v39  ;;  %v1584_v52 = vrot.slane %v15593_v26, 2 }
 0x20c   : > { %15590 = vst [vmem:[#allocation333_spill] sm:$0xff] %v9725_v41 }
 0x20d   : > { %1630 = vrot.lane.b32.xlu2 %v9700_v43, %s7797_s22  ;;  %1628 = vrot.lane.b32.xlu1 %v9703_v53, %s7797_s22  ;;  %v1579_v43 = vrot.slane %v15594_v9, 1  ;;  %v9748_v13 = vor.u32 %v1584_v52, %v1583_v35 }
 0x20e   : > { %1626 = vrot.lane.b32.xlu0 %v9708_v46, %s7797_s22  ;;  %v1593_v46 = vrot.slane %v1591_v57, 2 }
 0x20f   : > { %v9718_v56 = vpop.permute.xlu2 %1452  ;;  %v9720_v4 = vpop.permute.xlu1 %1380  ;;  %15597 = vst [vmem:[#allocation336_spill] sm:$0xff] %v9748_v13 }
 0x210   : > { %15587 = vst [vmem:[#allocation330_spill] sm:$0xff] %v9718_v56  ;;  %v9722_v22 = vpop.permute.xlu0 %1378  ;;  %v1594_v9 = vor.u32 %v1593_v46, %v1590_v61 }
 0x211   : > { %15588 = vst [vmem:[#allocation331_spill] sm:$0xff] %v9720_v4  ;;  %v15595_v4 = vshll.u32 %v9009_v28, 16 }
 0x212   : > { %15589 = vst [vmem:[#allocation332_spill] sm:$0xff] %v9722_v22  ;;  %v9739_v22 = vsel %vm15146_vm3, %v1565_v17, %v1569_v20  ;;  %v1645_v17 = vunpack.c.l.b16 %v306_v6  ;;  %v1650_v6 = vrot.slane %v8841_v7, 2  ;;  %v1656_v7 = vrot.slane %v8869_v12, 2 }
 0x213   : > { %v1580_v53 = vrot.slane %v15595_v4, 2  ;;  %15596 = vst [vmem:[#allocation335_spill] sm:$0xff] %v9739_v22  ;;  %v1595_v4 = vsel %vm15146_vm3, %v9748_v13, %v1594_v9 }
 0x214   : > { %v1646_v46 = vpack.c.b16 %v8832_v49, %v1645_v17 }
 0x215   : > { %1636 = vrot.lane.b32.xlu2 %v9725_v41, %s7797_s22  ;;  %1634 = vrot.lane.b32.xlu1 %v9728_v39, %s7797_s22  ;;  %v1581_v10 = vor.u32 %v1580_v53, %v1579_v43  ;;  %v1652_v43 = vrot.slane %v8875_v63, 2  ;;  %v7646_v53 = vld [vmem:[%s7879_s7 + $0x14] sm:$0xff]  }
 0x216   : > { %1632 = vrot.lane.b32.xlu0 %v9739_v22, %s7797_s22  ;;  %v1648_v26 = vrot.slane %v7646_v53, 2  ;;  %v1647_v49 = vrot.slane %v1646_v46, 2  ;;  %v9789_v46 = vld [vmem:[%s7879_s7 + $0x2c] sm:$0xff]   ;;  %v1670_v22 = vrot.slane %v8938_v21, 2  ;;  %v9847_v21 = vld [vmem:[%s7879_s7 + $0x7c] sm:$0xff]  }
 0x217   : > { %v9750_v28 = vpop.permute.xlu2 %1458  ;;  %v9752_v57 = vpop.permute.xlu1 %1438  ;;  %v9760_v3 = vsel %vm15146_vm3, %v1581_v10, %v9748_v13  ;;  %v9763_v35 = vsel %vm15146_vm3, %v1577_v5, %v1581_v10  ;;  %v1653_v9 = vsel %vm961_vm4, %v1650_v6, %v1652_v43  ;;  %v1654_v53 = vrot.slane %v9789_v46, 2 }
 0x218   : > { %15598 = vst [vmem:[#allocation337_spill] sm:$0xff] %v9750_v28  ;;  %v9754_v20 = vpop.permute.xlu0 %1436  ;;  %v1651_v10 = vsel %vm961_vm4, %v1648_v26, %v1650_v6  ;;  %v1649_v17 = vsel %vm961_vm4, %v1647_v49, %v1648_v26  ;;  %v9831_v28 = vld [vmem:[%s7879_s7 + $0x5c] sm:$0xff]  }
 0x219   : > { %15599 = vst [vmem:[#allocation338_spill] sm:$0xff] %v9752_v57 }
 0x21a   : > { %15600 = vst [vmem:[#allocation339_spill] sm:$0xff] %v9760_v3 }
 0x21b   : > { %15601 = vst [vmem:[#allocation340_spill] sm:$0xff] %v9763_v35 }
 0x21d   : > { %1642 = vrot.lane.b32.xlu2 %v1595_v4, %s7797_s22  ;;  %1640 = vrot.lane.b32.xlu1 %v9760_v3, %s7797_s22  ;;  %v1658_v4 = vrot.slane %v8896_v30, 2  ;;  %v9805_v30 = vld [vmem:[%s7879_s7 + $0x4c] sm:$0xff]   ;;  %v1664_v3 = vrot.slane %v8917_v8, 2  ;;  %v9826_v8 = vld [vmem:[%s7879_s7 + $0x64] sm:$0xff]  }
 0x21e   : > { %1638 = vrot.lane.b32.xlu0 %v9763_v35, %s7797_s22  ;;  %v1662_v13 = vrot.slane %v9805_v30, 2  ;;  %v9810_v35 = vld [vmem:[%s7879_s7 + $0x44] sm:$0xff]   ;;  %v1668_v39 = vrot.slane %v9826_v8, 2 }
 0x21f   : > { %v9774_v52 = vpop.permute.xlu2 %1464  ;;  %v9776_v5 = vpop.permute.xlu1 %1444 }
 0x220   : > { %15602 = vst [vmem:[#allocation341_spill] sm:$0xff] %v9774_v52  ;;  %v9778_v61 = vpop.permute.xlu0 %1442 }
 0x221   : > { %15603 = vst [vmem:[#allocation342_spill] sm:$0xff] %v9776_v5  ;;  %v15655_v5 = vld [vmem:[#allocation10_spill] sm:$0xff] }
 0x222   : > { %15604 = vst [vmem:[#allocation343_spill] sm:$0xff] %v9778_v61  ;;  %v15684_v61 = vld [vmem:[#allocation58_spill] sm:$0xff] }
 0x225   : > { %1700 = vrot.lane.b32.xlu2 %v1653_v9, %s7798_s23  ;;  %1698 = vrot.lane.b32.xlu1 %v1651_v10, %s7798_s23  ;;  %v1659_v9 = vsel %vm961_vm4, %v1656_v7, %v1658_v4  ;;  %v1657_v10 = vsel %vm961_vm4, %v1654_v53, %v1656_v7  ;;  %v1660_v7 = vrot.slane %v9810_v35, 2 }
 0x226   : > { %1696 = vrot.lane.b32.xlu0 %v1649_v17, %s7798_s23  ;;  %v1655_v17 = vsel %vm961_vm4, %v1652_v43, %v1654_v53 }
 0x227   : > { %v9792_v6 = vpop.permute.xlu2 %1470  ;;  %v9794_v26 = vpop.permute.xlu1 %1450 }
 0x228   : > { %15605 = vst [vmem:[#allocation344_spill] sm:$0xff] %v9792_v6  ;;  %v9796_v49 = vpop.permute.xlu0 %1448  ;;  %v9873_v6 = vld [vmem:[%s7879_s7 + $0x8c] sm:$0xff]  }
 0x229   : > { %15606 = vst [vmem:[#allocation345_spill] sm:$0xff] %v9794_v26  ;;  %v1682_v26 = vrot.slane %v8984_v15, 2  ;;  %v9889_v15 = vld [vmem:[%s7879_s7 + $0xac] sm:$0xff]  }
 0x22a   : > { %15607 = vst [vmem:[#allocation346_spill] sm:$0xff] %v9796_v49  ;;  %v1686_v49 = vrot.slane %v9889_v15, 2 }
 0x22d   : > { %1706 = vrot.lane.b32.xlu2 %v1659_v9, %s7798_s23  ;;  %1704 = vrot.lane.b32.xlu1 %v1657_v10, %s7798_s23  ;;  %v1665_v9 = vsel %vm961_vm4, %v1662_v13, %v1664_v3  ;;  %v1663_v10 = vsel %vm961_vm4, %v1660_v7, %v1662_v13  ;;  %v1666_v13 = vrot.slane %v9831_v28, 2 }
 0x22e   : > { %1702 = vrot.lane.b32.xlu0 %v1655_v17, %s7798_s23  ;;  %v1661_v17 = vsel %vm961_vm4, %v1658_v4, %v1660_v7 }
 0x22f   : > { %v9813_v41 = vpop.permute.xlu2 %1476  ;;  %v9815_v43 = vpop.permute.xlu1 %1456 }
 0x230   : > { %15608 = vst [vmem:[#allocation347_spill] sm:$0xff] %v9813_v41  ;;  %v9817_v53 = vpop.permute.xlu0 %1454  ;;  %v1676_v41 = vrot.slane %v8959_v1, 2  ;;  %v9868_v1 = vld [vmem:[%s7879_s7 + $0x94] sm:$0xff]  }
 0x231   : > { %15609 = vst [vmem:[#allocation348_spill] sm:$0xff] %v9815_v43  ;;  %v1680_v24 = vrot.slane %v9868_v1, 2 }
 0x232   : > { %15610 = vst [vmem:[#allocation349_spill] sm:$0xff] %v9817_v53  ;;  %v9852_v53 = vld [vmem:[%s7879_s7 + $0x74] sm:$0xff]  }
 0x235   : > { %1712 = vrot.lane.b32.xlu2 %v1665_v9, %s7798_s23  ;;  %1710 = vrot.lane.b32.xlu1 %v1663_v10, %s7798_s23  ;;  %v1671_v9 = vsel %vm961_vm4, %v1668_v39, %v1670_v22  ;;  %v1669_v10 = vsel %vm961_vm4, %v1666_v13, %v1668_v39  ;;  %v1672_v39 = vrot.slane %v9852_v53, 2 }
 0x236   : > { %1708 = vrot.lane.b32.xlu0 %v1661_v17, %s7798_s23  ;;  %v1667_v17 = vsel %vm961_vm4, %v1664_v3, %v1666_v13 }
 0x237   : > { %v9834_v43 = vpop.permute.xlu2 %1482  ;;  %v9836_v4 = vpop.permute.xlu1 %1462 }
 0x238   : > { %15611 = vst [vmem:[#allocation350_spill] sm:$0xff] %v9834_v43  ;;  %v9838_v7 = vpop.permute.xlu0 %1460  ;;  %v1674_v43 = vrot.slane %v9847_v21, 2 }
 0x239   : > { %15612 = vst [vmem:[#allocation351_spill] sm:$0xff] %v9836_v4 }
 0x23a   : > { %15613 = vst [vmem:[#allocation352_spill] sm:$0xff] %v9838_v7 }
 0x23d   : > { %1718 = vrot.lane.b32.xlu2 %v1671_v9, %s7798_s23  ;;  %1716 = vrot.lane.b32.xlu1 %v1669_v10, %s7798_s23  ;;  %v1677_v9 = vsel %vm961_vm4, %v1674_v43, %v1676_v41  ;;  %v1675_v10 = vsel %vm961_vm4, %v1672_v39, %v1674_v43  ;;  %v1678_v43 = vrot.slane %v9873_v6, 2 }
 0x23e   : > { %1714 = vrot.lane.b32.xlu0 %v1667_v17, %s7798_s23  ;;  %v1673_v17 = vsel %vm961_vm4, %v1670_v22, %v1672_v39 }
 0x23f   : > { %v9855_v56 = vpop.permute.xlu2 %1600  ;;  %v9857_v3 = vpop.permute.xlu1 %1468 }
 0x240   : > { %15614 = vst [vmem:[#allocation353_spill] sm:$0xff] %v9855_v56  ;;  %v9859_v13 = vpop.permute.xlu0 %1466 }
 0x241   : > { %15615 = vst [vmem:[#allocation354_spill] sm:$0xff] %v9857_v3 }
 0x242   : > { %15616 = vst [vmem:[#allocation355_spill] sm:$0xff] %v9859_v13  ;;  %v7671_v13 = vld [vmem:[%s7879_s7 + $0x88] sm:$0xff]  }
 0x245   : > { %1724 = vrot.lane.b32.xlu2 %v1677_v9, %s7798_s23  ;;  %1722 = vrot.lane.b32.xlu1 %v1675_v10, %s7798_s23  ;;  %v1683_v9 = vsel %vm961_vm4, %v1680_v24, %v1682_v26  ;;  %v1681_v10 = vsel %vm961_vm4, %v1678_v43, %v1680_v24 }
 0x246   : > { %1720 = vrot.lane.b32.xlu0 %v1673_v17, %s7798_s23  ;;  %v1679_v17 = vsel %vm961_vm4, %v1676_v41, %v1678_v43 }
 0x247   : > { %v9876_v3 = vpop.permute.xlu2 %1606  ;;  %v9878_v22 = vpop.permute.xlu1 %1474 }
 0x248   : > { %15617 = vst [vmem:[#allocation356_spill] sm:$0xff] %v9876_v3  ;;  %v9880_v39 = vpop.permute.xlu0 %1472  ;;  %v7663_v3 = vld [vmem:[%s7879_s7 + $0x38] sm:$0xff]  }
 0x249   : > { %15618 = vst [vmem:[#allocation357_spill] sm:$0xff] %v9878_v22  ;;  %v1688_v22 = vrot.slane %v9017_v50, 2  ;;  %v1692_v50 = vrot.slane %v9004_v19, 2 }
 0x24a   : > { %15619 = vst [vmem:[#allocation358_spill] sm:$0xff] %v9880_v39  ;;  %v9894_v39 = vld [vmem:[%s7879_s7 + $0xa4] sm:$0xff]  }
 0x24b   : > { %v1684_v31 = vrot.slane %v9894_v39, 2 }
 0x24d   : > { %1730 = vrot.lane.b32.xlu2 %v1683_v9, %s7798_s23  ;;  %1728 = vrot.lane.b32.xlu1 %v1681_v10, %s7798_s23  ;;  %v1689_v9 = vsel %vm961_vm4, %v1686_v49, %v1688_v22  ;;  %v1687_v10 = vsel %vm961_vm4, %v1684_v31, %v1686_v49 }
 0x24e   : > { %1726 = vrot.lane.b32.xlu0 %v1679_v17, %s7798_s23  ;;  %v1685_v17 = vsel %vm961_vm4, %v1682_v26, %v1684_v31 }
 0x24f   : > { %v9897_v24 = vpop.permute.xlu2 %1612  ;;  %v9899_v41 = vpop.permute.xlu1 %1480 }
 0x250   : > { %15620 = vst [vmem:[#allocation359_spill] sm:$0xff] %v9897_v24  ;;  %v9901_v43 = vpop.permute.xlu0 %1478  ;;  %v1694_v24 = vrot.slane %v9705_v14, 2 }
 0x251   : > { %15621 = vst [vmem:[#allocation360_spill] sm:$0xff] %v9899_v41  ;;  %v9912_v41 = vld [vmem:[%s7879_s7 + $0xbc] sm:$0xff]  }
 0x252   : > { %15622 = vst [vmem:[#allocation361_spill] sm:$0xff] %v9901_v43  ;;  %v1690_v43 = vrot.slane %v9912_v41, 2  ;;  %v1695_v26 = vsel %vm961_vm4, %v1692_v50, %v1694_v24  ;;  %v7659_v24 = vld [vmem:[%s7879_s7 + $0x28] sm:$0xff]  }
 0x255   : > { %1736 = vrot.lane.b32.xlu2 %v1689_v9, %s7798_s23  ;;  %1734 = vrot.lane.b32.xlu1 %v1687_v10, %s7798_s23  ;;  %v1693_v9 = vsel %vm961_vm4, %v1690_v43, %v1692_v50  ;;  %v1691_v10 = vsel %vm961_vm4, %v1688_v22, %v1690_v43  ;;  %v7660_v22 = vld [vmem:[%s7879_s7 + $0x20] sm:$0xff]   ;;  %v7661_v43 = vld [vmem:[%s7879_s7 + $0x18] sm:$0xff]  }
 0x256   : > { %1732 = vrot.lane.b32.xlu0 %v1685_v17, %s7798_s23 }
 0x257   : > { %v9915_v2 = vpop.permute.xlu2 %1618  ;;  %v9917_v49 = vpop.permute.xlu1 %1598 }
 0x258   : > { %15623 = vst [vmem:[#allocation362_spill] sm:$0xff] %v9915_v2  ;;  %v9919_v31 = vpop.permute.xlu0 %1596 }
 0x259   : > { %15624 = vst [vmem:[#allocation363_spill] sm:$0xff] %v9917_v49 }
 0x25d   : > { %1742 = vrot.lane.b32.xlu2 %v1695_v26, %s7798_s23  ;;  %1740 = vrot.lane.b32.xlu1 %v1693_v9, %s7798_s23 }
 0x25e   : > { %1738 = vrot.lane.b32.xlu0 %v1691_v10, %s7798_s23  ;;  %v7662_v10 = vld [vmem:[%s7879_s7 + $0x40] sm:$0xff]  }
 0x25f   : > { %v9927_v14 = vpop.permute.xlu2 %1624  ;;  %v9929_v17 = vpop.permute.xlu1 %1604 }
 0x260   : > { %15625 = vst [vmem:[#allocation364_spill] sm:$0xff] %v9927_v14  ;;  %v9931_v2 = vpop.permute.xlu0 %1602 }
 0x261   : > { %15626 = vst [vmem:[#allocation365_spill] sm:$0xff] %v9929_v17  ;;  %v7679_v17 = vld [vmem:[%s7879_s7 + $0xa8] sm:$0xff]  }
 0x262   : > { %15627 = vst [vmem:[#allocation366_spill] sm:$0xff] %v9931_v2 }
 0x265   : > { %1757 = vrot.lane.b32.xlu2 %v7659_v24, %s7799_s24  ;;  %1755 = vrot.lane.b32.xlu1 %v7660_v22, %s7799_s24  ;;  %v7664_v24 = vld [vmem:[%s7879_s7 + $0x30] sm:$0xff]  }
 0x266   : > { %1753 = vrot.lane.b32.xlu0 %v7661_v43, %s7799_s24 }
 0x267   : > { %v9939_v50 = vpop.permute.xlu2 %1630  ;;  %v9941_v26 = vpop.permute.xlu1 %1610 }
 0x268   : > { %15628 = vst [vmem:[#allocation367_spill] sm:$0xff] %v9939_v50  ;;  %v9943_v9 = vpop.permute.xlu0 %1608 }
 0x269   : > { %15629 = vst [vmem:[#allocation368_spill] sm:$0xff] %v9941_v26  ;;  %v7665_v26 = vld [vmem:[%s7879_s7 + $0x58] sm:$0xff]  }
 0x26a   : > { %15630 = vst [vmem:[#allocation369_spill] sm:$0xff] %v9943_v9  ;;  %v7666_v9 = vld [vmem:[%s7879_s7 + $0x50] sm:$0xff]  }
 0x26d   : > { %1763 = vrot.lane.b32.xlu2 %v7662_v10, %s7799_s24  ;;  %1761 = vrot.lane.b32.xlu1 %v7663_v3, %s7799_s24  ;;  %v7667_v10 = vld [vmem:[%s7879_s7 + $0x48] sm:$0xff]  }
 0x26e   : > { %1759 = vrot.lane.b32.xlu0 %v7664_v24, %s7799_s24 }
 0x26f   : > { %v9951_v22 = vpop.permute.xlu2 %1636  ;;  %v9953_v43 = vpop.permute.xlu1 %1616 }
 0x270   : > { %15631 = vst [vmem:[#allocation370_spill] sm:$0xff] %v9951_v22  ;;  %v9955_v50 = vpop.permute.xlu0 %1614 }
 0x271   : > { %15632 = vst [vmem:[#allocation371_spill] sm:$0xff] %v9953_v43  ;;  %v7668_v43 = vld [vmem:[%s7879_s7 + $0x70] sm:$0xff]  }
 0x272   : > { %15633 = vst [vmem:[#allocation372_spill] sm:$0xff] %v9955_v50  ;;  %v7669_v50 = vld [vmem:[%s7879_s7 + $0x68] sm:$0xff]  }
 0x275   : > { %1769 = vrot.lane.b32.xlu2 %v7665_v26, %s7799_s24  ;;  %1767 = vrot.lane.b32.xlu1 %v7666_v9, %s7799_s24  ;;  %v7670_v26 = vld [vmem:[%s7879_s7 + $0x60] sm:$0xff]  }
 0x276   : > { %1765 = vrot.lane.b32.xlu0 %v7667_v10, %s7799_s24 }
 0x277   : > { %v9963_v3 = vpop.permute.xlu2 %1642  ;;  %v9965_v24 = vpop.permute.xlu1 %1622 }
 0x278   : > { %15634 = vst [vmem:[#allocation373_spill] sm:$0xff] %v9963_v3  ;;  %v9967_v22 = vpop.permute.xlu0 %1620 }
 0x279   : > { %15635 = vst [vmem:[#allocation374_spill] sm:$0xff] %v9965_v24 }
 0x27a   : > { %15636 = vst [vmem:[#allocation375_spill] sm:$0xff] %v9967_v22 }
 0x27d   : > { %1775 = vrot.lane.b32.xlu2 %v7668_v43, %s7799_s24  ;;  %1773 = vrot.lane.b32.xlu1 %v7669_v50, %s7799_s24  ;;  %v7673_v50 = vld [vmem:[%s7879_s7 + $0x78] sm:$0xff]  }
 0x27e   : > { %1771 = vrot.lane.b32.xlu0 %v7670_v26, %s7799_s24 }
 0x27f   : > { %v9975_v9 = vpop.permute.xlu2 %1700  ;;  %v9977_v10 = vpop.permute.xlu1 %1628 }
 0x280   : > { %15637 = vst [vmem:[#allocation376_spill] sm:$0xff] %v9975_v9  ;;  %v9979_v3 = vpop.permute.xlu0 %1626 }
 0x281   : > { %15638 = vst [vmem:[#allocation377_spill] sm:$0xff] %v9977_v10  ;;  %v7674_v10 = vld [vmem:[%s7879_s7 + $0xa0] sm:$0xff]  }
 0x282   : > { %15639 = vst [vmem:[#allocation378_spill] sm:$0xff] %v9979_v3  ;;  %v7676_v3 = vld [vmem:[%s7879_s7 + $0x90] sm:$0xff]  }
 0x285   : > { %1781 = vrot.lane.b32.xlu2 %v7671_v13, %s7799_s24  ;;  %1779 = vrot.lane.b32.xlu1 %v7672_v27, %s7799_s24  ;;  %v7675_v13 = vld [vmem:[%s7879_s7 + $0x98] sm:$0xff]  }
 0x286   : > { %1777 = vrot.lane.b32.xlu0 %v7673_v50, %s7799_s24 }
 0x287   : > { %v9987_v43 = vpop.permute.xlu2 %1706  ;;  %v9989_v26 = vpop.permute.xlu1 %1634 }
 0x288   : > { %15640 = vst [vmem:[#allocation379_spill] sm:$0xff] %v9987_v43  ;;  %v9991_v37 = vpop.permute.xlu0 %1632 }
 0x289   : > { %15641 = vst [vmem:[#allocation380_spill] sm:$0xff] %v9989_v26  ;;  %v10006_v26 = vld [vmem:[%s7879_s7 + $0xcc] sm:$0xf] }
 0x28a   : > { %15642 = vst [vmem:[#allocation381_spill] sm:$0xff] %v9991_v37  ;;  %v7677_v37 = vld [vmem:[%s7879_s7 + $0xb8] sm:$0xff]  }
 0x28d   : > { %1787 = vrot.lane.b32.xlu2 %v7674_v10, %s7799_s24  ;;  %1785 = vrot.lane.b32.xlu1 %v7675_v13, %s7799_s24  ;;  %v7678_v10 = vld [vmem:[%s7879_s7 + $0xb0] sm:$0xff]   ;;  %v15102_v13 = vunpack.c.l.b16 %v10006_v26 }
 0x28e   : > { %1783 = vrot.lane.b32.xlu0 %v7676_v3, %s7799_s24 }
 0x28f   : > { %v9999_v27 = vpop.permute.xlu2 %1712  ;;  %v10001_v50 = vpop.permute.xlu1 %1640 }
 0x290   : > { %15643 = vst [vmem:[#allocation382_spill] sm:$0xff] %v9999_v27  ;;  %v10003_v43 = vpop.permute.xlu0 %1638 }
 0x291   : > { %15644 = vst [vmem:[#allocation383_spill] sm:$0xff] %v10001_v50 }
 0x292   : > { %15645 = vst [vmem:[#allocation384_spill] sm:$0xff] %v10003_v43  ;;  %v15648_v43 = vunpack.c.l.b16 %v8981_v33 }
 0x294   : > { %v10025_v14 = vpack.c.b16 %v15102_v13, %v15648_v43  ;;  %v15653_v43 = vld [vmem:[#allocation9_spill] sm:$0xff]  ;;  %v15654_v13 = vld [vmem:[#allocation6_spill] sm:$0xff] }
 0x295   : > { %1793 = vrot.lane.b32.xlu2 %v7677_v37, %s7799_s24  ;;  %1791 = vrot.lane.b32.xlu1 %v7678_v10, %s7799_s24  ;;  %v10028_v37 = vld [vmem:[%s7879_s7 + $0xd0] sm:$0xff]  }
 0x296   : > { %1789 = vrot.lane.b32.xlu0 %v7679_v17, %s7799_s24  ;;  %15649 = vst [vmem:[#allocation387_spill] sm:$0xff] %v10025_v14  ;;  %v10035_v17 = vld [vmem:[%s7879_s7 + $0xc0] sm:$0xff]   ;;  %v10141_v9 = vshrl.u32 %v10025_v14, 16 }
 0x297   : > { %v10015_v3 = vpop.permute.xlu2 %1718  ;;  %v10017_v27 = vpop.permute.xlu1 %1698 }
 0x298   : > { %15646 = vst [vmem:[#allocation385_spill] sm:$0xff] %v10015_v3  ;;  %v10019_v50 = vpop.permute.xlu0 %1696 }
 0x299   : > { %15647 = vst [vmem:[#allocation386_spill] sm:$0xff] %v10017_v27 }
 0x29a   : > { %15695 = vst [vmem:[#allocation409_spill] sm:$0xff] %v10141_v9 }
 0x29d   : > { %1799 = vrot.lane.b32.xlu2 %v10028_v37, %s7799_s24  ;;  %1797 = vrot.lane.b32.xlu1 %v10025_v14, %s7799_s24 }
 0x29e   : > { %1795 = vrot.lane.b32.xlu0 %v10035_v17, %s7799_s24 }
 0x29f   : > { %v10039_v10 = vpop.permute.xlu2 %1724  ;;  %v10041_v33 = vpop.permute.xlu1 %1704 }
 0x2a0   : > { %15650 = vst [vmem:[#allocation388_spill] sm:$0xff] %v10039_v10  ;;  %v10043_v3 = vpop.permute.xlu0 %1702  ;;  %v15660_v10 = vld [vmem:[#allocation21_spill] sm:$0xff] }
 0x2a1   : > { %15651 = vst [vmem:[#allocation389_spill] sm:$0xff] %v10041_v33  ;;  %v15659_v33 = vld [vmem:[#allocation20_spill] sm:$0xff] }
 0x2a2   : > { %15652 = vst [vmem:[#allocation390_spill] sm:$0xff] %v10043_v3 }
 0x2a5   : > { %1837 = vrot.lane.b32.xlu2 %v15653_v43, %s7800_s25  ;;  %1835 = vrot.lane.b32.xlu1 %v15654_v13, %s7800_s25  ;;  %v15661_v43 = vld [vmem:[#allocation23_spill] sm:$0xff] }
 0x2a6   : > { %1833 = vrot.lane.b32.xlu0 %v15655_v5, %s7800_s25 }
 0x2a7   : > { %v10051_v52 = vpop.permute.xlu2 %1730  ;;  %v10053_v42 = vpop.permute.xlu1 %1710 }
 0x2a8   : > { %15656 = vst [vmem:[#allocation9_spill] sm:$0xff] %v10051_v52  ;;  %v10055_v24 = vpop.permute.xlu0 %1708  ;;  %v15665_v52 = vld [vmem:[#allocation27_spill] sm:$0xff] }
 0x2a9   : > { %15657 = vst [vmem:[#allocation6_spill] sm:$0xff] %v10053_v42  ;;  %v15666_v42 = vld [vmem:[#allocation30_spill] sm:$0xff] }
 0x2aa   : > { %15658 = vst [vmem:[#allocation10_spill] sm:$0xff] %v10055_v24 }
 0x2ad   : > { %1843 = vrot.lane.b32.xlu2 %v15659_v33, %s7800_s25  ;;  %1841 = vrot.lane.b32.xlu1 %v15660_v10, %s7800_s25  ;;  %v15667_v33 = vld [vmem:[#allocation32_spill] sm:$0xff] }
 0x2ae   : > { %1839 = vrot.lane.b32.xlu0 %v15661_v43, %s7800_s25 }
 0x2af   : > { %v10063_v3 = vpop.permute.xlu2 %1736  ;;  %v10065_v13 = vpop.permute.xlu1 %1716 }
 0x2b0   : > { %15662 = vst [vmem:[#allocation23_spill] sm:$0xff] %v10063_v3  ;;  %v10067_v5 = vpop.permute.xlu0 %1714  ;;  %v15672_v3 = vld [vmem:[#allocation39_spill] sm:$0xff] }
 0x2b1   : > { %15663 = vst [vmem:[#allocation391_spill] sm:$0xff] %v10065_v13  ;;  %v15671_v13 = vld [vmem:[#allocation38_spill] sm:$0xff] }
 0x2b2   : > { %15664 = vst [vmem:[#allocation392_spill] sm:$0xff] %v10067_v5 }
 0x2b5   : > { %1849 = vrot.lane.b32.xlu2 %v15665_v52, %s7800_s25  ;;  %1847 = vrot.lane.b32.xlu1 %v15666_v42, %s7800_s25  ;;  %v15673_v52 = vld [vmem:[#allocation41_spill] sm:$0xff] }
 0x2b6   : > { %1845 = vrot.lane.b32.xlu0 %v15667_v33, %s7800_s25 }
 0x2b7   : > { %v10075_v10 = vpop.permute.xlu2 %1742  ;;  %v10077_v24 = vpop.permute.xlu1 %1722 }
 0x2b8   : > { %15668 = vst [vmem:[#allocation393_spill] sm:$0xff] %v10075_v10  ;;  %v10079_v43 = vpop.permute.xlu0 %1720  ;;  %v15677_v10 = vld [vmem:[#allocation47_spill] sm:$0xff] }
 0x2b9   : > { %15669 = vst [vmem:[#allocation394_spill] sm:$0xff] %v10077_v24  ;;  %v15678_v24 = vld [vmem:[#allocation50_spill] sm:$0xff] }
 0x2ba   : > { %15670 = vst [vmem:[#allocation395_spill] sm:$0xff] %v10079_v43  ;;  %v10136_v43 = vshrl.u32 %v10028_v37, 16 }
 0x2bc   : > { %15694 = vst [vmem:[#allocation408_spill] sm:$0xff] %v10136_v43 }
 0x2bd   : > { %1855 = vrot.lane.b32.xlu2 %v15671_v13, %s7800_s25  ;;  %1853 = vrot.lane.b32.xlu1 %v15672_v3, %s7800_s25  ;;  %v15679_v13 = vld [vmem:[#allocation53_spill] sm:$0xff] }
 0x2be   : > { %1851 = vrot.lane.b32.xlu0 %v15673_v52, %s7800_s25  ;;  %v310_v52 = vld [vmem:[%s7879_s7 + $0xd8] sm:$0x1] }
 0x2bf   : > { %v10087_v42 = vpop.permute.xlu2 %1757  ;;  %v10089_v5 = vpop.permute.xlu1 %1728 }
 0x2c0   : > { %15674 = vst [vmem:[#allocation396_spill] sm:$0xff] %v10087_v42  ;;  %v10091_v33 = vpop.permute.xlu0 %1726 }
 0x2c1   : > { %15675 = vst [vmem:[#allocation397_spill] sm:$0xff] %v10089_v5  ;;  %v10107_v5 = vshll.u32 %v10035_v17, 16 }
 0x2c2   : > { %15676 = vst [vmem:[#allocation398_spill] sm:$0xff] %v10091_v33  ;;  %v1802_v33 = vunpack.c.l.b16 %v310_v52 }
 0x2c3   : > { %15683 = vst [vmem:[#allocation402_spill] sm:$0xff] %v10107_v5 }
 0x2c5   : > { %1861 = vrot.lane.b32.xlu2 %v15677_v10, %s7800_s25  ;;  %1859 = vrot.lane.b32.xlu1 %v15678_v24, %s7800_s25  ;;  %v15685_v10 = vld [vmem:[#allocation60_spill] sm:$0xff]  ;;  %v1807_v24 = vrot.slane %v10107_v5, 1 }
 0x2c6   : > { %1857 = vrot.lane.b32.xlu0 %v15679_v13, %s7800_s25  ;;  %v10115_v13 = vshll.u32 %v10028_v37, 16 }
 0x2c7   : > { %v10099_v2 = vpop.permute.xlu2 %1763  ;;  %v10101_v3 = vpop.permute.xlu1 %1734 }
 0x2c8   : > { %15680 = vst [vmem:[#allocation399_spill] sm:$0xff] %v10099_v2  ;;  %v10104_v4 = vpop.permute.xlu0 %1732  ;;  %v10122_v2 = vshll.u32 %v10025_v14, 16  ;;  %v1823_v42 = vrot.slane %v10115_v13, 1 }
 0x2c9   : > { %15681 = vst [vmem:[#allocation400_spill] sm:$0xff] %v10101_v3  ;;  %v15687_v3 = vld [vmem:[#allocation62_spill] sm:$0xff] }
 0x2ca   : > { %15682 = vst [vmem:[#allocation401_spill] sm:$0xff] %v10104_v4  ;;  %v10119_v4 = vpack.c.b16 %v1802_v33, %v1802_v33  ;;  %v10154_v22 = vor.u32 %v10136_v43, %v1823_v42 }
 0x2cb   : > { %15686 = vst [vmem:[#allocation403_spill] sm:$0xff] %v10115_v13 }
 0x2cc   : > { %15688 = vst [vmem:[#allocation404_spill] sm:$0xff] %v10122_v2  ;;  %v1829_v33 = vshll.u32 %v10119_v4, 16 }
 0x2cd   : > { %1867 = vrot.lane.b32.xlu2 %v15684_v61, %s7800_s25  ;;  %1865 = vrot.lane.b32.xlu1 %v15685_v10, %s7800_s25  ;;  %v15692_v10 = vld [vmem:[#allocation64_spill] sm:$0xff]  ;;  %15699 = vst [vmem:[#allocation411_spill] sm:$0xff] %v10154_v22 }
 0x2ce   : > { %1863 = vrot.lane.b32.xlu0 %v15687_v3, %s7800_s25  ;;  %v10132_v18 = vsel %vm15151_vm1, %v15692_v10, %v1807_v24  ;;  %v1815_v3 = vrot.slane %v10122_v2, 1  ;;  %v15697_v10 = vld [vmem:[#allocation65_spill] sm:$0xff]  ;;  %v1831_v56 = vrot.slane %v1829_v33, 1 }
 0x2cf   : > { %v10124_v52 = vpop.permute.xlu2 %1769  ;;  %v10126_v61 = vpop.permute.xlu1 %1740  ;;  %15693 = vst [vmem:[#allocation64_spill] sm:$0xff] %v10132_v18 }
 0x2d0   : > { %15689 = vst [vmem:[#allocation405_spill] sm:$0xff] %v10124_v52  ;;  %v10128_v48 = vpop.permute.xlu0 %1738  ;;  %v15698_v52 = vld [vmem:[#allocation66_spill] sm:$0xff]  ;;  %v1819_v7 = vor.u32 %v10141_v9, %v1815_v3 }
 0x2d1   : > { %15690 = vst [vmem:[#allocation406_spill] sm:$0xff] %v10126_v61  ;;  %v10144_v61 = vshrl.u32 %v10035_v17, 16 }
 0x2d2   : > { %15691 = vst [vmem:[#allocation407_spill] sm:$0xff] %v10128_v48  ;;  %v311_v48 = vld [vmem:[%s7879_s7 + $0x18] sm:$0xe] }
 0x2d3   : > { %15696 = vst [vmem:[#allocation410_spill] sm:$0xff] %v10144_v61  ;;  %v1811_v27 = vor.u32 %v10144_v61, %v1807_v24  ;;  %v1882_v49 = vunpack.c.l.b16 %v311_v48  ;;  %v15706_v24 = vld [vmem:[#allocation67_spill] sm:$0xff] }
 0x2d5   : > { %1873 = vrot.lane.b32.xlu2 %v10132_v18, %s7800_s25  ;;  %1871 = vrot.lane.b32.xlu1 %v15697_v10, %s7800_s25  ;;  %v1832_v10 = vsel %vm15151_vm1, %v10154_v22, %v1831_v56  ;;  %v10170_v57 = vsel %vm15151_vm1, %v1811_v27, %v1815_v3  ;;  %v10173_v33 = vpack.c.b16 %v8825_v54, %v1882_v49  ;;  %v15707_v27 = vld [vmem:[#allocation68_spill] sm:$0xff]  ;;  %v15708_v3 = vld [vmem:[#allocation69_spill] sm:$0xff] }
 0x2d6   : > { %1869 = vrot.lane.b32.xlu0 %v15698_v52, %s7800_s25  ;;  %v10167_v52 = vsel %vm15151_vm1, %v1819_v7, %v1823_v42  ;;  %15702 = vst [vmem:[#allocation414_spill] sm:$0xff] %v10170_v57 }
 0x2d7   : > { %v10157_v55 = vpop.permute.xlu2 %1775  ;;  %v10159_v36 = vpop.permute.xlu1 %1755  ;;  %15701 = vst [vmem:[#allocation413_spill] sm:$0xff] %v10167_v52  ;;  %v1884_v42 = vrot.slane %v10173_v33, 1 }
 0x2d8   : > { %15700 = vst [vmem:[#allocation412_spill] sm:$0xff] %v10157_v55  ;;  %v10162_v18 = vpop.permute.xlu0 %1753  ;;  %v15718_v55 = vld [vmem:[#allocation74_spill] sm:$0xff] }
 0x2d9   : > { %v1885_v49 = vsel %vm15152_vm2, %v1884_v42, %v15706_v24  ;;  %v15713_v42 = vld [vmem:[#allocation72_spill] sm:$0xff]  ;;  %v15714_v24 = vld [vmem:[#allocation73_spill] sm:$0xff] }
 0x2dd   : > { %1879 = vrot.lane.b32.xlu2 %v1832_v10, %s7800_s25  ;;  %1877 = vrot.lane.b32.xlu1 %v10167_v52, %s7800_s25 }
 0x2de   : > { %1875 = vrot.lane.b32.xlu0 %v10170_v57, %s7800_s25  ;;  %v15712_v57 = vld [vmem:[#allocation71_spill] sm:$0xff] }
 0x2df   : > { %v10180_v48 = vpop.permute.xlu2 %1781  ;;  %v10182_v56 = vpop.permute.xlu1 %1761 }
 0x2e0   : > { %15703 = vst [vmem:[#allocation415_spill] sm:$0xff] %v10180_v48  ;;  %v10185_v7 = vpop.permute.xlu0 %1759  ;;  %v15734_v48 = vld [vmem:[#allocation86_spill] sm:$0xff] }
 0x2e1   : > { %15704 = vst [vmem:[#allocation416_spill] sm:$0xff] %v10182_v56 }
 0x2e2   : > { %15705 = vst [vmem:[#allocation417_spill] sm:$0xff] %v10185_v7 }
 0x2e5   : > { %1898 = vrot.lane.b32.xlu2 %v15707_v27, %s7801_s26  ;;  %1896 = vrot.lane.b32.xlu1 %v15708_v3, %s7801_s26 }
 0x2e6   : > { %1894 = vrot.lane.b32.xlu0 %v1885_v49, %s7801_s26 }
 0x2e7   : > { %v10194_v10 = vpop.permute.xlu2 %1787  ;;  %v10196_v22 = vpop.permute.xlu1 %1767 }
 0x2e8   : > { %15709 = vst [vmem:[#allocation67_spill] sm:$0xff] %v10194_v10  ;;  %v10198_v52 = vpop.permute.xlu0 %1765 }
 0x2e9   : > { %15710 = vst [vmem:[#allocation68_spill] sm:$0xff] %v10196_v22  ;;  %v15719_v22 = vld [vmem:[#allocation75_spill] sm:$0xff] }
 0x2ea   : > { %15711 = vst [vmem:[#allocation69_spill] sm:$0xff] %v10198_v52  ;;  %v15729_v52 = vld [vmem:[#allocation83_spill] sm:$0xff] }
 0x2ed   : > { %1904 = vrot.lane.b32.xlu2 %v15712_v57, %s7801_s26  ;;  %1902 = vrot.lane.b32.xlu1 %v15713_v42, %s7801_s26  ;;  %v15720_v57 = vld [vmem:[#allocation76_spill] sm:$0xff] }
 0x2ee   : > { %1900 = vrot.lane.b32.xlu0 %v15714_v24, %s7801_s26 }
 0x2ef   : > { %v10206_v27 = vpop.permute.xlu2 %1793  ;;  %v10208_v3 = vpop.permute.xlu1 %1773 }
 0x2f0   : > { %15715 = vst [vmem:[#allocation73_spill] sm:$0xff] %v10206_v27  ;;  %v10210_v49 = vpop.permute.xlu0 %1771  ;;  %v15723_v27 = vld [vmem:[#allocation78_spill] sm:$0xff] }
 0x2f1   : > { %15716 = vst [vmem:[#allocation418_spill] sm:$0xff] %v10208_v3  ;;  %v15724_v3 = vld [vmem:[#allocation79_spill] sm:$0xff] }
 0x2f2   : > { %15717 = vst [vmem:[#allocation419_spill] sm:$0xff] %v10210_v49 }
 0x2f5   : > { %1910 = vrot.lane.b32.xlu2 %v15718_v55, %s7801_s26  ;;  %1908 = vrot.lane.b32.xlu1 %v15719_v22, %s7801_s26  ;;  %v15725_v55 = vld [vmem:[#allocation80_spill] sm:$0xff] }
 0x2f6   : > { %1906 = vrot.lane.b32.xlu0 %v15720_v57, %s7801_s26 }
 0x2f7   : > { %v10218_v10 = vpop.permute.xlu2 %1799  ;;  %v10220_v42 = vpop.permute.xlu1 %1779 }
 0x2f8   : > { %15721 = vst [vmem:[#allocation420_spill] sm:$0xff] %v10218_v10  ;;  %v10222_v24 = vpop.permute.xlu0 %1777  ;;  %v15728_v10 = vld [vmem:[#allocation82_spill] sm:$0xff] }
 0x2f9   : > { %15722 = vst [vmem:[#allocation421_spill] sm:$0xff] %v10220_v42 }
 0x2fd   : > { %1916 = vrot.lane.b32.xlu2 %v15723_v27, %s7801_s26  ;;  %1914 = vrot.lane.b32.xlu1 %v15724_v3, %s7801_s26  ;;  %v15730_v27 = vld [vmem:[#allocation84_spill] sm:$0xff] }
 0x2fe   : > { %1912 = vrot.lane.b32.xlu0 %v15725_v55, %s7801_s26 }
 0x2ff   : > { %v10230_v49 = vpop.permute.xlu2 %1837  ;;  %v10232_v22 = vpop.permute.xlu1 %1785 }
 0x300   : > { %15726 = vst [vmem:[#allocation422_spill] sm:$0xff] %v10232_v22  ;;  %v10234_v57 = vpop.permute.xlu0 %1783  ;;  %v15735_v22 = vld [vmem:[#allocation87_spill] sm:$0xff] }
 0x301   : > { %15727 = vst [vmem:[#allocation423_spill] sm:$0xff] %v10234_v57 }
 0x305   : > { %1922 = vrot.lane.b32.xlu2 %v15728_v10, %s7801_s26  ;;  %1920 = vrot.lane.b32.xlu1 %v15729_v52, %s7801_s26  ;;  %v15736_v10 = vld [vmem:[#allocation88_spill] sm:$0xff]  ;;  %v1886_v52 = vrot.slane %v10035_v17, 1 }
 0x306   : > { %1918 = vrot.lane.b32.xlu0 %v15730_v27, %s7801_s26 }
 0x307   : > { %v10242_v56 = vpop.permute.xlu2 %1843  ;;  %v10244_v3 = vpop.permute.xlu1 %1791 }
 0x308   : > { %15731 = vst [vmem:[#allocation424_spill] sm:$0xff] %v10242_v56  ;;  %v10246_v55 = vpop.permute.xlu0 %1789 }
 0x309   : > { %15732 = vst [vmem:[#allocation425_spill] sm:$0xff] %v10244_v3  ;;  %v15740_v3 = vld [vmem:[#allocation89_spill] sm:$0xff] }
 0x30a   : > { %15733 = vst [vmem:[#allocation426_spill] sm:$0xff] %v10246_v55  ;;  %v10263_v55 = vsel %vm15152_vm2, %v15740_v3, %v1886_v52 }
 0x30b   : > { %15741 = vst [vmem:[#allocation89_spill] sm:$0xff] %v10263_v55 }
 0x30d   : > { %1928 = vrot.lane.b32.xlu2 %v15734_v48, %s7801_s26  ;;  %1926 = vrot.lane.b32.xlu1 %v15735_v22, %s7801_s26  ;;  %v1892_v48 = vrot.slane %v10119_v4, 1  ;;  %v1888_v22 = vrot.slane %v10025_v14, 1 }
 0x30e   : > { %1924 = vrot.lane.b32.xlu0 %v15736_v10, %s7801_s26  ;;  %v10272_v10 = vrot.slane %v10028_v37, 1 }
 0x30f   : > { %v10255_v57 = vpop.permute.xlu2 %1849  ;;  %v10257_v27 = vpop.permute.xlu1 %1797  ;;  %v10291_v4 = vsel %vm15152_vm2, %v1886_v52, %v1888_v22 }
 0x310   : > { %15737 = vst [vmem:[#allocation427_spill] sm:$0xff] %v10255_v57  ;;  %v10259_v56 = vpop.permute.xlu0 %1795 }
 0x311   : > { %15738 = vst [vmem:[#allocation428_spill] sm:$0xff] %v10257_v27 }
 0x312   : > { %15739 = vst [vmem:[#allocation429_spill] sm:$0xff] %v10259_v56  ;;  %v1946_v56 = vshrl.u32 %v10173_v33, 16 }
 0x313   : > { %15742 = vst [vmem:[#allocation430_spill] sm:$0xff] %v10272_v10 }
 0x314   : > { %15745 = vst [vmem:[#allocation433_spill] sm:$0xff] %v10291_v4  ;;  %v1948_v42 = vrot.slane %v1946_v56, 1 }
 0x315   : > { %1934 = vrot.lane.b32.xlu2 %v10263_v55, %s7801_s26  ;;  %1932 = vrot.lane.b32.xlu1 %v8414_v32, %s7801_s26  ;;  %v1949_v55 = vshll.u32 %v10173_v33, 16  ;;  %v1893_v32 = vsel %vm15152_vm2, %v10272_v10, %v1892_v48 }
 0x316   : > { %1930 = vrot.lane.b32.xlu0 %v8417_v29, %s7801_s26  ;;  %v10288_v29 = vsel %vm15152_vm2, %v1888_v22, %v10272_v10 }
 0x317   : > { %v10276_v27 = vpop.permute.xlu2 %1855  ;;  %v10278_v3 = vpop.permute.xlu1 %1835  ;;  %15744 = vst [vmem:[#allocation432_spill] sm:$0xff] %v10288_v29 }
 0x318   : > { %15743 = vst [vmem:[#allocation431_spill] sm:$0xff] %v10276_v27  ;;  %v10282_v57 = vpop.permute.xlu0 %1833  ;;  %v1951_v27 = vrot.slane %v1949_v55, 2 }
 0x31a   : > { %v1952_v7 = vor.u32 %v1951_v27, %v1948_v42 }
 0x31c   : > { %v1953_v22 = vsel %vm15146_vm3, %v1952_v7, %v8446_v25 }
 0x31d   : > { %1940 = vrot.lane.b32.xlu2 %v1893_v32, %s7801_s26  ;;  %1938 = vrot.lane.b32.xlu1 %v10288_v29, %s7801_s26  ;;  %v312_v29 = vld [vmem:[%s7879_s7 + $0xd8] sm:$0x3] }
 0x31e   : > { %1936 = vrot.lane.b32.xlu0 %v10291_v4, %s7801_s26  ;;  %v1943_v4 = vunpack.c.l.b16 %v312_v29 }
 0x31f   : > { %v10298_v33 = vpop.permute.xlu2 %1861  ;;  %v10300_v48 = vpop.permute.xlu1 %1841 }
 0x320   : > { %v10302_v10 = vpop.permute.xlu0 %1839 }
 0x325   : > { %1979 = vrot.lane.b32.xlu2 %v8461_v34, %s7802_s27  ;;  %1977 = vrot.lane.b32.xlu1 %v8465_v60, %s7802_s27 }
 0x326   : > { %1975 = vrot.lane.b32.xlu0 %v1953_v22, %s7802_s27 }
 0x327   : > { %v10311_v32 = vpop.permute.xlu2 %1867  ;;  %v10313_v55 = vpop.permute.xlu1 %1847 }
 0x328   : > { %15746 = vst [vmem:[#allocation434_spill] sm:$0xff] %v10311_v32  ;;  %v10315_v52 = vpop.permute.xlu0 %1845  ;;  %v15844_v32 = vld [vmem:[#allocation238_spill] sm:$0xff] }
 0x329   : > { %15747 = vst [vmem:[#allocation435_spill] sm:$0xff] %v10313_v55 }
 0x32a   : > { %15748 = vst [vmem:[#allocation436_spill] sm:$0xff] %v10315_v52 }
 0x32d   : > { %1985 = vrot.lane.b32.xlu2 %v8483_v45, %s7802_s27  ;;  %1983 = vrot.lane.b32.xlu1 %v8487_v38, %s7802_s27  ;;  %v15795_v45 = vld [vmem:[#allocation172_spill] sm:$0xff]  ;;  %v15824_v38 = vld [vmem:[#allocation215_spill] sm:$0xff] }
 0x32e   : > { %1981 = vrot.lane.b32.xlu0 %v8497_v0, %s7802_s27 }
 0x32f   : > { %v10323_v25 = vpop.permute.xlu2 %1873  ;;  %v10325_v34 = vpop.permute.xlu1 %1853 }
 0x330   : > { %15749 = vst [vmem:[#allocation437_spill] sm:$0xff] %v10323_v25  ;;  %v10327_v60 = vpop.permute.xlu0 %1851  ;;  %v15761_v25 = vld [vmem:[#allocation131_spill] sm:$0xff] }
 0x331   : > { %15750 = vst [vmem:[#allocation438_spill] sm:$0xff] %v10325_v34 }
 0x332   : > { %15751 = vst [vmem:[#allocation439_spill] sm:$0xff] %v10327_v60  ;;  %v313_v60 = vld [vmem:[%s7879_s7 + $0x18] sm:$0xc] }
 0x335   : > { %1991 = vrot.lane.b32.xlu2 %v8518_v40, %s7802_s27  ;;  %1989 = vrot.lane.b32.xlu1 %v8521_v16, %s7802_s27  ;;  %v1955_v40 = vrot.slane %v10107_v5, 2  ;;  %v10368_v16 = vpack.c.b16 %v1943_v4, %v1943_v4 }
 0x336   : > { %1987 = vrot.lane.b32.xlu0 %v8524_v47, %s7802_s27  ;;  %v1958_v47 = vrot.slane %v10141_v9, 1  ;;  %v2024_v9 = vunpack.c.l.b16 %v313_v60  ;;  %v15769_v60 = vld [vmem:[#allocation140_spill] sm:$0xff] }
 0x337   : > { %v10335_v56 = vpop.permute.xlu2 %1879  ;;  %v10337_v7 = vpop.permute.xlu1 %1859  ;;  %v1970_v34 = vshll.u32 %v10368_v16, 16 }
 0x338   : > { %15752 = vst [vmem:[#allocation440_spill] sm:$0xff] %v10335_v56  ;;  %v10339_v0 = vpop.permute.xlu0 %1857  ;;  %v1954_v56 = vrot.slane %v10144_v61, 1 }
 0x33a   : > { %v1956_v29 = vor.u32 %v1955_v40, %v1954_v56  ;;  %v1963_v40 = vrot.slane %v10115_v13, 2 }
 0x33d   : > { %1997 = vrot.lane.b32.xlu2 %v8539_v62, %s7802_s27  ;;  %1995 = vrot.lane.b32.xlu1 %v8542_v11, %s7802_s27 }
 0x33e   : > { %1993 = vrot.lane.b32.xlu0 %v8551_v51, %s7802_s27 }
 0x33f   : > { %v10347_v42 = vpop.permute.xlu2 %1898  ;;  %v10349_v27 = vpop.permute.xlu1 %1865 }
 0x340   : > { %15753 = vst [vmem:[#allocation441_spill] sm:$0xff] %v10349_v27  ;;  %v10351_v22 = vpop.permute.xlu0 %1863 }
 0x345   : > { %2003 = vrot.lane.b32.xlu2 %v8573_v23, %s7802_s27  ;;  %2001 = vrot.lane.b32.xlu1 %v8576_v44, %s7802_s27  ;;  %v15756_v23 = vld [vmem:[#allocation129_spill] sm:$0xff]  ;;  %v15757_v44 = vld [vmem:[#allocation130_spill] sm:$0xff] }
 0x346   : > { %1999 = vrot.lane.b32.xlu0 %v8581_v58, %s7802_s27  ;;  %v1967_v58 = vshrl.u32 %v10368_v16, 16 }
 0x347   : > { %v10360_v62 = vpop.permute.xlu2 %1904  ;;  %v10362_v11 = vpop.permute.xlu1 %1871 }
 0x348   : > { %15754 = vst [vmem:[#allocation442_spill] sm:$0xff] %v10362_v11  ;;  %v10364_v51 = vpop.permute.xlu0 %1869  ;;  %v1969_v56 = vrot.slane %v1967_v58, 1  ;;  %v1959_v11 = vrot.slane %v10122_v2, 2 }
 0x349   : > { %15755 = vst [vmem:[#allocation443_spill] sm:$0xff] %v10364_v51 }
 0x34a   : > { %v1960_v13 = vor.u32 %v1959_v11, %v1958_v47 }
 0x34d   : > { %2009 = vrot.lane.b32.xlu2 %v8598_v59, %s7802_s27  ;;  %2007 = vrot.lane.b32.xlu1 %v15756_v23, %s7802_s27  ;;  %v10386_v59 = vsel %vm15146_vm3, %v15761_v25, %v1956_v29  ;;  %v1962_v23 = vrot.slane %v10136_v43, 1  ;;  %v15764_v25 = vld [vmem:[#allocation136_spill] sm:$0xff] }
 0x34e   : > { %2005 = vrot.lane.b32.xlu0 %v15757_v44, %s7802_s27  ;;  %15762 = vst [vmem:[#allocation131_spill] sm:$0xff] %v10386_v59  ;;  %v1972_v44 = vrot.slane %v1970_v34, 2 }
 0x34f   : > { %v10378_v61 = vpop.permute.xlu2 %1910  ;;  %v10380_v5 = vpop.permute.xlu1 %1877 }
 0x350   : > { %15758 = vst [vmem:[#allocation444_spill] sm:$0xff] %v10378_v61  ;;  %v10382_v4 = vpop.permute.xlu0 %1875  ;;  %v1973_v43 = vor.u32 %v1972_v44, %v1969_v56  ;;  %v15775_v56 = vld [vmem:[#allocation149_spill] sm:$0xff]  ;;  %v15794_v61 = vld [vmem:[#allocation171_spill] sm:$0xff] }
 0x351   : > { %15759 = vst [vmem:[#allocation445_spill] sm:$0xff] %v10380_v5  ;;  %v15763_v5 = vld [vmem:[#allocation135_spill] sm:$0xff] }
 0x352   : > { %15760 = vst [vmem:[#allocation446_spill] sm:$0xff] %v10382_v4  ;;  %v10399_v4 = vor.u32 %v1963_v40, %v1962_v23  ;;  %v2025_v23 = vpack.c.b16 %v8825_v54, %v2024_v9  ;;  %v15770_v54 = vld [vmem:[#allocation144_spill] sm:$0xff] }
 0x354   : > { %15765 = vst [vmem:[#allocation447_spill] sm:$0xff] %v10399_v4  ;;  %v2026_v44 = vrot.slane %v2025_v23, 2  ;;  %v15776_v23 = vld [vmem:[#allocation150_spill] sm:$0xff] }
 0x355   : > { %2015 = vrot.lane.b32.xlu2 %v10386_v59, %s7802_s27  ;;  %2013 = vrot.lane.b32.xlu1 %v15763_v5, %s7802_s27  ;;  %v1974_v59 = vsel %vm15146_vm3, %v10399_v4, %v1973_v43  ;;  %v10411_v5 = vsel %vm15146_vm3, %v1960_v13, %v10399_v4  ;;  %v15782_v4 = vld [vmem:[#allocation156_spill] sm:$0xff] }
 0x356   : > { %2011 = vrot.lane.b32.xlu0 %v15764_v25, %s7802_s27  ;;  %15767 = vst [vmem:[#allocation449_spill] sm:$0xff] %v10411_v5  ;;  %v10414_v25 = vsel %vm15146_vm3, %v1956_v29, %v1960_v13  ;;  %v2027_v13 = vsel %vm961_vm4, %v2026_v44, %v15769_v60  ;;  %v15777_v44 = vld [vmem:[#allocation151_spill] sm:$0xff]  ;;  %vm15153_vm3 = vcmask 916480  }
 0x357   : > { %v10401_v58 = vpop.permute.xlu2 %1916  ;;  %v10403_v34 = vpop.permute.xlu1 %1896  ;;  %15768 = vst [vmem:[#allocation450_spill] sm:$0xff] %v10414_v25 }
 0x358   : > { %15766 = vst [vmem:[#allocation448_spill] sm:$0xff] %v10401_v58  ;;  %v10405_v2 = vpop.permute.xlu0 %1894  ;;  %v15786_v58 = vld [vmem:[#allocation162_spill] sm:$0xff] }
 0x35d   : > { %2021 = vrot.lane.b32.xlu2 %v1974_v59, %s7802_s27  ;;  %2019 = vrot.lane.b32.xlu1 %v10411_v5, %s7802_s27  ;;  %v15771_v59 = vld [vmem:[#allocation145_spill] sm:$0xff] }
 0x35e   : > { %2017 = vrot.lane.b32.xlu0 %v10414_v25, %s7802_s27  ;;  %v15785_v25 = vld [vmem:[#allocation161_spill] sm:$0xff]  ;;  %s4568_s27 = smul.u32 384, %s7771_s15 }
 0x35f   : > { %v10422_v47 = vpop.permute.xlu2 %1922  ;;  %v10424_v11 = vpop.permute.xlu1 %1902 }
 0x360   : > { %v10426_v43 = vpop.permute.xlu0 %1900 }
 0x365   : > { %2040 = vrot.lane.b32.xlu2 %v15770_v54, %s7803_s28  ;;  %2038 = vrot.lane.b32.xlu1 %v15771_v59, %s7803_s28  ;;  %v15781_v59 = vld [vmem:[#allocation155_spill] sm:$0xff] }
 0x366   : > { %2036 = vrot.lane.b32.xlu0 %v2027_v13, %s7803_s28 }
 0x367   : > { %v10435_v9 = vpop.permute.xlu2 %1928  ;;  %v10437_v29 = vpop.permute.xlu1 %1908 }
 0x368   : > { %15772 = vst [vmem:[#allocation140_spill] sm:$0xff] %v10435_v9  ;;  %v10439_v40 = vpop.permute.xlu0 %1906 }
 0x369   : > { %15773 = vst [vmem:[#allocation144_spill] sm:$0xff] %v10437_v29 }
 0x36a   : > { %15774 = vst [vmem:[#allocation145_spill] sm:$0xff] %v10439_v40  ;;  %v15850_v40 = vld [vmem:[#allocation134_spill] sm:$0xff] }
 0x36d   : > { %2046 = vrot.lane.b32.xlu2 %v15775_v56, %s7803_s28  ;;  %2044 = vrot.lane.b32.xlu1 %v15776_v23, %s7803_s28  ;;  %v15783_v56 = vld [vmem:[#allocation157_spill] sm:$0xff] }
 0x36e   : > { %2042 = vrot.lane.b32.xlu0 %v15777_v44, %s7803_s28 }
 0x36f   : > { %v10447_v60 = vpop.permute.xlu2 %1934  ;;  %v10449_v54 = vpop.permute.xlu1 %1914 }
 0x370   : > { %15778 = vst [vmem:[#allocation149_spill] sm:$0xff] %v10447_v60  ;;  %v10451_v13 = vpop.permute.xlu0 %1912  ;;  %v15790_v60 = vld [vmem:[#allocation168_spill] sm:$0xff] }
 0x371   : > { %15779 = vst [vmem:[#allocation150_spill] sm:$0xff] %v10449_v54 }
 0x372   : > { %15780 = vst [vmem:[#allocation151_spill] sm:$0xff] %v10451_v13 }
 0x375   : > { %2052 = vrot.lane.b32.xlu2 %v15781_v59, %s7803_s28  ;;  %2050 = vrot.lane.b32.xlu1 %v15782_v4, %s7803_s28  ;;  %v15787_v59 = vld [vmem:[#allocation163_spill] sm:$0xff] }
 0x376   : > { %2048 = vrot.lane.b32.xlu0 %v15783_v56, %s7803_s28 }
 0x377   : > { %v10459_v5 = vpop.permute.xlu2 %1940  ;;  %v10461_v23 = vpop.permute.xlu1 %1920 }
 0x378   : > { %15784 = vst [vmem:[#allocation155_spill] sm:$0xff] %v10459_v5  ;;  %v10463_v44 = vpop.permute.xlu0 %1918  ;;  %v15789_v5 = vld [vmem:[#allocation167_spill] sm:$0xff] }
 0x37d   : > { %2058 = vrot.lane.b32.xlu2 %v15785_v25, %s7803_s28  ;;  %2056 = vrot.lane.b32.xlu1 %v15786_v58, %s7803_s28  ;;  %v15791_v25 = vld [vmem:[#allocation169_spill] sm:$0xff] }
 0x37e   : > { %2054 = vrot.lane.b32.xlu0 %v15787_v59, %s7803_s28 }
 0x37f   : > { %v10471_v54 = vpop.permute.xlu2 %1979  ;;  %v10473_v4 = vpop.permute.xlu1 %1926 }
 0x380   : > { %15788 = vst [vmem:[#allocation156_spill] sm:$0xff] %v10473_v4  ;;  %v10475_v56 = vpop.permute.xlu0 %1924 }
 0x385   : > { %2064 = vrot.lane.b32.xlu2 %v15789_v5, %s7803_s28  ;;  %2062 = vrot.lane.b32.xlu1 %v15790_v60, %s7803_s28  ;;  %v15796_v5 = vld [vmem:[#allocation173_spill] sm:$0xff]  ;;  %v2028_v60 = vrot.slane %v10035_v17, 2  ;;  %v2034_v17 = vrot.slane %v10368_v16, 2 }
 0x386   : > { %2060 = vrot.lane.b32.xlu0 %v15791_v25, %s7803_s28 }
 0x387   : > { %v10483_v13 = vpop.permute.xlu2 %1985  ;;  %v10485_v58 = vpop.permute.xlu1 %1932 }
 0x388   : > { %15792 = vst [vmem:[#allocation157_spill] sm:$0xff] %v10485_v58  ;;  %v10487_v59 = vpop.permute.xlu0 %1930  ;;  %v15800_v58 = vld [vmem:[#allocation52_spill] sm:$0xff] }
 0x389   : > { %15793 = vst [vmem:[#allocation161_spill] sm:$0xff] %v10487_v59  ;;  %v2029_v59 = vsel %vm961_vm4, %v15800_v58, %v2028_v60 }
 0x38d   : > { %2070 = vrot.lane.b32.xlu2 %v15794_v61, %s7803_s28  ;;  %2068 = vrot.lane.b32.xlu1 %v15795_v45, %s7803_s28  ;;  %v15801_v61 = vld [vmem:[#allocation176_spill] sm:$0xff]  ;;  %v15802_v45 = vld [vmem:[#allocation177_spill] sm:$0xff] }
 0x38e   : > { %2066 = vrot.lane.b32.xlu0 %v15796_v5, %s7803_s28  ;;  %v2032_v5 = vrot.slane %v10028_v37, 2 }
 0x38f   : > { %v10496_v51 = vpop.permute.xlu2 %1991  ;;  %v10498_v25 = vpop.permute.xlu1 %1938 }
 0x390   : > { %15797 = vst [vmem:[#allocation162_spill] sm:$0xff] %v10496_v51  ;;  %v10500_v29 = vpop.permute.xlu0 %1936  ;;  %v2030_v51 = vrot.slane %v10025_v14, 2  ;;  %v2035_v58 = vsel %vm961_vm4, %v2032_v5, %v2034_v17  ;;  %v7681_v17 = vld [vmem:[%s7879_s7 + $0x3c] sm:$0xff]  }
 0x391   : > { %15798 = vst [vmem:[#allocation163_spill] sm:$0xff] %v10498_v25 }
 0x392   : > { %15799 = vst [vmem:[#allocation167_spill] sm:$0xff] %v10500_v29 }
 0x395   : > { %2076 = vrot.lane.b32.xlu2 %v2029_v59, %s7803_s28  ;;  %2074 = vrot.lane.b32.xlu1 %v15801_v61, %s7803_s28  ;;  %v2033_v59 = vsel %vm961_vm4, %v2030_v51, %v2032_v5  ;;  %v2031_v61 = vsel %vm961_vm4, %v2028_v60, %v2030_v51  ;;  %vm2729_vm4 = vcmask 850944  }
 0x396   : > { %2072 = vrot.lane.b32.xlu0 %v15802_v45, %s7803_s28 }
 0x397   : > { %v10512_v25 = vpop.permute.xlu2 %1997  ;;  %v10514_v29 = vpop.permute.xlu1 %1977 }
 0x398   : > { %15803 = vst [vmem:[#allocation168_spill] sm:$0xff] %v10512_v25  ;;  %v10516_v9 = vpop.permute.xlu0 %1975  ;;  %v318_v25 = vld [vmem:[%s7879_s7 + $0x24] sm:$0xe] }
 0x39d   : > { %2082 = vrot.lane.b32.xlu2 %v2035_v58, %s7803_s28  ;;  %2080 = vrot.lane.b32.xlu1 %v2033_v59, %s7803_s28 }
 0x39e   : > { %2078 = vrot.lane.b32.xlu0 %v2031_v61, %s7803_s28 }
 0x39f   : > { %v10524_v16 = vpop.permute.xlu2 %2003  ;;  %v10526_v45 = vpop.permute.xlu1 %1983 }
 0x3a0   : > { %v10528_v14 = vpop.permute.xlu0 %1981 }
 0x3a5   : > { %2097 = vrot.lane.b32.xlu2 %v8869_v12, %s7804_s29  ;;  %2095 = vrot.lane.b32.xlu1 %v9789_v46, %s7804_s29  ;;  %v10567_v12 = vld [vmem:[%s7879_s7 + $0xe0] sm:$0xff]  }
 0x3a6   : > { %2093 = vrot.lane.b32.xlu0 %v8875_v63, %s7804_s29  ;;  %15811 = vst [vmem:[#allocation451_spill] sm:$0xff] %v10567_v12  ;;  %v7767_v63 = vld [vmem:[%s7879_s7 + $0xdc] sm:$0xf0]  }
 0x3a7   : > { %v10536_v51 = vpop.permute.xlu2 %2009  ;;  %v10538_v60 = vpop.permute.xlu1 %1989 }
 0x3a8   : > { %15804 = vst [vmem:[#allocation169_spill] sm:$0xff] %v10536_v51  ;;  %v10540_v5 = vpop.permute.xlu0 %1987  ;;  %v15823_v51 = vld [vmem:[#allocation214_spill] sm:$0xff] }
 0x3a9   : > { %15805 = vst [vmem:[#allocation171_spill] sm:$0xff] %v10538_v60 }
 0x3aa   : > { %15806 = vst [vmem:[#allocation172_spill] sm:$0xff] %v10540_v5  ;;  %v15849_v5 = vld [vmem:[#allocation92_spill] sm:$0xff] }
 0x3ad   : > { %2103 = vrot.lane.b32.xlu2 %v9805_v30, %s7804_s29  ;;  %2101 = vrot.lane.b32.xlu1 %v9810_v35, %s7804_s29  ;;  %v7682_v30 = vld [vmem:[%s7879_s7 + $0x54] sm:$0xff]  }
 0x3ae   : > { %2099 = vrot.lane.b32.xlu0 %v7681_v17, %s7804_s29 }
 0x3af   : > { %v10548_v46 = vpop.permute.xlu2 %2015  ;;  %v10550_v58 = vpop.permute.xlu1 %1995 }
 0x3b0   : > { %15807 = vst [vmem:[#allocation173_spill] sm:$0xff] %v10548_v46  ;;  %v10552_v59 = vpop.permute.xlu0 %1993 }
 0x3b1   : > { %15808 = vst [vmem:[#allocation52_spill] sm:$0xff] %v10550_v58  ;;  %v2904_v58 = vunpack.c.l.b16 %v318_v25 }
 0x3b2   : > { %15809 = vst [vmem:[#allocation176_spill] sm:$0xff] %v10552_v59  ;;  %v15818_v59 = vld [vmem:[#allocation182_spill] sm:$0xff] }
 0x3b5   : > { %2109 = vrot.lane.b32.xlu2 %v9826_v8, %s7804_s29  ;;  %2107 = vrot.lane.b32.xlu1 %v9831_v28, %s7804_s29  ;;  %v7683_v28 = vld [vmem:[%s7879_s7 + $0x6c] sm:$0xff]  }
 0x3b6   : > { %2105 = vrot.lane.b32.xlu0 %v7682_v30, %s7804_s29 }
 0x3b7   : > { %v10560_v35 = vpop.permute.xlu2 %2021  ;;  %v10562_v61 = vpop.permute.xlu1 %2001 }
 0x3b8   : > { %15810 = vst [vmem:[#allocation177_spill] sm:$0xff] %v10560_v35  ;;  %v10564_v17 = vpop.permute.xlu0 %1999 }
 0x3bd   : > { %2115 = vrot.lane.b32.xlu2 %v9847_v21, %s7804_s29  ;;  %2113 = vrot.lane.b32.xlu1 %v9852_v53, %s7804_s29  ;;  %v7684_v21 = vld [vmem:[%s7879_s7 + $0x84] sm:$0xff]  }
 0x3be   : > { %2111 = vrot.lane.b32.xlu0 %v7683_v28, %s7804_s29 }
 0x3bf   : > { %v10576_v8 = vpop.permute.xlu2 %2040  ;;  %v10578_v30 = vpop.permute.xlu1 %2007 }
 0x3c0   : > { %15812 = vst [vmem:[#allocation452_spill] sm:$0xff] %v10578_v30  ;;  %v10580_v35 = vpop.permute.xlu0 %2005 }
 0x3c5   : > { %2121 = vrot.lane.b32.xlu2 %v9868_v1, %s7804_s29  ;;  %2119 = vrot.lane.b32.xlu1 %v9873_v6, %s7804_s29  ;;  %v7685_v1 = vld [vmem:[%s7879_s7 + $0x9c] sm:$0xff]  }
 0x3c6   : > { %2117 = vrot.lane.b32.xlu0 %v7684_v21, %s7804_s29 }
 0x3c7   : > { %v10588_v53 = vpop.permute.xlu2 %2046  ;;  %v10590_v28 = vpop.permute.xlu1 %2013 }
 0x3c8   : > { %15813 = vst [vmem:[#allocation453_spill] sm:$0xff] %v10590_v28  ;;  %v10592_v12 = vpop.permute.xlu0 %2011  ;;  %v7768_v28 = vld [vmem:[%s7879_s7 + $0xdc] sm:$0xf] }
 0x3c9   : > { %15814 = vst [vmem:[#allocation454_spill] sm:$0xff] %v10592_v12  ;;  %v10609_v12 = vpack.c.b16 %v15818_v59, %v2904_v58  ;;  %v10625_v58 = vor.u32 %v7768_v28, %v7767_v63  ;;  %v7289_v63 = vld [vmem:[%s14818_s1 + $0x30] sm:$0xff] }
 0x3cd   : > { %2127 = vrot.lane.b32.xlu2 %v9889_v15, %s7804_s29  ;;  %2125 = vrot.lane.b32.xlu1 %v9894_v39, %s7804_s29  ;;  %v7686_v39 = vld [vmem:[%s7879_s7 + $0xb4] sm:$0xff]   ;;  %v7397_v15 = vunpack.c.l.b16 %v10028_v37  ;;  %v2907_v37 = vshrl.u32 %v10609_v12, 16 }
 0x3ce   : > { %2123 = vrot.lane.b32.xlu0 %v7685_v1, %s7804_s29 }
 0x3cf   : > { %v10601_v6 = vpop.permute.xlu2 %2052  ;;  %v10603_v21 = vpop.permute.xlu1 %2019 }
 0x3d0   : > { %15815 = vst [vmem:[#allocation455_spill] sm:$0xff] %v10601_v6  ;;  %v10605_v46 = vpop.permute.xlu0 %2017  ;;  %v10628_v6 = vld [vmem:[%s7879_s7 + $0xd4] sm:$0xff]  }
 0x3d1   : > { %15816 = vst [vmem:[#allocation456_spill] sm:$0xff] %v10603_v21  ;;  %v2909_v21 = vshll.u32 %v10609_v12, 16 }
 0x3d2   : > { %15817 = vst [vmem:[#allocation457_spill] sm:$0xff] %v10605_v46 }
 0x3d3   : > { %15820 = vst [vmem:[#allocation458_spill] sm:$0xff] %v10628_v6 }
 0x3d5   : > { %2133 = vrot.lane.b32.xlu2 %v9004_v19, %s7804_s29  ;;  %2131 = vrot.lane.b32.xlu1 %v9912_v41, %s7804_s29  ;;  %v7290_v41 = vld [vmem:[%s14818_s1 + $0x38] sm:$0xff] }
 0x3d6   : > { %2129 = vrot.lane.b32.xlu0 %v7686_v39, %s7804_s29  ;;  %v15821_v39 = vunpack.c.l.b16 %v10006_v26  ;;  %4310 = vmatpush.bf16.msra.mxu0 %v7290_v41 }
 0x3d7   : > { %v10618_v1 = vpop.permute.xlu2 %2058  ;;  %v10620_v25 = vpop.permute.xlu1 %2038  ;;  %7565 = vmatpush.bf16.msra.mxu2 %v7290_v41  ;;  %v7288_v41 = vld [vmem:[%s14818_s1 + $0x28] sm:$0xff] }
 0x3d8   : > { %15819 = vst [vmem:[#allocation182_spill] sm:$0xff] %v10618_v1  ;;  %v10623_v46 = vpop.permute.xlu0 %2036  ;;  %v10635_v19 = vpack.c.b16 %v7397_v15, %v15821_v39  ;;  %v2911_v1 = vrot.slane %v2909_v21, 1  ;;  %v15822_v39 = vld [vmem:[#allocation210_spill] sm:$0xff] }
 0x3da   : > { %v2912_v21 = vor.u32 %v2911_v1, %v2907_v37  ;;  %4311 = vmatpush.bf16.msra.mxu0 %v7289_v63  ;;  %v7287_v1 = vld [vmem:[%s14818_s1 + $0x20] sm:$0xff] }
 0x3db   : > { %7566 = vmatpush.bf16.msra.mxu2 %v7289_v63 }
 0x3dc   : > { %v2913_v60 = vsel %vm15151_vm1, %v2912_v21, %v15822_v39  ;;  %v15830_v39 = vld [vmem:[#allocation221_spill] sm:$0xff] }
 0x3dd   : > { %2139 = vrot.lane.b32.xlu2 %v10625_v58, %s7804_s29  ;;  %2137 = vrot.lane.b32.xlu1 %v10628_v6, %s7804_s29 }
 0x3de   : > { %2135 = vrot.lane.b32.xlu0 %v10635_v19, %s7804_s29  ;;  %4312 = vmatpush.bf16.msra.mxu0 %v7288_v41 }
 0x3df   : > { %v10647_v26 = vpop.permute.xlu2 %2064  ;;  %v10649_v28 = vpop.permute.xlu1 %2044  ;;  %7567 = vmatpush.bf16.msra.mxu2 %v7288_v41  ;;  %v15829_v41 = vld [vmem:[#allocation220_spill] sm:$0xff] }
 0x3e0   : > { %v10651_v15 = vpop.permute.xlu0 %2042 }
 0x3e2   : > { %4313 = vmatpush.bf16.msra.mxu0 %v7287_v1 }
 0x3e3   : > { %7568 = vmatpush.bf16.msra.mxu2 %v7287_v1 }
 0x3e5   : > { %2949 = vrot.lane.b32.xlu2 %v15823_v51, %s7790_s8  ;;  %2947 = vrot.lane.b32.xlu1 %v15824_v38, %s7790_s8  ;;  %v7286_v51 = vld [vmem:[%s14818_s1 + $0x18] sm:$0xff] }
 0x3e6   : > { %2945 = vrot.lane.b32.xlu0 %v2913_v60, %s7790_s8  ;;  %4314 = vmatpush.bf16.msra.mxu0 %v7286_v51  ;;  %v15828_v38 = vld [vmem:[#allocation219_spill] sm:$0xff] }
 0x3e7   : > { %v10666_v37 = vpop.permute.xlu2 %2070  ;;  %v10668_v63 = vpop.permute.xlu1 %2050  ;;  %7569 = vmatpush.bf16.msra.mxu2 %v7286_v51  ;;  %v7285_v60 = vld [vmem:[%s14818_s1 + $0x10] sm:$0xff] }
 0x3e8   : > { %15825 = vst [vmem:[#allocation210_spill] sm:$0xff] %v10666_v37  ;;  %v10670_v21 = vpop.permute.xlu0 %2048  ;;  %v15835_v37 = vld [vmem:[#allocation226_spill] sm:$0xff] }
 0x3e9   : > { %15826 = vst [vmem:[#allocation214_spill] sm:$0xff] %v10668_v63 }
 0x3ea   : > { %15827 = vst [vmem:[#allocation215_spill] sm:$0xff] %v10670_v21  ;;  %4315 = vmatpush.bf16.msra.mxu0 %v7285_v60 }
 0x3eb   : > { %7570 = vmatpush.bf16.msra.mxu2 %v7285_v60  ;;  %v15836_v60 = vld [vmem:[#allocation227_spill] sm:$0xff] }
 0x3ed   : > { %2955 = vrot.lane.b32.xlu2 %v15828_v38, %s7790_s8  ;;  %2953 = vrot.lane.b32.xlu1 %v15829_v41, %s7790_s8  ;;  %v7284_v38 = vld [vmem:[%s14818_s1 + $0x8] sm:$0xff] }
 0x3ee   : > { %2951 = vrot.lane.b32.xlu0 %v15830_v39, %s7790_s8  ;;  %4316 = vmatpush.bf16.msra.mxu0 %v7284_v38  ;;  %v15834_v41 = vld [vmem:[#allocation225_spill] sm:$0xff] }
 0x3ef   : > { %v10684_v1 = vpop.permute.xlu2 %2076  ;;  %v10686_v63 = vpop.permute.xlu1 %2056  ;;  %7571 = vmatpush.bf16.msra.mxu2 %v7284_v38  ;;  %v7283_v39 = vld [vmem:[%s14818_s1] sm:$0xff] }
 0x3f0   : > { %15831 = vst [vmem:[#allocation219_spill] sm:$0xff] %v10684_v1  ;;  %v10688_v51 = vpop.permute.xlu0 %2054 }
 0x3f1   : > { %15832 = vst [vmem:[#allocation220_spill] sm:$0xff] %v10686_v63 }
 0x3f2   : > { %15833 = vst [vmem:[#allocation221_spill] sm:$0xff] %v10688_v51  ;;  %4317 = vmatpush.bf16.msra.mxu0 %v7283_v39  ;;  %v15840_v51 = vld [vmem:[#allocation233_spill] sm:$0xff] }
 0x3f3   : > { %7572 = vmatpush.bf16.msra.mxu2 %v7283_v39  ;;  %v15843_v39 = vld [vmem:[#allocation237_spill] sm:$0xff] }
 0x3f5   : > { %2961 = vrot.lane.b32.xlu2 %v15834_v41, %s7790_s8  ;;  %2959 = vrot.lane.b32.xlu1 %v15835_v37, %s7790_s8  ;;  %v15838_v41 = vld [vmem:[#allocation231_spill] sm:$0xff]  ;;  %v15839_v37 = vld [vmem:[#allocation232_spill] sm:$0xff] }
 0x3f6   : > { %2957 = vrot.lane.b32.xlu0 %v15836_v60, %s7790_s8 }
 0x3f7   : > { %v10702_v63 = vpop.permute.xlu2 %2082  ;;  %v10704_v1 = vpop.permute.xlu1 %2062 }
 0x3f8   : > { %15837 = vst [vmem:[#allocation225_spill] sm:$0xff] %v10702_v63  ;;  %v10706_v38 = vpop.permute.xlu0 %2060 }
 0x3fd   : > { %2967 = vrot.lane.b32.xlu2 %v15838_v41, %s7790_s8  ;;  %2965 = vrot.lane.b32.xlu1 %v15839_v37, %s7790_s8  ;;  %v15845_v41 = vld [vmem:[#allocation239_spill] sm:$0xff] }
 0x3fe   : > { %2963 = vrot.lane.b32.xlu0 %v15840_v51, %s7790_s8  ;;  %v317_v51 = vld [vmem:[%s7879_s7 + $0xe4] sm:$0x1] }
 0x3ff   : > { %v10714_v60 = vpop.permute.xlu2 %2097  ;;  %v10716_v63 = vpop.permute.xlu1 %2068  ;;  %v2901_v27 = vunpack.c.l.b16 %v317_v51  ;;  %v15856_v51 = vld [vmem:[#allocation294_spill] sm:$0xff] }
 0x400   : > { %15841 = vst [vmem:[#allocation226_spill] sm:$0xff] %v10716_v63  ;;  %v10718_v55 = vpop.permute.xlu0 %2066  ;;  %v7687_v63 = vld [vmem:[%s7879_s7] sm:$0xff]  }
 0x401   : > { %15842 = vst [vmem:[#allocation227_spill] sm:$0xff] %v10718_v55  ;;  %v2143_v4 = vsel %vm2141_vm5, %v7687_v63, %v15849_v5  ;;  %v15854_v5 = vld [vmem:[#allocation243_spill] sm:$0xff]  ;;  %v15855_v63 = vld [vmem:[#allocation244_spill] sm:$0xff] }
 0x405   : > { %2973 = vrot.lane.b32.xlu2 %v15843_v39, %s7790_s8  ;;  %2971 = vrot.lane.b32.xlu1 %v15844_v32, %s7790_s8  ;;  %v15143_v39 = vshll.u32 %v10635_v19, 16  ;;  %v2192_v32 = vsel %vm2190_vm6, %v2143_v4, %v15850_v40  ;;  %v15144_v4 = vshll.u32 %v10625_v58, 16 }
 0x406   : > { %2969 = vrot.lane.b32.xlu0 %v15845_v41, %s7790_s8  ;;  %v15851_v41 = vld [vmem:[#allocation175_spill] sm:$0xff] }
 0x407   : > { %v10726_v37 = vpop.permute.xlu2 %2103  ;;  %v10728_v21 = vpop.permute.xlu1 %2074  ;;  %v2241_v52 = vsel %vm2239_vm7, %v2192_v32, %v15851_v41  ;;  %v2917_v40 = vrot.slane %v15143_v39, 1 }
 0x408   : > { %15846 = vst [vmem:[#allocation231_spill] sm:$0xff] %v10726_v37  ;;  %v10731_v30 = vpop.permute.xlu0 %2072 }
 0x409   : > { %15847 = vst [vmem:[#allocation232_spill] sm:$0xff] %v10728_v21  ;;  %v15852_v21 = vld [vmem:[#allocation205_spill] sm:$0xff] }
 0x40a   : > { %15848 = vst [vmem:[#allocation233_spill] sm:$0xff] %v10731_v30  ;;  %v2290_v37 = vsel %vm2288_vm8, %v2241_v52, %v15852_v21  ;;  %v15853_v30 = vld [vmem:[#allocation249_spill] sm:$0xff]  ;;  %v15145_v21 = vshll.u32 %v10628_v6, 16 }
 0x40b   : > { %v2339_v55 = vsel %vm2337_vm9, %v2290_v37, %v15853_v30  ;;  %v15857_v52 = vld [vmem:[#allocation245_spill] sm:$0xff]  ;;  %v10756_v30 = vpack.c.b16 %v2901_v27, %v2901_v27 }
 0x40c   : > { %v2388_v32 = vsel %vm2386_vm10, %v2339_v55, %v15856_v51  ;;  %v15861_v51 = vld [vmem:[#allocation246_spill] sm:$0xff] }
 0x40d   : > { %2979 = vrot.lane.b32.xlu2 %v15854_v5, %s7790_s8  ;;  %2977 = vrot.lane.b32.xlu1 %v15855_v63, %s7790_s8  ;;  %v2437_v37 = vsel %vm2435_vm11, %v2388_v32, %v9754_v20  ;;  %v2933_v20 = vrot.slane %v15144_v4, 1  ;;  %v15148_v32 = vshrl.u32 %v10625_v58, 16  ;;  %v2939_v39 = vshll.u32 %v10756_v30, 16  ;;  %v15862_v4 = vld [vmem:[#allocation250_spill] sm:$0xff] }
 0x40e   : > { %2975 = vrot.lane.b32.xlu0 %v15857_v52, %s7790_s8  ;;  %v2486_v63 = vsel %vm2484_vm12, %v2437_v37, %v9919_v31  ;;  %v2918_v52 = vsel %vm15151_vm1, %v15861_v51, %v2917_v40  ;;  %v2925_v31 = vrot.slane %v15145_v21, 1  ;;  %v15149_v37 = vshrl.u32 %v10628_v6, 16  ;;  %v15863_v21 = vld [vmem:[#allocation251_spill] sm:$0xff] }
 0x40f   : > { %v10761_v41 = vpop.permute.xlu2 %2109  ;;  %v10763_v5 = vpop.permute.xlu1 %2080  ;;  %v2535_v27 = vsel %vm2533_vm13, %v2486_v63, %v10019_v50  ;;  %v15150_v50 = vshrl.u32 %v10635_v19, 16 }
 0x410   : > { %15858 = vst [vmem:[#allocation237_spill] sm:$0xff] %v10761_v41  ;;  %v10767_v55 = vpop.permute.xlu0 %2078  ;;  %v15866_v41 = vld [vmem:[#allocation133_spill] sm:$0xff] }
 0x411   : > { %15859 = vst [vmem:[#allocation238_spill] sm:$0xff] %v10763_v5  ;;  %v2584_v5 = vsel %vm2582_vm14, %v2535_v27, %v10162_v18  ;;  %v2937_v18 = vor.u32 %v15148_v32, %v2933_v20  ;;  %v2941_v27 = vrot.slane %v2939_v39, 1 }
 0x412   : > { %15860 = vst [vmem:[#allocation239_spill] sm:$0xff] %v10767_v55  ;;  %v2633_v63 = vsel %vm2631_vm15, %v2584_v5, %v10282_v57  ;;  %v2929_v57 = vor.u32 %v15149_v37, %v2925_v31 }
 0x413   : > { %v2682_v51 = vsel %vm15147_vm0, %v2633_v63, %v10405_v2  ;;  %vm2827_vm0 = vcmask 982016   ;;  %v2942_v32 = vsel %vm15151_vm1, %v2937_v18, %v2941_v27  ;;  %v15869_v27 = vld [vmem:[#allocation248_spill] sm:$0xff] }
 0x414   : > { %v2731_v2 = vsel %vm2729_vm4, %v2682_v51, %v10516_v9  ;;  %v2934_v37 = vsel %vm15151_vm1, %v2929_v57, %v2933_v20  ;;  %v7688_v9 = vld [vmem:[%s7879_s7 + $0x8] sm:$0xff]   ;;  %v2998_v20 = vrot.slane %v10609_v12, 1 }
 0x415   : > { %2985 = vrot.lane.b32.xlu2 %v2918_v52, %s7790_s8  ;;  %2983 = vrot.lane.b32.xlu1 %v15862_v4, %s7790_s8  ;;  %v2921_v4 = vor.u32 %v15150_v50, %v2917_v40  ;;  %v15865_v51 = vld [vmem:[#allocation97_spill] sm:$0xff]  ;;  %v15867_v50 = vld [vmem:[#allocation174_spill] sm:$0xff] }
 0x416   : > { %2981 = vrot.lane.b32.xlu0 %v15863_v21, %s7790_s8  ;;  %v2780_v21 = vsel %vm15153_vm3, %v2731_v2, %v10623_v46  ;;  %v15868_v2 = vld [vmem:[#allocation204_spill] sm:$0xff] }
 0x417   : > { %v10798_v5 = vpop.permute.xlu2 %2115  ;;  %v2096_v52 = vpop.permute.xlu1 %2095  ;;  %v2926_v55 = vsel %vm15151_vm1, %v2921_v4, %v2925_v31  ;;  %vm15876_vm1 = vcmask 785408  }
 0x418   : > { %15864 = vst [vmem:[#allocation92_spill] sm:$0xff] %v10798_v5  ;;  %v2094_v63 = vpop.permute.xlu0 %2093  ;;  %v2145_v5 = vsel %vm2141_vm5, %v7688_v9, %v15865_v51  ;;  %v15874_v9 = vld [vmem:[#allocation386_spill] sm:$0xff] }
 0x419   : > { %v2829_v39 = vsel %vm2827_vm0, %v2780_v21, %v2094_v63  ;;  %v2194_v40 = vsel %vm2190_vm6, %v2145_v5, %v15866_v41  ;;  %v15870_v5 = vld [vmem:[#allocation293_spill] sm:$0xff]  ;;  %v15872_v21 = vld [vmem:[#allocation363_spill] sm:$0xff] }
 0x41a   : > { %4318 = vmatmul.bf16.vlgmr.msra.gmra.mxu0 %v2829_v39  ;;  %v2243_v46 = vsel %vm2239_vm7, %v2194_v40, %v15867_v50  ;;  %v15873_v63 = vld [vmem:[#allocation255_spill] sm:$0xff]  ;;  %v2943_v39 = vshrl.u32 %v10756_v30, 16 }
 0x41b   : > { %v2292_v18 = vsel %vm2288_vm8, %v2243_v46, %v15868_v2  ;;  %v2999_v12 = vsel %vm15152_vm2, %v2998_v20, %v15873_v63  ;;  %v15875_v2 = vld [vmem:[#allocation260_spill] sm:$0xff]  ;;  %vm15901_vm2 = vmmov %vm15876_vm1 }
 0x41c   : > { %v2341_v31 = vsel %vm2337_vm9, %v2292_v18, %v15869_v27 }
 0x41d   : > { %2991 = vrot.lane.b32.xlu2 %v2942_v32, %s7790_s8  ;;  %2989 = vrot.lane.b32.xlu1 %v2934_v37, %s7790_s8  ;;  %v2390_v50 = vsel %vm2386_vm10, %v2341_v31, %v15870_v5  ;;  %v15871_v37 = vld [vmem:[#allocation338_spill] sm:$0xff] }
 0x41e   : > { %2987 = vrot.lane.b32.xlu0 %v2926_v55, %s7790_s8  ;;  %v2439_v4 = vsel %vm2435_vm11, %v2390_v50, %v15871_v37  ;;  %v7689_v50 = vld [vmem:[%s7879_s7 + $0x10] sm:$0xff]  }
 0x41f   : > { %v10823_v57 = vpop.permute.xlu2 %2121  ;;  %v10825_v41 = vpop.permute.xlu1 %2101  ;;  %v2488_v55 = vsel %vm2484_vm12, %v2439_v4, %v15872_v21  ;;  %v15877_v37 = vld [vmem:[#allocation91_spill] sm:$0xff]  ;;  %v7690_v4 = vld [vmem:[%s7879_s7 + $0x60] sm:$0xff]  }
 0x420   : > { %v10829_v32 = vpop.permute.xlu0 %2099  ;;  %v2537_v51 = vsel %vm2533_vm13, %v2488_v55, %v15874_v9  ;;  %v15878_v21 = vld [vmem:[#allocation109_spill] sm:$0xff] }
 0x421   : > { %v2586_v40 = vsel %vm2582_vm14, %v2537_v51, %v10159_v36  ;;  %v15879_v55 = vld [vmem:[#allocation113_spill] sm:$0xff] }
 0x422   : > { %v2635_v46 = vsel %vm2631_vm15, %v2586_v40, %v10278_v3  ;;  %v15882_v51 = vld [vmem:[#allocation193_spill] sm:$0xff] }
 0x423   : > { %v2684_v18 = vsel %vm15876_vm1, %v2635_v46, %v10403_v34  ;;  %v2147_v34 = vsel %vm2141_vm5, %v7689_v50, %v15877_v37  ;;  %v15883_v40 = vld [vmem:[#allocation265_spill] sm:$0xff]  ;;  %v15884_v46 = vld [vmem:[#allocation266_spill] sm:$0xff]  ;;  %v15888_v50 = vld [vmem:[#allocation228_spill] sm:$0xff] }
 0x424   : > { %v2733_v20 = vsel %vm2729_vm4, %v2684_v18, %v10514_v29  ;;  %v2167_v29 = vsel %vm2141_vm5, %v7690_v4, %v15878_v21  ;;  %v2196_v63 = vsel %vm2190_vm6, %v2147_v34, %v15879_v55  ;;  %v15889_v34 = vld [vmem:[#allocation269_spill] sm:$0xff] }
 0x425   : > { %3010 = vrot.lane.b32.xlu2 %v15875_v2, %s7791_s9  ;;  %3008 = vrot.lane.b32.xlu1 %v2999_v12, %s7791_s9  ;;  %v2782_v36 = vsel %vm15153_vm3, %v2733_v20, %v10620_v25  ;;  %v15880_v12 = vld [vmem:[#allocation154_spill] sm:$0xff]  ;;  %v15886_v20 = vld [vmem:[#allocation224_spill] sm:$0xff]  ;;  %v15890_v55 = vld [vmem:[#allocation273_spill] sm:$0xff] }
 0x426   : > { %2993 = vrot.lane.b32.xlu0 %v2943_v39, %s7790_s8  ;;  %v2832_v5 = vsel %vm2827_vm0, %v2782_v36, %v2096_v52  ;;  %v2216_v39 = vsel %vm2190_vm6, %v2167_v29, %v15880_v12  ;;  %v15881_v25 = vld [vmem:[#allocation158_spill] sm:$0xff]  ;;  %s12585_s8 = scalar_lea.vmem [#allocation2], %s4568_s27 }
 0x427   : > { %v10852_v27 = vpop.permute.xlu2 %2127  ;;  %v10854_v31 = vpop.permute.xlu1 %2107  ;;  %v2245_v9 = vsel %vm2239_vm7, %v2196_v63, %v15881_v25  ;;  %v2265_v52 = vsel %vm2239_vm7, %v2216_v39, %v15882_v51  ;;  %v15885_v2 = vld [vmem:[#allocation194_spill] sm:$0xff] }
 0x428   : > { %v10858_v3 = vpop.permute.xlu0 %2105  ;;  %v2294_v18 = vsel %vm2288_vm8, %v2245_v9, %v15885_v2  ;;  %v2314_v36 = vsel %vm2288_vm8, %v2265_v52, %v15886_v20  ;;  %v15891_v12 = vld [vmem:[#allocation314_spill] sm:$0xff]  ;;  %v15893_v52 = vld [vmem:[#allocation352_spill] sm:$0xff] }
 0x429   : > { %v2343_v37 = vsel %vm2337_vm9, %v2294_v18, %v15888_v50  ;;  %v2363_v4 = vsel %vm2337_vm9, %v2314_v36, %v15889_v34  ;;  %v15892_v9 = vld [vmem:[#allocation318_spill] sm:$0xff]  ;;  %v15895_v18 = vld [vmem:[#allocation375_spill] sm:$0xff]  ;;  %v15896_v36 = vld [vmem:[#allocation376_spill] sm:$0xff] }
 0x42a   : > { %4323 = vmatmul.bf16.gmra.mxu0 %v2832_v5  ;;  %v15887_v5 = vld [vmem:[#allocation259_spill] sm:$0xff]  ;;  %v2392_v63 = vsel %vm2386_vm10, %v2343_v37, %v15890_v55  ;;  %v2412_v39 = vsel %vm2386_vm10, %v2363_v4, %v15891_v12  ;;  %v15898_v34 = vld [vmem:[#allocation396_spill] sm:$0xff] }
 0x42b   : > { %v2441_v51 = vsel %vm2435_vm11, %v2392_v63, %v15892_v9  ;;  %v15897_v50 = vld [vmem:[#allocation395_spill] sm:$0xff]  ;;  %v15900_v9 = vld [vmem:[#allocation272_spill] sm:$0xff] }
 0x42d   : > { %3016 = vrot.lane.b32.xlu2 %v15883_v40, %s7791_s9  ;;  %3014 = vrot.lane.b32.xlu1 %v15884_v46, %s7791_s9  ;;  %v2461_v40 = vsel %vm2435_vm11, %v2412_v39, %v15893_v52  ;;  %v15894_v46 = vld [vmem:[#allocation353_spill] sm:$0xff]  ;;  %v15899_v39 = vld [vmem:[#allocation271_spill] sm:$0xff]  ;;  %v15902_v52 = vld [vmem:[#allocation264_spill] sm:$0xff] }
 0x42e   : > { %3012 = vrot.lane.b32.xlu0 %v15887_v5, %s7791_s9  ;;  %v2490_v2 = vsel %vm2484_vm12, %v2441_v51, %v15894_v46  ;;  %v2510_v20 = vsel %vm2484_vm12, %v2461_v40, %v15895_v18 }
 0x42f   : > { %v10889_v21 = vpop.permute.xlu2 %2133  ;;  %v10891_v29 = vpop.permute.xlu1 %2113  ;;  %v2539_v5 = vsel %vm2533_vm13, %v2490_v2, %v15896_v36  ;;  %v2559_v37 = vsel %vm2533_vm13, %v2510_v20, %v15897_v50  ;;  %v15903_v36 = vld [vmem:[#allocation96_spill] sm:$0xff] }
 0x430   : > { %v10897_v25 = vpop.permute.xlu0 %2111  ;;  %v2588_v4 = vsel %vm2582_vm14, %v2539_v5, %v15898_v34  ;;  %v2608_v55 = vsel %vm2582_vm14, %v2559_v37, %v10222_v24  ;;  %v7692_v5 = vld [vmem:[%s7879_s7 + $0x68] sm:$0xff]   ;;  %v15904_v50 = vld [vmem:[#allocation108_spill] sm:$0xff] }
 0x431   : > { %v2637_v63 = vsel %vm2631_vm15, %v2588_v4, %v10230_v49  ;;  %v2657_v12 = vsel %vm2631_vm15, %v2608_v55, %v10339_v0  ;;  %v2169_v37 = vsel %vm2141_vm5, %v7692_v5, %v15904_v50  ;;  %v15907_v55 = vld [vmem:[#allocation180_spill] sm:$0xff]  ;;  %v15917_v5 = vld [vmem:[#allocation313_spill] sm:$0xff] }
 0x432   : > { %v2686_v51 = vsel %vm15876_vm1, %v2637_v63, %v10347_v42  ;;  %v2706_v24 = vsel %vm15901_vm2, %v2657_v12, %v10463_v44  ;;  %v15908_v63 = vld [vmem:[#allocation192_spill] sm:$0xff]  ;;  %vm15928_vm2 = vmmov %vm15876_vm1 }
 0x433   : > { %v2735_v49 = vsel %vm2729_vm4, %v2686_v51, %v10471_v54  ;;  %v2755_v0 = vsel %vm2729_vm4, %v2706_v24, %v10564_v17  ;;  %v7691_v54 = vld [vmem:[%s7879_s7 + $0x18] sm:$0xff]   ;;  %v15911_v51 = vld [vmem:[#allocation209_spill] sm:$0xff] }
 0x434   : > { %v2784_v2 = vsel %vm15153_vm3, %v2735_v49, %v10576_v8  ;;  %v2804_v42 = vsel %vm15153_vm3, %v2755_v0, %v10706_v38  ;;  %v2149_v17 = vsel %vm2141_vm5, %v7691_v54, %v15903_v36  ;;  %v15905_v8 = vld [vmem:[#allocation139_spill] sm:$0xff]  ;;  %v15906_v38 = vld [vmem:[#allocation153_spill] sm:$0xff]  ;;  %v15913_v0 = vld [vmem:[#allocation270_spill] sm:$0xff] }
 0x435   : > { %3022 = vrot.lane.b32.xlu2 %v15899_v39, %s7791_s9  ;;  %3020 = vrot.lane.b32.xlu1 %v15900_v9, %s7791_s9  ;;  %v2835_v44 = vsel %vm2827_vm0, %v2784_v2, %v10714_v60  ;;  %v2198_v34 = vsel %vm2190_vm6, %v2149_v17, %v15905_v8  ;;  %v2218_v4 = vsel %vm2190_vm6, %v2169_v37, %v15906_v38  ;;  %v15909_v39 = vld [vmem:[#allocation277_spill] sm:$0xff]  ;;  %v15910_v9 = vld [vmem:[#allocation278_spill] sm:$0xff]  ;;  %v15916_v36 = vld [vmem:[#allocation299_spill] sm:$0xff] }
 0x436   : > { %3018 = vrot.lane.b32.xlu0 %v15902_v52, %s7791_s9  ;;  %v2247_v60 = vsel %vm2239_vm7, %v2198_v34, %v15907_v55  ;;  %v2267_v12 = vsel %vm2239_vm7, %v2218_v4, %v15908_v63  ;;  %v15912_v52 = vld [vmem:[#allocation223_spill] sm:$0xff]  ;;  %v15914_v2 = vld [vmem:[#allocation254_spill] sm:$0xff] }
 0x437   : > { %v10933_v40 = vpop.permute.xlu2 %2139  ;;  %v2120_v46 = vpop.permute.xlu1 %2119  ;;  %v2296_v24 = vsel %vm2288_vm8, %v2247_v60, %v15911_v51  ;;  %v2316_v49 = vsel %vm2288_vm8, %v2267_v12, %v15912_v52  ;;  %v15918_v8 = vld [vmem:[#allocation343_spill] sm:$0xff]  ;;  %v15920_v55 = vld [vmem:[#allocation366_spill] sm:$0xff]  ;;  %v15924_v52 = vld [vmem:[#allocation417_spill] sm:$0xff] }
 0x438   : > { %v2118_v18 = vpop.permute.xlu0 %2117  ;;  %v15919_v38 = vld [vmem:[#allocation351_spill] sm:$0xff]  ;;  %v15921_v63 = vld [vmem:[#allocation374_spill] sm:$0xff] }
 0x439   : > { %v2865_v20 = vsel %vm2827_vm0, %v2804_v42, %v2118_v18  ;;  %v2345_v42 = vsel %vm2337_vm9, %v2296_v24, %v15914_v2  ;;  %v15915_v18 = vld [vmem:[#allocation268_spill] sm:$0xff]  ;;  %v15923_v51 = vld [vmem:[#allocation394_spill] sm:$0xff] }
 0x43a   : > { %4328 = vmatmul.bf16.gmra.mxu0 %v2835_v44  ;;  %4378 = vmatmul.bf16.vlgmr.msra.gmra.mxu2 %v2865_v20  ;;  %v2365_v44 = vsel %vm2337_vm9, %v2316_v49, %v15915_v18  ;;  %v2394_v17 = vsel %vm2386_vm10, %v2345_v42, %v15916_v36  ;;  %v15927_v36 = vld [vmem:[#allocation284_spill] sm:$0xff] }
 0x43b   : > { %v2414_v50 = vsel %vm2386_vm10, %v2365_v44, %v15917_v5  ;;  %v2443_v34 = vsel %vm2435_vm11, %v2394_v17, %v15918_v8  ;;  %v15926_v44 = vld [vmem:[#allocation283_spill] sm:$0xff] }
 0x43c   : > { %v2463_v4 = vsel %vm2435_vm11, %v2414_v50, %v15919_v38  ;;  %v2492_v60 = vsel %vm2484_vm12, %v2443_v34, %v15920_v55  ;;  %v15929_v50 = vld [vmem:[#allocation276_spill] sm:$0xff] }
 0x43d   : > { %3028 = vrot.lane.b32.xlu2 %v15909_v39, %s7791_s9  ;;  %3026 = vrot.lane.b32.xlu1 %v15910_v9, %s7791_s9  ;;  %v2512_v12 = vsel %vm2484_vm12, %v2463_v4, %v15921_v63  ;;  %v15922_v39 = vld [vmem:[#allocation390_spill] sm:$0xff]  ;;  %v7693_v55 = vld [vmem:[%s7879_s7 + $0x20] sm:$0xff]  }
 0x43e   : > { %3024 = vrot.lane.b32.xlu0 %v15913_v0, %s7791_s9  ;;  %v2541_v9 = vsel %vm2533_vm13, %v2492_v60, %v15922_v39  ;;  %v2561_v24 = vsel %vm2533_vm13, %v2512_v12, %v15923_v51  ;;  %v15925_v0 = vld [vmem:[#allocation421_spill] sm:$0xff]  ;;  %v7694_v63 = vld [vmem:[%s7879_s7 + $0x70] sm:$0xff]  }
 0x43f   : > { %v10970_v20 = vpop.permute.xlu2 %2949  ;;  %v10972_v54 = vpop.permute.xlu1 %2125  ;;  %v2590_v49 = vsel %vm2582_vm14, %v2541_v9, %v15924_v52  ;;  %v2610_v2 = vsel %vm2582_vm14, %v2561_v24, %v15925_v0  ;;  %v15931_v12 = vld [vmem:[#allocation95_spill] sm:$0xff]  ;;  %v15933_v9 = vld [vmem:[#allocation138_spill] sm:$0xff]  ;;  %v320_v24 = vld [vmem:[%s7879_s7 + $0x24] sm:$0xc] }
 0x440   : > { %v10978_v37 = vpop.permute.xlu0 %2123  ;;  %v2639_v42 = vsel %vm2631_vm15, %v2590_v49, %v10302_v10  ;;  %v2659_v18 = vsel %vm2631_vm15, %v2610_v2, %v10337_v7  ;;  %v2171_v39 = vsel %vm2141_vm5, %v7694_v63, %v15931_v12  ;;  %v15935_v52 = vld [vmem:[#allocation179_spill] sm:$0xff]  ;;  %v15945_v63 = vld [vmem:[#allocation341_spill] sm:$0xff] }
 0x441   : > { %v2688_v17 = vsel %vm15928_vm2, %v2639_v42, %v10426_v43  ;;  %v2708_v5 = vsel %vm15876_vm1, %v2659_v18, %v10461_v23  ;;  %v15936_v0 = vld [vmem:[#allocation207_spill] sm:$0xff]  ;;  %v15937_v42 = vld [vmem:[#allocation208_spill] sm:$0xff]  ;;  %vm15953_vm2 = vmmov %vm15876_vm1 }
 0x442   : > { %v2737_v10 = vsel %vm2729_vm4, %v2688_v17, %v10528_v14  ;;  %v2757_v7 = vsel %vm2729_vm4, %v2708_v5, %v10562_v61  ;;  %v15930_v61 = vld [vmem:[#allocation77_spill] sm:$0xff]  ;;  %v15940_v17 = vld [vmem:[#allocation252_spill] sm:$0xff] }
 0x443   : > { %v2786_v43 = vsel %vm15153_vm3, %v2737_v10, %v10651_v15  ;;  %v2806_v23 = vsel %vm15153_vm3, %v2757_v7, %v10704_v1  ;;  %v2151_v60 = vsel %vm2141_vm5, %v7693_v55, %v15930_v61  ;;  %v15932_v15 = vld [vmem:[#allocation137_spill] sm:$0xff]  ;;  %v15942_v7 = vld [vmem:[#allocation282_spill] sm:$0xff] }
 0x444   : > { %v2838_v4 = vsel %vm2827_vm0, %v2786_v43, %v10829_v32  ;;  %v2868_v14 = vsel %vm2827_vm0, %v2806_v23, %v2120_v46  ;;  %v2220_v1 = vsel %vm2190_vm6, %v2171_v39, %v15932_v15  ;;  %v2200_v51 = vsel %vm2190_vm6, %v2151_v60, %v15933_v9  ;;  %v15934_v32 = vld [vmem:[#allocation178_spill] sm:$0xff]  ;;  %v15943_v23 = vld [vmem:[#allocation297_spill] sm:$0xff]  ;;  %v15947_v9 = vld [vmem:[#allocation364_spill] sm:$0xff] }
 0x445   : > { %3034 = vrot.lane.b32.xlu2 %v15926_v44, %s7791_s9  ;;  %3032 = vrot.lane.b32.xlu1 %v15927_v36, %s7791_s9  ;;  %v2269_v46 = vsel %vm2239_vm7, %v2220_v1, %v15934_v32  ;;  %v2249_v49 = vsel %vm2239_vm7, %v2200_v51, %v15935_v52  ;;  %v15938_v44 = vld [vmem:[#allocation289_spill] sm:$0xff]  ;;  %v15939_v36 = vld [vmem:[#allocation290_spill] sm:$0xff]  ;;  %v3059_v43 = vunpack.c.l.b16 %v320_v24 }
 0x446   : > { %3030 = vrot.lane.b32.xlu0 %v15929_v50, %s7791_s9  ;;  %v2318_v2 = vsel %vm2288_vm8, %v2269_v46, %v15936_v0  ;;  %v2298_v18 = vsel %vm2288_vm8, %v2249_v49, %v15937_v42  ;;  %v15941_v50 = vld [vmem:[#allocation253_spill] sm:$0xff]  ;;  %v15946_v39 = vld [vmem:[#allocation342_spill] sm:$0xff]  ;;  %v15949_v46 = vld [vmem:[#allocation388_spill] sm:$0xff] }
 0x447   : > { %v11014_v8 = vpop.permute.xlu2 %2955  ;;  %v11016_v34 = vpop.permute.xlu1 %2131  ;;  %v2367_v5 = vsel %vm2337_vm9, %v2318_v2, %v15940_v17  ;;  %v2347_v10 = vsel %vm2337_vm9, %v2298_v18, %v15941_v50  ;;  %v15948_v24 = vld [vmem:[#allocation365_spill] sm:$0xff]  ;;  %v3060_v2 = vpack.c.b16 %v15818_v59, %v3059_v43  ;;  %v15951_v42 = vld [vmem:[#allocation415_spill] sm:$0xff]  ;;  %v15955_v43 = vld [vmem:[#allocation296_spill] sm:$0xff] }
 0x448   : > { %v11022_v38 = vpop.permute.xlu0 %2129  ;;  %v15950_v49 = vld [vmem:[#allocation389_spill] sm:$0xff]  ;;  %v15954_v59 = vld [vmem:[#allocation295_spill] sm:$0xff] }
 0x449   : > { %v319_v50 = vld [vmem:[%s7879_s7 + $0xe4] sm:$0x3] }
 0x44a   : > { %4333 = vmatmul.bf16.gmra.mxu0 %v2838_v4  ;;  %4383 = vmatmul.bf16.gmra.mxu2 %v2868_v14  ;;  %v2416_v4 = vsel %vm2386_vm10, %v2367_v5, %v15943_v23  ;;  %v15944_v14 = vld [vmem:[#allocation298_spill] sm:$0xff]  ;;  %v3002_v23 = vrot.slane %v10628_v6, 1 }
 0x44b   : > { %v2396_v55 = vsel %vm2386_vm10, %v2347_v10, %v15944_v14  ;;  %v2465_v12 = vsel %vm2435_vm11, %v2416_v4, %v15945_v63  ;;  %v3000_v4 = vrot.slane %v10635_v19, 1  ;;  %v3062_v14 = vshrl.u32 %v3060_v2, 16  ;;  %v16164_v6 = vld [vmem:[#allocation30_spill] sm:$0xff] }
 0x44c   : > { %v2445_v15 = vsel %vm2435_vm11, %v2396_v55, %v15946_v39  ;;  %v2514_v51 = vsel %vm2484_vm12, %v2465_v12, %v15947_v9  ;;  %v2996_v39 = vunpack.c.l.b16 %v319_v50 }
 0x44d   : > { %3040 = vrot.lane.b32.xlu2 %v15938_v44, %s7791_s9  ;;  %3038 = vrot.lane.b32.xlu1 %v15939_v36, %s7791_s9  ;;  %v2494_v32 = vsel %vm2484_vm12, %v2445_v15, %v15948_v24  ;;  %v2563_v52 = vsel %vm2533_vm13, %v2514_v51, %v15949_v46  ;;  %v15952_v44 = vld [vmem:[#allocation416_spill] sm:$0xff]  ;;  %v3064_v46 = vrot.slane %v3062_v14, 1 }
 0x44e   : > { %3036 = vrot.lane.b32.xlu0 %v15942_v7, %s7791_s9  ;;  %v2543_v0 = vsel %vm2533_vm13, %v2494_v32, %v15950_v49  ;;  %v2612_v18 = vsel %vm2582_vm14, %v2563_v52, %v15951_v42  ;;  %v7695_v52 = vld [vmem:[%s7879_s7 + $0x28] sm:$0xff]  }
 0x44f   : > { %v11060_v61 = vpop.permute.xlu2 %2961  ;;  %v11062_v60 = vpop.permute.xlu1 %2137  ;;  %v2592_v36 = vsel %vm2582_vm14, %v2543_v0, %v15952_v44  ;;  %v2661_v17 = vsel %vm2631_vm15, %v2612_v18, %v10298_v33  ;;  %v15956_v33 = vld [vmem:[#allocation288_spill] sm:$0xff]  ;;  %v15959_v49 = vld [vmem:[#allocation81_spill] sm:$0xff]  ;;  %v325_v44 = vld [vmem:[%s7879_s7 + $0x30] sm:$0xe] }
 0x450   : > { %v11068_v1 = vpop.permute.xlu0 %2135  ;;  %v2641_v5 = vsel %vm2631_vm15, %v2592_v36, %v10300_v48  ;;  %v2710_v10 = vsel %vm15953_vm2, %v2661_v17, %v10422_v47  ;;  %v3004_v48 = vrot.slane %v10625_v58, 1  ;;  %v3065_v47 = vshll.u32 %v3060_v2, 16  ;;  %v7696_v0 = vld [vmem:[%s7879_s7 + $0x78] sm:$0xff]  }
 0x451   : > { %v2690_v7 = vsel %vm15876_vm1, %v2641_v5, %v10424_v11  ;;  %v2759_v11 = vsel %vm2729_vm4, %v2710_v10, %v10524_v16  ;;  %vm15957_vm2 = vcmask 1046528   ;;  %v15960_v2 = vld [vmem:[#allocation115_spill] sm:$0xff]  ;;  %v15965_v5 = vld [vmem:[#allocation160_spill] sm:$0xff] }
 0x452   : > { %v2739_v55 = vsel %vm2729_vm4, %v2690_v7, %v10526_v45  ;;  %v2808_v15 = vsel %vm15153_vm3, %v2759_v11, %v10647_v26  ;;  %v3005_v24 = vsel %vm15957_vm2, %v3002_v23, %v3004_v48  ;;  %vm15958_vm1 = vmmov %vm15957_vm2  ;;  %v3067_v26 = vrot.slane %v3065_v47, 2  ;;  %v15964_v36 = vld [vmem:[#allocation119_spill] sm:$0xff]  ;;  %v15966_v10 = vld [vmem:[#allocation164_spill] sm:$0xff] }
 0x453   : > { %v2788_v9 = vsel %vm15153_vm3, %v2739_v55, %v10649_v28  ;;  %v2871_v45 = vsel %vm2827_vm0, %v2808_v15, %v10823_v57  ;;  %v3003_v32 = vsel %vm15958_vm1, %v3000_v4, %v3002_v23  ;;  %v2153_v28 = vsel %vm2141_vm5, %v7695_v52, %v15959_v49  ;;  %vm15962_vm3 = vmmov %vm15958_vm1  ;;  %v15968_v23 = vld [vmem:[#allocation197_spill] sm:$0xff]  ;;  %v15970_v55 = vld [vmem:[#allocation234_spill] sm:$0xff] }
 0x454   : > { %v2841_v16 = vsel %vm2827_vm0, %v2788_v9, %v10825_v41  ;;  %v2173_v42 = vsel %vm2141_vm5, %v7696_v0, %v15960_v2  ;;  %v15961_v41 = vld [vmem:[#allocation291_spill] sm:$0xff]  ;;  %v11129_v57 = vpack.c.b16 %v2996_v39, %v2996_v39  ;;  %v2202_v17 = vsel %vm2190_vm6, %v2153_v28, %v15964_v36  ;;  %v15973_v49 = vld [vmem:[#allocation320_spill] sm:$0xff]  ;;  %vm15983_vm2 = vmmov %vm15958_vm1 }
 0x455   : > { %3046 = vrot.lane.b32.xlu2 %v15954_v59, %s7791_s9  ;;  %3044 = vrot.lane.b32.xlu1 %v15955_v43, %s7791_s9  ;;  %v3001_v18 = vsel %vm15962_vm3, %v15961_v41, %v3000_v4  ;;  %v2222_v50 = vsel %vm2190_vm6, %v2173_v42, %v15965_v5  ;;  %v2251_v7 = vsel %vm2239_vm7, %v2202_v17, %v15966_v10  ;;  %v15967_v59 = vld [vmem:[#allocation196_spill] sm:$0xff]  ;;  %v15969_v4 = vld [vmem:[#allocation230_spill] sm:$0xff]  ;;  %v3341_v11 = vunpack.c.l.b16 %v325_v44  ;;  %v15971_v15 = vld [vmem:[#allocation275_spill] sm:$0xff] }
 0x456   : > { %3042 = vrot.lane.b32.xlu0 %v15956_v33, %s7791_s9  ;;  %15963 = vst [vmem:[#allocation134_spill] sm:$0xff] %v11129_v57  ;;  %v2271_v43 = vsel %vm2239_vm7, %v2222_v50, %v15967_v59  ;;  %v2300_v33 = vsel %vm2288_vm8, %v2251_v7, %v15968_v23  ;;  %v3068_v47 = vor.u32 %v3067_v26, %v3064_v46  ;;  %v15974_v28 = vld [vmem:[#allocation324_spill] sm:$0xff]  ;;  %v15975_v2 = vld [vmem:[#allocation355_spill] sm:$0xff]  ;;  %v15977_v44 = vld [vmem:[#allocation378_spill] sm:$0xff]  ;;  %vm15979_vm3 = vsmask.f32 6400 }
 0x457   : > { %v11105_v63 = vpop.permute.xlu2 %2967  ;;  %v11107_v12 = vpop.permute.xlu1 %2947  ;;  %v2320_v14 = vsel %vm2288_vm8, %v2271_v43, %v15969_v4  ;;  %v2349_v39 = vsel %vm2337_vm9, %v2300_v33, %v15970_v55  ;;  %v15976_v41 = vld [vmem:[#allocation356_spill] sm:$0xff]  ;;  %v15980_v50 = vld [vmem:[#allocation181_spill] sm:$0xff]  ;;  %v15981_v7 = vld [vmem:[#allocation379_spill] sm:$0xff]  ;;  %vm15988_vm1 = vcmask 785408  }
 0x458   : > { %v11113_v51 = vpop.permute.xlu0 %2945  ;;  %v2369_v9 = vsel %vm2337_vm9, %v2320_v14, %v15971_v15  ;;  %v15978_v17 = vld [vmem:[#allocation300_spill] sm:$0xff]  ;;  %v11173_v10 = vpack.c.b16 %v15980_v50, %v3341_v11  ;;  %v15982_v43 = vld [vmem:[#allocation398_spill] sm:$0xff]  ;;  %v327_v4 = vld [vmem:[%s7879_s7 + $0x30] sm:$0xc] }
 0x459   : > { %v2418_v46 = vsel %vm2386_vm10, %v2369_v9, %v15973_v49  ;;  %v3069_v5 = vsel %vm15979_vm3, %v3068_v47, %v15978_v17  ;;  %v15984_v14 = vld [vmem:[#allocation399_spill] sm:$0xff]  ;;  %v15986_v9 = vld [vmem:[#allocation424_spill] sm:$0xff]  ;;  %vm15989_vm3 = vmmov %vm15988_vm1 }
 0x45a   : > { %4338 = vmatmul.bf16.gmra.mxu0 %v2841_v16  ;;  %4388 = vmatmul.bf16.gmra.mxu2 %v2871_v45  ;;  %v2467_v42 = vsel %vm2435_vm11, %v2418_v46, %v15975_v2  ;;  %v3346_v46 = vshll.u32 %v11173_v10, 16 }
 0x45b   : > { %v2516_v36 = vsel %vm2484_vm12, %v2467_v42, %v15977_v44  ;;  %v15993_v44 = vld [vmem:[#allocation100_spill] sm:$0xff] }
 0x45c   : > { %v2565_v23 = vsel %vm2533_vm13, %v2516_v36, %v15982_v43  ;;  %v15996_v43 = vld [vmem:[#allocation114_spill] sm:$0xff] }
 0x45d   : > { %3052 = vrot.lane.b32.xlu2 %v3005_v24, %s7791_s9  ;;  %3050 = vrot.lane.b32.xlu1 %v3003_v32, %s7791_s9  ;;  %v3006_v24 = vrot.slane %v11129_v57, 1  ;;  %v15972_v32 = vld [vmem:[#allocation279_spill] sm:$0xff]  ;;  %v16163_v57 = vld [vmem:[#allocation189_spill] sm:$0xff] }
 0x45e   : > { %3048 = vrot.lane.b32.xlu0 %v3001_v18, %s7791_s9  ;;  %v2398_v52 = vsel %vm2386_vm10, %v2349_v39, %v15972_v32  ;;  %v15985_v39 = vld [vmem:[#allocation423_spill] sm:$0xff] }
 0x45f   : > { %v11151_v16 = vpop.permute.xlu2 %2973  ;;  %v11153_v45 = vpop.permute.xlu1 %2953  ;;  %v2447_v0 = vsel %vm2435_vm11, %v2398_v52, %v15974_v28  ;;  %v3007_v33 = vsel %vm15983_vm2, %v3004_v48, %v3006_v24  ;;  %v2614_v15 = vsel %vm2582_vm14, %v2565_v23, %v15985_v39  ;;  %v15987_v32 = vld [vmem:[#allocation15_spill] sm:$0xff]  ;;  %v3481_v28 = vunpack.c.l.b16 %v327_v4 }
 0x460   : > { %v11160_v26 = vpop.permute.xlu0 %2951  ;;  %v2496_v18 = vsel %vm2484_vm12, %v2447_v0, %v15976_v41  ;;  %v2663_v11 = vsel %vm2631_vm15, %v2614_v15, %v10351_v22  ;;  %v3151_v48 = vrot.slane %v15987_v32, 7  ;;  %vm15990_vm2 = vcmask 916480   ;;  %v15998_v39 = vld [vmem:[#allocation159_spill] sm:$0xff] }
 0x461   : > { %v2545_v59 = vsel %vm2533_vm13, %v2496_v18, %v15981_v7  ;;  %v2712_v49 = vsel %vm15989_vm3, %v2663_v11, %v10475_v56  ;;  %v15991_v56 = vld [vmem:[#allocation227_spill] sm:$0xff]  ;;  %v3344_v23 = vshrl.u32 %v11173_v10, 16  ;;  %v3482_v4 = vpack.c.b16 %v15980_v50, %v3481_v28  ;;  %v16004_v28 = vld [vmem:[#allocation258_spill] sm:$0xff] }
 0x462   : > { %v2594_v55 = vsel %vm2582_vm14, %v2545_v59, %v15984_v14  ;;  %v7697_v18 = vld [vmem:[%s7879_s7 + $0x30] sm:$0xff]   ;;  %v7698_v59 = vld [vmem:[%s7879_s7 + $0x80] sm:$0xff]   ;;  %vm15154_vm3 = vsmask.f32 256 }
 0x463   : > { %v2643_v47 = vsel %vm2631_vm15, %v2594_v55, %v15986_v9  ;;  %v2155_v36 = vsel %vm2141_vm5, %v7697_v18, %v15993_v44  ;;  %v15997_v14 = vld [vmem:[#allocation143_spill] sm:$0xff]  ;;  %v3487_v44 = vshll.u32 %v3482_v4, 16 }
 0x464   : > { %v2692_v52 = vsel %vm15988_vm1, %v2643_v47, %v10360_v62  ;;  %vm15992_vm1 = vmmov %vm15990_vm2  ;;  %v2204_v55 = vsel %vm2190_vm6, %v2155_v36, %v15997_v14  ;;  %v16000_v47 = vld [vmem:[#allocation185_spill] sm:$0xff]  ;;  %v16001_v32 = vld [vmem:[#allocation195_spill] sm:$0xff] }
 0x465   : > { %3091 = vrot.lane.b32.xlu2 %v3069_v5, %s7792_s10  ;;  %3056 = vrot.lane.b32.xlu1 %v3006_v24, %s7791_s9  ;;  %v2741_v22 = vsel %vm2729_vm4, %v2692_v52, %v10483_v13  ;;  %v2761_v24 = vsel %vm2729_vm4, %v2712_v49, %v10580_v35  ;;  %v15994_v13 = vld [vmem:[#allocation231_spill] sm:$0xff]  ;;  %v15995_v5 = vld [vmem:[#allocation5_spill] sm:$0xff]  ;;  %v2253_v11 = vsel %vm2239_vm7, %v2204_v55, %v16000_v47  ;;  %v16006_v36 = vld [vmem:[#allocation274_spill] sm:$0xff] }
 0x466   : > { %3054 = vrot.lane.b32.xlu0 %v3007_v33, %s7791_s9  ;;  %v2790_v62 = vsel %vm15990_vm2, %v2741_v22, %v10588_v53  ;;  %v2810_v42 = vsel %vm15992_vm1, %v2761_v24, %v15991_v56  ;;  %v3152_v7 = vor.u32 %v3151_v48, %v15995_v5  ;;  %v2175_v53 = vsel %vm2141_vm5, %v7698_v59, %v15996_v43  ;;  %v16002_v49 = vld [vmem:[#allocation213_spill] sm:$0xff]  ;;  %v16009_v43 = vld [vmem:[#allocation319_spill] sm:$0xff]  ;;  %v16011_v14 = vld [vmem:[#allocation354_spill] sm:$0xff] }
 0x467   : > { %v11202_v0 = vpop.permute.xlu2 %2979  ;;  %v11204_v2 = vpop.permute.xlu1 %2959  ;;  %v2844_v17 = vsel %vm2827_vm0, %v2790_v62, %v15994_v13  ;;  %v2874_v35 = vsel %vm2827_vm0, %v2810_v42, %v10978_v37  ;;  %v3348_v33 = vrot.slane %v3346_v46, 1  ;;  %v2224_v15 = vsel %vm2190_vm6, %v2175_v53, %v15998_v39  ;;  %v15999_v37 = vld [vmem:[#allocation14_spill] sm:$0xff]  ;;  %v16003_v46 = vld [vmem:[#allocation229_spill] sm:$0xff] }
 0x468   : > { %v11210_v41 = vpop.permute.xlu0 %2957  ;;  %v3153_v9 = vrot.slane %v15999_v37, 7  ;;  %v2273_v52 = vsel %vm2239_vm7, %v2224_v15, %v16001_v32  ;;  %v2302_v22 = vsel %vm2288_vm8, %v2253_v11, %v16002_v49  ;;  %v16005_v62 = vld [vmem:[#allocation305_spill] sm:$0xff]  ;;  %v3484_v42 = vshrl.u32 %v3482_v4, 16  ;;  %v16082_v37 = vld [vmem:[#allocation200_spill] sm:$0xff] }
 0x469   : > { %v2322_v50 = vsel %vm2288_vm8, %v2273_v52, %v16003_v46  ;;  %v2351_v24 = vsel %vm2337_vm9, %v2302_v22, %v16004_v28  ;;  %v3349_v56 = vor.u32 %v3348_v33, %v3344_v23  ;;  %v16010_v23 = vld [vmem:[#allocation346_spill] sm:$0xff]  ;;  %v16012_v39 = vld [vmem:[#allocation369_spill] sm:$0xff]  ;;  %vm16015_vm2 = vsmask.f32 7424 }
 0x46a   : > { %4343 = vmatmul.bf16.gmra.mxu0 %v2844_v17  ;;  %4393 = vmatmul.bf16.gmra.mxu2 %v2874_v35  ;;  %v2371_v13 = vsel %vm2337_vm9, %v2322_v50, %v16006_v36  ;;  %v16007_v17 = vld [vmem:[#allocation303_spill] sm:$0xff]  ;;  %v16013_v47 = vld [vmem:[#allocation377_spill] sm:$0xff]  ;;  %v3486_v49 = vrot.slane %v3484_v42, 1  ;;  %v3489_v22 = vrot.slane %v3487_v44, 2  ;;  %v16016_v46 = vld [vmem:[#allocation10_spill] sm:$0xff]  ;;  %vm16023_vm1 = vcmask 785408  }
 0x46b   : > { %v2400_v35 = vsel %vm2386_vm10, %v2351_v24, %v16007_v17  ;;  %v2420_v53 = vsel %vm2386_vm10, %v2371_v13, %v16009_v43  ;;  %v16014_v32 = vld [vmem:[#allocation13_spill] sm:$0xff]  ;;  %v16019_v17 = vld [vmem:[#allocation422_spill] sm:$0xff]  ;;  %v7699_v44 = vld [vmem:[%s7879_s7 + $0x38] sm:$0xff]  }
 0x46c   : > { %v2449_v33 = vsel %vm2435_vm11, %v2400_v35, %v16010_v23  ;;  %v2469_v55 = vsel %vm2435_vm11, %v2420_v53, %v16011_v14  ;;  %v3350_v52 = vsel %vm16015_vm2, %v3349_v56, %v16014_v32  ;;  %v16017_v28 = vld [vmem:[#allocation397_spill] sm:$0xff]  ;;  %vm16025_vm2 = vmmov %vm16023_vm1  ;;  %v16026_v14 = vld [vmem:[#allocation172_spill] sm:$0xff]  ;;  %v3420_v32 = vrot.slane %v11173_v10, 1 }
 0x46d   : > { %3290 = vrot.lane.b32.xlu2 %v7697_v18, %s7794_s12  ;;  %3237 = vrot.lane.b32.xlu1 %v3152_v7, %s7793_s11  ;;  %v16008_v7 = vld [vmem:[#allocation8_spill] sm:$0xff]  ;;  %v2498_v15 = vsel %vm2484_vm12, %v2449_v33, %v16012_v39  ;;  %v2518_v11 = vsel %vm2484_vm12, %v2469_v55, %v16013_v47  ;;  %v16018_v36 = vld [vmem:[#allocation69_spill] sm:$0xff]  ;;  %v3490_v33 = vor.u32 %v3489_v22, %v3486_v49 }
 0x46e   : > { %3093 = vrot.lane.b32.xlu0 %v16005_v62, %s7792_s10  ;;  %v3154_v59 = vor.u32 %v3153_v9, %v16008_v7  ;;  %v2547_v50 = vsel %vm2533_vm13, %v2498_v15, %v16016_v46  ;;  %v2567_v24 = vsel %vm2533_vm13, %v2518_v11, %v16017_v28  ;;  %v16020_v7 = vld [vmem:[#allocation436_spill] sm:$0xff]  ;;  %v16021_v56 = vld [vmem:[#allocation441_spill] sm:$0xff] }
 0x46f   : > { %v11248_v5 = vpop.permute.xlu2 %2985  ;;  %v11250_v18 = vpop.permute.xlu1 %2965  ;;  %v2596_v13 = vsel %vm2582_vm14, %v2547_v50, %v16018_v36  ;;  %v2616_v35 = vsel %vm2582_vm14, %v2567_v24, %v16019_v17  ;;  %v16022_v53 = vld [vmem:[#allocation145_spill] sm:$0xff]  ;;  %v16027_v39 = vld [vmem:[#allocation452_spill] sm:$0xff]  ;;  %v16030_v50 = vld [vmem:[#allocation226_spill] sm:$0xff] }
 0x470   : > { %v11259_v4 = vpop.permute.xlu0 %2963  ;;  %v3155_v62 = vsel %vm15154_vm3, %v3151_v48, %v3154_v59  ;;  %v2645_v43 = vsel %vm2631_vm15, %v2596_v13, %v16020_v7  ;;  %v2665_v42 = vsel %vm2631_vm15, %v2616_v35, %v16021_v56  ;;  %v16024_v59 = vld [vmem:[#allocation156_spill] sm:$0xff]  ;;  %vm16033_vm3 = vsmask.f32 6400  ;;  %v7700_v10 = vld [vmem:[%s7879_s7 + $0x88] sm:$0xff]   ;;  %v16035_v35 = vld [vmem:[#allocation99_spill] sm:$0xff] }
 0x471   : > { %v2694_v48 = vsel %vm16023_vm1, %v2645_v43, %v16022_v53  ;;  %v2714_v23 = vsel %vm16025_vm2, %v2665_v42, %v16024_v59  ;;  %vm16029_vm1 = vcmask 916480   ;;  %v16034_v13 = vld [vmem:[#allocation98_spill] sm:$0xff]  ;;  %v2157_v7 = vsel %vm2141_vm5, %v7699_v44, %v16035_v35  ;;  %v16038_v42 = vld [vmem:[#allocation141_spill] sm:$0xff] }
 0x472   : > { %v2743_v55 = vsel %vm2729_vm4, %v2694_v48, %v16026_v14  ;;  %v2763_v15 = vsel %vm2729_vm4, %v2714_v23, %v16027_v39  ;;  %vm16031_vm2 = vmmov %vm16029_vm1  ;;  %v2177_v17 = vsel %vm2141_vm5, %v7700_v10, %v16034_v13  ;;  %v16036_v43 = vld [vmem:[#allocation70_spill] sm:$0xff]  ;;  %v16040_v48 = vld [vmem:[#allocation183_spill] sm:$0xff] }
 0x473   : > { %v2812_v28 = vsel %vm16031_vm2, %v2763_v15, %v16030_v50  ;;  %v16039_v53 = vld [vmem:[#allocation142_spill] sm:$0xff]  ;;  %v16041_v23 = vld [vmem:[#allocation184_spill] sm:$0xff]  ;;  %v16042_v14 = vld [vmem:[#allocation21_spill] sm:$0xff] }
 0x474   : > { %v2877_v22 = vsel %vm2827_vm0, %v2812_v28, %v10972_v54  ;;  %v2206_v54 = vsel %vm2190_vm6, %v2157_v7, %v16039_v53  ;;  %v16044_v39 = vld [vmem:[#allocation212_spill] sm:$0xff]  ;;  %v16050_v7 = vld [vmem:[#allocation345_spill] sm:$0xff] }
 0x475   : > { %3292 = vrot.lane.b32.xlu2 %v7699_v44, %s7794_s12  ;;  %3367 = vrot.lane.b32.xlu1 %v3350_v52, %s7795_s13  ;;  %v16028_v52 = vld [vmem:[#allocation215_spill] sm:$0xff] }
 0x476   : > { %3239 = vrot.lane.b32.xlu0 %v3155_v62, %s7793_s11  ;;  %v2792_v46 = vsel %vm16029_vm1, %v2743_v55, %v16028_v52  ;;  %v16032_v62 = vld [vmem:[#allocation101_spill] sm:$0xff]  ;;  %vm16037_vm1 = vcmask 1046528   ;;  %v16043_v44 = vld [vmem:[#allocation211_spill] sm:$0xff] }
 0x477   : > { %v11294_v47 = vpop.permute.xlu2 %2991  ;;  %v11296_v11 = vpop.permute.xlu1 %2971  ;;  %v2847_v49 = vsel %vm2827_vm0, %v2792_v46, %v10858_v3  ;;  %v3491_v36 = vsel %vm16033_vm3, %v3490_v33, %v16032_v62  ;;  %v3421_v56 = vsel %vm16037_vm1, %v3420_v32, %v16036_v43  ;;  %v2226_v3 = vsel %vm2190_vm6, %v2177_v17, %v16038_v42  ;;  %v16045_v32 = vld [vmem:[#allocation256_spill] sm:$0xff]  ;;  %v16046_v46 = vld [vmem:[#allocation257_spill] sm:$0xff] }
 0x478   : > { %v11303_v24 = vpop.permute.xlu0 %2969  ;;  %v2275_v59 = vsel %vm2239_vm7, %v2226_v3, %v16040_v48  ;;  %v2255_v33 = vsel %vm2239_vm7, %v2206_v54, %v16041_v23  ;;  %v16049_v17 = vld [vmem:[#allocation344_spill] sm:$0xff]  ;;  %v16053_v54 = vld [vmem:[#allocation9_spill] sm:$0xff]  ;;  %vm16063_vm3 = vcmask 785408   ;;  %vm16071_vm1 = vcmask 916480  }
 0x479   : > { %v2324_v55 = vsel %vm2288_vm8, %v2275_v59, %v16043_v44  ;;  %v2304_v15 = vsel %vm2288_vm8, %v2255_v33, %v16044_v39  ;;  %v16052_v3 = vld [vmem:[#allocation368_spill] sm:$0xff]  ;;  %v16054_v59 = vld [vmem:[#allocation6_spill] sm:$0xff]  ;;  %v16055_v33 = vld [vmem:[#allocation11_spill] sm:$0xff] }
 0x47a   : > { %4348 = vmatmul.bf16.gmra.mxu0 %v2847_v49  ;;  %4398 = vmatmul.bf16.gmra.mxu2 %v2877_v22  ;;  %v2373_v52 = vsel %vm2337_vm9, %v2324_v55, %v16045_v32  ;;  %v2353_v50 = vsel %vm2337_vm9, %v2304_v15, %v16046_v46  ;;  %v16047_v22 = vld [vmem:[#allocation301_spill] sm:$0xff]  ;;  %v16056_v44 = vld [vmem:[#allocation67_spill] sm:$0xff]  ;;  %v16057_v39 = vld [vmem:[#allocation68_spill] sm:$0xff] }
 0x47b   : > { %v2422_v62 = vsel %vm2386_vm10, %v2373_v52, %v16047_v22  ;;  %v16058_v32 = vld [vmem:[#allocation434_spill] sm:$0xff]  ;;  %v16059_v46 = vld [vmem:[#allocation435_spill] sm:$0xff]  ;;  %v16060_v22 = vld [vmem:[#allocation304_spill] sm:$0xff] }
 0x47c   : > { %v2471_v35 = vsel %vm2435_vm11, %v2422_v62, %v16049_v17  ;;  %v16061_v62 = vld [vmem:[#allocation106_spill] sm:$0xff]  ;;  %v16064_v17 = vld [vmem:[#allocation144_spill] sm:$0xff]  ;;  %vm16065_vm2 = vmmov %vm16063_vm3 }
 0x47d   : > { %3513 = vrot.lane.b32.xlu2 %v3491_v36, %s7797_s22  ;;  %3369 = vrot.lane.b32.xlu1 %v16042_v14, %s7795_s13  ;;  %v16048_v36 = vld [vmem:[#allocation302_spill] sm:$0xff]  ;;  %v3156_v14 = vrot.slane %v16055_v33, 7 }
 0x47e   : > { %3430 = vrot.lane.b32.xlu0 %v3421_v56, %s7796_s14  ;;  %v2402_v10 = vsel %vm2386_vm10, %v2353_v50, %v16048_v36  ;;  %v16051_v56 = vld [vmem:[#allocation367_spill] sm:$0xff]  ;;  %v16062_v36 = vld [vmem:[#allocation140_spill] sm:$0xff]  ;;  %v16122_v33 = vld [vmem:[#allocation218_spill] sm:$0xff] }
 0x47f   : > { %v11338_v28 = vpop.permute.xlu2 %3010  ;;  %v11340_v49 = vpop.permute.xlu1 %2977  ;;  %v2451_v43 = vsel %vm2435_vm11, %v2402_v10, %v16050_v7  ;;  %v2520_v42 = vsel %vm2484_vm12, %v2471_v35, %v16051_v56  ;;  %v16066_v7 = vld [vmem:[#allocation72_spill] sm:$0xff] }
 0x480   : > { %v11346_v13 = vpop.permute.xlu0 %2975  ;;  %v2500_v53 = vsel %vm2484_vm12, %v2451_v43, %v16052_v3  ;;  %v2569_v48 = vsel %vm2533_vm13, %v2520_v42, %v16053_v54  ;;  %v16067_v43 = vld [vmem:[#allocation169_spill] sm:$0xff]  ;;  %v16068_v42 = vld [vmem:[#allocation171_spill] sm:$0xff] }
 0x481   : > { %v2549_v23 = vsel %vm2533_vm13, %v2500_v53, %v16054_v59  ;;  %v2618_v55 = vsel %vm2582_vm14, %v2569_v48, %v16056_v44  ;;  %v16069_v48 = vld [vmem:[#allocation7_spill] sm:$0xff] }
 0x482   : > { %v2598_v15 = vsel %vm2582_vm14, %v2549_v23, %v16057_v39  ;;  %v2667_v52 = vsel %vm2631_vm15, %v2618_v55, %v16058_v32  ;;  %v3157_v59 = vor.u32 %v3156_v14, %v16069_v48  ;;  %v16070_v23 = vld [vmem:[#allocation210_spill] sm:$0xff]  ;;  %v16081_v48 = vld [vmem:[#allocation20_spill] sm:$0xff] }
 0x483   : > { %v2647_v50 = vsel %vm2631_vm15, %v2598_v15, %v16059_v46  ;;  %v2716_v10 = vsel %vm16063_vm3, %v2667_v52, %v16062_v36  ;;  %v16072_v55 = vld [vmem:[#allocation214_spill] sm:$0xff]  ;;  %vm16073_vm3 = vmmov %vm16071_vm1  ;;  %v7701_v46 = vld [vmem:[%s7879_s7 + $0x40] sm:$0xff]  }
 0x484   : > { %v2696_v35 = vsel %vm16065_vm2, %v2647_v50, %v16064_v17  ;;  %v2765_v56 = vsel %vm2729_vm4, %v2716_v10, %v16067_v43  ;;  %v16074_v50 = vld [vmem:[#allocation85_spill] sm:$0xff]  ;;  %vm16076_vm2 = vsmask.f32 256 }
 0x485   : > { %3095 = vrot.lane.b32.xlu2 %v16060_v22, %s7792_s10  ;;  %3515 = vrot.lane.b32.xlu1 %v16061_v62, %s7797_s22  ;;  %v2745_v3 = vsel %vm2729_vm4, %v2696_v35, %v16068_v42  ;;  %v2814_v44 = vsel %vm16071_vm1, %v2765_v56, %v16070_v23  ;;  %v2159_v22 = vsel %vm2141_vm5, %v7701_v46, %v16074_v50  ;;  %v7702_v62 = vld [vmem:[%s7879_s7 + $0x90] sm:$0xff]   ;;  %v16075_v36 = vld [vmem:[#allocation121_spill] sm:$0xff]  ;;  %vm16102_vm1 = vcmask 785408  }
 0x486   : > { %3432 = vrot.lane.b32.xlu0 %v16066_v7, %s7796_s14  ;;  %v2794_v39 = vsel %vm16073_vm3, %v2745_v3, %v16072_v55  ;;  %v2880_v52 = vsel %vm2827_vm0, %v2814_v44, %v10852_v27  ;;  %v2179_v10 = vsel %vm2141_vm5, %v7702_v62, %v16075_v36  ;;  %v3158_v17 = vsel %vm16076_vm2, %v3153_v9, %v3157_v59  ;;  %v16077_v35 = vld [vmem:[#allocation125_spill] sm:$0xff]  ;;  %v16078_v7 = vld [vmem:[#allocation166_spill] sm:$0xff]  ;;  %v16080_v42 = vld [vmem:[#allocation199_spill] sm:$0xff] }
 0x487   : > { %v11383_v53 = vpop.permute.xlu2 %3016  ;;  %v11385_v54 = vpop.permute.xlu1 %2983  ;;  %v2850_v32 = vsel %vm2827_vm0, %v2794_v39, %v10854_v31  ;;  %v2208_v31 = vsel %vm2190_vm6, %v2159_v22, %v16077_v35  ;;  %v2228_v27 = vsel %vm2190_vm6, %v2179_v10, %v16078_v7  ;;  %v16079_v43 = vld [vmem:[#allocation45_spill] sm:$0xff]  ;;  %v16083_v59 = vld [vmem:[#allocation236_spill] sm:$0xff]  ;;  %v16087_v62 = vld [vmem:[#allocation326_spill] sm:$0xff]  ;;  %vm16110_vm2 = vcmask 916480  }
 0x488   : > { %v11394_v15 = vpop.permute.xlu0 %2981  ;;  %v2257_v56 = vsel %vm2239_vm7, %v2208_v31, %v16079_v43  ;;  %v2277_v3 = vsel %vm2239_vm7, %v2228_v27, %v16080_v42  ;;  %v16084_v44 = vld [vmem:[#allocation240_spill] sm:$0xff]  ;;  %v16085_v39 = vld [vmem:[#allocation281_spill] sm:$0xff]  ;;  %v16088_v35 = vld [vmem:[#allocation330_spill] sm:$0xff] }
 0x489   : > { %v2306_v9 = vsel %vm2288_vm8, %v2257_v56, %v16082_v37  ;;  %v2326_v23 = vsel %vm2288_vm8, %v2277_v3, %v16083_v59  ;;  %v16086_v22 = vld [vmem:[#allocation285_spill] sm:$0xff]  ;;  %v16089_v31 = vld [vmem:[#allocation358_spill] sm:$0xff]  ;;  %v16090_v27 = vld [vmem:[#allocation359_spill] sm:$0xff] }
 0x48a   : > { %4353 = vmatmul.bf16.gmra.mxu0 %v2850_v32  ;;  %4403 = vmatmul.bf16.gmra.mxu2 %v2880_v52  ;;  %v2355_v55 = vsel %vm2337_vm9, %v2306_v9, %v16084_v44  ;;  %v2375_v32 = vsel %vm2337_vm9, %v2326_v23, %v16085_v39  ;;  %v16091_v56 = vld [vmem:[#allocation381_spill] sm:$0xff]  ;;  %v16092_v3 = vld [vmem:[#allocation382_spill] sm:$0xff]  ;;  %v16094_v59 = vld [vmem:[#allocation24_spill] sm:$0xff] }
 0x48b   : > { %v2424_v36 = vsel %vm2386_vm10, %v2375_v32, %v16087_v62  ;;  %v16093_v37 = vld [vmem:[#allocation401_spill] sm:$0xff]  ;;  %v15155_v23 = vrot.slane %v16094_v59, 7  ;;  %v16096_v39 = vld [vmem:[#allocation426_spill] sm:$0xff]  ;;  %v16098_v62 = vld [vmem:[#allocation443_spill] sm:$0xff] }
 0x48c   : > { %v2473_v7 = vsel %vm2435_vm11, %v2424_v36, %v16089_v31  ;;  %v16095_v44 = vld [vmem:[#allocation405_spill] sm:$0xff]  ;;  %v16101_v31 = vld [vmem:[#allocation444_spill] sm:$0xff]  ;;  %vm16104_vm3 = vmmov %vm16102_vm1 }
 0x48d   : > { %3371 = vrot.lane.b32.xlu2 %v16081_v48, %s7795_s13  ;;  %3294 = vrot.lane.b32.xlu1 %v7701_v46, %s7794_s12  ;;  %v2404_v46 = vsel %vm2386_vm10, %v2355_v55, %v16086_v22  ;;  %v2522_v42 = vsel %vm2484_vm12, %v2473_v7, %v16091_v56  ;;  %v16097_v22 = vld [vmem:[#allocation427_spill] sm:$0xff] }
 0x48e   : > { %3241 = vrot.lane.b32.xlu0 %v3158_v17, %s7793_s11  ;;  %v2453_v17 = vsel %vm2435_vm11, %v2404_v46, %v16088_v35  ;;  %v2571_v9 = vsel %vm2533_vm13, %v2522_v42, %v16093_v37  ;;  %v16099_v35 = vld [vmem:[#allocation311_spill] sm:$0xff]  ;;  %v16106_v42 = vld [vmem:[#allocation162_spill] sm:$0xff] }
 0x48f   : > { %v11429_v52 = vpop.permute.xlu2 %3022  ;;  %v11431_v50 = vpop.permute.xlu1 %2989  ;;  %v2502_v43 = vsel %vm2484_vm12, %v2453_v17, %v16090_v27  ;;  %v2620_v32 = vsel %vm2582_vm14, %v2571_v9, %v16096_v39  ;;  %v16100_v17 = vld [vmem:[#allocation105_spill] sm:$0xff]  ;;  %v16105_v56 = vld [vmem:[#allocation71_spill] sm:$0xff] }
 0x490   : > { %v11437_v10 = vpop.permute.xlu0 %2987  ;;  %v2551_v48 = vsel %vm2533_vm13, %v2502_v43, %v16092_v3  ;;  %v2669_v36 = vsel %vm2631_vm15, %v2620_v32, %v16098_v62  ;;  %v16103_v27 = vld [vmem:[#allocation161_spill] sm:$0xff]  ;;  %v16109_v39 = vld [vmem:[#allocation455_spill] sm:$0xff] }
 0x491   : > { %v2600_v55 = vsel %vm2582_vm14, %v2551_v48, %v16095_v44  ;;  %v2718_v43 = vsel %vm16104_vm3, %v2669_v36, %v16103_v27  ;;  %v16107_v48 = vld [vmem:[#allocation454_spill] sm:$0xff]  ;;  %v16108_v44 = vld [vmem:[#allocation12_spill] sm:$0xff]  ;;  %vm16116_vm3 = vsmask.f32 256 }
 0x492   : > { %v2649_v46 = vsel %vm2631_vm15, %v2600_v55, %v16097_v22  ;;  %v2767_v37 = vsel %vm2729_vm4, %v2718_v43, %v16107_v48  ;;  %v3160_v55 = vor.u32 %v15155_v23, %v16108_v44  ;;  %v16111_v22 = vld [vmem:[#allocation233_spill] sm:$0xff]  ;;  %v16114_v27 = vld [vmem:[#allocation104_spill] sm:$0xff]  ;;  %v16136_v23 = vld [vmem:[#allocation419_spill] sm:$0xff] }
 0x493   : > { %v2698_v7 = vsel %vm16102_vm1, %v2649_v46, %v16101_v31  ;;  %vm16112_vm1 = vmmov %vm16110_vm2 }
 0x494   : > { %v2747_v3 = vsel %vm2729_vm4, %v2698_v7, %v16106_v42  ;;  %v2816_v46 = vsel %vm16112_vm1, %v2767_v37, %v16111_v22  ;;  %v7703_v7 = vld [vmem:[%s7879_s7 + $0x48] sm:$0xff]   ;;  %v16115_v42 = vld [vmem:[#allocation120_spill] sm:$0xff]  ;;  %v3161_v48 = vsel %vm16116_vm3, %v3156_v14, %v3160_v55  ;;  %v16123_v55 = vld [vmem:[#allocation235_spill] sm:$0xff]  ;;  %vm16152_vm3 = vcmask 916480  }
 0x495   : > { %3097 = vrot.lane.b32.xlu2 %v16099_v35, %s7792_s10  ;;  %3517 = vrot.lane.b32.xlu1 %v16100_v17, %s7797_s22  ;;  %v2796_v32 = vsel %vm16110_vm2, %v2747_v3, %v16109_v39  ;;  %v16113_v35 = vld [vmem:[#allocation237_spill] sm:$0xff]  ;;  %v2883_v31 = vsel %vm2827_vm0, %v2816_v46, %v11022_v38  ;;  %v2161_v43 = vsel %vm2141_vm5, %v7703_v7, %v16114_v27  ;;  %v16117_v37 = vld [vmem:[#allocation148_spill] sm:$0xff]  ;;  %v16120_v46 = vld [vmem:[#allocation198_spill] sm:$0xff]  ;;  %vm16143_vm2 = vcmask 785408  }
 0x496   : > { %3434 = vrot.lane.b32.xlu0 %v16105_v56, %s7796_s14  ;;  %v2853_v17 = vsel %vm2827_vm0, %v2796_v32, %v16113_v35  ;;  %v11495_v56 = vld [vmem:[%s7879_s7 + $0x98] sm:$0xff]   ;;  %v2210_v44 = vsel %vm2190_vm6, %v2161_v43, %v16117_v37  ;;  %v16118_v38 = vld [vmem:[#allocation165_spill] sm:$0xff]  ;;  %v16119_v32 = vld [vmem:[#allocation190_spill] sm:$0xff] }
 0x497   : > { %v11474_v9 = vpop.permute.xlu2 %3028  ;;  %v11483_v62 = vpop.permute.xlu1 %3008  ;;  %v2181_v3 = vsel %vm2141_vm5, %v11495_v56, %v16115_v42  ;;  %v2259_v22 = vsel %vm2239_vm7, %v2210_v44, %v16119_v32  ;;  %v16124_v27 = vld [vmem:[#allocation263_spill] sm:$0xff]  ;;  %v16125_v42 = vld [vmem:[#allocation280_spill] sm:$0xff]  ;;  %vm16145_vm1 = vmmov %vm16143_vm2 }
 0x498   : > { %v11485_v36 = vpop.permute.xlu0 %2993  ;;  %v2230_v39 = vsel %vm2190_vm6, %v2181_v3, %v16118_v38  ;;  %v2308_v14 = vsel %vm2288_vm8, %v2259_v22, %v16122_v33  ;;  %v16127_v44 = vld [vmem:[#allocation308_spill] sm:$0xff] }
 0x499   : > { %v2279_v35 = vsel %vm2239_vm7, %v2230_v39, %v16120_v46  ;;  %v2357_v43 = vsel %vm2337_vm9, %v2308_v14, %v16124_v27  ;;  %v16129_v46 = vld [vmem:[#allocation349_spill] sm:$0xff]  ;;  %v16131_v33 = vld [vmem:[#allocation372_spill] sm:$0xff] }
 0x49a   : > { %4358 = vmatmul.bf16.gmra.mxu0 %v2853_v17  ;;  %4408 = vmatmul.bf16.gmra.mxu2 %v2883_v31  ;;  %v16121_v17 = vld [vmem:[#allocation32_spill] sm:$0xff]  ;;  %v2328_v31 = vsel %vm2288_vm8, %v2279_v35, %v16123_v55  ;;  %v2406_v38 = vsel %vm2386_vm10, %v2357_v43, %v16127_v44  ;;  %v16130_v35 = vld [vmem:[#allocation357_spill] sm:$0xff]  ;;  %v16135_v44 = vld [vmem:[#allocation22_spill] sm:$0xff] }
 0x49b   : > { %v2377_v3 = vsel %vm2337_vm9, %v2328_v31, %v16125_v42  ;;  %v16132_v55 = vld [vmem:[#allocation380_spill] sm:$0xff] }
 0x49c   : > { %v16133_v27 = vld [vmem:[#allocation392_spill] sm:$0xff] }
 0x49d   : > { %3373 = vrot.lane.b32.xlu2 %v16121_v17, %s7795_s13  ;;  %3296 = vrot.lane.b32.xlu1 %v7703_v7, %s7794_s12  ;;  %v16128_v7 = vld [vmem:[#allocation325_spill] sm:$0xff]  ;;  %v16134_v42 = vld [vmem:[#allocation400_spill] sm:$0xff] }
 0x49e   : > { %3243 = vrot.lane.b32.xlu0 %v3161_v48, %s7793_s11  ;;  %v2426_v39 = vsel %vm2386_vm10, %v2377_v3, %v16128_v7  ;;  %v2455_v48 = vsel %vm2435_vm11, %v2406_v38, %v16129_v46  ;;  %v15156_v7 = vrot.slane %v16135_v44, 7  ;;  %v16137_v46 = vld [vmem:[#allocation425_spill] sm:$0xff] }
 0x49f   : > { %v11523_v37 = vpop.permute.xlu2 %3034  ;;  %v11529_v32 = vpop.permute.xlu1 %3014  ;;  %v2475_v17 = vsel %vm2435_vm11, %v2426_v39, %v16130_v35  ;;  %v2504_v14 = vsel %vm2484_vm12, %v2455_v48, %v16131_v33  ;;  %v16138_v35 = vld [vmem:[#allocation439_spill] sm:$0xff]  ;;  %v16139_v33 = vld [vmem:[#allocation442_spill] sm:$0xff] }
 0x4a0   : > { %16126 = vst [vmem:[#allocation175_spill] sm:$0xff] %v11523_v37  ;;  %v11531_v22 = vpop.permute.xlu0 %3012  ;;  %v2524_v31 = vsel %vm2484_vm12, %v2475_v17, %v16132_v55  ;;  %v2553_v43 = vsel %vm2533_vm13, %v2504_v14, %v16133_v27  ;;  %v16140_v55 = vld [vmem:[#allocation310_spill] sm:$0xff]  ;;  %v16141_v14 = vld [vmem:[#allocation112_spill] sm:$0xff] }
 0x4a1   : > { %v2573_v3 = vsel %vm2533_vm13, %v2524_v31, %v16134_v42  ;;  %v2602_v38 = vsel %vm2582_vm14, %v2553_v43, %v16136_v23  ;;  %v16142_v31 = vld [vmem:[#allocation151_spill] sm:$0xff]  ;;  %v16144_v23 = vld [vmem:[#allocation157_spill] sm:$0xff]  ;;  %v16146_v42 = vld [vmem:[#allocation76_spill] sm:$0xff] }
 0x4a2   : > { %v2622_v39 = vsel %vm2582_vm14, %v2573_v3, %v16137_v46  ;;  %v2651_v48 = vsel %vm2631_vm15, %v2602_v38, %v16138_v35  ;;  %v16147_v3 = vld [vmem:[#allocation176_spill] sm:$0xff]  ;;  %v16148_v46 = vld [vmem:[#allocation453_spill] sm:$0xff] }
 0x4a3   : > { %v2671_v17 = vsel %vm2631_vm15, %v2622_v39, %v16139_v33  ;;  %v2700_v27 = vsel %vm16143_vm2, %v2651_v48, %v16142_v31  ;;  %v16150_v33 = vld [vmem:[#allocation17_spill] sm:$0xff]  ;;  %vm16154_vm2 = vmmov %vm16152_vm3 }
 0x4a4   : > { %v2720_v43 = vsel %vm16145_vm1, %v2671_v17, %v16144_v23  ;;  %v2749_v38 = vsel %vm2729_vm4, %v2700_v27, %v16147_v3  ;;  %v16151_v48 = vld [vmem:[#allocation221_spill] sm:$0xff]  ;;  %v16153_v17 = vld [vmem:[#allocation232_spill] sm:$0xff]  ;;  %vm16159_vm1 = vsmask.f32 256 }
 0x4a5   : > { %3099 = vrot.lane.b32.xlu2 %v16140_v55, %s7792_s10  ;;  %3519 = vrot.lane.b32.xlu1 %v16141_v14, %s7797_s22  ;;  %v2769_v39 = vsel %vm2729_vm4, %v2720_v43, %v16148_v46  ;;  %v3163_v55 = vor.u32 %v15156_v7, %v16150_v33  ;;  %v2798_v14 = vsel %vm16152_vm3, %v2749_v38, %v16151_v48  ;;  %v11586_v3 = vld [vmem:[%s7879_s7 + $0xa0] sm:$0xff]   ;;  %v16156_v46 = vld [vmem:[#allocation102_spill] sm:$0xff]  ;;  %vm16188_vm3 = vcmask 785408  }
 0x4a6   : > { %3436 = vrot.lane.b32.xlu0 %v16146_v42, %s7796_s14  ;;  %v2818_v31 = vsel %vm16154_vm2, %v2769_v39, %v16153_v17  ;;  %v2856_v27 = vsel %vm2827_vm0, %v2798_v14, %v10897_v25  ;;  %v2183_v38 = vsel %vm2141_vm5, %v11586_v3, %v16156_v46  ;;  %v7706_v33 = vld [vmem:[%s7879_s7 + $0x50] sm:$0xff]   ;;  %v16158_v17 = vrot.slane %v16094_v59, 7  ;;  %v16165_v59 = vld [vmem:[#allocation216_spill] sm:$0xff]  ;;  %vm16190_vm2 = vmmov %vm16188_vm3 }
 0x4a7   : > { %v11568_v35 = vpop.permute.xlu2 %3040  ;;  %v11577_v23 = vpop.permute.xlu1 %3020  ;;  %v2886_v43 = vsel %vm2827_vm0, %v2818_v31, %v11016_v34  ;;  %v16157_v39 = vld [vmem:[#allocation103_spill] sm:$0xff]  ;;  %v16160_v25 = vld [vmem:[#allocation146_spill] sm:$0xff] }
 0x4a8   : > { %16149 = vst [vmem:[#allocation205_spill] sm:$0xff] %v11568_v35  ;;  %v11579_v42 = vpop.permute.xlu0 %3018  ;;  %v2163_v48 = vsel %vm2141_vm5, %v7706_v33, %v16157_v39  ;;  %v3164_v7 = vsel %vm16159_vm1, %v16158_v17, %v3163_v55  ;;  %v2232_v14 = vsel %vm2190_vm6, %v2183_v38, %v16160_v25  ;;  %v16161_v34 = vld [vmem:[#allocation147_spill] sm:$0xff]  ;;  %v16166_v39 = vld [vmem:[#allocation217_spill] sm:$0xff]  ;;  %v16168_v25 = vld [vmem:[#allocation262_spill] sm:$0xff]  ;;  %vm16197_vm1 = vcmask 916480  }
 0x4a9   : > { %16155 = vst [vmem:[#allocation249_spill] sm:$0xff] %v11577_v23  ;;  %v2212_v31 = vsel %vm2190_vm6, %v2163_v48, %v16161_v34  ;;  %v16167_v48 = vld [vmem:[#allocation261_spill] sm:$0xff]  ;;  %v16170_v34 = vld [vmem:[#allocation306_spill] sm:$0xff] }
 0x4aa   : > { %4363 = vmatmul.bf16.gmra.mxu0 %v2856_v27  ;;  %4413 = vmatmul.bf16.gmra.mxu2 %v2886_v43  ;;  %v16162_v27 = vld [vmem:[#allocation188_spill] sm:$0xff]  ;;  %v2261_v46 = vsel %vm2239_vm7, %v2212_v31, %v16163_v57  ;;  %v16223_v23 = vld [vmem:[#allocation337_spill] sm:$0xff] }
 0x4ab   : > { %v2281_v43 = vsel %vm2239_vm7, %v2232_v14, %v16162_v27  ;;  %v2310_v38 = vsel %vm2288_vm8, %v2261_v46, %v16166_v39  ;;  %v16174_v46 = vld [vmem:[#allocation347_spill] sm:$0xff]  ;;  %v16176_v39 = vld [vmem:[#allocation370_spill] sm:$0xff] }
 0x4ac   : > { %v2330_v55 = vsel %vm2288_vm8, %v2281_v43, %v16165_v59  ;;  %v2359_v14 = vsel %vm2337_vm9, %v2310_v38, %v16168_v25  ;;  %v16175_v59 = vld [vmem:[#allocation348_spill] sm:$0xff] }
 0x4ad   : > { %3375 = vrot.lane.b32.xlu2 %v16164_v6, %s7795_s13  ;;  %3298 = vrot.lane.b32.xlu1 %v7706_v33, %s7794_s12  ;;  %v2379_v17 = vsel %vm2337_vm9, %v2330_v55, %v16167_v48  ;;  %v16171_v33 = vld [vmem:[#allocation307_spill] sm:$0xff] }
 0x4ae   : > { %3245 = vrot.lane.b32.xlu0 %v3164_v7, %s7793_s11  ;;  %v2428_v6 = vsel %vm2386_vm10, %v2379_v17, %v16170_v34  ;;  %v2408_v31 = vsel %vm2386_vm10, %v2359_v14, %v16171_v33  ;;  %v16177_v48 = vld [vmem:[#allocation371_spill] sm:$0xff] }
 0x4af   : > { %v11617_v57 = vpop.permute.xlu2 %3046  ;;  %v11623_v27 = vpop.permute.xlu1 %3026  ;;  %v2477_v7 = vsel %vm2435_vm11, %v2428_v6, %v16174_v46  ;;  %v2457_v55 = vsel %vm2435_vm11, %v2408_v31, %v16175_v59  ;;  %v16178_v17 = vld [vmem:[#allocation23_spill] sm:$0xff]  ;;  %v16182_v46 = vld [vmem:[#allocation418_spill] sm:$0xff]  ;;  %v16183_v59 = vld [vmem:[#allocation437_spill] sm:$0xff] }
 0x4b0   : > { %16169 = vst [vmem:[#allocation243_spill] sm:$0xff] %v11617_v57  ;;  %v11625_v43 = vpop.permute.xlu0 %3024  ;;  %v2526_v38 = vsel %vm2484_vm12, %v2477_v7, %v16176_v39  ;;  %v2506_v25 = vsel %vm2484_vm12, %v2457_v55, %v16177_v48  ;;  %v16179_v14 = vld [vmem:[#allocation391_spill] sm:$0xff]  ;;  %v16181_v57 = vld [vmem:[#allocation73_spill] sm:$0xff]  ;;  %v16184_v39 = vld [vmem:[#allocation438_spill] sm:$0xff] }
 0x4b1   : > { %16172 = vst [vmem:[#allocation244_spill] sm:$0xff] %v11623_v27  ;;  %v2575_v34 = vsel %vm2533_vm13, %v2526_v38, %v16178_v17  ;;  %v2555_v33 = vsel %vm2533_vm13, %v2506_v25, %v16179_v14  ;;  %v16180_v27 = vld [vmem:[#allocation18_spill] sm:$0xff]  ;;  %v16185_v48 = vld [vmem:[#allocation309_spill] sm:$0xff]  ;;  %v16186_v38 = vld [vmem:[#allocation111_spill] sm:$0xff] }
 0x4b2   : > { %16173 = vst [vmem:[#allocation294_spill] sm:$0xff] %v11625_v43  ;;  %v15161_v43 = vrot.slane %v16180_v27, 7  ;;  %v2624_v6 = vsel %vm2582_vm14, %v2575_v34, %v16181_v57  ;;  %v2604_v31 = vsel %vm2582_vm14, %v2555_v33, %v16182_v46  ;;  %v16187_v25 = vld [vmem:[#allocation149_spill] sm:$0xff]  ;;  %v16189_v14 = vld [vmem:[#allocation150_spill] sm:$0xff]  ;;  %v16191_v34 = vld [vmem:[#allocation75_spill] sm:$0xff] }
 0x4b3   : > { %v2673_v7 = vsel %vm2631_vm15, %v2624_v6, %v16183_v59  ;;  %v2653_v55 = vsel %vm2631_vm15, %v2604_v31, %v16184_v39  ;;  %v16192_v33 = vld [vmem:[#allocation173_spill] sm:$0xff]  ;;  %v16193_v46 = vld [vmem:[#allocation52_spill] sm:$0xff] }
 0x4b4   : > { %v2722_v17 = vsel %vm16188_vm3, %v2673_v7, %v16187_v25  ;;  %v2702_v57 = vsel %vm16190_vm2, %v2653_v55, %v16189_v14  ;;  %v16195_v39 = vld [vmem:[#allocation16_spill] sm:$0xff]  ;;  %vm16199_vm3 = vmmov %vm16197_vm1  ;;  %vm16206_vm2 = vsmask.f32 256 }
 0x4b5   : > { %3101 = vrot.lane.b32.xlu2 %v16185_v48, %s7792_s10  ;;  %3521 = vrot.lane.b32.xlu1 %v16186_v38, %s7797_s22  ;;  %v2771_v6 = vsel %vm2729_vm4, %v2722_v17, %v16192_v33  ;;  %v2751_v31 = vsel %vm2729_vm4, %v2702_v57, %v16193_v46  ;;  %v3166_v7 = vor.u32 %v15161_v43, %v16195_v39  ;;  %v16196_v48 = vld [vmem:[#allocation219_spill] sm:$0xff]  ;;  %v16198_v55 = vld [vmem:[#allocation220_spill] sm:$0xff]  ;;  %v16203_v43 = vld [vmem:[#allocation90_spill] sm:$0xff] }
 0x4b6   : > { %3438 = vrot.lane.b32.xlu0 %v16191_v34, %s7796_s14  ;;  %v2820_v38 = vsel %vm16197_vm1, %v2771_v6, %v16196_v48  ;;  %v2800_v25 = vsel %vm16199_vm3, %v2751_v31, %v16198_v55  ;;  %v16202_v33 = vld [vmem:[#allocation51_spill] sm:$0xff]  ;;  %v11684_v48 = vld [vmem:[%s7879_s7 + $0xa8] sm:$0xff]   ;;  %vm16228_vm1 = vmmov %vm16206_vm2  ;;  %vm16237_vm3 = vcmask 785408  }
 0x4b7   : > { %v11662_v59 = vpop.permute.xlu2 %3052  ;;  %v11671_v14 = vpop.permute.xlu1 %3032  ;;  %v2859_v17 = vsel %vm2827_vm0, %v2800_v25, %v10891_v29  ;;  %v2889_v57 = vsel %vm2827_vm0, %v2820_v38, %v10889_v21  ;;  %v7707_v39 = vld [vmem:[%s7879_s7 + $0x58] sm:$0xff]   ;;  %v16208_v38 = vld [vmem:[#allocation170_spill] sm:$0xff] }
 0x4b8   : > { %16194 = vst [vmem:[#allocation245_spill] sm:$0xff] %v11662_v59  ;;  %v11673_v34 = vpop.permute.xlu0 %3030  ;;  %v2165_v6 = vsel %vm2141_vm5, %v7707_v39, %v16203_v43  ;;  %v16204_v31 = vld [vmem:[#allocation127_spill] sm:$0xff]  ;;  %v16207_v25 = vld [vmem:[#allocation132_spill] sm:$0xff]  ;;  %v16210_v43 = vld [vmem:[#allocation202_spill] sm:$0xff] }
 0x4b9   : > { %16200 = vst [vmem:[#allocation246_spill] sm:$0xff] %v11671_v14  ;;  %v2185_v55 = vsel %vm2141_vm5, %v11684_v48, %v16204_v31  ;;  %v2214_v21 = vsel %vm2190_vm6, %v2165_v6, %v16207_v25  ;;  %v16211_v59 = vld [vmem:[#allocation27_spill] sm:$0xff]  ;;  %v16214_v31 = vld [vmem:[#allocation54_spill] sm:$0xff] }
 0x4ba   : > { %16201 = vst [vmem:[#allocation250_spill] sm:$0xff] %v11673_v34  ;;  %4368 = vmatmul.bf16.gmra.mxu0 %v2859_v17  ;;  %4418 = vmatmul.bf16.gmra.mxu2 %v2889_v57  ;;  %v16205_v34 = vrot.slane %v16135_v44, 7  ;;  %v2234_v17 = vsel %vm2190_vm6, %v2185_v55, %v16208_v38  ;;  %v16209_v57 = vld [vmem:[#allocation55_spill] sm:$0xff]  ;;  %v16215_v25 = vld [vmem:[#allocation46_spill] sm:$0xff] }
 0x4bb   : > { %v2263_v46 = vsel %vm2239_vm7, %v2214_v21, %v16209_v57  ;;  %v2283_v14 = vsel %vm2239_vm7, %v2234_v17, %v16210_v43  ;;  %v16212_v44 = vld [vmem:[#allocation203_spill] sm:$0xff]  ;;  %v16216_v21 = vrot.slane %v16202_v33, 7 }
 0x4bc   : > { %v3167_v29 = vsel %vm16206_vm2, %v16205_v34, %v3166_v7  ;;  %v2312_v7 = vsel %vm2288_vm8, %v2263_v46, %v16212_v44  ;;  %v16213_v34 = vld [vmem:[#allocation242_spill] sm:$0xff]  ;;  %v16217_v17 = vld [vmem:[#allocation247_spill] sm:$0xff]  ;;  %v16219_v46 = vld [vmem:[#allocation292_spill] sm:$0xff] }
 0x4bd   : > { %3377 = vrot.lane.b32.xlu2 %v16211_v59, %s7795_s13  ;;  %3300 = vrot.lane.b32.xlu1 %v7707_v39, %s7794_s12  ;;  %v2332_v6 = vsel %vm2288_vm8, %v2283_v14, %v16213_v34  ;;  %v3190_v38 = vor.u32 %v16216_v21, %v16215_v25  ;;  %v2361_v57 = vsel %vm2337_vm9, %v2312_v7, %v16217_v17  ;;  %v16218_v59 = vld [vmem:[#allocation287_spill] sm:$0xff]  ;;  %v16220_v14 = vld [vmem:[#allocation332_spill] sm:$0xff]  ;;  %v16224_v21 = vld [vmem:[#allocation361_spill] sm:$0xff] }
 0x4be   : > { %3247 = vrot.lane.b32.xlu0 %v3167_v29, %s7793_s11  ;;  %v2381_v39 = vsel %vm2337_vm9, %v2332_v6, %v16218_v59  ;;  %v2410_v44 = vsel %vm2386_vm10, %v2361_v57, %v16219_v46  ;;  %v16225_v17 = vld [vmem:[#allocation362_spill] sm:$0xff]  ;;  %v16226_v59 = vld [vmem:[#allocation384_spill] sm:$0xff]  ;;  %v16227_v57 = vrot.slane %v16214_v31, 7  ;;  %v16229_v46 = vld [vmem:[#allocation385_spill] sm:$0xff] }
 0x4bf   : > { %v11716_v43 = vpop.permute.xlu2 %3091  ;;  %v2430_v29 = vsel %vm2386_vm10, %v2381_v39, %v16220_v14  ;;  %v11722_v34 = vpop.permute.xlu1 %3038  ;;  %v2459_v25 = vsel %vm2435_vm11, %v2410_v44, %v16223_v23  ;;  %v16231_v23 = vld [vmem:[#allocation412_spill] sm:$0xff]  ;;  %vm16239_vm2 = vmmov %vm16237_vm3 }
 0x4c0   : > { %16221 = vst [vmem:[#allocation251_spill] sm:$0xff] %v11722_v34  ;;  %v11724_v55 = vpop.permute.xlu0 %3036  ;;  %v2479_v7 = vsel %vm2435_vm11, %v2430_v29, %v16224_v21  ;;  %v2508_v6 = vsel %vm2484_vm12, %v2459_v25, %v16225_v17  ;;  %v3191_v39 = vsel %vm16228_vm1, %v16227_v57, %v3190_v38  ;;  %v16232_v29 = vld [vmem:[#allocation429_spill] sm:$0xff]  ;;  %v16233_v25 = vld [vmem:[#allocation431_spill] sm:$0xff]  ;;  %v16235_v38 = vld [vmem:[#allocation74_spill] sm:$0xff]  ;;  %vm16244_vm1 = vcmask 916480  }
 0x4c1   : > { %16222 = vst [vmem:[#allocation97_spill] sm:$0xff] %v11724_v55  ;;  %v2528_v35 = vsel %vm2484_vm12, %v2479_v7, %v16226_v59  ;;  %v2557_v14 = vsel %vm2533_vm13, %v2508_v6, %v16229_v46  ;;  %v16230_v55 = vld [vmem:[#allocation407_spill] sm:$0xff]  ;;  %v16234_v7 = vld [vmem:[#allocation446_spill] sm:$0xff]  ;;  %v16236_v6 = vld [vmem:[#allocation448_spill] sm:$0xff] }
 0x4c2   : > { %v2577_v34 = vsel %vm2533_vm13, %v2528_v35, %v16230_v55  ;;  %v2606_v44 = vsel %vm2582_vm14, %v2557_v14, %v16231_v23  ;;  %v16238_v55 = vld [vmem:[#allocation167_spill] sm:$0xff]  ;;  %v16240_v46 = vld [vmem:[#allocation328_spill] sm:$0xff]  ;;  %v16242_v23 = vld [vmem:[#allocation457_spill] sm:$0xff] }
 0x4c3   : > { %v2626_v21 = vsel %vm2582_vm14, %v2577_v34, %v16232_v29  ;;  %v2655_v17 = vsel %vm2631_vm15, %v2606_v44, %v16233_v25  ;;  %v16241_v34 = vld [vmem:[#allocation168_spill] sm:$0xff] }
 0x4c4   : > { %v2675_v59 = vsel %vm2631_vm15, %v2626_v21, %v16234_v7  ;;  %v2704_v35 = vsel %vm16237_vm3, %v2655_v17, %v16236_v6  ;;  %v4158_v29 = vld [vmem:[%s14818_s1 + $0x60] sm:$0xf]  ;;  %v16243_v21 = vld [vmem:[#allocation182_spill] sm:$0xff]  ;;  %v16245_v17 = vld [vmem:[#allocation239_spill] sm:$0xff] }
 0x4c5   : > { %3263 = vrot.lane.b32.xlu2 %v3191_v39, %s7793_s11  ;;  %3440 = vrot.lane.b32.xlu1 %v16235_v38, %s7796_s14  ;;  %v2724_v57 = vsel %vm16239_vm2, %v2675_v59, %v16238_v55  ;;  %v2753_v14 = vsel %vm2729_vm4, %v2704_v35, %v16241_v34  ;;  %vm16246_vm3 = vmmov %vm16244_vm1  ;;  %v4208_v6 = vunpack.c.l.b16 %v4158_v29  ;;  %v16249_v35 = vld [vmem:[#allocation92_spill] sm:$0xff]  ;;  %v11780_v34 = vld [vmem:[%s7879_s7 + $0xb0] sm:$0xff]   ;;  %vm4306_vm2 = vcmask 1043456  }
 0x4c6   : > { %3117 = vrot.lane.b32.xlu0 %v16240_v46, %s7792_s10  ;;  %v2773_v44 = vsel %vm2729_vm4, %v2724_v57, %v16242_v23  ;;  %v2802_v25 = vsel %vm16244_vm1, %v2753_v14, %v16243_v21  ;;  %v16250_v14 = vld [vmem:[#allocation126_spill] sm:$0xff]  ;;  %vm16266_vm1 = vsmask.f32 256 }
 0x4c7   : > { %v11762_v39 = vpop.permute.xlu2 %3290  ;;  %v2822_v7 = vsel %vm16246_vm3, %v2773_v44, %v16245_v17  ;;  %v11771_v59 = vpop.permute.xlu1 %3044  ;;  %v2862_v55 = vsel %vm2827_vm0, %v2802_v25, %v16249_v35  ;;  %v4221_v46 = vpack.c.b16 %v4208_v6, %v4208_v6  ;;  %v2187_v23 = vsel %vm2141_vm5, %v11780_v34, %v16250_v14  ;;  %v16251_v44 = vld [vmem:[#allocation48_spill] sm:$0xff]  ;;  %v16252_v17 = vld [vmem:[#allocation43_spill] sm:$0xff]  ;;  %v16253_v25 = vld [vmem:[#allocation201_spill] sm:$0xff] }
 0x4c8   : > { %16247 = vst [vmem:[#allocation133_spill] sm:$0xff] %v11771_v59  ;;  %v11773_v38 = vpop.permute.xlu0 %3042  ;;  %v2892_v57 = vsel %vm2827_vm0, %v2822_v7, %v11068_v1  ;;  %v15163_v21 = vrot.slane %v16251_v44, 7  ;;  %v2236_v29 = vsel %vm2190_vm6, %v2187_v23, %v16252_v17  ;;  %v16254_v1 = vld [vmem:[#allocation327_spill] sm:$0xff]  ;;  %v16255_v7 = vld [vmem:[#allocation241_spill] sm:$0xff]  ;;  %v16258_v23 = vld [vmem:[#allocation44_spill] sm:$0xff]  ;;  %vm16271_vm3 = vcmask 785408  }
 0x4c9   : > { %16248 = vst [vmem:[#allocation174_spill] sm:$0xff] %v11773_v38  ;;  %v4308_v31 = vsel %vm4306_vm2, %v4221_v46, 0  ;;  %v2285_v35 = vsel %vm2239_vm7, %v2236_v29, %v16253_v25  ;;  %v16259_v29 = vld [vmem:[#allocation331_spill] sm:$0xff]  ;;  %v16265_v38 = vrot.slane %v16202_v33, 7  ;;  %vm16274_vm2 = vcmask 916480  }
 0x4ca   : > { %4373 = vmatmul.bf16.gmra.mxu0 %v2862_v55  ;;  %4423 = vmatmul.bf16.gmra.mxu2 %v2892_v57  ;;  %v2334_v6 = vsel %vm2288_vm8, %v2285_v35, %v16255_v7  ;;  %v16256_v55 = vld [vmem:[#allocation110_spill] sm:$0xff]  ;;  %v3193_v17 = vor.u32 %v15163_v21, %v16258_v23  ;;  %v16262_v7 = vld [vmem:[#allocation360_spill] sm:$0xff]  ;;  %v16270_v33 = vld [vmem:[#allocation163_spill] sm:$0xff] }
 0x4cb   : > { %4442 = vmatpush.bf16.msra.mxu1 %v4308_v31  ;;  %v16257_v57 = vld [vmem:[#allocation286_spill] sm:$0xff]  ;;  %7573 = vmatpush.bf16.msra.mxu3 %v4308_v31 }
 0x4cc   : > { %v2383_v14 = vsel %vm2337_vm9, %v2334_v6, %v16257_v57  ;;  %v16264_v23 = vld [vmem:[#allocation406_spill] sm:$0xff]  ;;  %v3194_v31 = vsel %vm16266_vm1, %v16265_v38, %v3193_v17  ;;  %v16272_v17 = vld [vmem:[#allocation456_spill] sm:$0xff]  ;;  %vm16295_vm1 = vmmov %vm16271_vm3 }
 0x4cd   : > { %3316 = vrot.lane.b32.xlu2 %v11495_v56, %s7794_s12  ;;  %3119 = vrot.lane.b32.xlu1 %v16254_v1, %s7792_s10  ;;  %v7294_v56 = vld [vmem:[%s14818_s1 + $0x58] sm:$0xff]  ;;  %v2432_v25 = vsel %vm2386_vm10, %v2383_v14, %v16259_v29  ;;  %v7293_v14 = vld [vmem:[%s14818_s1 + $0x50] sm:$0xff] }
 0x4ce   : > { %3523 = vrot.lane.b32.xlu0 %v16256_v55, %s7797_s22  ;;  %v2481_v6 = vsel %vm2435_vm11, %v2432_v25, %v16262_v7  ;;  %v16263_v55 = vld [vmem:[#allocation383_spill] sm:$0xff]  ;;  %v16267_v29 = vld [vmem:[#allocation428_spill] sm:$0xff]  ;;  %v16268_v25 = vld [vmem:[#allocation445_spill] sm:$0xff] }
 0x4cf   : > { %v11800_v46 = vpop.permute.xlu2 %3292  ;;  %v11810_v35 = vpop.permute.xlu1 %3050  ;;  %v2530_v57 = vsel %vm2484_vm12, %v2481_v6, %v16263_v55  ;;  %4443 = vmatpush.bf16.msra.mxu1 %v7294_v56  ;;  %7574 = vmatpush.bf16.msra.mxu3 %v7294_v56  ;;  %v16269_v6 = vld [vmem:[#allocation60_spill] sm:$0xff] }
 0x4d0   : > { %16260 = vst [vmem:[#allocation204_spill] sm:$0xff] %v11810_v35  ;;  %v11812_v1 = vpop.permute.xlu0 %3048  ;;  %v2579_v21 = vsel %vm2533_vm13, %v2530_v57, %v16264_v23  ;;  %v16289_v35 = vld [vmem:[#allocation33_spill] sm:$0xff] }
 0x4d1   : > { %16261 = vst [vmem:[#allocation248_spill] sm:$0xff] %v11812_v1  ;;  %v2628_v1 = vsel %vm2582_vm14, %v2579_v21, %v16267_v29  ;;  %v11853_v29 = vld [vmem:[%s7879_s7 + $0xb8] sm:$0xff]   ;;  %v15164_v59 = vrot.slane %v16289_v35, 7 }
 0x4d2   : > { %v2677_v7 = vsel %vm2631_vm15, %v2628_v1, %v16268_v25  ;;  %v7292_v1 = vld [vmem:[%s14818_s1 + $0x48] sm:$0xff]  ;;  %v16277_v25 = vld [vmem:[#allocation107_spill] sm:$0xff] }
 0x4d3   : > { %v2726_v38 = vsel %vm16271_vm3, %v2677_v7, %v16270_v33  ;;  %4444 = vmatpush.bf16.msra.mxu1 %v7293_v14  ;;  %7575 = vmatpush.bf16.msra.mxu3 %v7293_v14  ;;  %v2189_v7 = vsel %vm2141_vm5, %v11853_v29, %v16277_v25  ;;  %v7291_v14 = vld [vmem:[%s14818_s1 + $0x40] sm:$0xff] }
 0x4d4   : > { %v2775_v56 = vsel %vm2729_vm4, %v2726_v38, %v16272_v17  ;;  %v16279_v38 = vld [vmem:[#allocation191_spill] sm:$0xff] }
 0x4d5   : > { %3318 = vrot.lane.b32.xlu2 %v11586_v3, %s7794_s12  ;;  %3393 = vrot.lane.b32.xlu1 %v16269_v6, %s7795_s13  ;;  %v16273_v3 = vld [vmem:[#allocation238_spill] sm:$0xff]  ;;  %v16278_v6 = vld [vmem:[#allocation152_spill] sm:$0xff] }
 0x4d6   : > { %3265 = vrot.lane.b32.xlu0 %v3194_v31, %s7793_s11  ;;  %v2824_v55 = vsel %vm16274_vm2, %v2775_v56, %v16273_v3  ;;  %v2238_v33 = vsel %vm2190_vm6, %v2189_v7, %v16278_v6  ;;  %v16281_v56 = vld [vmem:[#allocation58_spill] sm:$0xff]  ;;  %v16285_v6 = vld [vmem:[#allocation312_spill] sm:$0xff] }
 0x4d7   : > { %v11839_v21 = vpop.permute.xlu2 %3513  ;;  %v11846_v57 = vpop.permute.xlu1 %3056  ;;  %v2895_v31 = vsel %vm2827_vm0, %v2824_v55, %v11062_v60  ;;  %4445 = vmatpush.bf16.msra.mxu1 %v7292_v1  ;;  %7576 = vmatpush.bf16.msra.mxu3 %v7292_v1  ;;  %v2287_v17 = vsel %vm2239_vm7, %v2238_v33, %v16279_v38  ;;  %v16280_v60 = vld [vmem:[#allocation129_spill] sm:$0xff]  ;;  %v16282_v3 = vld [vmem:[#allocation222_spill] sm:$0xff]  ;;  %v16284_v1 = vld [vmem:[#allocation267_spill] sm:$0xff] }
 0x4d8   : > { %16275 = vst [vmem:[#allocation293_spill] sm:$0xff] %v11846_v57  ;;  %v11848_v23 = vpop.permute.xlu0 %3054  ;;  %v2336_v55 = vsel %vm2288_vm8, %v2287_v17, %v16282_v3  ;;  %v16287_v57 = vld [vmem:[#allocation373_spill] sm:$0xff] }
 0x4d9   : > { %16276 = vst [vmem:[#allocation338_spill] sm:$0xff] %v11848_v23  ;;  %v2385_v25 = vsel %vm2337_vm9, %v2336_v55, %v16284_v1  ;;  %v16286_v23 = vld [vmem:[#allocation350_spill] sm:$0xff]  ;;  %v16288_v3 = vld [vmem:[#allocation393_spill] sm:$0xff]  ;;  %v16290_v55 = vld [vmem:[#allocation420_spill] sm:$0xff] }
 0x4da   : > { %4428 = vmatmul.bf16.gmra.mxu2 %v2895_v31  ;;  %v16283_v31 = vld [vmem:[#allocation87_spill] sm:$0xff]  ;;  %v2434_v33 = vsel %vm2386_vm10, %v2385_v25, %v16285_v6  ;;  %v16292_v25 = vld [vmem:[#allocation317_spill] sm:$0xff]  ;;  %v16293_v6 = vld [vmem:[#allocation128_spill] sm:$0xff] }
 0x4db   : > { %4446 = vmatpush.bf16.msra.mxu1 %v7291_v14  ;;  %7577 = vmatpush.bf16.msra.mxu3 %v7291_v14  ;;  %v16291_v14 = vld [vmem:[#allocation440_spill] sm:$0xff] }
 0x4dd   : > { %3539 = vrot.lane.b32.xlu2 %v16280_v60, %s7797_s22  ;;  %3395 = vrot.lane.b32.xlu1 %v16281_v56, %s7795_s13  ;;  %v2483_v56 = vsel %vm2435_vm11, %v2434_v33, %v16286_v23  ;;  %v16294_v23 = vld [vmem:[#allocation155_spill] sm:$0xff]  ;;  %v16296_v33 = vld [vmem:[#allocation86_spill] sm:$0xff] }
 0x4de   : > { %3456 = vrot.lane.b32.xlu0 %v16283_v31, %s7796_s14  ;;  %v2532_v17 = vsel %vm2484_vm12, %v2483_v56, %v16287_v57  ;;  %v16297_v56 = vld [vmem:[#allocation177_spill] sm:$0xff] }
 0x4df   : > { %v11875_v7 = vpop.permute.xlu2 %3095  ;;  %v3238_v38 = vpop.permute.xlu1 %3237  ;;  %v2581_v31 = vsel %vm2533_vm13, %v2532_v17, %v16288_v3 }
 0x4e0   : > { %v3094_v60 = vpop.permute.xlu0 %3093  ;;  %v2630_v1 = vsel %vm2582_vm14, %v2581_v31, %v16290_v55  ;;  %v16298_v31 = vld [vmem:[#allocation19_spill] sm:$0xff]  ;;  %vm16300_vm14 = vmmov %vm16274_vm2 }
 0x4e1   : > { %v2679_v37 = vsel %vm2631_vm15, %v2630_v1, %v16291_v14  ;;  %v3169_v55 = vor.u32 %v15164_v59, %v16298_v31  ;;  %v16299_v1 = vld [vmem:[#allocation225_spill] sm:$0xff]  ;;  %v16302_v31 = vrot.slane %v16180_v27, 7  ;;  %vm16303_vm15 = vsmask.f32 256 }
 0x4e2   : > { %v2728_v57 = vsel %vm16295_vm1, %v2679_v37, %v16294_v23  ;;  %v16301_v37 = vld [vmem:[#allocation187_spill] sm:$0xff]  ;;  %v16304_v59 = vld [vmem:[#allocation41_spill] sm:$0xff] }
 0x4e3   : > { %v2777_v17 = vsel %vm2729_vm4, %v2728_v57, %v16297_v56  ;;  %v3564_v23 = vsel %vm2141_vm5, %v16301_v37, %v11113_v51  ;;  %v7711_v51 = vld [vmem:[%s7879_s7 + $0x60] sm:$0xff]   ;;  %vm16314_vm4 = vsmask.f32 7424 }
 0x4e4   : > { %v2826_v14 = vsel %vm16300_vm14, %v2777_v17, %v16299_v1  ;;  %v3614_v57 = vsel %vm2190_vm6, %v3564_v23, %v11483_v62  ;;  %v3170_v17 = vsel %vm16303_vm15, %v16302_v31, %v3169_v55  ;;  %v7712_v55 = vld [vmem:[%s7879_s7 + $0x2c] sm:$0xff]   ;;  %vm16323_vm2 = vmmov %vm16314_vm4 }
 0x4e5   : > { %3103 = vrot.lane.b32.xlu2 %v16292_v25, %s7792_s10  ;;  %3541 = vrot.lane.b32.xlu1 %v16293_v6, %s7797_s22  ;;  %v3664_v56 = vsel %vm2239_vm7, %v3614_v57, %v11716_v43  ;;  %v16306_v31 = vld [vmem:[#allocation335_spill] sm:$0xff]  ;;  %vm16331_vm14 = vmmov %vm16323_vm2 }
 0x4e6   : > { %3458 = vrot.lane.b32.xlu0 %v16296_v33, %s7796_s14  ;;  %v2898_v33 = vsel %vm2827_vm0, %v2826_v14, %v10933_v40  ;;  %v3714_v1 = vsel %vm2288_vm8, %v3664_v56, %v3238_v38  ;;  %v3566_v38 = vsel %vm2141_vm5, %v7712_v55, %v11107_v12  ;;  %v16307_v12 = vld [vmem:[#allocation118_spill] sm:$0xff]  ;;  %vm16311_vm0 = vmmov %vm16303_vm15 }
 0x4e7   : > { %v11900_v3 = vpop.permute.xlu2 %3371  ;;  %v3368_v25 = vpop.permute.xlu1 %3367  ;;  %v3764_v40 = vsel %vm2337_vm9, %v3714_v1, %v11762_v39  ;;  %v3616_v37 = vsel %vm2190_vm6, %v3566_v38, %v11338_v28  ;;  %vm16321_vm3 = vmmov %vm16311_vm0 }
 0x4e8   : > { %v3240_v6 = vpop.permute.xlu0 %3239  ;;  %v3814_v43 = vsel %vm2386_vm10, %v3764_v40, %v3368_v25  ;;  %v3666_v39 = vsel %vm2239_vm7, %v3616_v37, %v3094_v60  ;;  %v16309_v60 = vld [vmem:[#allocation49_spill] sm:$0xff]  ;;  %v16310_v37 = vrot.slane %v16251_v44, 7  ;;  %vm16329_vm1 = vmmov %vm16311_vm0 }
 0x4e9   : > { %v3716_v25 = vsel %vm2288_vm8, %v3666_v39, %v3240_v6  ;;  %vm16337_vm15 = vmmov %vm16311_vm0 }
 0x4ea   : > { %4433 = vmatmul.bf16.gmra.mxu2 %v2898_v33  ;;  %v16305_v33 = vld [vmem:[#allocation63_spill] sm:$0xff]  ;;  %v3766_v28 = vsel %vm2337_vm9, %v3716_v25, %v11800_v46  ;;  %v16312_v25 = vld [vmem:[#allocation66_spill] sm:$0xff] }
 0x4eb   : > { %v3195_v57 = vrot.slane %v16305_v33, 7 }
 0x4ed   : > { %3379 = vrot.lane.b32.xlu2 %v16304_v59, %s7795_s13  ;;  %3302 = vrot.lane.b32.xlu1 %v7711_v51, %s7794_s12  ;;  %v3196_v1 = vor.u32 %v3195_v57, %v16309_v60 }
 0x4ee   : > { %3249 = vrot.lane.b32.xlu0 %v3170_v17, %s7793_s11  ;;  %v16308_v17 = vld [vmem:[#allocation80_spill] sm:$0xff] }
 0x4ef   : > { %v11927_v62 = vpop.permute.xlu2 %3097  ;;  %v3370_v27 = vpop.permute.xlu1 %3369  ;;  %v3197_v46 = vsel %vm16311_vm0, %v16310_v37, %v3196_v1  ;;  %v16315_v1 = vld [vmem:[#allocation31_spill] sm:$0xff]  ;;  %vm16339_vm0 = vmmov %vm16323_vm2 }
 0x4f0   : > { %v3431_v14 = vpop.permute.xlu0 %3430  ;;  %v3816_v6 = vsel %vm2386_vm10, %v3766_v28, %v3370_v27 }
 0x4f1   : > { %v3864_v59 = vsel %vm2435_vm11, %v3814_v43, %v3431_v14 }
 0x4f2   : > { %v3914_v23 = vsel %vm2484_vm12, %v3864_v59, %v11839_v21 }
 0x4f3   : > { %v3965_v56 = vshll.u32 %v3914_v23, 16  ;;  %v3963_v38 = vshrl.u32 %v3914_v23, 16 }
 0x4f5   : > { %3121 = vrot.lane.b32.xlu2 %v16306_v31, %s7792_s10  ;;  %3525 = vrot.lane.b32.xlu1 %v16307_v12, %s7797_s22  ;;  %v3967_v43 = vrot.slane %v3965_v56, 1  ;;  %v16313_v56 = vld [vmem:[#allocation186_spill] sm:$0xff] }
 0x4f6   : > { %3442 = vrot.lane.b32.xlu0 %v16308_v17, %s7796_s14  ;;  %v3568_v31 = vsel %vm2141_vm5, %v16313_v56, %v10970_v20 }
 0x4f7   : > { %v11949_v21 = vpop.permute.xlu2 %3373  ;;  %v3516_v51 = vpop.permute.xlu1 %3515  ;;  %v3968_v27 = vor.u32 %v3967_v43, %v3963_v38  ;;  %v3618_v12 = vsel %vm2190_vm6, %v3568_v31, %v11531_v22  ;;  %v16318_v22 = vld [vmem:[#allocation94_spill] sm:$0xff]  ;;  %v16320_v31 = vrot.slane %v16289_v35, 7 }
 0x4f8   : > { %v3433_v40 = vpop.permute.xlu0 %3432 }
 0x4f9   : > { %v3866_v14 = vsel %vm2435_vm11, %v3816_v6, %v3433_v40  ;;  %v3171_v6 = vrot.slane %v16315_v1, 7  ;;  %v16317_v40 = vld [vmem:[#allocation136_spill] sm:$0xff] }
 0x4fa   : > { %v3916_v55 = vsel %vm2484_vm12, %v3866_v14, %v3516_v51  ;;  %v16316_v51 = vld [vmem:[#allocation316_spill] sm:$0xff]  ;;  %v16319_v14 = vld [vmem:[#allocation26_spill] sm:$0xff] }
 0x4fb   : > { %v3969_v59 = vshll.u32 %v3916_v55, 16 }
 0x4fd   : > { %v3971_v39 = vrot.slane %v3969_v59, 1  ;;  %3397 = vrot.lane.b32.xlu2 %v16312_v25, %s7795_s13  ;;  %3320 = vrot.lane.b32.xlu1 %v11684_v48, %s7794_s12  ;;  %v3668_v48 = vsel %vm2239_vm7, %v3618_v12, %v11875_v7  ;;  %v3172_v7 = vor.u32 %v3171_v6, %v16319_v14  ;;  %v16324_v14 = vld [vmem:[#allocation61_spill] sm:$0xff] }
 0x4fe   : > { %3267 = vrot.lane.b32.xlu0 %v3197_v46, %s7793_s11 }
 0x4ff   : > { %v11968_v23 = vpop.permute.xlu2 %3099  ;;  %v3972_v44 = vsel %vm16314_vm4, %v3968_v27, %v3971_v39  ;;  %v3295_v17 = vpop.permute.xlu1 %3294  ;;  %v3973_v27 = vshrl.u32 %v3916_v55, 16  ;;  %vm16345_vm4 = vmmov %vm16329_vm1 }
 0x500   : > { %7207 = vmatmul.msk.bf16.vlgmr.msra.gmra.mxu1 %vm2533_vm13, %v3972_v44  ;;  %v3242_v28 = vpop.permute.xlu0 %3241  ;;  %v3173_v44 = vsel %vm16321_vm3, %v16320_v31, %v3172_v7  ;;  %v3198_v7 = vrot.slane %v16324_v14, 7  ;;  %v7719_v14 = vld [vmem:[%s7879_s7 + $0x7c] sm:$0xff]   ;;  %vm16352_vm3 = vmmov %vm16339_vm0 }
 0x501   : > { %v3718_v60 = vsel %vm2288_vm8, %v3668_v48, %v3242_v28  ;;  %v7713_v28 = vld [vmem:[%s7879_s7 + $0x68] sm:$0xff]   ;;  %v3975_v48 = vor.u32 %v3973_v27, %v3971_v39 }
 0x502   : > { %v3768_v20 = vsel %vm2337_vm9, %v3718_v60, %v3295_v17  ;;  %v16322_v17 = vld [vmem:[#allocation39_spill] sm:$0xff] }
 0x503   : > { %v3818_v59 = vsel %vm2386_vm10, %v3768_v20, %v11900_v3  ;;  %v7714_v3 = vld [vmem:[%s7879_s7 + $0x3c] sm:$0xff]  }
 0x504   : > { %v3570_v60 = vsel %vm2141_vm5, %v7714_v3, %v11160_v26 }
 0x505   : > { %3105 = vrot.lane.b32.xlu2 %v16316_v51, %s7792_s10  ;;  %3543 = vrot.lane.b32.xlu1 %v16317_v40, %s7797_s22  ;;  %v3620_v20 = vsel %vm2190_vm6, %v3570_v60, %v11529_v32  ;;  %v16327_v32 = vld [vmem:[#allocation79_spill] sm:$0xff] }
 0x506   : > { %3460 = vrot.lane.b32.xlu0 %v16318_v22, %s7796_s14  ;;  %v3670_v39 = vsel %vm2239_vm7, %v3620_v20, %v11927_v62 }
 0x507   : > { %v11985_v43 = vpop.permute.xlu2 %3375  ;;  %v3518_v38 = vpop.permute.xlu1 %3517 }
 0x508   : > { %v3435_v37 = vpop.permute.xlu0 %3434 }
 0x509   : > { %v3868_v46 = vsel %vm2435_vm11, %v3818_v59, %v3435_v37  ;;  %v16326_v59 = vld [vmem:[#allocation117_spill] sm:$0xff] }
 0x50a   : > { %v3918_v25 = vsel %vm2484_vm12, %v3868_v46, %v3518_v38  ;;  %v16325_v38 = vld [vmem:[#allocation334_spill] sm:$0xff]  ;;  %v16328_v46 = vld [vmem:[#allocation57_spill] sm:$0xff] }
 0x50b   : > { %v3976_v56 = vshll.u32 %v3918_v25, 16  ;;  %v3199_v62 = vor.u32 %v3198_v7, %v16328_v46  ;;  %v16336_v46 = vld [vmem:[#allocation25_spill] sm:$0xff] }
 0x50d   : > { %v3978_v12 = vrot.slane %v3976_v56, 1  ;;  %3381 = vrot.lane.b32.xlu2 %v16322_v17, %s7795_s13  ;;  %3304 = vrot.lane.b32.xlu1 %v7713_v28, %s7794_s12  ;;  %v3980_v28 = vshrl.u32 %v3918_v25, 16  ;;  %v3200_v3 = vsel %vm16329_vm1, %v3195_v57, %v3199_v62 }
 0x50e   : > { %3251 = vrot.lane.b32.xlu0 %v3173_v44, %s7793_s11 }
 0x50f   : > { %v12005_v55 = vpop.permute.xlu2 %3101  ;;  %v3979_v35 = vsel %vm16323_vm2, %v3975_v48, %v3978_v12  ;;  %v3297_v51 = vpop.permute.xlu1 %3296  ;;  %v3982_v20 = vor.u32 %v3980_v28, %v3978_v12 }
 0x510   : > { %7208 = vmatmul.msk.bf16.gmra.mxu1 %vm2533_vm13, %v3979_v35  ;;  %v3244_v40 = vpop.permute.xlu0 %3243  ;;  %v16330_v35 = vld [vmem:[#allocation65_spill] sm:$0xff] }
 0x511   : > { %v3720_v22 = vsel %vm2288_vm8, %v3670_v39, %v3244_v40 }
 0x512   : > { %v3770_v26 = vsel %vm2337_vm9, %v3720_v22, %v3297_v51  ;;  %v16332_v22 = vld [vmem:[#allocation28_spill] sm:$0xff] }
 0x513   : > { %v3820_v56 = vsel %vm2386_vm10, %v3770_v26, %v11949_v21  ;;  %v7715_v21 = vld [vmem:[%s7879_s7 + $0x44] sm:$0xff]   ;;  %v3174_v26 = vrot.slane %v16332_v22, 7 }
 0x514   : > { %v3572_v51 = vsel %vm2141_vm5, %v7715_v21, %v11153_v45 }
 0x515   : > { %3123 = vrot.lane.b32.xlu2 %v16325_v38, %s7792_s10  ;;  %3527 = vrot.lane.b32.xlu1 %v16326_v59, %s7797_s22  ;;  %v3622_v57 = vsel %vm2190_vm6, %v3572_v51, %v11383_v53  ;;  %v16333_v38 = vld [vmem:[#allocation315_spill] sm:$0xff]  ;;  %v16335_v53 = vld [vmem:[#allocation93_spill] sm:$0xff] }
 0x516   : > { %3444 = vrot.lane.b32.xlu0 %v16327_v32, %s7796_s14  ;;  %v16334_v59 = vld [vmem:[#allocation135_spill] sm:$0xff] }
 0x517   : > { %v12022_v37 = vpop.permute.xlu2 %3377  ;;  %v3520_v27 = vpop.permute.xlu1 %3519 }
 0x518   : > { %v3437_v31 = vpop.permute.xlu0 %3436 }
 0x519   : > { %v3870_v44 = vsel %vm2435_vm11, %v3820_v56, %v3437_v31 }
 0x51a   : > { %v3920_v17 = vsel %vm2484_vm12, %v3870_v44, %v3520_v27 }
 0x51b   : > { %v3983_v48 = vshll.u32 %v3920_v17, 16  ;;  %v3987_v28 = vshrl.u32 %v3920_v17, 16 }
 0x51d   : > { %v3985_v60 = vrot.slane %v3983_v48, 1  ;;  %3399 = vrot.lane.b32.xlu2 %v16330_v35, %s7795_s13  ;;  %3322 = vrot.lane.b32.xlu1 %v11780_v34, %s7794_s12  ;;  %v3672_v34 = vsel %vm2239_vm7, %v3622_v57, %v11968_v23  ;;  %v3175_v23 = vor.u32 %v3174_v26, %v16336_v46 }
 0x51e   : > { %3269 = vrot.lane.b32.xlu0 %v3200_v3, %s7793_s11 }
 0x51f   : > { %v12042_v25 = vpop.permute.xlu2 %3263  ;;  %v3986_v33 = vsel %vm16331_vm14, %v3982_v20, %v3985_v60  ;;  %v3299_v40 = vpop.permute.xlu1 %3298  ;;  %v3176_v3 = vsel %vm16337_vm15, %v3171_v6, %v3175_v23  ;;  %v16338_v20 = vld [vmem:[#allocation38_spill] sm:$0xff]  ;;  %v3989_v21 = vor.u32 %v3987_v28, %v3985_v60  ;;  %v7720_v28 = vld [vmem:[%s7879_s7 + $0x94] sm:$0xff]   ;;  %vm16373_vm14 = vmmov %vm16345_vm4 }
 0x520   : > { %7209 = vmatmul.msk.bf16.gmra.mxu1 %vm2533_vm13, %v3986_v33  ;;  %v3246_v39 = vpop.permute.xlu0 %3245  ;;  %v16340_v33 = vld [vmem:[#allocation59_spill] sm:$0xff] }
 0x521   : > { %v3722_v12 = vsel %vm2288_vm8, %v3672_v34, %v3246_v39  ;;  %v3201_v57 = vrot.slane %v16340_v33, 7  ;;  %v16342_v39 = vld [vmem:[#allocation116_spill] sm:$0xff]  ;;  %v7717_v60 = vld [vmem:[%s7879_s7 + $0x4c] sm:$0xff]  }
 0x522   : > { %v3772_v45 = vsel %vm2337_vm9, %v3722_v12, %v3299_v40  ;;  %v16341_v40 = vld [vmem:[#allocation333_spill] sm:$0xff]  ;;  %v3574_v34 = vsel %vm2141_vm5, %v7717_v60, %v11014_v8  ;;  %v16343_v12 = vld [vmem:[#allocation78_spill] sm:$0xff]  ;;  %v4618_v60 = vlaneseq  ;;  %v16375_v33 = vld [vmem:[#allocation124_spill] sm:$0xff] }
 0x523   : > { %v3822_v27 = vsel %vm2386_vm10, %v3772_v45, %v11985_v43  ;;  %v7716_v43 = vld [vmem:[%s7879_s7 + $0x70] sm:$0xff]   ;;  %v3624_v45 = vsel %vm2190_vm6, %v3574_v34, %v11579_v42  ;;  %v12167_v34 = vsel %vm2141_vm5, %v10625_v58, %v11294_v47 }
 0x524   : > { %v3674_v46 = vsel %vm2239_vm7, %v3624_v45, %v12005_v55  ;;  %v7718_v55 = vld [vmem:[%s7879_s7 + $0x64] sm:$0xff]  }
 0x525   : > { %3107 = vrot.lane.b32.xlu2 %v16333_v38, %s7792_s10  ;;  %3545 = vrot.lane.b32.xlu1 %v16334_v59, %s7797_s22  ;;  %v16344_v59 = vld [vmem:[#allocation56_spill] sm:$0xff]  ;;  %v16348_v45 = vld [vmem:[#allocation42_spill] sm:$0xff] }
 0x526   : > { %3462 = vrot.lane.b32.xlu0 %v16335_v53, %s7796_s14  ;;  %v3202_v53 = vor.u32 %v3201_v57, %v16344_v59  ;;  %v3177_v59 = vrot.slane %v16348_v45, 7 }
 0x527   : > { %v12059_v32 = vpop.permute.xlu2 %3316  ;;  %v3522_v62 = vpop.permute.xlu1 %3521 }
 0x528   : > { %v3439_v56 = vpop.permute.xlu0 %3438  ;;  %v3203_v42 = vsel %vm16345_vm4, %v3198_v7, %v3202_v53  ;;  %v12125_v7 = vsel %vm2141_vm5, %v7719_v14, %v11105_v63  ;;  %v7726_v53 = vld [vmem:[%s7879_s7 + $0x8c] sm:$0xff]  }
 0x529   : > { %v3872_v31 = vsel %vm2435_vm11, %v3822_v27, %v3439_v56  ;;  %v16346_v56 = vld [vmem:[#allocation64_spill] sm:$0xff] }
 0x52a   : > { %v12068_v44 = vsel %vm2484_vm12, %v3872_v31, %v3522_v62  ;;  %v12119_v31 = vsel %vm2141_vm5, %v7718_v55, %v11060_v61 }
 0x52b   : > { %v3990_v48 = vshll.u32 %v12068_v44, 16 }
 0x52d   : > { %v12074_v35 = vrot.slane %v3990_v48, 1  ;;  %3383 = vrot.lane.b32.xlu2 %v16338_v20, %s7795_s13  ;;  %3306 = vrot.lane.b32.xlu1 %v7716_v43, %s7794_s12  ;;  %v12130_v48 = vsel %vm2141_vm5, %v7720_v28, %v11151_v16  ;;  %v7722_v43 = vld [vmem:[%s7879_s7 + $0x5c] sm:$0xff]   ;;  %v7731_v28 = vld [vmem:[%s7879_s7 + $0xb4] sm:$0xff]  }
 0x52e   : > { %3253 = vrot.lane.b32.xlu0 %v3176_v3, %s7793_s11  ;;  %v3578_v63 = vsel %vm2141_vm5, %v7722_v43, %v11204_v2  ;;  %v16351_v43 = vld [vmem:[#allocation89_spill] sm:$0xff] }
 0x52f   : > { %v12081_v51 = vpop.permute.xlu2 %3318  ;;  %v3993_v17 = vsel %vm16339_vm0, %v3989_v21, %v12074_v35  ;;  %v3301_v1 = vpop.permute.xlu1 %3300  ;;  %v7723_v21 = vld [vmem:[%s7879_s7 + $0x54] sm:$0xff]  }
 0x530   : > { %7210 = vmatmul.msk.bf16.gmra.mxu1 %vm2533_vm13, %v3993_v17  ;;  %v3248_v6 = vpop.permute.xlu0 %3247  ;;  %v3576_v16 = vsel %vm2141_vm5, %v7723_v21, %v11210_v41  ;;  %v16347_v17 = vld [vmem:[#allocation206_spill] sm:$0xff] }
 0x531   : > { %v3724_v62 = vsel %vm2288_vm8, %v3674_v46, %v3248_v6  ;;  %v7727_v46 = vld [vmem:[%s7879_s7 + $0x84] sm:$0xff]  }
 0x532   : > { %v3774_v27 = vsel %vm2337_vm9, %v3724_v62, %v3301_v1  ;;  %v12150_v1 = vsel %vm2141_vm5, %v16347_v17, %v11248_v5  ;;  %v7728_v62 = vld [vmem:[%s7879_s7 + $0xa4] sm:$0xff]   ;;  %v12226_v17 = vsel %vm2141_vm5, %v10756_v30, %v11485_v36 }
 0x533   : > { %v3824_v61 = vsel %vm2386_vm10, %v3774_v27, %v12022_v37  ;;  %v3596_v47 = vsel %vm2141_vm5, %v7728_v62, %v11340_v49  ;;  %v12197_v49 = vsel %vm2190_vm6, %v3578_v63, %v11429_v52  ;;  %v16353_v63 = vld [vmem:[#allocation29_spill] sm:$0xff] }
 0x534   : > { %v3178_v21 = vor.u32 %v3177_v59, %v16353_v63  ;;  %v16368_v63 = vld [vmem:[#allocation97_spill] sm:$0xff] }
 0x535   : > { %3125 = vrot.lane.b32.xlu2 %v16341_v40, %s7792_s10  ;;  %3529 = vrot.lane.b32.xlu1 %v16342_v39, %s7797_s22  ;;  %v7724_v40 = vld [vmem:[%s7879_s7 + $0x74] sm:$0xff]   ;;  %v7725_v39 = vld [vmem:[%s7879_s7 + $0x6c] sm:$0xff]  }
 0x536   : > { %3446 = vrot.lane.b32.xlu0 %v16343_v12, %s7796_s14  ;;  %v3584_v2 = vsel %vm2141_vm5, %v7724_v40, %v11250_v18  ;;  %v3582_v41 = vsel %vm2141_vm5, %v7725_v39, %v11259_v4  ;;  %v3994_v12 = vshrl.u32 %v12068_v44, 16  ;;  %v3590_v4 = vsel %vm2141_vm5, %v7726_v53, %v11296_v11  ;;  %v7729_v44 = vld [vmem:[%s7879_s7 + $0x9c] sm:$0xff]  }
 0x537   : > { %v12098_v38 = vpop.permute.xlu2 %3539  ;;  %v3441_v23 = vpop.permute.xlu1 %3440  ;;  %v3594_v27 = vsel %vm2141_vm5, %v7729_v44, %v11346_v13  ;;  %v12214_v52 = vsel %vm2190_vm6, %v3584_v2, %v11474_v9  ;;  %v16355_v2 = vld [vmem:[#allocation205_spill] sm:$0xff]  ;;  %v16360_v44 = vld [vmem:[#allocation294_spill] sm:$0xff] }
 0x538   : > { %v12105_v8 = vpop.permute.xlu0 %3117  ;;  %v3996_v11 = vor.u32 %v3994_v12, %v12074_v35  ;;  %v12236_v39 = vsel %vm2190_vm6, %v3596_v47, %v16355_v2  ;;  %v12253_v47 = vsel %vm2190_vm6, %v12119_v31, %v16360_v44 }
 0x53d   : > { %3401 = vrot.lane.b32.xlu2 %v16346_v56, %s7795_s13  ;;  %3324 = vrot.lane.b32.xlu1 %v11853_v29, %s7794_s12  ;;  %v7721_v29 = vld [vmem:[%s7879_s7 + $0xac] sm:$0xff]   ;;  %v7730_v56 = vld [vmem:[%s7879_s7 + $0xbc] sm:$0xff]  }
 0x53e   : > { %3271 = vrot.lane.b32.xlu0 %v3203_v42, %s7793_s11  ;;  %v12135_v3 = vsel %vm2141_vm5, %v7721_v29, %v11202_v0  ;;  %v3874_v0 = vsel %vm2435_vm11, %v3824_v61, %v3441_v23  ;;  %v3588_v23 = vsel %vm2141_vm5, %v7727_v46, %v11303_v24  ;;  %v12181_v42 = vshrl.u32 %v4618_v60, 7  ;;  %v7732_v29 = vld [vmem:[%s7879_s7 + $0xd4] sm:$0xff]   ;;  %v16356_v60 = vld [vmem:[#allocation249_spill] sm:$0xff] }
 0x53f   : > { %v12139_v20 = vpop.permute.xlu2 %3103  ;;  %v12153_v37 = vpop.permute.xlu1 %3119  ;;  %v3602_v55 = vsel %vm2141_vm5, %v7730_v56, %v11385_v54  ;;  %v3600_v24 = vsel %vm2141_vm5, %v7731_v28, %v11394_v15  ;;  %v3608_v13 = vsel %vm2141_vm5, %v7732_v29, %v11431_v50  ;;  %v16349_v61 = vld [vmem:[#allocation323_spill] sm:$0xff]  ;;  %v12210_v15 = vsel %vm2141_vm5, %v10635_v19, %v11437_v10  ;;  %v16359_v46 = vld [vmem:[#allocation244_spill] sm:$0xff]  ;;  %v16361_v56 = vld [vmem:[#allocation245_spill] sm:$0xff] }
 0x540   : > { %v3524_v6 = vpop.permute.xlu0 %3523  ;;  %v16350_v54 = vld [vmem:[#allocation131_spill] sm:$0xff]  ;;  %v4670_v35 = vand.u32 65535, %v12181_v42  ;;  %v3626_v12 = vsel %vm2190_vm6, %v3576_v16, %v16356_v60  ;;  %v12248_v62 = vsel %vm2190_vm6, %v3582_v41, %v16359_v46  ;;  %v12257_v16 = vsel %vm2190_vm6, %v3608_v13, %v16361_v56  ;;  %vm16363_vm5 = vmmov %vm16329_vm1 }
 0x541   : > { %v12162_v5 = vsel %vm2484_vm12, %v3874_v0, %v3524_v6  ;;  %v16354_v10 = vld [vmem:[#allocation175_spill] sm:$0xff]  ;;  %v4671_v6 = vshrl.u32 %v12181_v42, 16  ;;  %16362 = vst [vmem:[#allocation255_spill] sm:$0xff] %v12257_v16  ;;  %v12266_v31 = vadd.s32 8, %v12181_v42 }
 0x542   : > { %v3997_v18 = vshll.u32 %v12162_v5, 16  ;;  %v3640_v0 = vsel %vm2190_vm6, %v3590_v4, %v16354_v10  ;;  %v4674_v40 = vmul.u32 43690, %v4670_v35  ;;  %v7733_v10 = vld [vmem:[%s7879_s7 + $0x78] sm:$0xff]  }
 0x543   : > { %v3690_v36 = vsel %vm2239_vm7, %v3640_v0, %v12105_v8  ;;  %v3179_v8 = vsel %vm16363_vm5, %v3174_v26, %v3178_v21  ;;  %v4675_v29 = vmul.u32 43691, %v4671_v6  ;;  %v3642_v21 = vsel %vm2190_vm6, %v12130_v48, %v16368_v63 }
 0x544   : > { %v12189_v14 = vrot.slane %v3997_v18, 1  ;;  %v16357_v18 = vld [vmem:[#allocation243_spill] sm:$0xff]  ;;  %v4677_v41 = vshll.u32 %v4674_v40, 16  ;;  %v15172_v0 = vmov 0   ;;  %v4700_v44 = vshrl.u32 %v12266_v31, 16 }
 0x545   : > { %3109 = vrot.lane.b32.xlu2 %v16349_v61, %s7792_s10  ;;  %3547 = vrot.lane.b32.xlu1 %v16350_v54, %s7797_s22  ;;  %v12242_v30 = vsel %vm2190_vm6, %v3602_v55, %v16357_v18  ;;  %v4673_v55 = vmul.u32 43691, %v4670_v35  ;;  %v3740_v61 = vsel %vm2288_vm8, %v3690_v36, %v12042_v25  ;;  %v4676_v54 = vmul.u32 43690, %v4671_v6  ;;  %v16369_v25 = vld [vmem:[#allocation53_spill] sm:$0xff] }
 0x546   : > { %3464 = vrot.lane.b32.xlu0 %v16351_v43, %s7796_s14  ;;  %v4000_v50 = vsel %vm16352_vm3, %v3996_v11, %v12189_v14  ;;  %16358 = vst [vmem:[#allocation363_spill] sm:$0xff] %v12242_v30  ;;  %v16364_v11 = vld [vmem:[#allocation410_spill] sm:$0xff]  ;;  %v4679_v35 = vshll.u32 %v4675_v29, 16  ;;  %v4699_v6 = vand.u32 65535, %v12266_v31  ;;  %v3790_v2 = vsel %vm2337_vm9, %v3740_v61, %v12059_v32 }
 0x547   : > { %7211 = vmatmul.msk.bf16.gmra.mxu1 %vm2533_vm13, %v4000_v50  ;;  %v12231_v9 = vpop.permute.xlu2 %3379  ;;  %v3394_v53 = vpop.permute.xlu1 %3393  ;;  %v3204_v28 = vrot.slane %v16364_v11, 7  ;;  %v16365_v43 = vld [vmem:[#allocation246_spill] sm:$0xff]  ;;  %vm4681_vm2 = vc.u32 %v4673_v55, %v4677_v41  ;;  %v4683_v22 = vadd.s32 %v4677_v41, %v4673_v55  ;;  %v16367_v50 = vld [vmem:[#allocation251_spill] sm:$0xff]  ;;  %v4678_v36 = vshrl.u32 %v4674_v40, 16  ;;  %v16371_v55 = vld [vmem:[#allocation133_spill] sm:$0xff] }
 0x548   : > { %v3266_v4 = vpop.permute.xlu0 %3265  ;;  %v12270_v13 = vsel %vm2190_vm6, %v3588_v23, %v16365_v43  ;;  %v12274_v26 = vsel %vm2190_vm6, %v3594_v27, %v16367_v50  ;;  %v4682_v23 = vsel %vm4681_vm2, 1, %v15172_v0  ;;  %v16370_v27 = vld [vmem:[#allocation402_spill] sm:$0xff]  ;;  %v4703_v56 = vmul.u32 43690, %v4699_v6 }
 0x549   : > { %16366 = vst [vmem:[#allocation386_spill] sm:$0xff] %v12270_v13  ;;  %v3205_v48 = vor.u32 %v3204_v28, %v16370_v27  ;;  %v4684_v60 = vadd.s32 %v4682_v23, %v4676_v54  ;;  %vm4685_vm1 = vc.u32 %v4683_v22, %v4679_v35  ;;  %v12297_v41 = vsel %vm2190_vm6, %v3600_v24, %v16371_v55  ;;  %v16372_v32 = vld [vmem:[#allocation174_spill] sm:$0xff] }
 0x54a   : > { %v4686_v46 = vsel %vm4685_vm1, 1, %v15172_v0  ;;  %v3840_v61 = vsel %vm2386_vm10, %v3790_v2, %v3394_v53  ;;  %v3692_v40 = vsel %vm2239_vm7, %v3642_v21, %v12153_v37  ;;  %v4680_v50 = vshrl.u32 %v4675_v29, 16  ;;  %vm16385_vm1 = vmmov %vm16373_vm14 }
 0x54b   : > { %v4688_v35 = vadd.s32 %v4686_v46, %v4684_v60  ;;  %v4702_v63 = vmul.u32 43691, %v4699_v6  ;;  %v4706_v23 = vshll.u32 %v4703_v56, 16  ;;  %v3206_v53 = vsel %vm16373_vm14, %v3201_v57, %v3205_v48  ;;  %v16374_v60 = vld [vmem:[#allocation340_spill] sm:$0xff] }
 0x54c   : > { %v4705_v2 = vmul.u32 43690, %v4700_v44  ;;  %v12315_v27 = vadd.s32 16, %v12181_v42  ;;  %v16376_v48 = vld [vmem:[#allocation84_spill] sm:$0xff]  ;;  %vm16384_vm2 = vsmask.f32 7424 }
 0x54d   : > { %3385 = vrot.lane.b32.xlu2 %v16369_v25, %s7795_s13  ;;  %3308 = vrot.lane.b32.xlu1 %v7733_v10, %s7794_s12  ;;  %v4689_v25 = vadd.s32 %v4688_v35, %v4678_v36  ;;  %v4704_v10 = vmul.u32 43691, %v4700_v44  ;;  %vm4710_vm15 = vc.u32 %v4702_v63, %v4706_v23  ;;  %v4712_v29 = vadd.s32 %v4706_v23, %v4702_v63  ;;  %v16377_v36 = vld [vmem:[#allocation40_spill] sm:$0xff] }
 0x54e   : > { %3255 = vrot.lane.b32.xlu0 %v3179_v8, %s7793_s11  ;;  %v12302_v8 = vsel %vm2190_vm6, %v12135_v3, %v16372_v32  ;;  %v3742_v3 = vsel %vm2288_vm8, %v3692_v40, %v3266_v4  ;;  %v4711_v57 = vsel %vm4710_vm15, 1, %v15172_v0  ;;  %v4728_v4 = vand.u32 65535, %v12315_v27 }
 0x54f   : > { %v12291_v18 = vpop.permute.xlu2 %3121  ;;  %v3396_v54 = vpop.permute.xlu1 %3395  ;;  %v4690_v37 = vadd.s32 %v4689_v25, %v4680_v50  ;;  %v4708_v21 = vshll.u32 %v4704_v10, 16  ;;  %v3180_v46 = vrot.slane %v16377_v36, 7  ;;  %v4713_v55 = vadd.s32 %v4711_v57, %v4705_v2 }
 0x550   : > { %v3457_v43 = vpop.permute.xlu0 %3456  ;;  %v4707_v32 = vshrl.u32 %v4703_v56, 16  ;;  %v4001_v35 = vshrl.u32 %v12162_v5, 16 }
 0x551   : > { %v3890_v22 = vsel %vm2435_vm11, %v3840_v61, %v3457_v43  ;;  %v4691_v44 = vshrl.u32 %v4690_v37, 4  ;;  %vm4714_vm0 = vc.u32 %v4712_v29, %v4708_v21  ;;  %v4729_v43 = vshrl.u32 %v12315_v27, 16  ;;  %v16379_v37 = vld [vmem:[#allocation35_spill] sm:$0xff] }
 0x552   : > { %v3940_v24 = vsel %vm2484_vm12, %v3890_v22, %v12098_v38  ;;  %v12319_v38 = vsel %vm2239_vm7, %v3626_v12, %v12139_v20  ;;  %v3792_v20 = vsel %vm2337_vm9, %v3742_v3, %v12081_v51  ;;  %v4715_v61 = vsel %vm4714_vm0, 1, %v15172_v0 }
 0x553   : > { %v4053_v6 = vshll.u32 %v3940_v24, 16  ;;  %v3842_v40 = vsel %vm2386_vm10, %v3792_v20, %v3396_v54  ;;  %v4692_v63 = vmul.u32 24, %v4691_v44  ;;  %v4717_v25 = vadd.s32 %v4715_v61, %v4713_v55  ;;  %v16381_v55 = vld [vmem:[#allocation414_spill] sm:$0xff]  ;;  %v7734_v20 = vld [vmem:[%s7879_s7 + $0xc0] sm:$0xff]  }
 0x554   : > { %v4709_v51 = vshrl.u32 %v4704_v10, 16  ;;  %v12341_v3 = vmul.u32 43690, %v4728_v4  ;;  %v3181_v5 = vor.u32 %v3180_v46, %v16379_v37  ;;  %v4057_v29 = vshrl.u32 %v3940_v24, 16 }
 0x555   : > { %3127 = vrot.lane.b32.xlu2 %v16374_v60, %s7792_s10  ;;  %3531 = vrot.lane.b32.xlu1 %v16375_v33, %s7797_s22  ;;  %v12338_v23 = vrot.slane %v4053_v6, 1  ;;  %v12350_v54 = vsub.s32 %v12181_v42, %v4692_v63  ;;  %v4718_v21 = vadd.s32 %v4717_v25, %v4707_v32  ;;  %v16380_v60 = vld [vmem:[#allocation409_spill] sm:$0xff]  ;;  %v12354_v10 = vmul.u32 43691, %v4729_v43 }
 0x556   : > { %3448 = vrot.lane.b32.xlu0 %v16376_v48, %s7796_s14  ;;  %v15165_v33 = vrot.slane %v16380_v60, 7  ;;  %v4731_v48 = vmul.u32 43691, %v4728_v4  ;;  %v4735_v61 = vshll.u32 %v12341_v3, 16  ;;  %v12374_v63 = vadd.s32 24, %v12181_v42 }
 0x557   : > { %v12332_v12 = vpop.permute.xlu2 %3397  ;;  %v3542_v50 = vpop.permute.xlu1 %3541  ;;  %16378 = vst [vmem:[#allocation260_spill] sm:$0xff] %v12338_v23  ;;  %vm6059_vm4 = vcmp.ne.s32.totalorder %v12350_v54, 0  ;;  %vm6107_vm3 = vcmp.lt.s32.totalorder %v12350_v54, 0  ;;  %v4719_v57 = vadd.s32 %v4718_v21, %v4709_v51  ;;  %v4059_v24 = vor.u32 %v4057_v29, %v12338_v23  ;;  %v16386_v21 = vld [vmem:[#allocation404_spill] sm:$0xff] }
 0x558   : > { %v3459_v22 = vpop.permute.xlu0 %3458  ;;  %v6203_v32 = vadd.s32 24, %v12350_v54  ;;  %vm12369_vm5 = vmand %vm6107_vm3, %vm6059_vm4  ;;  %v12379_v25 = vsel %vm2239_vm7, %v12274_v26, %v12291_v18  ;;  %v3208_v26 = vor.u32 %v15165_v33, %v16386_v21  ;;  %vm4739_vm14 = vc.u32 %v4731_v48, %v4735_v61 }
 0x559   : > { %v3892_v2 = vsel %vm2435_vm11, %v3842_v40, %v3459_v22  ;;  %v12366_v40 = vor.u32 %v4001_v35, %v12189_v14  ;;  %v4720_v22 = vshrl.u32 %v4719_v57, 4  ;;  %v4737_v35 = vshll.u32 %v12354_v10, 16 }
 0x55a   : > { %v12344_v56 = vsel %vm2484_vm12, %v3892_v2, %v3542_v50  ;;  %v4734_v50 = vmul.u32 43690, %v4729_v43  ;;  %v6251_v45 = vsel %vm12369_vm5, %v6203_v32, %v12350_v54  ;;  %v4741_v29 = vadd.s32 %v4735_v61, %v4731_v48  ;;  %v16388_v32 = vld [vmem:[#allocation450_spill] sm:$0xff]  ;;  %vm16392_vm5 = vmmov %vm16385_vm1 }
 0x55b   : > { %v4060_v6 = vshll.u32 %v12344_v56, 16  ;;  %v4064_v43 = vshrl.u32 %v12344_v56, 16  ;;  %v4721_v18 = vmul.u32 24, %v4720_v22  ;;  %v12405_v54 = vadd.s32 32, %v12181_v42 }
 0x55c   : > { %vm4743_vm15 = vc.u32 %v4741_v29, %v4737_v35 }
 0x55d   : > { %v4062_v44 = vrot.slane %v4060_v6, 1  ;;  %3403 = vrot.lane.b32.xlu2 %v16381_v55, %s7795_s13  ;;  %3326 = vrot.lane.b32.xlu1 %v7734_v20, %s7794_s12  ;;  %v4722_v6 = vsub.s32 %v12266_v31, %v4721_v18  ;;  %v4757_v55 = vand.u32 65535, %v12374_v63  ;;  %v4738_v20 = vshrl.u32 %v12354_v10, 16  ;;  %v16387_v31 = vld [vmem:[#allocation322_spill] sm:$0xff] }
 0x55e   : > { %3273 = vrot.lane.b32.xlu0 %v3206_v53, %s7793_s11  ;;  %v12385_v53 = vsel %vm16385_vm1, %v3177_v59, %v3181_v5  ;;  %v4736_v59 = vshrl.u32 %v12341_v3, 16  ;;  %v4740_v5 = vsel %vm4739_vm14, 1, %v15172_v0  ;;  %v4744_v48 = vsel %vm4743_vm15, 1, %v15172_v0 }
 0x55f   : > { %v3106_v2 = vpop.permute.xlu2 %3105  ;;  %v4063_v14 = vsel %vm16384_vm2, %v4059_v24, %v4062_v44  ;;  %v3303_v37 = vpop.permute.xlu1 %3302  ;;  %v4742_v57 = vadd.s32 %v4740_v5, %v4734_v50  ;;  %v4758_v24 = vshrl.u32 %v12374_v63, 16  ;;  %vm6060_vm0 = vcmp.ne.s32.totalorder %v4722_v6, 0  ;;  %v16391_v50 = vld [vmem:[#allocation433_spill] sm:$0xff] }
 0x560   : > { %7220 = vmatmul.msk.bf16.vlgmr.msra.gmra.mxu3 %vm2533_vm13, %v4063_v14  ;;  %v3250_v51 = vpop.permute.xlu0 %3249  ;;  %vm6108_vm4 = vcmp.lt.s32.totalorder %v4722_v6, 0  ;;  %v6204_v3 = vadd.s32 24, %v4722_v6  ;;  %v12417_v4 = vmul.u32 43690, %v4757_v55  ;;  %v12426_v14 = vsel %vm16392_vm5, %v3204_v28, %v3208_v26 }
 0x561   : > { %v3726_v56 = vsel %vm2288_vm8, %v12319_v38, %v3250_v51  ;;  %vm12413_vm3 = vmand %vm6108_vm4, %vm6060_vm0  ;;  %v4746_v61 = vadd.s32 %v4744_v48, %v4742_v57  ;;  %v12419_v22 = vmul.u32 43691, %v4758_v24  ;;  %v4760_v35 = vmul.u32 43691, %v4757_v55 }
 0x562   : > { %v3776_v38 = vsel %vm2337_vm9, %v3726_v56, %v3303_v37  ;;  %v4786_v51 = vand.u32 65535, %v12405_v54  ;;  %v12429_v37 = vor.u32 %v4064_v43, %v4062_v44  ;;  %vm12433_vm2 = vcmp.lt.s32.totalorder %v6251_v45, 16 }
 0x563   : > { %v4747_v5 = vadd.s32 %v4746_v61, %v4736_v59  ;;  %v4764_v29 = vshll.u32 %v12417_v4, 16  ;;  %v3826_v11 = vsel %vm2386_vm10, %v3776_v38, %v12231_v9  ;;  %v6252_v26 = vsel %vm12413_vm3, %v6204_v3, %v4722_v6  ;;  %v16397_v61 = vld [vmem:[#allocation50_spill] sm:$0xff] }
 0x564   : > { %v4766_v44 = vshll.u32 %v12419_v22, 16  ;;  %v4787_v43 = vshrl.u32 %v12405_v54, 16  ;;  %v12446_v45 = vsel %vm2239_vm7, %v12197_v49, %v3106_v2  ;;  %v4763_v55 = vmul.u32 43690, %v4758_v24 }
 0x565   : > { %3111 = vrot.lane.b32.xlu2 %v16387_v31, %s7792_s10  ;;  %3549 = vrot.lane.b32.xlu1 %v16388_v32, %s7797_s22  ;;  %v4748_v57 = vadd.s32 %v4747_v5, %v4738_v20  ;;  %vm4768_vm1 = vc.u32 %v4760_v35, %v4764_v29  ;;  %v4770_v48 = vadd.s32 %v4764_v29, %v4760_v35  ;;  %v12450_v38 = vmul.u32 43690, %v4786_v51  ;;  %v16398_v29 = vld [vmem:[#allocation36_spill] sm:$0xff] }
 0x566   : > { %3466 = vrot.lane.b32.xlu0 %v16391_v50, %s7796_s14  ;;  %v15169_v3 = vmov 0.0   ;;  %vm12457_vm14 = vcmp.lt.s32.totalorder %v6252_v26, 16  ;;  %v4769_v20 = vsel %vm4768_vm1, 1, %v15172_v0  ;;  %v4789_v24 = vmul.u32 43691, %v4786_v51  ;;  %v7735_v50 = vld [vmem:[%s7879_s7 + $0x80] sm:$0xff]   ;;  %v12475_v26 = vpop.f32.mrf.mxu0 }
 0x567   : > { %v12431_v21 = vpop.permute.xlu2 %3381  ;;  %v3526_v28 = vpop.permute.xlu1 %3525  ;;  %v12455_v31 = vsel %vm12433_vm2, 1.0, %v15169_v3  ;;  %v4749_v2 = vshrl.u32 %v4748_v57, 4  ;;  %vm4772_vm15 = vc.u32 %v4770_v48, %v4766_v44  ;;  %v12462_v32 = vmul.u32 43691, %v4787_v43 }
 0x568   : > { %v3443_v56 = vpop.permute.xlu0 %3442  ;;  %v4765_v18 = vshrl.u32 %v12417_v4, 16  ;;  %v4771_v5 = vadd.s32 %v4769_v20, %v4763_v55  ;;  %v4767_v51 = vshrl.u32 %v12419_v22, 16  ;;  %vm16399_vm0 = vsmask.f32 7424 }
 0x569   : > { %v3876_v59 = vsel %vm2435_vm11, %v3826_v11, %v3443_v56  ;;  %v4750_v35 = vmul.u32 24, %v4749_v2  ;;  %v15166_v11 = vrot.slane %v16398_v29, 7  ;;  %v4773_v56 = vsel %vm4772_vm15, 1, %v15172_v0 }
 0x56a   : > { %v3926_v9 = vsel %vm2484_vm12, %v3876_v59, %v3526_v28  ;;  %v4793_v28 = vshll.u32 %v12450_v38, 16  ;;  %v4775_v57 = vadd.s32 %v4773_v56, %v4771_v5  ;;  %v4792_v55 = vmul.u32 43690, %v4787_v43 }
 0x56b   : > { %v4004_v6 = vshll.u32 %v3926_v9, 16  ;;  %v4751_v4 = vsub.s32 %v12315_v27, %v4750_v35  ;;  %v4795_v22 = vshll.u32 %v12462_v32, 16  ;;  %v12483_v2 = vadd.s32 40, %v12181_v42  ;;  %v16400_v27 = vld [vmem:[#allocation34_spill] sm:$0xff] }
 0x56c   : > { %vm4797_vm4 = vc.u32 %v4789_v24, %v4793_v28  ;;  %v3184_v43 = vor.u32 %v15166_v11, %v16400_v27  ;;  %v4008_v56 = vshrl.u32 %v3926_v9, 16  ;;  %v16403_v27 = vld [vmem:[#allocation339_spill] sm:$0xff]  ;;  %vm16408_vm15 = vsmask.f32 256  ;;  %v16411_v9 = vld [vmem:[#allocation408_spill] sm:$0xff] }
 0x56d   : > { %v4006_v10 = vrot.slane %v4004_v6, 1  ;;  %3387 = vrot.lane.b32.xlu2 %v16397_v61, %s7795_s13  ;;  %3310 = vrot.lane.b32.xlu1 %v7735_v50, %s7794_s12  ;;  %v4799_v6 = vadd.s32 %v4793_v28, %v4789_v24  ;;  %vm6061_vm3 = vcmp.ne.s32.totalorder %v4751_v4, 0  ;;  %vm6109_vm5 = vcmp.lt.s32.totalorder %v4751_v4, 0 }
 0x56e   : > { %3257 = vrot.lane.b32.xlu0 %v12385_v53, %s7793_s11  ;;  %vm6157_vm2 = vmand %vm6109_vm5, %vm6061_vm3  ;;  %v4776_v61 = vadd.s32 %v4775_v57, %v4765_v18  ;;  %v16401_v50 = vshrl.u32 %v10635_v19, 16  ;;  %v16402_v24 = vshll.u32 %v10635_v19, 16  ;;  %v4794_v18 = vshrl.u32 %v12450_v38, 16  ;;  %v16404_v19 = vld [vmem:[#allocation123_spill] sm:$0xff] }
 0x56f   : > { %v3124_v44 = vpop.permute.xlu2 %3123  ;;  %v4007_v59 = vsel %vm16399_vm0, %v12366_v40, %v4006_v10  ;;  %v3321_v48 = vpop.permute.xlu1 %3320  ;;  %v6205_v40 = vadd.s32 24, %v4751_v4  ;;  %v16407_v38 = vld [vmem:[#allocation83_spill] sm:$0xff]  ;;  %vm16410_vm0 = vsmask.f32 6400 }
 0x570   : > { %7212 = vmatmul.msk.bf16.gmra.mxu1 %vm2533_vm13, %v4007_v59  ;;  %v3268_v53 = vpop.permute.xlu0 %3267  ;;  %v3070_v35 = vrot.slane %v16401_v50, 1  ;;  %v3071_v5 = vrot.slane %v16402_v24, 2  ;;  %v4798_v59 = vsel %vm4797_vm4, 1, %v15172_v0  ;;  %v4777_v33 = vadd.s32 %v4776_v61, %v4767_v51  ;;  %v12540_v50 = vpop.f32.mrf.mxu0 }
 0x571   : > { %v3744_v20 = vsel %vm2288_vm8, %v12379_v25, %v3268_v53  ;;  %v12497_v25 = vsel %vm12457_vm14, 1.0, %v15169_v3  ;;  %v6253_v28 = vsel %vm6157_vm2, %v6205_v40, %v4751_v4  ;;  %v4800_v57 = vadd.s32 %v4798_v59, %v4792_v55  ;;  %v12555_v59 = vld [vmem:[%s7879_s7 + $0xd8] sm:$0xff]  }
 0x572   : > { %v3794_v53 = vsel %vm2337_vm9, %v3744_v20, %v3321_v48  ;;  %vm12506_vm1 = vcmp.lt.s32.totalorder %v6253_v28, 16  ;;  %v12510_v49 = vor.u32 %v3071_v5, %v3070_v35  ;;  %vm4801_vm14 = vc.u32 %v4799_v6, %v4795_v22  ;;  %v16409_v35 = vld [vmem:[#allocation336_spill] sm:$0xff] }
 0x573   : > { %v4815_v4 = vand.u32 65535, %v12483_v2  ;;  %v12513_v48 = vor.u32 %v4008_v56, %v4006_v10  ;;  %v12520_v51 = vsel %vm16408_vm15, %v3180_v46, %v3184_v43  ;;  %v4778_v55 = vshrl.u32 %v4777_v33, 4 }
 0x574   : > { %v4802_v20 = vsel %vm4801_vm14, 1, %v15172_v0  ;;  %v12525_v40 = vsel %vm2239_vm7, %v12236_v39, %v3124_v44  ;;  %v4796_v10 = vshrl.u32 %v12462_v32, 16  ;;  %v4816_v61 = vshrl.u32 %v12483_v2, 16 }
 0x575   : > { %3129 = vrot.lane.b32.xlu2 %v16403_v27, %s7792_s10  ;;  %3533 = vrot.lane.b32.xlu1 %v16404_v19, %s7797_s22  ;;  %v4804_v6 = vadd.s32 %v4802_v20, %v4800_v57  ;;  %v3844_v36 = vsel %vm2386_vm10, %v3794_v53, %v12332_v12  ;;  %v12536_v33 = vsel %vm12506_vm1, 1.0, %v15169_v3  ;;  %v4779_v39 = vmul.u32 24, %v4778_v55 }
 0x576   : > { %3450 = vrot.lane.b32.xlu0 %v16407_v38, %s7796_s14  ;;  %v12538_v44 = vmul.u32 43690, %v4815_v4  ;;  %v12547_v24 = vsel %vm16410_vm0, %v16409_v35, %v12510_v49  ;;  %v12550_v5 = vadd.s32 48, %v12181_v42  ;;  %v12558_v53 = vshll.u32 %v12555_v59, 16 }
 0x577   : > { %v12527_v22 = vpop.permute.xlu2 %3399  ;;  %v3544_v43 = vpop.permute.xlu1 %3543  ;;  %v4805_v12 = vadd.s32 %v4804_v6, %v4794_v18  ;;  %v4780_v28 = vsub.s32 %v12374_v63, %v4779_v39  ;;  %v4818_v57 = vmul.u32 43691, %v4815_v4  ;;  %v15167_v38 = vrot.slane %v16411_v9, 7  ;;  %v16412_v63 = vld [vmem:[#allocation413_spill] sm:$0xff] }
 0x578   : > { %v3461_v46 = vpop.permute.xlu0 %3460  ;;  %v12561_v55 = vmul.u32 43691, %v4816_v61  ;;  %v4822_v20 = vshll.u32 %v12538_v44, 16  ;;  %v4844_v39 = vand.u32 65535, %v12550_v5  ;;  %v15168_v35 = vrot.slane %v12558_v53, 1 }
 0x579   : > { %v3894_v32 = vsel %vm2435_vm11, %v3844_v36, %v3461_v46  ;;  %v4806_v19 = vadd.s32 %v4805_v12, %v4796_v10  ;;  %vm6062_vm4 = vcmp.ne.s32.totalorder %v4780_v28, 0  ;;  %vm6110_vm3 = vcmp.lt.s32.totalorder %v4780_v28, 0  ;;  %v16413_v46 = vld [vmem:[#allocation387_spill] sm:$0xff] }
 0x57a   : > { %v3944_v56 = vsel %vm2484_vm12, %v3894_v32, %v3544_v43  ;;  %v6206_v18 = vadd.s32 24, %v4780_v28  ;;  %vm12568_vm5 = vmand %vm6110_vm3, %vm6062_vm4  ;;  %v4821_v43 = vmul.u32 43690, %v4816_v61  ;;  %v4823_v12 = vshrl.u32 %v12538_v44, 16 }
 0x57b   : > { %v4067_v27 = vshll.u32 %v3944_v56, 16  ;;  %v4807_v10 = vshrl.u32 %v4806_v19, 4  ;;  %vm16416_vm2 = vsmask.f32 7424  ;;  %vm4826_vm1 = vc.u32 %v4818_v57, %v4822_v20 }
 0x57c   : > { %v6254_v61 = vsel %vm12568_vm5, %v6206_v18, %v4780_v28  ;;  %v4827_v4 = vsel %vm4826_vm1, 1, %v15172_v0  ;;  %vm16421_vm15 = vmmov %vm16416_vm2  ;;  %vm16425_vm5 = vsmask.f32 256 }
 0x57d   : > { %v4069_v6 = vrot.slane %v4067_v27, 1  ;;  %v4448_v36 = vpop.f32.mrf.mxu1  ;;  %3405 = vrot.lane.b32.xlu2 %v16412_v63, %s7795_s13  ;;  %3328 = vrot.lane.b32.xlu1 %v16413_v46, %s7794_s12  ;;  %v4071_v63 = vshrl.u32 %v3944_v56, 16  ;;  %v4808_v19 = vmul.u32 24, %v4807_v10  ;;  %v16417_v56 = vld [vmem:[#allocation403_spill] sm:$0xff]  ;;  %v4828_v10 = vadd.s32 %v4822_v20, %v4818_v57  ;;  %v4324_v27 = vpop.f32.mrf.mxu0 }
 0x57e   : > { %v4449_v32 = vadd.f32 %v4448_v36, %v12475_v26  ;;  %3275 = vrot.lane.b32.xlu0 %v12426_v14, %s7793_s11  ;;  %v4824_v36 = vshll.u32 %v12561_v55, 16  ;;  %vm12599_vm14 = vcmp.lt.s32.totalorder %v6254_v61, 16  ;;  %v16424_v20 = vrot.slane %v16380_v60, 7 }
 0x57f   : > { %v3108_v46 = vpop.permute.xlu2 %3107  ;;  %v4070_v11 = vsel %vm16416_vm2, %v12429_v37, %v4069_v6  ;;  %v3305_v44 = vpop.permute.xlu1 %3304  ;;  %v3211_v37 = vor.u32 %v15167_v38, %v16417_v56  ;;  %v4809_v18 = vsub.s32 %v12405_v54, %v4808_v19  ;;  %v4829_v38 = vadd.s32 %v4827_v4, %v4821_v43 }
 0x580   : > { %4570 = vst.msk [vmem:[%s12585_s8] sm:$0xff] %vm2190_vm6, %v4449_v32  ;;  %v6443_v14 = vmul.f32 %v12455_v31, %v4449_v32  ;;  %7221 = vmatmul.msk.bf16.gmra.mxu3 %vm2533_vm13, %v4070_v11  ;;  %v3252_v26 = vpop.permute.xlu0 %3251  ;;  %v16420_v32 = vld [vmem:[#allocation411_spill] sm:$0xff]  ;;  %v12610_v19 = vor.u32 %v4071_v63, %v4069_v6  ;;  %vm4830_vm2 = vc.u32 %v4828_v10, %v4824_v36  ;;  %v16426_v63 = vld [vmem:[#allocation321_spill] sm:$0xff]  ;;  %v12634_v60 = vsel %vm12599_vm14, 1.0, %v15169_v3 }
 0x581   : > { %v3728_v28 = vsel %vm2288_vm8, %v12446_v45, %v3252_v26  ;;  %v12607_v56 = vsel %vm16421_vm15, %v16420_v32, %v15168_v35  ;;  %vm6063_vm0 = vcmp.ne.s32.totalorder %v4809_v18, 0  ;;  %vm6111_vm4 = vcmp.lt.s32.totalorder %v4809_v18, 0 }
 0x582   : > { %v6597_v31 = vmul.f32 %v6443_v14, %v6443_v14  ;;  %v3778_v45 = vsel %vm2337_vm9, %v3728_v28, %v3305_v44  ;;  %v6207_v54 = vadd.s32 24, %v4809_v18  ;;  %vm12612_vm3 = vmand %vm6111_vm4, %vm6063_vm0  ;;  %v12619_v61 = vsel %vm16425_vm5, %v16424_v20, %v3211_v37  ;;  %v16427_v28 = vld [vmem:[#allocation449_spill] sm:$0xff] }
 0x583   : > { %v4825_v26 = vshrl.u32 %v12561_v55, 16  ;;  %v6492_v43 = vsel %vm2190_vm6, %v6443_v14, 0.0  ;;  %v12625_v44 = vsel %vm2239_vm7, %v12253_v47, %v3108_v46  ;;  %v4831_v55 = vsel %vm4830_vm2, 1, %v15172_v0  ;;  %v16428_v47 = vld [vmem:[#allocation432_spill] sm:$0xff] }
 0x584   : > { %v3828_v46 = vsel %vm2386_vm10, %v3778_v45, %v12431_v21  ;;  %v6255_v37 = vsel %vm12612_vm3, %v6207_v54, %v4809_v18  ;;  %v4833_v36 = vadd.s32 %v4831_v55, %v4829_v38  ;;  %v6645_v4 = vsel %vm2190_vm6, %v6597_v31, 0.0 }
 0x585   : > { %v4450_v6 = vpop.f32.mrf.mxu1  ;;  %3113 = vrot.lane.b32.xlu2 %v16426_v63, %s7792_s10  ;;  %3551 = vrot.lane.b32.xlu1 %v16427_v28, %s7797_s22  ;;  %v15171_v11 = vrot.slane %v12555_v59, 1  ;;  %v12649_v32 = vshrl.u32 %v12555_v59, 16  ;;  %v3493_v31 = vrot.slane %v12558_v53, 2  ;;  %v16429_v54 = vshrl.u32 %v12550_v5, 16  ;;  %v4326_v3 = vpop.f32.mrf.mxu0 }
 0x586   : > { %v4451_v14 = vadd.f32 %v4450_v6, %v12540_v50  ;;  %3468 = vrot.lane.b32.xlu0 %v16428_v47, %s7796_s14  ;;  %v12653_v50 = vmul.u32 43690, %v4844_v39  ;;  %v4834_v38 = vadd.s32 %v4833_v36, %v4823_v12  ;;  %vm12664_vm1 = vcmp.lt.s32.totalorder %v6255_v37, 16 }
 0x587   : > { %v12645_v10 = vpop.permute.xlu2 %3383  ;;  %v3528_v18 = vpop.permute.xlu1 %3527  ;;  %v12661_v57 = vmul.u32 43691, %v16429_v54  ;;  %v4847_v63 = vmul.u32 43691, %v4844_v39  ;;  %v3492_v37 = vrot.slane %v12649_v32, 1  ;;  %v16432_v36 = vmov %v16429_v54 }
 0x588   : > { %4571 = vst.msk [vmem:[%s12585_s8 + $0x8] sm:$0xff] %vm2190_vm6, %v4451_v14  ;;  %v6444_v21 = vmul.f32 %v12497_v25, %v4451_v14  ;;  %v3445_v45 = vpop.permute.xlu0 %3444  ;;  %v4851_v25 = vshll.u32 %v12653_v50, 16  ;;  %v4835_v14 = vadd.s32 %v4834_v38, %v4825_v26  ;;  %v7737_v38 = vld [vmem:[%s7879_s7 + $0x88] sm:$0xff]   ;;  %vm16435_vm15 = vcmask 1046528  }
 0x589   : > { %v3878_v20 = vsel %vm2435_vm11, %v3828_v46, %v3445_v45  ;;  %v4850_v45 = vmul.u32 43690, %v16432_v36  ;;  %v4853_v35 = vshll.u32 %v12661_v57, 16  ;;  %v16434_v36 = vld [vmem:[#allocation430_spill] sm:$0xff]  ;;  %vm16436_vm0 = vsmask.f32 7424 }
 0x58a   : > { %v6493_v28 = vsel %vm2190_vm6, %v6444_v21, 0.0  ;;  %v6598_v12 = vmul.f32 %v6444_v21, %v6444_v21  ;;  %v12673_v55 = vsel %vm2484_vm12, %v3878_v20, %v3528_v18  ;;  %v4836_v54 = vshrl.u32 %v4835_v14, 4 }
 0x58b   : > { %v6494_v47 = vadd.f32 %v6493_v28, %v6492_v43  ;;  %v4011_v46 = vshll.u32 %v12673_v55, 16  ;;  %v12682_v21 = vadd.s32 56, %v12181_v42  ;;  %v16433_v43 = vld [vmem:[#allocation47_spill] sm:$0xff]  ;;  %vm4855_vm14 = vc.u32 %v4847_v63, %v4851_v25 }
 0x58c   : > { %v6646_v39 = vsel %vm2190_vm6, %v6598_v12, 0.0  ;;  %v4857_v28 = vadd.s32 %v4851_v25, %v4847_v63  ;;  %v4837_v14 = vmul.u32 24, %v4836_v54 }
 0x58d   : > { %v6647_v18 = vadd.f32 %v6646_v39, %v6645_v4  ;;  %v4013_v20 = vrot.slane %v4011_v46, 1  ;;  %v4453_v26 = vpop.f32.mrf.mxu1  ;;  %3389 = vrot.lane.b32.xlu2 %v16433_v43, %s7795_s13  ;;  %3312 = vrot.lane.b32.xlu1 %v7737_v38, %s7794_s12  ;;  %v12694_v4 = vsel %vm16435_vm15, %v16434_v36, %v15171_v11  ;;  %v4856_v46 = vsel %vm4855_vm14, 1, %v15172_v0 }
 0x58e   : > { %v4454_v12 = vadd.f32 %v4453_v26, %v4324_v27  ;;  %3259 = vrot.lane.b32.xlu0 %v12520_v51, %s7793_s11  ;;  %v16437_v38 = vmov 0.0   ;;  %v4858_v51 = vadd.s32 %v4856_v46, %v4850_v45  ;;  %vm4859_vm4 = vc.u32 %v4857_v28, %v4853_v35 }
 0x58f   : > { %v12697_v39 = vpop.permute.xlu2 %3125  ;;  %v4014_v43 = vsel %vm16436_vm0, %v12513_v48, %v4013_v20  ;;  %v12704_v27 = vsel %vm12664_vm1, 1.0, %v16437_v38  ;;  %v3323_v54 = vpop.permute.xlu1 %3322  ;;  %v12711_v26 = vsub.s32 %v12483_v2, %v4837_v14  ;;  %v4852_v48 = vshrl.u32 %v12653_v50, 16 }
 0x590   : > { %4572 = vst.msk [vmem:[%s12585_s8 + $0x10] sm:$0xff] %vm2190_vm6, %v4454_v12  ;;  %v6445_v63 = vmul.f32 %v12536_v33, %v4454_v12  ;;  %7213 = vmatmul.msk.bf16.gmra.mxu1 %vm2533_vm13, %v4014_v43  ;;  %v3270_v25 = vpop.permute.xlu0 %3269  ;;  %v4860_v36 = vsel %vm4859_vm4, 1, %v15172_v0  ;;  %v12717_v45 = vor.u32 %v3493_v31, %v3492_v37  ;;  %v4873_v28 = vand.u32 65535, %v12682_v21 }
 0x591   : > { %v3746_v6 = vsel %vm2288_vm8, %v12525_v40, %v3270_v25  ;;  %v4862_v35 = vadd.s32 %v4860_v36, %v4858_v51  ;;  %vm6064_vm3 = vcmp.ne.s32.totalorder %v12711_v26, 0  ;;  %v4854_v2 = vshrl.u32 %v12661_v57, 16 }
 0x592   : > { %v6495_v33 = vsel %vm2190_vm6, %v6445_v63, 0.0  ;;  %v6599_v12 = vmul.f32 %v6445_v63, %v6445_v63  ;;  %v4015_v14 = vshrl.u32 %v12673_v55, 16  ;;  %vm6112_vm5 = vcmp.lt.s32.totalorder %v12711_v26, 0  ;;  %v16440_v55 = vld [vmem:[#allocation122_spill] sm:$0xff] }
 0x593   : > { %v6496_v50 = vadd.f32 %v6495_v33, %v6494_v47  ;;  %v12726_v46 = vadd.s32 24, %v12711_v26  ;;  %v3796_v31 = vsel %vm2337_vm9, %v3746_v6, %v3323_v54  ;;  %vm12730_vm2 = vmand %vm6112_vm5, %vm6064_vm3  ;;  %v4863_v43 = vadd.s32 %v4862_v35, %v4852_v48  ;;  %v16441_v47 = vld [vmem:[#allocation447_spill] sm:$0xff]  ;;  %v16443_v6 = vld [vmem:[#allocation82_spill] sm:$0xff] }
 0x594   : > { %v6648_v40 = vsel %vm2190_vm6, %v6599_v12, 0.0  ;;  %v4874_v51 = vshrl.u32 %v12682_v21, 16  ;;  %vm16442_vm1 = vsmask.f32 6400  ;;  %v4876_v54 = vmul.u32 43691, %v4873_v28  ;;  %v16444_v35 = vld [vmem:[#allocation37_spill] sm:$0xff] }
 0x595   : > { %v6649_v57 = vadd.f32 %v6648_v40, %v6647_v18  ;;  %v4455_v63 = vpop.f32.mrf.mxu1  ;;  %3131 = vrot.lane.b32.xlu2 %v12547_v24, %s7792_s10  ;;  %3535 = vrot.lane.b32.xlu1 %v16440_v55, %s7797_s22  ;;  %v12742_v25 = vsel %vm16442_vm1, %v16441_v47, %v12717_v45  ;;  %v12744_v36 = vmul.u32 43690, %v4873_v28  ;;  %v4864_v18 = vadd.s32 %v4863_v43, %v4854_v2  ;;  %v16445_v33 = vld [vmem:[#allocation54_spill] sm:$0xff]  ;;  %v4329_v55 = vpop.f32.mrf.mxu0 }
 0x596   : > { %v4456_v48 = vadd.f32 %v4455_v63, %v4326_v3  ;;  %3452 = vrot.lane.b32.xlu0 %v16443_v6, %s7796_s14  ;;  %v16446_v24 = vrot.slane %v16445_v33, 7  ;;  %v12751_v40 = vmul.u32 43691, %v4874_v51  ;;  %v12753_v11 = vor.u32 %v4015_v14, %v4013_v20 }
 0x597   : > { %v12755_v0 = vpop.permute.xlu2 %3401  ;;  %v3846_v28 = vsel %vm2386_vm10, %v3796_v31, %v12527_v22  ;;  %v6256_v3 = vsel %vm12730_vm2, %v12726_v46, %v12711_v26  ;;  %v4880_v2 = vshll.u32 %v12744_v36, 16  ;;  %v3546_v47 = vpop.permute.xlu1 %3545  ;;  %v4865_v20 = vshrl.u32 %v4864_v18, 4  ;;  %v16447_v31 = vld [vmem:[#allocation458_spill] sm:$0xff] }
 0x598   : > { %v3187_v12 = vor.u32 %v16446_v24, %v16444_v35  ;;  %4573 = vst.msk [vmem:[%s12585_s8 + $0x18] sm:$0xff] %vm2190_vm6, %v4456_v48  ;;  %v6446_v43 = vmul.f32 %v12634_v60, %v4456_v48  ;;  %v3463_v63 = vpop.permute.xlu0 %3462  ;;  %v4879_v14 = vmul.u32 43690, %v4874_v51  ;;  %v4882_v6 = vshll.u32 %v12751_v40, 16 }
 0x599   : > { %v3896_v35 = vsel %vm2435_vm11, %v3846_v28, %v3463_v63  ;;  %vm4884_vm14 = vc.u32 %v4876_v54, %v4880_v2  ;;  %v4886_v22 = vadd.s32 %v4880_v2, %v4876_v54  ;;  %v16448_v33 = vshrl.u32 %v16447_v31, 16 }
 0x59a   : > { %v6497_v26 = vsel %vm2190_vm6, %v6446_v43, 0.0  ;;  %v6600_v46 = vmul.f32 %v6446_v43, %v6446_v43  ;;  %v3946_v24 = vsel %vm2484_vm12, %v3896_v35, %v3546_v47  ;;  %v4866_v60 = vmul.u32 24, %v4865_v20  ;;  %v7738_v43 = vld [vmem:[%s7879_s7 + $0xd0] sm:$0xff]  }
 0x59b   : > { %v3074_v37 = vrot.slane %v16448_v33, 1  ;;  %v6498_v48 = vadd.f32 %v6497_v26, %v6496_v50  ;;  %v4074_v23 = vshll.u32 %v3946_v24, 16  ;;  %v16449_v18 = vmov 0  }
 0x59c   : > { %v4885_v51 = vsel %vm4884_vm14, 1, %v16449_v18  ;;  %v16450_v16 = vshll.u32 %v16447_v31, 16  ;;  %v6650_v28 = vsel %vm2190_vm6, %v6600_v46, 0.0  ;;  %v4867_v54 = vsub.s32 %v12550_v5, %v4866_v60 }
 0x59d   : > { %v4887_v2 = vadd.s32 %v4885_v51, %v4879_v14  ;;  %vm4888_vm15 = vc.u32 %v4886_v22, %v4882_v6  ;;  %v6651_v63 = vadd.f32 %v6650_v28, %v6649_v57  ;;  %v4076_v33 = vrot.slane %v4074_v23, 1  ;;  %v4458_v30 = vpop.f32.mrf.mxu1  ;;  %3407 = vrot.lane.b32.xlu2 %v12607_v56, %s7795_s13  ;;  %3330 = vrot.lane.b32.xlu1 %v7738_v43, %s7794_s12  ;;  %v4331_v35 = vpop.f32.mrf.mxu0  ;;  %v16462_v43 = vld [vmem:[#allocation329_spill] sm:$0xff] }
 0x59e   : > { %v3075_v13 = vrot.slane %v16450_v16, 2  ;;  %v4881_v50 = vshrl.u32 %v12744_v36, 16  ;;  %v4889_v16 = vsel %vm4888_vm15, 1, %v16449_v18  ;;  %v4459_v47 = vadd.f32 %v4458_v30, %v4329_v55  ;;  %3277 = vrot.lane.b32.xlu0 %v12619_v61, %s7793_s11 }
 0x59f   : > { %vm6065_vm0 = vcmp.ne.s32.totalorder %v4867_v54, 0  ;;  %vm6113_vm4 = vcmp.lt.s32.totalorder %v4867_v54, 0  ;;  %v6209_v5 = vadd.s32 24, %v4867_v54  ;;  %v3110_v23 = vpop.permute.xlu2 %3109  ;;  %vm16451_vm3 = vsmask.f32 7424 }
 0x5a0   : > { %v4077_v57 = vsel %vm16451_vm3, %v12610_v19, %v4076_v33  ;;  %vm12788_vm5 = vcmp.lt.s32.totalorder %v6256_v3, 16  ;;  %vm12792_vm2 = vmand %vm6113_vm4, %vm6065_vm0  ;;  %v4883_v30 = vshrl.u32 %v12751_v40, 16  ;;  %v4891_v36 = vadd.s32 %v4889_v16, %v4887_v2  ;;  %4574 = vst.msk [vmem:[%s12585_s8 + $0x20] sm:$0xff] %vm2190_vm6, %v4459_v47  ;;  %v3254_v14 = vpop.permute.xlu0 %3253  ;;  %v3307_v19 = vpop.permute.xlu1 %3306 }
 0x5a1   : > { %v4078_v55 = vshrl.u32 %v3946_v24, 16  ;;  %v6447_v61 = vmul.f32 %v12704_v27, %v4459_v47  ;;  %7222 = vmatmul.msk.bf16.gmra.mxu3 %vm2533_vm13, %v4077_v57  ;;  %v6257_v3 = vsel %vm12792_vm2, %v6209_v5, %v4867_v54  ;;  %v12803_v6 = vor.u32 %v3075_v13, %v3074_v37 }
 0x5a2   : > { %v12808_v40 = vsel %vm2239_vm7, %v12302_v8, %v12697_v39  ;;  %v3730_v22 = vsel %vm2288_vm8, %v12625_v44, %v3254_v14  ;;  %v16456_v27 = vrot.slane %v16398_v29, 7  ;;  %vm16457_vm1 = vsmask.f32 256  ;;  %v16460_v29 = vld [vmem:[#allocation451_spill] sm:$0xff] }
 0x5a3   : > { %v4892_v26 = vadd.s32 %v4891_v36, %v4881_v50  ;;  %v12817_v46 = vor.u32 %v4078_v55, %v4076_v33  ;;  %v6499_v13 = vsel %vm2190_vm6, %v6447_v61, 0.0  ;;  %v6601_v37 = vmul.f32 %v6447_v61, %v6447_v61 }
 0x5a4   : > { %v12815_v31 = vsel %vm16457_vm1, %v16456_v27, %v3187_v12  ;;  %v7236_v24 = vsel %vm12788_vm5, 1.0, %v16437_v38  ;;  %v6500_v8 = vadd.f32 %v6499_v13, %v6498_v48  ;;  %vm12823_vm14 = vcmp.lt.s32.totalorder %v6257_v3, 16 }
 0x5a5   : > { %v4893_v44 = vadd.s32 %v4892_v26, %v4883_v30  ;;  %v12828_v60 = vshll.u32 %v16460_v29, 16  ;;  %v6652_v12 = vsel %vm2190_vm6, %v6601_v37, 0.0  ;;  %v3780_v51 = vsel %vm2337_vm9, %v3730_v22, %v3307_v19  ;;  %v4460_v33 = vpop.f32.mrf.mxu1  ;;  %3115 = vrot.lane.b32.xlu2 %v16462_v43, %s7792_s10  ;;  %3553 = vrot.lane.b32.xlu1 %v12742_v25, %s7797_s22  ;;  %v4334_v39 = vpop.f32.mrf.mxu0 }
 0x5a6   : > { %vm16461_vm15 = vsmask.f32 6400  ;;  %v12838_v54 = vadd.s32 64, %v12181_v42  ;;  %v6653_v48 = vadd.f32 %v6652_v12, %v6651_v63  ;;  %v12842_v2 = vsel %vm2239_vm7, %v12248_v62, %v3110_v23  ;;  %3470 = vrot.lane.b32.xlu0 %v12694_v4, %s7796_s14 }
 0x5a7   : > { %v12835_v28 = vsel %vm16461_vm15, %v12510_v49, %v12803_v6  ;;  %v4894_v50 = vshrl.u32 %v4893_v44, 4  ;;  %v16463_v49 = vrot.slane %v12558_v53, 1  ;;  %v4461_v47 = vadd.f32 %v4460_v33, %v4331_v35  ;;  %v12858_v23 = vpop.permute.xlu2 %3385 }
 0x5a8   : > { %v7237_v62 = vsel %vm12823_vm14, 1.0, %v16437_v38  ;;  %v4902_v63 = vand.u32 65535, %v12838_v54  ;;  %v4903_v5 = vshrl.u32 %v12838_v54, 16  ;;  %v3830_v25 = vsel %vm2386_vm10, %v3780_v51, %v12645_v10  ;;  %v3447_v30 = vpop.permute.xlu0 %3446  ;;  %v3530_v36 = vpop.permute.xlu1 %3529 }
 0x5a9   : > { %v3353_v16 = vor.u32 %v16463_v49, %v12649_v32  ;;  %v4895_v57 = vmul.u32 24, %v4894_v50  ;;  %v3354_v56 = vrot.slane %v12828_v60, 1  ;;  %v3216_v20 = vrot.slane %v12649_v32, 7  ;;  %4575 = vst.msk [vmem:[%s12585_s8 + $0x28] sm:$0xff] %vm2190_vm6, %v4461_v47 }
 0x5aa   : > { %v6448_v4 = vmul.f32 %v7236_v24, %v4461_v47  ;;  %v12866_v55 = vmul.u32 43690, %v4902_v63  ;;  %v16464_v61 = vshrl.u32 %v10625_v58, 16  ;;  %v16465_v19 = vshll.u32 %v10625_v58, 16  ;;  %v16466_v47 = vld [vmem:[#allocation62_spill] sm:$0xff] }
 0x5ab   : > { %v3880_v10 = vsel %vm2435_vm11, %v3830_v25, %v3447_v30  ;;  %v4896_v35 = vsub.s32 %v12682_v21, %v4895_v57  ;;  %v4905_v22 = vmul.u32 43691, %v4902_v63  ;;  %v12874_v27 = vmul.u32 43691, %v4903_v5  ;;  %v7739_v63 = vld [vmem:[%s7879_s7 + $0x90] sm:$0xff]  }
 0x5ac   : > { %v3078_v14 = vrot.slane %v16464_v61, 1  ;;  %v3079_v3 = vrot.slane %v16465_v19, 2  ;;  %v6501_v26 = vsel %vm2190_vm6, %v6448_v4, 0.0  ;;  %v6602_v13 = vmul.f32 %v6448_v4, %v6448_v4 }
 0x5ad   : > { %v3930_v37 = vsel %vm2484_vm12, %v3880_v10, %v3530_v36  ;;  %v4909_v24 = vshll.u32 %v12866_v55, 16  ;;  %v6502_v44 = vadd.f32 %v6501_v26, %v6500_v8  ;;  %vm6066_vm0 = vcmp.ne.s32.totalorder %v4896_v35, 0  ;;  %v4463_v49 = vpop.f32.mrf.mxu1  ;;  %3391 = vrot.lane.b32.xlu2 %v16466_v47, %s7795_s13  ;;  %3314 = vrot.lane.b32.xlu1 %v7739_v63, %s7794_s12 }
 0x5ae   : > { %v4018_v12 = vshll.u32 %v3930_v37, 16  ;;  %v3219_v58 = vor.u32 %v12558_v53, %v3216_v20  ;;  %v6654_v21 = vsel %vm2190_vm6, %v6602_v13, 0.0  ;;  %vm6114_vm4 = vcmp.lt.s32.totalorder %v4896_v35, 0  ;;  %3261 = vrot.lane.b32.xlu0 %v12815_v31, %s7793_s11 }
 0x5af   : > { %v6210_v51 = vadd.s32 24, %v4896_v35  ;;  %v4908_v33 = vmul.u32 43690, %v4903_v5  ;;  %v6655_v43 = vadd.f32 %v6654_v21, %v6653_v48  ;;  %vm12887_vm3 = vmand %vm6114_vm4, %vm6066_vm0  ;;  %vm16469_vm5 = vsmask.f32 7424  ;;  %v3128_v4 = vpop.permute.xlu2 %3127 }
 0x5b0   : > { %v4020_v50 = vrot.slane %v4018_v12, 1  ;;  %v12894_v53 = vsel %vm16469_vm5, %v3353_v16, %v3354_v56  ;;  %v4911_v48 = vshll.u32 %v12874_v27, 16  ;;  %v4464_v5 = vadd.f32 %v4463_v49, %v4334_v39  ;;  %vm16470_vm1 = vmmov %vm16469_vm5  ;;  %v3272_v31 = vpop.permute.xlu0 %3271  ;;  %v3325_v10 = vpop.permute.xlu1 %3324 }
 0x5b1   : > { %vm4913_vm2 = vc.u32 %v4905_v22, %v4909_v24  ;;  %v4915_v25 = vadd.s32 %v4909_v24, %v4905_v22  ;;  %v12899_v57 = vor.u32 %v3079_v3, %v3078_v14  ;;  %v6258_v36 = vsel %vm12887_vm3, %v6210_v51, %v4896_v35  ;;  %v4336_v49 = vpop.f32.mrf.mxu0 }
 0x5b2   : > { %v4021_v30 = vsel %vm16470_vm1, %v12753_v11, %v4020_v50  ;;  %v4914_v16 = vsel %vm4913_vm2, 1, %v16449_v18  ;;  %v3424_v61 = vrot.slane %v16460_v29, 1  ;;  %4576 = vst.msk [vmem:[%s12585_s8 + $0x30] sm:$0xff] %vm2190_vm6, %v4464_v5  ;;  %v6449_v19 = vmul.f32 %v7237_v62, %v4464_v5  ;;  %vm16478_vm2 = vmmov %vm16470_vm1 }
 0x5b3   : > { %7214 = vmatmul.msk.bf16.gmra.mxu1 %vm2533_vm13, %v4021_v30  ;;  %v16471_v14 = vrot.slane %v16411_v9, 7  ;;  %vm16472_vm14 = vsmask.f32 256  ;;  %v4916_v11 = vadd.s32 %v4914_v16, %v4908_v33  ;;  %v12916_v22 = vshrl.u32 %v16460_v29, 16  ;;  %v12936_v33 = vld [vmem:[%s7879_s7 + $0xe8] sm:$0xff] }
 0x5b4   : > { %v4022_v35 = vshrl.u32 %v3930_v37, 16  ;;  %v3748_v26 = vsel %vm2288_vm8, %v12808_v40, %v3272_v31  ;;  %v4910_v62 = vshrl.u32 %v12866_v55, 16  ;;  %vm4917_vm15 = vc.u32 %v4915_v25, %v4911_v48  ;;  %v16475_v48 = vld [vmem:[#allocation88_spill] sm:$0xff] }
 0x5b5   : > { %v12913_v3 = vsel %vm16472_vm14, %v16471_v14, %v3219_v58  ;;  %v6503_v13 = vsel %vm2190_vm6, %v6449_v19, 0.0  ;;  %v6603_v24 = vmul.f32 %v6449_v19, %v6449_v19  ;;  %vm6306_vm0 = vcmp.lt.s32.totalorder %v6258_v36, 16  ;;  %v4465_v47 = vpop.f32.mrf.mxu1  ;;  %3133 = vrot.lane.b32.xlu2 %v12835_v28, %s7792_s10 }
 0x5b6   : > { %v4918_v9 = vsel %vm4917_vm15, 1, %v16449_v18  ;;  %v12923_v39 = vor.u32 %v4022_v35, %v4020_v50  ;;  %v6504_v12 = vadd.f32 %v6503_v13, %v6502_v44  ;;  %v4912_v58 = vshrl.u32 %v12874_v27, 16  ;;  %v16473_v44 = vld [vmem:[#allocation130_spill] sm:$0xff]  ;;  %3454 = vrot.lane.b32.xlu0 %v16475_v48, %s7796_s14 }
 0x5b7   : > { %v4920_v21 = vadd.s32 %v4918_v9, %v4916_v11  ;;  %v6656_v37 = vsel %vm2190_vm6, %v6603_v24, 0.0  ;;  %v12929_v40 = vsel %vm2239_vm7, %v12297_v41, %v3128_v4  ;;  %v3798_v55 = vsel %vm2337_vm9, %v3748_v26, %v3325_v10  ;;  %3537 = vrot.lane.b32.xlu1 %v16473_v44, %s7797_s22  ;;  %v12959_v4 = vpop.permute.xlu2 %3403 }
 0x5b8   : > { %v12933_v51 = vadd.s32 72, %v12181_v42  ;;  %v6657_v50 = vadd.f32 %v6656_v37, %v6655_v43  ;;  %v7238_v27 = vsel %vm6306_vm0, 1.0, %v16437_v38  ;;  %vm16474_vm4 = vsmask.f32 6400  ;;  %v3465_v31 = vpop.permute.xlu0 %3464  ;;  %v3548_v10 = vpop.permute.xlu1 %3547 }
 0x5b9   : > { %v4921_v41 = vadd.s32 %v4920_v21, %v4910_v62  ;;  %v12946_v63 = vsel %vm16474_vm4, %v12803_v6, %v12899_v57  ;;  %v4466_v8 = vadd.f32 %v4465_v47, %v4336_v49  ;;  %v16476_v43 = vrot.slane %v12555_v59, 1 }
 0x5ba   : > { %vm16477_vm3 = vcmask 1046528   ;;  %v4931_v28 = vand.u32 65535, %v12933_v51  ;;  %v4932_v25 = vshrl.u32 %v12933_v51, 16  ;;  %v3848_v6 = vsel %vm2386_vm10, %v3798_v55, %v12755_v0 }
 0x5bb   : > { %v12955_v5 = vsel %vm16477_vm3, %v16476_v43, %v3424_v61  ;;  %v4922_v30 = vadd.s32 %v4921_v41, %v4912_v58  ;;  %v3496_v36 = vrot.slane %v12916_v22, 1  ;;  %v3497_v16 = vrot.slane %v12828_v60, 2  ;;  %4577 = vst.msk [vmem:[%s12585_s8 + $0x38] sm:$0xff] %vm2190_vm6, %v4466_v8  ;;  %vm16480_vm3 = vmmov %vm16478_vm2 }
 0x5bc   : > { %v6450_v19 = vmul.f32 %v7238_v27, %v4466_v8  ;;  %v4935_v14 = vmul.u32 43690, %v4931_v28  ;;  %v12968_v11 = vshll.u32 %v12936_v33, 16  ;;  %v3224_v35 = vrot.slane %v12916_v22, 7 }
 0x5bd   : > { %v3898_v26 = vsel %vm2435_vm11, %v3848_v6, %v3465_v31  ;;  %v4923_v62 = vshrl.u32 %v4922_v30, 4  ;;  %v4934_v0 = vmul.u32 43691, %v4931_v28  ;;  %v12972_v13 = vmul.u32 43691, %v4932_v25  ;;  %3409 = vrot.lane.b32.xlu2 %v12894_v53, %s7795_s13 }
 0x5be   : > { %v6505_v24 = vsel %vm2190_vm6, %v6450_v19, 0.0  ;;  %v6604_v9 = vmul.f32 %v6450_v19, %v6450_v19  ;;  %v3948_v58 = vsel %vm2484_vm12, %v3898_v26, %v3548_v10  ;;  %v4938_v21 = vshll.u32 %v4935_v14, 16  ;;  %3279 = vrot.lane.b32.xlu0 %v12913_v3, %s7793_s11  ;;  %v4339_v26 = vpop.f32.mrf.mxu0 }
 0x5bf   : > { %v12976_v37 = vadd.f32 %v6505_v24, %v6504_v12  ;;  %v4081_v55 = vshll.u32 %v3948_v58, 16  ;;  %v4924_v49 = vmul.u32 24, %v4923_v62  ;;  %v3356_v47 = vor.u32 %v3354_v56, %v12916_v22  ;;  %3332 = vrot.lane.b32.xlu1 %v12555_v59, %s7794_s12  ;;  %v3112_v6 = vpop.permute.xlu2 %3111  ;;  %v16479_v59 = vld [vmem:[#allocation134_spill] sm:$0xff] }
 0x5c0   : > { %v6658_v27 = vsel %vm2190_vm6, %v6604_v9, 0.0  ;;  %v12982_v44 = vor.u32 %v3497_v16, %v3496_v36  ;;  %v4937_v41 = vmul.u32 43690, %v4932_v25  ;;  %v4940_v8 = vshll.u32 %v12972_v13, 16  ;;  %v3256_v3 = vpop.permute.xlu0 %3255  ;;  %v3309_v30 = vpop.permute.xlu1 %3308 }
 0x5c1   : > { %v12985_v48 = vadd.f32 %v6658_v27, %v6657_v50  ;;  %v4083_v43 = vrot.slane %v4081_v55, 1  ;;  %v4925_v12 = vsub.s32 %v12838_v54, %v4924_v49  ;;  %vm4942_vm5 = vc.u32 %v4934_v0, %v4938_v21 }
 0x5c2   : > { %v4943_v56 = vsel %vm4942_vm5, 1, %v16449_v18  ;;  %v4944_v28 = vadd.s32 %v4938_v21, %v4934_v0  ;;  %v3357_v25 = vrot.slane %v12968_v11, 1  ;;  %v3227_v50 = vor.u32 %v12828_v60, %v3224_v35 }
 0x5c3   : > { %v4084_v53 = vsel %vm16478_vm2, %v12817_v46, %v4083_v43  ;;  %vm6067_vm1 = vcmp.ne.s32.totalorder %v4925_v12, 0  ;;  %vm6115_vm14 = vcmp.lt.s32.totalorder %v4925_v12, 0  ;;  %v3083_v54 = vshrl.u32 %v16479_v59, 16 }
 0x5c4   : > { %7223 = vmatmul.msk.bf16.gmra.mxu3 %vm2533_vm13, %v4084_v53  ;;  %vm6163_vm15 = vmand %vm6115_vm14, %vm6067_vm1  ;;  %v6211_v36 = vadd.s32 24, %v4925_v12  ;;  %v4939_v16 = vshrl.u32 %v4935_v14, 16  ;;  %v4945_v19 = vadd.s32 %v4943_v56, %v4937_v41  ;;  %vm4946_vm0 = vc.u32 %v4944_v28, %v4940_v8  ;;  %v4468_v55 = vpop.f32.mrf.mxu1 }
 0x5c5   : > { %v4085_v31 = vshrl.u32 %v3948_v58, 16  ;;  %v3732_v60 = vsel %vm2288_vm8, %v12842_v2, %v3256_v3  ;;  %v3499_v46 = vsel %vm16474_vm4, %v12717_v45, %v12982_v44  ;;  %v4947_v10 = vsel %vm4946_vm0, 1, %v16449_v18  ;;  %v324_v58 = vld [vmem:[%s7879_s7 + $0xf0] sm:$0x1]  ;;  %3135 = vrot.lane.b32.xlu2 %v12946_v63, %s7792_s10  ;;  %vm16483_vm4 = vmmov %vm16480_vm3 }
 0x5c6   : > { %v6259_v62 = vsel %vm6163_vm15, %v6211_v36, %v4925_v12  ;;  %v4941_v0 = vshrl.u32 %v12972_v13, 16  ;;  %v4949_v24 = vadd.s32 %v4947_v10, %v4945_v19  ;;  %v3358_v14 = vsel %vm16480_vm3, %v3356_v47, %v3357_v25  ;;  %3472 = vrot.lane.b32.xlu0 %v12955_v5, %s7796_s14 }
 0x5c7   : > { %vm6307_vm5 = vcmp.lt.s32.totalorder %v6259_v62, 16  ;;  %vm16481_vm2 = vsmask.f32 256  ;;  %v3086_v9 = vshll.u32 %v16479_v59, 16  ;;  %v3426_v45 = vrot.slane %v12936_v33, 1  ;;  %3555 = vrot.lane.b32.xlu1 %v3499_v46, %s7797_s22  ;;  %v13042_v56 = vpop.permute.xlu2 %3387  ;;  %v13067_v46 = vpop.f32.mrf.mxu2 }
 0x5c8   : > { %v3228_v2 = vsel %vm16481_vm2, %v3216_v20, %v3227_v50  ;;  %v3782_v21 = vsel %vm2337_vm9, %v3732_v60, %v3309_v30  ;;  %v7239_v13 = vsel %vm6307_vm5, 1.0, %v16437_v38  ;;  %v4950_v49 = vadd.s32 %v4949_v24, %v4939_v16  ;;  %v3449_v50 = vpop.permute.xlu0 %3448  ;;  %v4341_v24 = vpop.f32.mrf.mxu0 }
 0x5c9   : > { %v13022_v27 = vshrl.u32 %v12936_v33, 16  ;;  %v13024_v47 = vor.u32 %v4085_v31, %v4083_v43  ;;  %v13028_v32 = vsel %vm2239_vm7, %v12214_v52, %v3112_v6  ;;  %v4469_v20 = vadd.f32 %v4468_v55, %v4339_v26  ;;  %v3532_v6 = vpop.permute.xlu1 %3531 }
 0x5ca   : > { %v4951_v41 = vadd.s32 %v4950_v49, %v4941_v0  ;;  %v13035_v8 = vrot.slane %v3083_v54, 1  ;;  %v3288_v12 = vunpack.c.l.b16 %v324_v58  ;;  %v13038_v43 = vadd.s32 208, %v12181_v42 }
 0x5cb   : > { %4578 = vst.msk [vmem:[%s12585_s8 + $0x40] sm:$0xff] %vm2190_vm6, %v4469_v20  ;;  %v6451_v52 = vmul.f32 %v7239_v13, %v4469_v20  ;;  %v3832_v63 = vsel %vm2386_vm10, %v3782_v21, %v12858_v23  ;;  %v3088_v28 = vrot.slane %v3086_v9, 2  ;;  %vm16482_vm1 = vcmask 1046528  }
 0x5cc   : > { %v13051_v5 = vsel %vm16482_vm1, %v3424_v61, %v3426_v45  ;;  %v4952_v53 = vshrl.u32 %v4951_v41, 4  ;;  %v3500_v59 = vrot.slane %v13022_v27, 1  ;;  %v3501_v54 = vrot.slane %v12968_v11, 2  ;;  %v4470_v9 = vpop.f32.mrf.mxu1 }
 0x5cd   : > { %v5424_v3 = vand.u32 65535, %v13038_v43  ;;  %v6507_v30 = vsel %vm2190_vm6, %v6451_v52, 0.0  ;;  %v6605_v23 = vmul.f32 %v6451_v52, %v6451_v52  ;;  %v3882_v36 = vsel %vm2435_vm11, %v3832_v63, %v3449_v50  ;;  %3411 = vrot.lane.b32.xlu2 %v3358_v14, %s7795_s13 }
 0x5ce   : > { %v5425_v16 = vshrl.u32 %v13038_v43, 16  ;;  %v13060_v19 = vadd.f32 %v6507_v30, %v12976_v37  ;;  %v13063_v61 = vsel %vm2484_vm12, %v3882_v36, %v3532_v6  ;;  %v4953_v31 = vmul.u32 24, %v4952_v53  ;;  %3281 = vrot.lane.b32.xlu0 %v3228_v2, %s7793_s11 }
 0x5cf   : > { %v13065_v60 = vpack.c.b16 %v3288_v12, %v3288_v12  ;;  %v6660_v10 = vsel %vm2190_vm6, %v6605_v23, 0.0  ;;  %v4025_v26 = vshll.u32 %v13063_v61, 16  ;;  %v3089_v62 = vor.u32 %v3088_v28, %v13035_v8  ;;  %3334 = vrot.lane.b32.xlu1 %v16460_v29, %s7794_s12  ;;  %v13090_v12 = vpop.permute.xlu2 %3129 }
 0x5d0   : > { %v3232_v0 = vrot.slane %v13022_v27, 7  ;;  %v13074_v37 = vadd.f32 %v6660_v10, %v12985_v48  ;;  %v4954_v58 = vsub.s32 %v12933_v51, %v4953_v31  ;;  %v13077_v21 = vor.u32 %v3501_v54, %v3500_v59  ;;  %v3274_v2 = vpop.permute.xlu0 %3273  ;;  %v326_v59 = vld [vmem:[%s7879_s7 + $0xf0] sm:$0x3] }
 0x5d1   : > { %v5427_v55 = vmul.u32 43691, %v5424_v3  ;;  %v13079_v13 = vrot.slane %v4025_v26, 1  ;;  %v4471_v49 = vadd.f32 %v4470_v9, %v4341_v24  ;;  %v5428_v20 = vmul.u32 43690, %v5424_v3  ;;  %v3327_v50 = vpop.permute.xlu1 %3326 }
 0x5d2   : > { %v13084_v41 = vmul.u32 43691, %v5425_v16  ;;  %vm6068_vm14 = vcmp.ne.s32.totalorder %v4954_v58, 0  ;;  %vm6116_vm15 = vcmp.lt.s32.totalorder %v4954_v58, 0  ;;  %v6212_v48 = vadd.s32 24, %v4954_v58 }
 0x5d3   : > { %v3361_v51 = vshll.u32 %v13065_v60, 16  ;;  %4579 = vst.msk [vmem:[%s12585_s8 + $0x48] sm:$0xff] %vm2190_vm6, %v4471_v49  ;;  %vm6164_vm0 = vmand %vm6116_vm15, %vm6068_vm14  ;;  %v4028_v29 = vsel %vm16483_vm4, %v12923_v39, %v13079_v13  ;;  %v3359_v14 = vor.u32 %v3357_v25, %v13022_v27  ;;  %v5430_v52 = vmul.u32 43690, %v5425_v16 }
 0x5d4   : > { %v5431_v63 = vshll.u32 %v5428_v20, 16  ;;  %v6260_v28 = vsel %vm6164_vm0, %v6212_v48, %v4954_v58  ;;  %7215 = vmatmul.msk.bf16.gmra.mxu1 %vm2533_vm13, %v4028_v29  ;;  %vm16484_vm3 = vsmask.f32 6400  ;;  %v3235_v53 = vor.u32 %v12968_v11, %v3232_v0  ;;  %vm16486_vm15 = vmmov %vm16483_vm4 }
 0x5d5   : > { %v3090_v6 = vsel %vm16484_vm3, %v12899_v57, %v3089_v62  ;;  %v5433_v39 = vshll.u32 %v13084_v41, 16  ;;  %vm6308_vm5 = vcmp.lt.s32.totalorder %v6260_v28, 16  ;;  %v3750_v25 = vsel %vm2288_vm8, %v12929_v40, %v3274_v2  ;;  %vm16485_vm2 = vmmov %vm16484_vm3 }
 0x5d6   : > { %v3503_v54 = vsel %vm16485_vm2, %v12982_v44, %v13077_v21  ;;  %vm5435_vm1 = vc.u32 %v5427_v55, %v5431_v63  ;;  %v7240_v3 = vsel %vm6308_vm5, 1.0, %v16437_v38  ;;  %v3363_v30 = vrot.slane %v3361_v51, 1  ;;  %v13118_v44 = vpop.f32.mrf.mxu2  ;;  %3137 = vrot.lane.b32.xlu2 %v3090_v6, %s7792_s10  ;;  %3474 = vrot.lane.b32.xlu0 %v13051_v5, %s7796_s14  ;;  %vm16488_vm3 = vmmov %vm16486_vm15 }
 0x5d7   : > { %v5436_v57 = vsel %vm5435_vm1, 1, %v16449_v18  ;;  %v5437_v23 = vadd.s32 %v5431_v63, %v5427_v55  ;;  %v6452_v36 = vmul.f32 %v7240_v3, %v4471_v49  ;;  %v5432_v11 = vshrl.u32 %v5428_v20, 16  ;;  %3557 = vrot.lane.b32.xlu1 %v3503_v54, %s7797_s22  ;;  %v13134_v51 = vpop.permute.xlu2 %3405 }
 0x5d8   : > { %v5438_v16 = vadd.s32 %v5436_v57, %v5430_v52  ;;  %v3418_v31 = vunpack.c.l.b16 %v326_v59  ;;  %v3800_v10 = vsel %vm2337_vm9, %v3750_v25, %v3327_v50  ;;  %v5434_v26 = vshrl.u32 %v13084_v41, 16  ;;  %v3467_v28 = vpop.permute.xlu0 %3466 }
 0x5d9   : > { %vm5439_vm14 = vc.u32 %v5437_v23, %v5433_v39  ;;  %v13116_v40 = vadd.s32 216, %v12181_v42  ;;  %v6509_v62 = vsel %vm2190_vm6, %v6452_v36, 0.0  ;;  %v6606_v24 = vmul.f32 %v6452_v36, %v6452_v36  ;;  %v3550_v2 = vpop.permute.xlu1 %3549 }
 0x5da   : > { %v5440_v9 = vsel %vm5439_vm14, 1, %v16449_v18  ;;  %v13124_v58 = vpack.c.b16 %v3418_v31, %v3418_v31  ;;  %v13127_v55 = vadd.f32 %v6509_v62, %v13060_v19  ;;  %v3364_v29 = vsel %vm16486_vm15, %v3359_v14, %v3363_v30 }
 0x5db   : > { %v5442_v49 = vadd.s32 %v5440_v9, %v5438_v16  ;;  %v5453_v20 = vand.u32 65535, %v13116_v40  ;;  %v5454_v41 = vshrl.u32 %v13116_v40, 16  ;;  %v6662_v48 = vsel %vm2190_vm6, %v6606_v24, 0.0 }
 0x5dc   : > { %v3505_v52 = vshrl.u32 %v13124_v58, 16  ;;  %v3508_v63 = vshll.u32 %v13124_v58, 16  ;;  %v13140_v19 = vadd.f32 %v6662_v48, %v13074_v37  ;;  %v3850_v5 = vsel %vm2386_vm10, %v3800_v10, %v12959_v4 }
 0x5dd   : > { %v5443_v50 = vadd.s32 %v5442_v49, %v5432_v11  ;;  %v5457_v6 = vmul.u32 43690, %v5453_v20  ;;  %v3900_v39 = vsel %vm2435_vm11, %v3850_v5, %v3467_v28  ;;  %v5456_v14 = vmul.u32 43691, %v5453_v20 }
 0x5de   : > { %v13145_v59 = vrot.slane %v3505_v52, 1  ;;  %v3510_v25 = vrot.slane %v3508_v63, 2  ;;  %v13148_v54 = vsel %vm2484_vm12, %v3900_v39, %v3550_v2  ;;  %v5458_v30 = vmul.u32 43691, %v5454_v41  ;;  %3413 = vrot.lane.b32.xlu2 %v3364_v29, %s7795_s13  ;;  %v4384_v49 = vpop.f32.mrf.mxu2 }
 0x5df   : > { %v5444_v3 = vadd.s32 %v5443_v50, %v5434_v26  ;;  %v13151_v37 = vadd.s32 80, %v12181_v42  ;;  %v4088_v4 = vshll.u32 %v13148_v54, 16  ;;  %vm16487_vm0 = vsmask.f32 256  ;;  %3336 = vrot.lane.b32.xlu1 %v12936_v33, %s7794_s12  ;;  %v13179_v50 = vpop.permute.xlu2 %3113 }
 0x5e0   : > { %v3236_v57 = vsel %vm16487_vm0, %v3224_v35, %v3235_v53  ;;  %v5459_v23 = vmul.u32 43690, %v5454_v41  ;;  %v5460_v36 = vshll.u32 %v5457_v6, 16  ;;  %v3511_v16 = vor.u32 %v3510_v25, %v13145_v59  ;;  %v3258_v29 = vpop.permute.xlu0 %3257 }
 0x5e1   : > { %v5445_v11 = vshrl.u32 %v5444_v3, 4  ;;  %v5462_v31 = vshll.u32 %v5458_v30, 16  ;;  %v13159_v10 = vadd.s32 88, %v12181_v42  ;;  %v13161_v26 = vrot.slane %v4088_v4, 1  ;;  %3283 = vrot.lane.b32.xlu0 %v3236_v57, %s7793_s11  ;;  %v3311_v52 = vpop.permute.xlu1 %3310  ;;  %v16489_v3 = vld [vmem:[#allocation250_spill] sm:$0xff] }
 0x5e2   : > { %v3428_v22 = vrot.slane %v13124_v58, 1  ;;  %vm5464_vm4 = vc.u32 %v5456_v14, %v5460_v36  ;;  %v5466_v35 = vadd.s32 %v5460_v36, %v5456_v14  ;;  %v4960_v24 = vand.u32 65535, %v13151_v37 }
 0x5e3   : > { %v5446_v53 = vmul.u32 24, %v5445_v11  ;;  %v5465_v62 = vsel %vm5464_vm4, 1, %v16449_v18  ;;  %v4961_v9 = vshrl.u32 %v13151_v37, 16  ;;  %v4091_v20 = vsel %vm16488_vm3, %v13024_v47, %v13161_v26 }
 0x5e4   : > { %v5461_v41 = vshrl.u32 %v5457_v6, 16  ;;  %v5467_v48 = vadd.s32 %v5465_v62, %v5459_v23  ;;  %vm5468_vm5 = vc.u32 %v5466_v35, %v5462_v31  ;;  %7224 = vmatmul.msk.bf16.gmra.mxu3 %vm2533_vm13, %v4091_v20  ;;  %v3512_v5 = vsel %vm16485_vm2, %v13077_v21, %v3511_v16 }
 0x5e5   : > { %v5447_v63 = vsub.s32 %v13038_v43, %v5446_v53  ;;  %v5463_v28 = vshrl.u32 %v5458_v30, 16  ;;  %v5469_v2 = vsel %vm5468_vm5, 1, %v16449_v18  ;;  %v4963_v25 = vmul.u32 43691, %v4960_v24  ;;  %v4513_v30 = vpop.f32.mrf.mxu3 }
 0x5e6   : > { %v5471_v39 = vadd.s32 %v5469_v2, %v5467_v48  ;;  %v13181_v47 = vmul.u32 43690, %v4960_v24  ;;  %v13183_v6 = vmul.u32 43691, %v4961_v9  ;;  %v3734_v14 = vsel %vm2288_vm8, %v13028_v32, %v3258_v29  ;;  %3139 = vrot.lane.b32.xlu2 %v13035_v8, %s7792_s10 }
 0x5e7   : > { %vm6085_vm1 = vcmp.ne.s32.totalorder %v5447_v63, 0  ;;  %vm6133_vm14 = vcmp.lt.s32.totalorder %v5447_v63, 0  ;;  %v6229_v43 = vadd.s32 24, %v5447_v63  ;;  %v13190_v21 = vsel %vm2190_vm6, %v12125_v7, %v16489_v3  ;;  %3559 = vrot.lane.b32.xlu1 %v3512_v5, %s7797_s22 }
 0x5e8   : > { %vm13192_vm15 = vmand %vm6133_vm14, %vm6085_vm1  ;;  %vm16492_vm0 = vcmask 1046528   ;;  %v5472_v57 = vadd.s32 %v5471_v39, %v5461_v41  ;;  %v4967_v23 = vshll.u32 %v13181_v47, 16  ;;  %v4514_v36 = vadd.f32 %v4513_v30, %v4384_v49  ;;  %v3451_v41 = vpop.permute.xlu0 %3450  ;;  %v4386_v39 = vpop.f32.mrf.mxu2 }
 0x5e9   : > { %v3429_v32 = vsel %vm16492_vm0, %v3426_v45, %v3428_v22  ;;  %v6277_v7 = vsel %vm13192_vm15, %v6229_v43, %v5447_v63  ;;  %v4966_v11 = vmul.u32 43690, %v4961_v9  ;;  %v4969_v16 = vshll.u32 %v13183_v6, 16  ;;  %v16493_v45 = vld [vmem:[#allocation204_spill] sm:$0xff]  ;;  %v3534_v48 = vpop.permute.xlu1 %3533  ;;  %v16495_v63 = vld [vmem:[#allocation293_spill] sm:$0xff]  ;;  %v13247_v30 = vpop.permute.xlu2 %3389 }
 0x5ea   : > { %v3784_v31 = vsel %vm2337_vm9, %v3734_v14, %v3311_v52  ;;  %v5473_v33 = vadd.s32 %v5472_v57, %v5463_v28  ;;  %vm4971_vm4 = vc.u32 %v4963_v25, %v4967_v23  ;;  %v13212_v35 = vsel %vm2190_vm6, %v12210_v15, %v16493_v45  ;;  %4596 = vst.msk [vmem:[%s12585_s8 + $0xd0] sm:$0xff] %vm2190_vm6, %v4514_v36  ;;  %v16494_v9 = vld [vmem:[#allocation248_spill] sm:$0xff] }
 0x5eb   : > { %3476 = vrot.lane.b32.xlu0 %v3429_v32, %s7796_s14  ;;  %v4972_v53 = vsel %vm4971_vm4, 1, %v16449_v18  ;;  %v4973_v62 = vadd.s32 %v4967_v23, %v4963_v25  ;;  %v4989_v24 = vand.u32 65535, %v13159_v10  ;;  %v13222_v8 = vsel %vm2190_vm6, %v12150_v1, %v16494_v9  ;;  %v16496_v1 = vld [vmem:[#allocation338_spill] sm:$0xff]  ;;  %v4344_v25 = vpop.f32.mrf.mxu0 }
 0x5ec   : > { %vm6325_vm3 = vcmp.lt.s32.totalorder %v6277_v7, 16  ;;  %v5474_v49 = vshrl.u32 %v5473_v33, 4  ;;  %v4990_v20 = vshrl.u32 %v13159_v10, 16  ;;  %v3834_v15 = vsel %vm2386_vm10, %v3784_v31, %v13042_v56 }
 0x5ed   : > { %v4974_v29 = vadd.s32 %v4972_v53, %v4966_v11  ;;  %vm4975_vm5 = vc.u32 %v4973_v62, %v4969_v16  ;;  %v13227_v52 = vmul.u32 43690, %v4989_v24  ;;  %v13232_v5 = vsel %vm2190_vm6, %v12226_v17, %v16495_v63  ;;  %v4515_v4 = vpop.f32.mrf.mxu3  ;;  %v4473_v45 = vpop.f32.mrf.mxu1 }
 0x5ee   : > { %v13237_v28 = vsel %vm2190_vm6, %v12167_v34, %v16496_v1  ;;  %v4029_v2 = vshrl.u32 %v13063_v61, 16  ;;  %v3884_v56 = vsel %vm2435_vm11, %v3834_v15, %v3451_v41  ;;  %v7257_v14 = vsel %vm6325_vm3, 1.0, %v16437_v38 }
 0x5ef   : > { %v13243_v43 = vsel %vm2484_vm12, %v3884_v56, %v3534_v48  ;;  %v4968_v3 = vshrl.u32 %v13181_v47, 16  ;;  %v4976_v17 = vsel %vm4975_vm5, 1, %v16449_v18  ;;  %v5475_v61 = vmul.u32 24, %v5474_v49  ;;  %3338 = vrot.lane.b32.xlu1 %v13065_v60, %s7794_s12  ;;  %v16498_v49 = vld [vmem:[#allocation363_spill] sm:$0xff] }
 0x5f0   : > { %v4032_v34 = vshll.u32 %v13243_v43, 16  ;;  %v4992_v32 = vmul.u32 43691, %v4989_v24  ;;  %v13250_v57 = vmul.u32 43691, %v4990_v20  ;;  %v13252_v23 = vadd.f32 %v4515_v4, %v4386_v39 }
 0x5f1   : > { %v4970_v7 = vshrl.u32 %v13183_v6, 16  ;;  %v4978_v11 = vadd.s32 %v4976_v17, %v4974_v29  ;;  %v4996_v16 = vshll.u32 %v13227_v52, 16  ;;  %v4031_v47 = vor.u32 %v4029_v2, %v13079_v13 }
 0x5f2   : > { %v4092_v31 = vshrl.u32 %v13148_v54, 16  ;;  %v13258_v33 = vrot.slane %v4032_v34, 1  ;;  %v4995_v53 = vmul.u32 43690, %v4990_v20  ;;  %v13262_v62 = vmul.f32 %v7257_v14, %v4514_v36  ;;  %4597 = vst.msk [vmem:[%s12585_s8 + $0xd8] sm:$0xff] %vm2190_vm6, %v13252_v23  ;;  %v13310_v34 = vpop.permute.xlu2 %3131 }
 0x5f3   : > { %v13267_v6 = vadd.f32 %v4473_v45, %v4344_v25  ;;  %v4979_v24 = vadd.s32 %v4978_v11, %v4968_v3  ;;  %3285 = vrot.lane.b32.xlu0 %v3232_v0, %s7793_s11  ;;  %v13273_v13 = vadd.s32 224, %v12181_v42  ;;  %v13276_v54 = vsub.s32 %v13116_v40, %v5475_v61  ;;  %v3276_v0 = vpop.permute.xlu0 %3275  ;;  %v3329_v40 = vpop.permute.xlu1 %3328 }
 0x5f4   : > { %vm16497_vm2 = vsmask.f32 7424  ;;  %v4998_v9 = vshll.u32 %v13250_v57, 16  ;;  %vm5000_vm1 = vc.u32 %v4992_v32, %v4996_v16  ;;  %v3702_v20 = vsel %vm2239_vm7, %v16498_v49, %v13090_v12 }
 0x5f5   : > { %v4035_v36 = vsel %vm16497_vm2, %v4031_v47, %v13258_v33  ;;  %v13285_v15 = vor.u32 %v4092_v31, %v13161_v26  ;;  %4580 = vst.msk [vmem:[%s12585_s8 + $0x50] sm:$0xff] %vm2190_vm6, %v13267_v6  ;;  %v4980_v27 = vadd.s32 %v4979_v24, %v4970_v7  ;;  %v5001_v41 = vsel %vm5000_vm1, 1, %v16449_v18 }
 0x5f6   : > { %7216 = vmatmul.msk.bf16.gmra.mxu1 %vm2533_vm13, %v4035_v36  ;;  %v13295_v48 = vsel %vm2239_vm7, %v13190_v21, %v13179_v50  ;;  %v3752_v12 = vsel %vm2288_vm8, %v3702_v20, %v3276_v0  ;;  %v5002_v29 = vadd.s32 %v4996_v16, %v4992_v32  ;;  %v5003_v26 = vadd.s32 %v5001_v41, %v4995_v53  ;;  %v4346_v21 = vpop.f32.mrf.mxu0 }
 0x5f7   : > { %v13300_v63 = vsel %vm2190_vm6, %v13262_v62, 0.0  ;;  %v4981_v1 = vshrl.u32 %v4980_v27, 4  ;;  %v4997_v2 = vshrl.u32 %v13227_v52, 16  ;;  %v5482_v56 = vand.u32 65535, %v13273_v13  ;;  %v4475_v52 = vpop.f32.mrf.mxu1  ;;  %3561 = vrot.lane.b32.xlu1 %v13145_v59, %s7797_s22 }
 0x5f8   : > { %vm6086_vm14 = vcmp.ne.s32.totalorder %v13276_v54, 0  ;;  %vm5004_vm15 = vc.u32 %v5002_v29, %v4998_v9  ;;  %v5483_v39 = vshrl.u32 %v13273_v13, 16  ;;  %v3365_v50 = vshrl.u32 %v13065_v60, 16 }
 0x5f9   : > { %v4982_v25 = vmul.u32 24, %v4981_v1  ;;  %v3802_v14 = vsel %vm2337_vm9, %v3752_v12, %v3329_v40  ;;  %v4999_v3 = vshrl.u32 %v13250_v57, 16  ;;  %v5005_v17 = vsel %vm5004_vm15, 1, %v16449_v18 }
 0x5fa   : > { %v5007_v4 = vadd.s32 %v5005_v17, %v5003_v26  ;;  %v5485_v61 = vmul.u32 43691, %v5482_v56  ;;  %v5486_v32 = vmul.u32 43690, %v5482_v56  ;;  %v13314_v7 = vmul.u32 43691, %v5483_v39  ;;  %3415 = vrot.lane.b32.xlu2 %v3365_v50, %s7795_s13 }
 0x5fb   : > { %vm6134_vm0 = vcmp.lt.s32.totalorder %v13276_v54, 0  ;;  %v13319_v60 = vadd.s32 24, %v13276_v54  ;;  %v4983_v57 = vsub.s32 %v13151_v37, %v4982_v25  ;;  %v13322_v11 = vadd.f32 %v4475_v52, %v4346_v21  ;;  %3478 = vrot.lane.b32.xlu0 %v3428_v22, %s7796_s14  ;;  %v3469_v53 = vpop.permute.xlu0 %3468  ;;  %v3552_v37 = vpop.permute.xlu1 %3551 }
 0x5fc   : > { %v5008_v59 = vadd.s32 %v5007_v4, %v4997_v2  ;;  %v3852_v16 = vsel %vm2386_vm10, %v3802_v14, %v13134_v51  ;;  %v5488_v47 = vmul.u32 43690, %v5483_v39  ;;  %v5489_v31 = vshll.u32 %v5486_v32, 16  ;;  %vm13345_vm1 = vmand %vm6134_vm0, %vm6086_vm14  ;;  %v13364_v4 = vpop.permute.xlu2 %3407 }
 0x5fd   : > { %vm6069_vm4 = vcmp.ne.s32.totalorder %v4983_v57, 0  ;;  %vm6117_vm3 = vcmp.lt.s32.totalorder %v4983_v57, 0  ;;  %v6213_v45 = vadd.s32 24, %v4983_v57  ;;  %4581 = vst.msk [vmem:[%s12585_s8 + $0x58] sm:$0xff] %vm2190_vm6, %v13322_v11  ;;  %v5491_v24 = vshll.u32 %v13314_v7, 16 }
 0x5fe   : > { %vm6165_vm5 = vmand %vm6117_vm3, %vm6069_vm4  ;;  %v5009_v36 = vadd.s32 %v5008_v59, %v4999_v3  ;;  %v3902_v58 = vsel %vm2435_vm11, %v3852_v16, %v3469_v53  ;;  %vm5493_vm2 = vc.u32 %v5485_v61, %v5489_v31  ;;  %v5495_v22 = vadd.s32 %v5489_v31, %v5485_v61  ;;  %v4389_v3 = vpop.f32.mrf.mxu2 }
 0x5ff   : > { %v6261_v9 = vsel %vm6165_vm5, %v6213_v45, %v4983_v57  ;;  %v13335_v51 = vsel %vm2484_vm12, %v3902_v58, %v3552_v37  ;;  %v5494_v49 = vsel %vm5493_vm2, 1, %v16449_v18  ;;  %v13339_v20 = vadd.s32 232, %v12181_v42 }
 0x600   : > { %vm6309_vm15 = vcmp.lt.s32.totalorder %v6261_v9, 16  ;;  %v5010_v0 = vshrl.u32 %v5009_v36, 4  ;;  %v4095_v40 = vshll.u32 %v13335_v51, 16  ;;  %v5490_v41 = vshrl.u32 %v5486_v32, 16 }
 0x601   : > { %v7241_v12 = vsel %vm6309_vm15, 1.0, %v16437_v38  ;;  %v5496_v29 = vadd.s32 %v5494_v49, %v5488_v47  ;;  %vm5497_vm4 = vc.u32 %v5495_v22, %v5491_v24  ;;  %v5511_v26 = vand.u32 65535, %v13339_v20 }
 0x602   : > { %v6453_v1 = vmul.f32 %v7241_v12, %v13267_v6  ;;  %v5011_v2 = vmul.u32 24, %v5010_v0  ;;  %v13353_v56 = vrot.slane %v4095_v40, 1  ;;  %v5498_v39 = vsel %vm5497_vm4, 1, %v16449_v18 }
 0x603   : > { %v6278_v50 = vsel %vm13345_vm1, %v13319_v60, %v13276_v54  ;;  %v5492_v21 = vshrl.u32 %v13314_v7, 16  ;;  %v5500_v25 = vadd.s32 %v5498_v39, %v5496_v29  ;;  %v5512_v14 = vshrl.u32 %v13339_v20, 16  ;;  %v3260_v7 = vpop.permute.xlu0 %3259  ;;  %v3313_v60 = vpop.permute.xlu1 %3312 }
 0x604   : > { %v6511_v17 = vsel %vm2190_vm6, %v6453_v1, 0.0  ;;  %v6607_v52 = vmul.f32 %v6453_v1, %v6453_v1  ;;  %v5012_v6 = vsub.s32 %v13159_v10, %v5011_v2  ;;  %v13366_v61 = vmul.u32 43690, %v5511_v26  ;;  %v4518_v24 = vpop.f32.mrf.mxu3 }
 0x605   : > { %v6512_v32 = vadd.f32 %v6511_v17, %v13127_v55  ;;  %vm16501_vm14 = vsmask.f32 7424  ;;  %v5501_v57 = vadd.s32 %v5500_v25, %v5490_v41  ;;  %v5514_v59 = vmul.u32 43691, %v5511_v26  ;;  %v13409_v25 = vpop.permute.xlu2 %3115 }
 0x606   : > { %v4098_v54 = vsel %vm16501_vm14, %v13285_v15, %v13353_v56  ;;  %v6664_v16 = vsel %vm2190_vm6, %v6607_v52, 0.0  ;;  %vm6070_vm0 = vcmp.ne.s32.totalorder %v5012_v6, 0  ;;  %vm6118_vm3 = vcmp.lt.s32.totalorder %v5012_v6, 0 }
 0x607   : > { %v6214_v47 = vadd.s32 24, %v5012_v6  ;;  %7225 = vmatmul.msk.bf16.gmra.mxu3 %vm2533_vm13, %v4098_v54  ;;  %v6665_v10 = vadd.f32 %v6664_v16, %v13140_v19  ;;  %vm6166_vm5 = vmand %vm6118_vm3, %vm6070_vm0  ;;  %v3736_v55 = vsel %vm2288_vm8, %v13295_v48, %v3260_v7  ;;  %v5502_v31 = vadd.s32 %v5501_v57, %v5492_v21 }
 0x608   : > { %v13377_v15 = vmul.u32 43691, %v5512_v14  ;;  %vm13379_vm2 = vcmp.lt.s32.totalorder %v6278_v50, 16  ;;  %v3786_v37 = vsel %vm2337_vm9, %v3736_v55, %v3313_v60  ;;  %v5518_v36 = vshll.u32 %v13366_v61, 16 }
 0x609   : > { %v6262_v53 = vsel %vm6166_vm5, %v6214_v47, %v5012_v6  ;;  %v13385_v19 = vadd.f32 %v4518_v24, %v4389_v3  ;;  %v5503_v58 = vshrl.u32 %v5502_v31, 4  ;;  %v5517_v22 = vmul.u32 43690, %v5512_v14  ;;  %v4391_v3 = vpop.f32.mrf.mxu2 }
 0x60a   : > { %vm6310_vm1 = vcmp.lt.s32.totalorder %v6262_v53, 16  ;;  %v6623_v48 = vmul.f32 %v13262_v62, %v13262_v62  ;;  %v4036_v9 = vshrl.u32 %v13243_v43, 16  ;;  %v5520_v27 = vshll.u32 %v13377_v15, 16 }
 0x60b   : > { %v7242_v49 = vsel %vm6310_vm1, 1.0, %v16437_v38  ;;  %4598 = vst.msk [vmem:[%s12585_s8 + $0xe0] sm:$0xff] %vm2190_vm6, %v13385_v19  ;;  %v5504_v40 = vmul.u32 24, %v5503_v58  ;;  %vm5522_vm15 = vc.u32 %v5514_v59, %v5518_v36  ;;  %v5524_v41 = vadd.s32 %v5518_v36, %v5514_v59  ;;  %v3453_v2 = vpop.permute.xlu0 %3452  ;;  %v3536_v39 = vpop.permute.xlu1 %3535 }
 0x60c   : > { %v6454_v0 = vmul.f32 %v7242_v49, %v13322_v11  ;;  %v7258_v12 = vsel %vm13379_vm2, 1.0, %v16437_v38  ;;  %v3836_v62 = vsel %vm2386_vm10, %v3786_v37, %v13247_v30  ;;  %v5523_v43 = vsel %vm5522_vm15, 1, %v16449_v18  ;;  %v4520_v54 = vpop.f32.mrf.mxu3 }
 0x60d   : > { %v13403_v29 = vadd.s32 96, %v12181_v42  ;;  %v5505_v1 = vsub.s32 %v13273_v13, %v5504_v40  ;;  %v5525_v50 = vadd.s32 %v5523_v43, %v5517_v22  ;;  %v3886_v14 = vsel %vm2435_vm11, %v3836_v62, %v3453_v2  ;;  %v4349_v13 = vpop.f32.mrf.mxu0  ;;  %v4478_v31 = vpop.f32.mrf.mxu1 }
 0x60e   : > { %v6513_v11 = vsel %vm2190_vm6, %v6454_v0, 0.0  ;;  %v6608_v26 = vmul.f32 %v6454_v0, %v6454_v0  ;;  %vm5526_vm4 = vc.u32 %v5524_v41, %v5520_v27  ;;  %v5519_v52 = vshrl.u32 %v13366_v61, 16 }
 0x60f   : > { %v13407_v21 = vadd.f32 %v6513_v11, %v6512_v32  ;;  %v5018_v30 = vand.u32 65535, %v13403_v29  ;;  %vm6087_vm14 = vcmp.ne.s32.totalorder %v5505_v1, 0  ;;  %vm6135_vm0 = vcmp.lt.s32.totalorder %v5505_v1, 0 }
 0x610   : > { %v6666_v17 = vsel %vm2190_vm6, %v6608_v26, 0.0  ;;  %v13418_v32 = vsel %vm2484_vm12, %v3886_v14, %v3536_v39  ;;  %v5527_v7 = vsel %vm5526_vm4, 1, %v16449_v18  ;;  %v5019_v60 = vshrl.u32 %v13403_v29, 16  ;;  %vm13426_vm3 = vmand %vm6135_vm0, %vm6087_vm14 }
 0x611   : > { %v13415_v6 = vadd.f32 %v6666_v17, %v6665_v10  ;;  %v6470_v57 = vmul.f32 %v7258_v12, %v13252_v23  ;;  %v6231_v59 = vadd.s32 24, %v5505_v1  ;;  %v4039_v16 = vshll.u32 %v13418_v32, 16 }
 0x612   : > { %v13424_v47 = vadd.f32 %v4520_v54, %v4391_v3  ;;  %v5521_v10 = vshrl.u32 %v13377_v15, 16  ;;  %v5529_v55 = vadd.s32 %v5527_v7, %v5525_v50  ;;  %v5021_v45 = vmul.u32 43691, %v5018_v30 }
 0x613   : > { %v5022_v53 = vmul.u32 43690, %v5018_v30  ;;  %v13432_v37 = vsel %vm2190_vm6, %v6623_v48, 0.0  ;;  %v13434_v23 = vrot.slane %v4039_v16, 1  ;;  %v13439_v24 = vadd.f32 %v4478_v31, %v4349_v13  ;;  %v3278_v40 = vpop.permute.xlu0 %3277  ;;  %v3331_v41 = vpop.permute.xlu1 %3330 }
 0x614   : > { %4599 = vst.msk [vmem:[%s12585_s8 + $0xe8] sm:$0xff] %vm2190_vm6, %v13424_v47  ;;  %v5023_v36 = vmul.u32 43691, %v5019_v60  ;;  %v4038_v58 = vor.u32 %v4036_v9, %v13258_v33  ;;  %v5530_v22 = vadd.s32 %v5529_v55, %v5519_v52  ;;  %v5024_v15 = vmul.u32 43690, %v5019_v60 }
 0x615   : > { %v5025_v49 = vshll.u32 %v5022_v53, 16  ;;  %v3704_v27 = vsel %vm2239_vm7, %v13222_v8, %v13310_v34  ;;  %v6279_v48 = vsel %vm13426_vm3, %v6231_v59, %v5505_v1  ;;  %4582 = vst.msk [vmem:[%s12585_s8 + $0x60] sm:$0xff] %vm2190_vm6, %v13439_v24  ;;  %v13451_v12 = vadd.s32 104, %v12181_v42  ;;  %v13466_v1 = vpop.permute.xlu2 %3391  ;;  %v4351_v17 = vpop.f32.mrf.mxu0 }
 0x616   : > { %v5027_v0 = vshll.u32 %v5023_v36, 16  ;;  %v13454_v33 = vsel %vm2190_vm6, %v6470_v57, 0.0  ;;  %v6624_v9 = vmul.f32 %v6470_v57, %v6470_v57  ;;  %v5531_v62 = vadd.s32 %v5530_v22, %v5521_v10  ;;  %v4480_v60 = vpop.f32.mrf.mxu1 }
 0x617   : > { %vm5029_vm5 = vc.u32 %v5021_v45, %v5025_v49  ;;  %v5031_v34 = vadd.s32 %v5025_v49, %v5021_v45  ;;  %vm16506_vm2 = vsmask.f32 7424  ;;  %v13460_v11 = vadd.s32 240, %v12181_v42 }
 0x618   : > { %v5030_v8 = vsel %vm5029_vm5, 1, %v16449_v18  ;;  %v4042_v43 = vsel %vm16506_vm2, %v4038_v58, %v13434_v23  ;;  %vm13462_vm1 = vcmp.lt.s32.totalorder %v6279_v48, 16  ;;  %v5532_v2 = vshrl.u32 %v5531_v62, 4 }
 0x619   : > { %v5032_v39 = vadd.s32 %v5030_v8, %v5024_v15  ;;  %7217 = vmatmul.msk.bf16.gmra.mxu1 %vm2533_vm13, %v4042_v43  ;;  %v3754_v50 = vsel %vm2288_vm8, %v3704_v27, %v3278_v40  ;;  %v5026_v14 = vshrl.u32 %v5022_v53, 16  ;;  %vm5033_vm15 = vc.u32 %v5031_v34, %v5027_v0 }
 0x61a   : > { %v5047_v30 = vand.u32 65535, %v13451_v12  ;;  %v5048_v3 = vshrl.u32 %v13451_v12, 16  ;;  %v5533_v52 = vmul.u32 24, %v5532_v2  ;;  %v5028_v13 = vshrl.u32 %v5023_v36, 16 }
 0x61b   : > { %v5034_v54 = vsel %vm5033_vm15, 1, %v16449_v18  ;;  %v3804_v7 = vsel %vm2337_vm9, %v3754_v50, %v3331_v41  ;;  %v13474_v59 = vadd.f32 %v4480_v60, %v4351_v17  ;;  %v13477_v10 = vsel %vm2190_vm6, %v6624_v9, 0.0  ;;  %v3471_v22 = vpop.permute.xlu0 %3470  ;;  %v3554_v15 = vpop.permute.xlu1 %3553 }
 0x61c   : > { %v5036_v57 = vadd.s32 %v5034_v54, %v5032_v39  ;;  %v5050_v16 = vmul.u32 43691, %v5047_v30  ;;  %v5051_v61 = vmul.u32 43690, %v5047_v30  ;;  %v4099_v55 = vshrl.u32 %v13335_v51, 16 }
 0x61d   : > { %v5534_v31 = vsub.s32 %v13339_v20, %v5533_v52  ;;  %v5052_v45 = vmul.u32 43691, %v5048_v3  ;;  %4583 = vst.msk [vmem:[%s12585_s8 + $0x68] sm:$0xff] %vm2190_vm6, %v13474_v59  ;;  %v5053_v36 = vmul.u32 43690, %v5048_v3  ;;  %v5540_v49 = vand.u32 65535, %v13460_v11  ;;  %v13496_v2 = vpop.permute.xlu2 %3133 }
 0x61e   : > { %v5037_v53 = vadd.s32 %v5036_v57, %v5026_v14  ;;  %v5054_v58 = vshll.u32 %v5051_v61, 16  ;;  %v7259_v27 = vsel %vm13462_vm1, 1.0, %v16437_v38  ;;  %v3854_v51 = vsel %vm2386_vm10, %v3804_v7, %v13364_v4  ;;  %v16509_v14 = vld [vmem:[#allocation386_spill] sm:$0xff] }
 0x61f   : > { %v5056_v48 = vshll.u32 %v5052_v45, 16  ;;  %v5541_v20 = vshrl.u32 %v13460_v11, 16  ;;  %v5055_v40 = vshrl.u32 %v5051_v61, 16  ;;  %vm6088_vm14 = vcmp.ne.s32.totalorder %v5534_v31, 0 }
 0x620   : > { %v5038_v0 = vadd.s32 %v5037_v53, %v5028_v13  ;;  %vm5058_vm4 = vc.u32 %v5050_v16, %v5054_v58  ;;  %v5060_v41 = vadd.s32 %v5054_v58, %v5050_v16  ;;  %vm6136_vm0 = vcmp.lt.s32.totalorder %v5534_v31, 0 }
 0x621   : > { %v5059_v9 = vsel %vm5058_vm4, 1, %v16449_v18  ;;  %v3904_v62 = vsel %vm2435_vm11, %v3854_v51, %v3471_v22  ;;  %v13493_v43 = vmul.u32 43690, %v5540_v49  ;;  %v4101_v26 = vor.u32 %v4099_v55, %v13353_v56  ;;  %vm13505_vm5 = vmand %vm6136_vm0, %vm6088_vm14 }
 0x622   : > { %v5039_v8 = vshrl.u32 %v5038_v0, 4  ;;  %v5061_v34 = vadd.s32 %v5059_v9, %v5053_v36  ;;  %vm5062_vm3 = vc.u32 %v5060_v41, %v5056_v48  ;;  %v6232_v4 = vadd.s32 24, %v5534_v31  ;;  %v4394_v36 = vpop.f32.mrf.mxu2 }
 0x623   : > { %v5063_v39 = vsel %vm5062_vm3, 1, %v16449_v18  ;;  %v13500_v50 = vsel %vm2484_vm12, %v3904_v62, %v3554_v15  ;;  %v3688_v30 = vsel %vm2239_vm7, %v16509_v14, %v13409_v25  ;;  %v13511_v13 = vmul.f32 %v7259_v27, %v13385_v19  ;;  %v3262_v25 = vpop.permute.xlu0 %3261  ;;  %v3315_v61 = vpop.permute.xlu1 %3314 }
 0x624   : > { %v5040_v17 = vmul.u32 24, %v5039_v8  ;;  %v5065_v52 = vadd.s32 %v5063_v39, %v5061_v34  ;;  %v4102_v56 = vshll.u32 %v13500_v50, 16  ;;  %v4043_v54 = vshrl.u32 %v13418_v32, 16  ;;  %v4523_v27 = vpop.f32.mrf.mxu3 }
 0x625   : > { %v5057_v7 = vshrl.u32 %v5052_v45, 16  ;;  %v13514_v60 = vmul.u32 43691, %v5541_v20  ;;  %v5543_v55 = vmul.u32 43691, %v5540_v49  ;;  %v5547_v53 = vshll.u32 %v13493_v43, 16  ;;  %v13551_v14 = vpop.permute.xlu2 %3409 }
 0x626   : > { %v5041_v57 = vsub.s32 %v13403_v29, %v5040_v17  ;;  %v5066_v16 = vadd.s32 %v5065_v52, %v5055_v40  ;;  %v13519_v58 = vor.u32 %v4043_v54, %v13434_v23  ;;  %v6280_v19 = vsel %vm13505_vm5, %v6232_v4, %v5534_v31 }
 0x627   : > { %v13523_v22 = vrot.slane %v4102_v56, 1  ;;  %v3738_v32 = vsel %vm2288_vm8, %v3688_v30, %v3262_v25  ;;  %v5546_v45 = vmul.u32 43690, %v5541_v20  ;;  %v13528_v15 = vsel %vm2190_vm6, %v13511_v13, 0.0 }
 0x628   : > { %vm6071_vm2 = vcmp.ne.s32.totalorder %v5041_v57, 0  ;;  %vm6119_vm1 = vcmp.lt.s32.totalorder %v5041_v57, 0  ;;  %v6215_v29 = vadd.s32 24, %v5041_v57  ;;  %v5067_v49 = vadd.s32 %v5066_v16, %v5057_v7 }
 0x629   : > { %vm6167_vm15 = vmand %vm6119_vm1, %vm6071_vm2  ;;  %vm16512_vm4 = vsmask.f32 7424  ;;  %v5549_v31 = vshll.u32 %v13514_v60, 16  ;;  %vm13533_vm14 = vcmp.lt.s32.totalorder %v6280_v19, 16  ;;  %v3788_v20 = vsel %vm2337_vm9, %v3738_v32, %v3315_v61 }
 0x62a   : > { %v4105_v23 = vsel %vm16512_vm4, %v4101_v26, %v13523_v22  ;;  %v6263_v51 = vsel %vm6167_vm15, %v6215_v29, %v5041_v57  ;;  %v13539_v0 = vadd.f32 %v4523_v27, %v4394_v36  ;;  %vm5551_vm0 = vc.u32 %v5543_v55, %v5547_v53 }
 0x62b   : > { %7226 = vmatmul.msk.bf16.gmra.mxu3 %vm2533_vm13, %v4105_v23  ;;  %vm6311_vm3 = vcmp.lt.s32.totalorder %v6263_v51, 16  ;;  %v5068_v40 = vshrl.u32 %v5067_v49, 4  ;;  %v5552_v41 = vsel %vm5551_vm0, 1, %v16449_v18  ;;  %v5553_v9 = vadd.s32 %v5547_v53, %v5543_v55  ;;  %v3455_v52 = vpop.permute.xlu0 %3454  ;;  %v3538_v56 = vpop.permute.xlu1 %3537 }
 0x62c   : > { %v7243_v62 = vsel %vm6311_vm3, 1.0, %v16437_v38  ;;  %4600 = vst.msk [vmem:[%s12585_s8 + $0xf0] sm:$0xff] %vm2190_vm6, %v13539_v0  ;;  %v5548_v8 = vshrl.u32 %v13493_v43, 16  ;;  %v5554_v34 = vadd.s32 %v5552_v41, %v5546_v45  ;;  %v13548_v26 = vadd.s32 248, %v12181_v42  ;;  %v4396_v53 = vpop.f32.mrf.mxu2  ;;  %v4525_v19 = vpop.f32.mrf.mxu3 }
 0x62d   : > { %v6455_v4 = vmul.f32 %v7243_v62, %v13439_v24  ;;  %v5069_v39 = vmul.u32 24, %v5068_v40  ;;  %v5550_v30 = vshrl.u32 %v13514_v60, 16  ;;  %vm5555_vm5 = vc.u32 %v5553_v9, %v5549_v31  ;;  %v4354_v40 = vpop.f32.mrf.mxu0 }
 0x62e   : > { %v5556_v3 = vsel %vm5555_vm5, 1, %v16449_v18  ;;  %v3838_v17 = vsel %vm2386_vm10, %v3788_v20, %v13466_v1  ;;  %v5569_v43 = vand.u32 65535, %v13548_v26  ;;  %v5570_v54 = vshrl.u32 %v13548_v26, 16 }
 0x62f   : > { %v6515_v7 = vsel %vm2190_vm6, %v6455_v4, 0.0  ;;  %v6609_v24 = vmul.f32 %v6455_v4, %v6455_v4  ;;  %v5070_v57 = vsub.s32 %v13451_v12, %v5069_v39  ;;  %v5558_v16 = vadd.s32 %v5556_v3, %v5554_v34  ;;  %v13588_v3 = vpop.permute.xlu2 %3135 }
 0x630   : > { %v6516_v60 = vadd.f32 %v6515_v7, %v13407_v21  ;;  %v3888_v25 = vsel %vm2435_vm11, %v3838_v17, %v3455_v52  ;;  %v5572_v61 = vmul.u32 43691, %v5569_v43  ;;  %v5573_v55 = vmul.u32 43690, %v5569_v43  ;;  %v4483_v31 = vpop.f32.mrf.mxu1 }
 0x631   : > { %v6668_v1 = vsel %vm2190_vm6, %v6609_v24, 0.0  ;;  %vm6072_vm2 = vcmp.ne.s32.totalorder %v5070_v57, 0  ;;  %vm6120_vm1 = vcmp.lt.s32.totalorder %v5070_v57, 0  ;;  %v6216_v36 = vadd.s32 24, %v5070_v57 }
 0x632   : > { %v6669_v32 = vadd.f32 %v6668_v1, %v13415_v6  ;;  %vm6168_vm15 = vmand %vm6120_vm1, %vm6072_vm2  ;;  %v5559_v29 = vadd.s32 %v5558_v16, %v5548_v8  ;;  %v13566_v12 = vsel %vm2484_vm12, %v3888_v25, %v3538_v56  ;;  %v13568_v21 = vadd.f32 %v4525_v19, %v4396_v53 }
 0x633   : > { %v6625_v45 = vmul.f32 %v13511_v13, %v13511_v13  ;;  %v6264_v49 = vsel %vm6168_vm15, %v6216_v36, %v5070_v57  ;;  %v4046_v23 = vshll.u32 %v13566_v12, 16  ;;  %v5574_v27 = vmul.u32 43691, %v5570_v54  ;;  %v3280_v39 = vpop.permute.xlu0 %3279 }
 0x634   : > { %vm6312_vm4 = vcmp.lt.s32.totalorder %v6264_v49, 16  ;;  %v5560_v51 = vadd.s32 %v5559_v29, %v5550_v30  ;;  %4601 = vst.msk [vmem:[%s12585_s8 + $0xf8] sm:$0xff] %vm2190_vm6, %v13568_v21  ;;  %v5575_v6 = vmul.u32 43690, %v5570_v54  ;;  %v5576_v20 = vshll.u32 %v5573_v55, 16  ;;  %v13586_v30 = vpop.permute.xlu1 %3332 }
 0x635   : > { %v7260_v41 = vsel %vm13533_vm14, 1.0, %v16437_v38  ;;  %v7244_v9 = vsel %vm6312_vm4, 1.0, %v16437_v38  ;;  %v5578_v13 = vshll.u32 %v5574_v27, 16  ;;  %v13581_v62 = vadd.s32 112, %v12181_v42 }
 0x636   : > { %v6456_v8 = vmul.f32 %v7244_v9, %v13474_v59  ;;  %v5561_v34 = vshrl.u32 %v5560_v51, 4  ;;  %v13584_v4 = vrot.slane %v4046_v23, 1  ;;  %vm5580_vm0 = vc.u32 %v5572_v61, %v5576_v20 }
 0x637   : > { %v5577_v48 = vshrl.u32 %v5573_v55, 16  ;;  %v5581_v17 = vsel %vm5580_vm0, 1, %v16449_v18  ;;  %v5582_v52 = vadd.s32 %v5576_v20, %v5572_v61  ;;  %v13591_v56 = vadd.f32 %v4483_v31, %v4354_v40 }
 0x638   : > { %v6517_v43 = vsel %vm2190_vm6, %v6456_v8, 0.0  ;;  %v6610_v54 = vmul.f32 %v6456_v8, %v6456_v8  ;;  %v5562_v59 = vmul.u32 24, %v5561_v34  ;;  %v5583_v7 = vadd.s32 %v5581_v17, %v5575_v6  ;;  %v4485_v51 = vpop.f32.mrf.mxu1  ;;  %v13630_v17 = vpop.permute.xlu2 %3411 }
 0x639   : > { %v13594_v24 = vadd.f32 %v6517_v43, %v6516_v60  ;;  %vm5584_vm14 = vc.u32 %v5582_v52, %v5578_v13  ;;  %4584 = vst.msk [vmem:[%s12585_s8 + $0x70] sm:$0xff] %vm2190_vm6, %v13591_v56  ;;  %v5076_v57 = vand.u32 65535, %v13581_v62  ;;  %v5077_v16 = vshrl.u32 %v13581_v62, 16 }
 0x63a   : > { %v6670_v25 = vsel %vm2190_vm6, %v6610_v54, 0.0  ;;  %v5563_v61 = vsub.s32 %v13460_v11, %v5562_v59  ;;  %v5579_v55 = vshrl.u32 %v5574_v27, 16  ;;  %v5585_v53 = vsel %vm5584_vm14, 1, %v16449_v18 }
 0x63b   : > { %v13604_v1 = vadd.f32 %v6670_v25, %v6669_v32  ;;  %v5587_v36 = vadd.s32 %v5585_v53, %v5583_v7  ;;  %v5079_v60 = vmul.u32 43691, %v5076_v57  ;;  %v5080_v19 = vmul.u32 43690, %v5076_v57  ;;  %v3473_v40 = vpop.permute.xlu0 %3472 }
 0x63c   : > { %v13607_v29 = vsel %vm2190_vm6, %v6625_v45, 0.0  ;;  %v3706_v49 = vsel %vm2239_vm7, %v13212_v35, %v13496_v2  ;;  %vm6089_vm3 = vcmp.ne.s32.totalorder %v5563_v61, 0  ;;  %v5081_v23 = vmul.u32 43691, %v5077_v16  ;;  %v3556_v9 = vpop.permute.xlu1 %3555  ;;  %v4356_v35 = vpop.f32.mrf.mxu0 }
 0x63d   : > { %vm6137_vm5 = vcmp.lt.s32.totalorder %v5563_v61, 0  ;;  %v5588_v31 = vadd.s32 %v5587_v36, %v5577_v48  ;;  %v5082_v11 = vmul.u32 43690, %v5077_v16  ;;  %v5083_v27 = vshll.u32 %v5080_v19, 16 }
 0x63e   : > { %v6472_v32 = vmul.f32 %v7260_v41, %v13424_v47  ;;  %v5085_v6 = vshll.u32 %v5081_v23, 16  ;;  %vm16515_vm2 = vsmask.f32 7424  ;;  %v13617_v45 = vadd.s32 120, %v12181_v42  ;;  %vm13623_vm15 = vmand %vm6137_vm5, %vm6089_vm3 }
 0x63f   : > { %v4049_v20 = vsel %vm16515_vm2, %v13519_v58, %v13584_v4  ;;  %v6233_v2 = vadd.s32 24, %v5563_v61  ;;  %v5589_v13 = vadd.s32 %v5588_v31, %v5579_v55  ;;  %vm5087_vm1 = vc.u32 %v5079_v60, %v5083_v27 }
 0x640   : > { %v5089_v8 = vadd.s32 %v5083_v27, %v5079_v60  ;;  %7218 = vmatmul.msk.bf16.gmra.mxu1 %vm2533_vm13, %v4049_v20  ;;  %v4106_v47 = vshrl.u32 %v13500_v50, 16  ;;  %v5084_v58 = vshrl.u32 %v5080_v19, 16  ;;  %v5088_v34 = vsel %vm5087_vm1, 1, %v16449_v18 }
 0x641   : > { %v13628_v48 = vadd.f32 %v4485_v51, %v4356_v35  ;;  %v5590_v52 = vshrl.u32 %v5589_v13, 4  ;;  %v5090_v43 = vadd.s32 %v5088_v34, %v5082_v11  ;;  %v3756_v54 = vsel %vm2288_vm8, %v3706_v49, %v3280_v39  ;;  %v16518_v51 = vld [vmem:[#allocation255_spill] sm:$0xff] }
 0x642   : > { %vm5091_vm4 = vc.u32 %v5089_v8, %v5085_v6  ;;  %v13634_v50 = vsel %vm2190_vm6, %v6472_v32, 0.0  ;;  %v5105_v7 = vand.u32 65535, %v13617_v45  ;;  %v5106_v57 = vshrl.u32 %v13617_v45, 16 }
 0x643   : > { %v5092_v59 = vsel %vm5091_vm4, 1, %v16449_v18  ;;  %4585 = vst.msk [vmem:[%s12585_s8 + $0x78] sm:$0xff] %vm2190_vm6, %v13628_v48  ;;  %v6281_v16 = vsel %vm13623_vm15, %v6233_v2, %v5563_v61  ;;  %v5591_v25 = vmul.u32 24, %v5590_v52  ;;  %v5086_v55 = vshrl.u32 %v5081_v23, 16  ;;  %v3282_v35 = vpop.permute.xlu0 %3281 }
 0x644   : > { %v5094_v53 = vadd.s32 %v5092_v59, %v5090_v43  ;;  %v3806_v39 = vsel %vm2337_vm9, %v3756_v54, %v13586_v30  ;;  %v5108_v36 = vmul.u32 43691, %v5105_v7  ;;  %v5109_v60 = vmul.u32 43690, %v5105_v7  ;;  %v3138_v7 = vpop.permute.xlu2 %3137 }
 0x645   : > { %v5110_v19 = vmul.u32 43691, %v5106_v57  ;;  %v13646_v49 = vmul.f32 %v6472_v32, %v6472_v32  ;;  %v4050_v31 = vshrl.u32 %v13566_v12, 16  ;;  %v13650_v11 = vsub.s32 %v13548_v26, %v5591_v25 }
 0x646   : > { %v5095_v27 = vadd.s32 %v5094_v53, %v5084_v58  ;;  %v3708_v61 = vsel %vm2239_vm7, %v16518_v51, %v13588_v3  ;;  %v5111_v23 = vmul.u32 43690, %v5106_v57  ;;  %v5112_v6 = vshll.u32 %v5109_v60, 16  ;;  %v3335_v3 = vpop.permute.xlu1 %3334 }
 0x647   : > { %v5114_v20 = vshll.u32 %v5110_v19, 16  ;;  %vm13655_vm0 = vcmp.lt.s32.totalorder %v6281_v16, 16  ;;  %v4052_v32 = vor.u32 %v4050_v31, %v13584_v4  ;;  %v3856_v26 = vsel %vm2386_vm10, %v3806_v39, %v13551_v14  ;;  %v4528_v52 = vpop.f32.mrf.mxu3  ;;  %v4399_v4 = vpop.f32.mrf.mxu2 }
 0x648   : > { %v5096_v2 = vadd.s32 %v5095_v27, %v5086_v55  ;;  %v5113_v12 = vshrl.u32 %v5109_v60, 16  ;;  %vm5116_vm14 = vc.u32 %v5108_v36, %v5112_v6  ;;  %v5118_v13 = vadd.s32 %v5112_v6, %v5108_v36  ;;  %v16523_v27 = vld [vmem:[#allocation260_spill] sm:$0xff] }
 0x649   : > { %v3906_v8 = vsel %vm2435_vm11, %v3856_v26, %v3473_v40  ;;  %vm6090_vm3 = vcmp.ne.s32.totalorder %v13650_v11, 0  ;;  %v5117_v58 = vsel %vm5116_vm14, 1, %v16449_v18  ;;  %vm6138_vm5 = vcmp.lt.s32.totalorder %v13650_v11, 0 }
 0x64a   : > { %v5097_v41 = vshrl.u32 %v5096_v2, 4  ;;  %v13666_v34 = vsel %vm2484_vm12, %v3906_v8, %v3556_v9  ;;  %v5119_v43 = vadd.s32 %v5117_v58, %v5111_v23  ;;  %vm5120_vm2 = vc.u32 %v5118_v13, %v5114_v20  ;;  %vm13682_vm1 = vmand %vm6138_vm5, %vm6090_vm3 }
 0x64b   : > { %v4109_v14 = vshll.u32 %v13666_v34, 16  ;;  %v4108_v54 = vor.u32 %v4106_v47, %v13523_v22  ;;  %v7261_v40 = vsel %vm13655_vm0, 1.0, %v16437_v38  ;;  %v5121_v57 = vsel %vm5120_vm2, 1, %v16449_v18  ;;  %v3475_v20 = vpop.permute.xlu0 %3474 }
 0x64c   : > { %v5098_v59 = vmul.u32 24, %v5097_v41  ;;  %v13676_v9 = vadd.s32 24, %v13650_v11  ;;  %v5115_v16 = vshrl.u32 %v5110_v19, 16  ;;  %v5123_v25 = vadd.s32 %v5121_v57, %v5119_v43 }
 0x64d   : > { %v13678_v55 = vrot.slane %v4109_v14, 1  ;;  %v3758_v53 = vsel %vm2288_vm8, %v3708_v61, %v3282_v35  ;;  %v13688_v39 = vadd.f32 %v4528_v52, %v4399_v4  ;;  %v13691_v36 = vadd.s32 256, %v12181_v42 }
 0x64e   : > { %v5099_v47 = vsub.s32 %v13581_v62, %v5098_v59  ;;  %v13694_v60 = vmul.f32 %v7261_v40, %v13539_v0  ;;  %v13698_v19 = vsel %vm2239_vm7, %v13237_v28, %v3138_v7  ;;  %v5124_v31 = vadd.s32 %v5123_v25, %v5113_v12  ;;  %v3558_v13 = vpop.permute.xlu1 %3557 }
 0x64f   : > { %vm16524_vm15 = vsmask.f32 7424  ;;  %4602 = vst.msk [vmem:[%s12585_s8 + $0x100] sm:$0xff] %vm2190_vm6, %v13688_v39  ;;  %v6282_v28 = vsel %vm13682_vm1, %v13676_v9, %v13650_v11  ;;  %v3808_v23 = vsel %vm2337_vm9, %v3758_v53, %v3335_v3  ;;  %v5598_v6 = vand.u32 65535, %v13691_v36  ;;  %v4530_v8 = vpop.f32.mrf.mxu3 }
 0x650   : > { %v4056_v51 = vsel %vm16524_vm15, %v4052_v32, %v16523_v27  ;;  %vm6073_vm4 = vcmp.ne.s32.totalorder %v5099_v47, 0  ;;  %vm6121_vm0 = vcmp.lt.s32.totalorder %v5099_v47, 0  ;;  %v6217_v62 = vadd.s32 24, %v5099_v47  ;;  %vm16525_vm14 = vmmov %vm16524_vm15 }
 0x651   : > { %7219 = vmatmul.msk.bf16.gmra.mxu1 %vm2533_vm13, %v4056_v51  ;;  %v4112_v61 = vsel %vm16525_vm14, %v4108_v54, %v13678_v55  ;;  %vm6169_vm3 = vmand %vm6121_vm0, %vm6073_vm4  ;;  %v5125_v0 = vadd.s32 %v5124_v31, %v5115_v16  ;;  %v4113_v30 = vshrl.u32 %v13666_v34, 16  ;;  %v5599_v32 = vshrl.u32 %v13691_v36, 16  ;;  %v4401_v34 = vpop.f32.mrf.mxu2  ;;  %v4488_v27 = vpop.f32.mrf.mxu1 }
 0x652   : > { %7227 = vmatmul.msk.bf16.gmra.mxu3 %vm2533_vm13, %v4112_v61  ;;  %v6265_v35 = vsel %vm6169_vm3, %v6217_v62, %v5099_v47  ;;  %v3858_v2 = vsel %vm2386_vm10, %v3808_v23, %v13630_v17  ;;  %v5601_v11 = vmul.u32 43691, %v5598_v6  ;;  %v5602_v12 = vmul.u32 43690, %v5598_v6 }
 0x653   : > { %vm6313_vm5 = vcmp.lt.s32.totalorder %v6265_v35, 16  ;;  %v5126_v26 = vshrl.u32 %v5125_v0, 4  ;;  %v5603_v3 = vmul.u32 43691, %v5599_v32  ;;  %v3908_v58 = vsel %vm2435_vm11, %v3858_v2, %v3475_v20 }
 0x654   : > { %v7245_v41 = vsel %vm6313_vm5, 1.0, %v16437_v38  ;;  %v13722_v52 = vadd.s32 264, %v12181_v42  ;;  %v5604_v17 = vmul.u32 43690, %v5599_v32  ;;  %v5605_v14 = vshll.u32 %v5602_v12, 16 }
 0x655   : > { %v6457_v4 = vmul.f32 %v7245_v41, %v13591_v56  ;;  %v5127_v43 = vmul.u32 24, %v5126_v26  ;;  %v5606_v54 = vshrl.u32 %v5602_v12, 16  ;;  %v5607_v40 = vshll.u32 %v5603_v3, 16 }
 0x656   : > { %v13726_v59 = vsel %vm2484_vm12, %v3908_v58, %v3558_v13  ;;  %v13728_v7 = vadd.f32 %v4530_v8, %v4401_v34  ;;  %vm5609_vm2 = vc.u32 %v5601_v11, %v5605_v14  ;;  %v5611_v22 = vadd.s32 %v5605_v14, %v5601_v11  ;;  %v3337_v14 = vpop.permute.xlu1 %3336 }
 0x657   : > { %v6519_v57 = vsel %vm2190_vm6, %v6457_v4, 0.0  ;;  %v6611_v9 = vmul.f32 %v6457_v4, %v6457_v4  ;;  %v5128_v16 = vsub.s32 %v13617_v45, %v5127_v43  ;;  %v5610_v56 = vsel %vm5609_vm2, 1, %v16449_v18  ;;  %v3414_v43 = vpop.permute.xlu2 %3413 }
 0x658   : > { %v6520_v25 = vadd.f32 %v6519_v57, %v13594_v24  ;;  %v4116_v47 = vshll.u32 %v13726_v59, 16  ;;  %4603 = vst.msk [vmem:[%s12585_s8 + $0x108] sm:$0xff] %vm2190_vm6, %v13728_v7  ;;  %v5608_v45 = vshrl.u32 %v5603_v3, 16  ;;  %v5612_v62 = vadd.s32 %v5610_v56, %v5604_v17  ;;  %v4359_v24 = vpop.f32.mrf.mxu0 }
 0x659   : > { %v6672_v53 = vsel %vm2190_vm6, %v6611_v9, 0.0  ;;  %vm6074_vm1 = vcmp.ne.s32.totalorder %v5128_v16, 0  ;;  %vm6122_vm15 = vcmp.lt.s32.totalorder %v5128_v16, 0  ;;  %v6218_v31 = vadd.s32 24, %v5128_v16 }
 0x65a   : > { %v6673_v51 = vadd.f32 %v6672_v53, %v13604_v1  ;;  %vm6170_vm4 = vmand %vm6122_vm15, %vm6074_vm1  ;;  %vm5613_vm0 = vc.u32 %v5611_v22, %v5607_v40  ;;  %v13741_v23 = vrot.slane %v4116_v47, 1  ;;  %v5627_v6 = vand.u32 65535, %v13722_v52 }
 0x65b   : > { %v6266_v61 = vsel %vm6170_vm4, %v6218_v31, %v5128_v16  ;;  %v5614_v0 = vsel %vm5613_vm0, 1, %v16449_v18  ;;  %v5628_v35 = vshrl.u32 %v13722_v52, 16  ;;  %v13745_v32 = vadd.f32 %v4488_v27, %v4359_v24  ;;  %v4490_v24 = vpop.f32.mrf.mxu1 }
 0x65c   : > { %vm6314_vm14 = vcmp.lt.s32.totalorder %v6266_v61, 16  ;;  %v5616_v20 = vadd.s32 %v5614_v0, %v5612_v62  ;;  %v4115_v2 = vor.u32 %v4113_v30, %v13678_v55  ;;  %v5630_v26 = vmul.u32 43691, %v5627_v6  ;;  %v3284_v30 = vpop.permute.xlu0 %3283 }
 0x65d   : > { %v7246_v1 = vsel %vm6314_vm14, 1.0, %v16437_v38  ;;  %v5631_v11 = vmul.u32 43690, %v5627_v6  ;;  %vm13749_vm3 = vcmp.lt.s32.totalorder %v6282_v28, 16  ;;  %v5632_v41 = vmul.u32 43691, %v5628_v35  ;;  %4586 = vst.msk [vmem:[%s12585_s8 + $0x80] sm:$0xff] %vm2190_vm6, %v13745_v32 }
 0x65e   : > { %v6458_v13 = vmul.f32 %v7246_v1, %v13628_v48  ;;  %v5617_v8 = vadd.s32 %v5616_v20, %v5606_v54  ;;  %v5633_v3 = vmul.u32 43690, %v5628_v35  ;;  %v13758_v34 = vadd.s32 128, %v12181_v42 }
 0x65f   : > { %v5634_v58 = vshll.u32 %v5631_v11, 16  ;;  %vm16528_vm5 = vsmask.f32 7424  ;;  %v5636_v48 = vshll.u32 %v5632_v41, 16  ;;  %v5635_v40 = vshrl.u32 %v5631_v11, 16 }
 0x660   : > { %v4119_v55 = vsel %vm16528_vm5, %v4115_v2, %v13741_v23  ;;  %v6521_v28 = vsel %vm2190_vm6, %v6458_v13, 0.0  ;;  %v6612_v4 = vmul.f32 %v6458_v13, %v6458_v13  ;;  %v5618_v17 = vadd.s32 %v5617_v8, %v5608_v45  ;;  %v4361_v35 = vpop.f32.mrf.mxu0 }
 0x661   : > { %v13763_v54 = vadd.f32 %v6521_v28, %v6520_v25  ;;  %vm5638_vm2 = vc.u32 %v5630_v26, %v5634_v58  ;;  %v5640_v57 = vadd.s32 %v5634_v58, %v5630_v26  ;;  %v5134_v22 = vand.u32 65535, %v13758_v34 }
 0x662   : > { %7228 = vmatmul.msk.bf16.gmra.mxu3 %vm2533_vm13, %v4119_v55  ;;  %v6674_v9 = vsel %vm2190_vm6, %v6612_v4, 0.0  ;;  %v5619_v16 = vshrl.u32 %v5618_v17, 4  ;;  %v5639_v56 = vsel %vm5638_vm2, 1, %v16449_v18  ;;  %v5135_v31 = vshrl.u32 %v13758_v34, 16  ;;  %v3560_v4 = vpop.permute.xlu1 %3559 }
 0x663   : > { %v13769_v47 = vadd.f32 %v6674_v9, %v6673_v51  ;;  %v5641_v53 = vadd.s32 %v5639_v56, %v5633_v3  ;;  %vm5642_vm1 = vc.u32 %v5640_v57, %v5636_v48  ;;  %v5137_v45 = vmul.u32 43691, %v5134_v22 }
 0x664   : > { %v5620_v25 = vmul.u32 24, %v5619_v16  ;;  %v5643_v27 = vsel %vm5642_vm1, 1, %v16449_v18  ;;  %v5138_v62 = vmul.u32 43690, %v5134_v22  ;;  %v5637_v61 = vshrl.u32 %v5632_v41, 16  ;;  %v3477_v3 = vpop.permute.xlu0 %3476 }
 0x665   : > { %v5645_v0 = vadd.s32 %v5643_v27, %v5641_v53  ;;  %v5139_v6 = vmul.u32 43691, %v5135_v31  ;;  %v3760_v20 = vsel %vm2288_vm8, %v13698_v19, %v3284_v30  ;;  %v13777_v51 = vsel %vm2190_vm6, %v13646_v49, 0.0 }
 0x666   : > { %v5621_v1 = vsub.s32 %v13691_v36, %v5620_v25  ;;  %v5140_v2 = vmul.u32 43690, %v5135_v31  ;;  %v5141_v26 = vshll.u32 %v5138_v62, 16  ;;  %v13782_v11 = vsel %vm2190_vm6, %v13694_v60, 0.0 }
 0x667   : > { %v5646_v13 = vadd.s32 %v5645_v0, %v5635_v40  ;;  %v5143_v8 = vshll.u32 %v5139_v6, 16  ;;  %v13784_v41 = vadd.f32 %v4490_v24, %v4361_v35  ;;  %v6627_v19 = vmul.f32 %v13694_v60, %v13694_v60  ;;  %v3140_v60 = vpop.permute.xlu2 %3139  ;;  %v4533_v35 = vpop.f32.mrf.mxu3 }
 0x668   : > { %v7262_v49 = vsel %vm13749_vm3, 1.0, %v16437_v38  ;;  %vm5145_vm15 = vc.u32 %v5137_v45, %v5141_v26  ;;  %v3810_v36 = vsel %vm2337_vm9, %v3760_v20, %v3337_v14  ;;  %v5147_v30 = vadd.s32 %v5141_v26, %v5137_v45 }
 0x669   : > { %v5647_v58 = vadd.s32 %v5646_v13, %v5637_v61  ;;  %v5146_v55 = vsel %vm5145_vm15, 1, %v16449_v18  ;;  %4587 = vst.msk [vmem:[%s12585_s8 + $0x88] sm:$0xff] %vm2190_vm6, %v13784_v41  ;;  %v13797_v28 = vadd.s32 136, %v12181_v42  ;;  %vm6091_vm4 = vcmp.ne.s32.totalorder %v5621_v1, 0 }
 0x66a   : > { %vm6139_vm0 = vcmp.lt.s32.totalorder %v5621_v1, 0  ;;  %v5142_v12 = vshrl.u32 %v5138_v62, 16  ;;  %v5148_v17 = vadd.s32 %v5146_v55, %v5140_v2  ;;  %vm5149_vm14 = vc.u32 %v5147_v30, %v5143_v8 }
 0x66b   : > { %v5648_v48 = vshrl.u32 %v5647_v58, 4  ;;  %v5163_v14 = vand.u32 65535, %v13797_v28  ;;  %v3860_v40 = vsel %vm2386_vm10, %v3810_v36, %v3414_v43  ;;  %v6235_v57 = vadd.s32 24, %v5621_v1  ;;  %vm13809_vm3 = vmand %vm6139_vm0, %vm6091_vm4 }
 0x66c   : > { %v5150_v9 = vsel %vm5149_vm14, 1, %v16449_v18  ;;  %v5164_v16 = vshrl.u32 %v13797_v28, 16  ;;  %v3910_v56 = vsel %vm2435_vm11, %v3860_v40, %v3477_v3  ;;  %v13805_v22 = vsel %vm2190_vm6, %v6627_v19, 0.0  ;;  %v3286_v8 = vpop.permute.xlu0 %3285  ;;  %v4404_v19 = vpop.f32.mrf.mxu2 }
 0x66d   : > { %v3712_v53 = vsel %vm2239_vm7, %v13232_v5, %v3140_v60  ;;  %v5649_v25 = vmul.u32 24, %v5648_v48  ;;  %v5152_v27 = vadd.s32 %v5150_v9, %v5148_v17  ;;  %v5144_v43 = vshrl.u32 %v5139_v6, 16 }
 0x66e   : > { %v5166_v45 = vmul.u32 43691, %v5163_v14  ;;  %v5167_v62 = vmul.u32 43690, %v5163_v14  ;;  %v13813_v24 = vmul.u32 43691, %v5164_v16  ;;  %v13816_v61 = vmul.f32 %v7262_v49, %v13568_v21  ;;  %v3339_v21 = vpop.permute.xlu1 %3338 }
 0x66f   : > { %v13819_v0 = vsub.s32 %v13722_v52, %v5649_v25  ;;  %v5153_v20 = vadd.s32 %v5152_v27, %v5142_v12  ;;  %v3960_v5 = vsel %vm2484_vm12, %v3910_v56, %v3560_v4  ;;  %v6283_v2 = vsel %vm13809_vm3, %v6235_v57, %v5621_v1 }
 0x670   : > { %v5169_v26 = vmul.u32 43690, %v5164_v16  ;;  %v5170_v13 = vshll.u32 %v5167_v62, 16  ;;  %v5172_v6 = vshll.u32 %v13813_v24, 16  ;;  %v4120_v36 = vshrl.u32 %v13726_v59, 16 }
 0x671   : > { %vm6092_vm7 = vcmp.ne.s32.totalorder %v13819_v0, 0  ;;  %vm6140_vm5 = vcmp.lt.s32.totalorder %v13819_v0, 0  ;;  %v13829_v52 = vadd.s32 272, %v12181_v42  ;;  %v5154_v49 = vadd.s32 %v5153_v20, %v5144_v43 }
 0x672   : > { %vm5174_vm2 = vc.u32 %v5166_v45, %v5170_v13  ;;  %v5176_v3 = vadd.s32 %v5170_v13, %v5166_v45  ;;  %v4123_v1 = vshll.u32 %v3960_v5, 16  ;;  %vm6331_vm1 = vcmp.lt.s32.totalorder %v6283_v2, 16  ;;  %vm13845_vm4 = vmand %vm6140_vm5, %vm6092_vm7 }
 0x673   : > { %v5171_v58 = vshrl.u32 %v5167_v62, 16  ;;  %v5175_v55 = vsel %vm5174_vm2, 1, %v16449_v18  ;;  %v3762_v30 = vsel %vm2288_vm8, %v3712_v53, %v3286_v8  ;;  %v13834_v59 = vadd.s32 24, %v13819_v0 }
 0x674   : > { %v5155_v4 = vshrl.u32 %v5154_v49, 4  ;;  %v5177_v60 = vadd.s32 %v5175_v55, %v5169_v26  ;;  %vm5178_vm15 = vc.u32 %v5176_v3, %v5172_v6  ;;  %v13838_v12 = vsel %vm2190_vm6, %v13816_v61, 0.0  ;;  %v3479_v2 = vpop.permute.xlu0 %3478  ;;  %v4535_v6 = vpop.f32.mrf.mxu3 }
 0x675   : > { %v4122_v17 = vor.u32 %v4120_v36, %v13741_v23  ;;  %v5179_v14 = vsel %vm5178_vm15, 1, %v16449_v18  ;;  %v4125_v40 = vrot.slane %v4123_v1, 1  ;;  %v13851_v57 = vsel %vm6331_vm1, 1.0, %v16437_v38  ;;  %v3416_v23 = vpop.permute.xlu2 %3415 }
 0x676   : > { %v5156_v9 = vmul.u32 24, %v5155_v4  ;;  %v5181_v16 = vadd.s32 %v5179_v14, %v5177_v60  ;;  %v3812_v56 = vsel %vm2337_vm9, %v3762_v30, %v3339_v21  ;;  %v5173_v53 = vshrl.u32 %v13813_v24, 16  ;;  %v4493_v14 = vpop.f32.mrf.mxu1 }
 0x677   : > { %vm16533_vm8 = vsmask.f32 7424  ;;  %v13856_v25 = vadd.f32 %v4533_v35, %v4404_v19  ;;  %v5656_v27 = vand.u32 65535, %v13829_v52  ;;  %v6284_v43 = vsel %vm13845_vm4, %v13834_v59, %v13819_v0  ;;  %v3562_v19 = vpop.permute.xlu1 %3561 }
 0x678   : > { %v4126_v31 = vsel %vm16533_vm8, %v4122_v17, %v4125_v40  ;;  %v5157_v45 = vsub.s32 %v13758_v34, %v5156_v9  ;;  %v5182_v62 = vadd.s32 %v5181_v16, %v5171_v58  ;;  %v4127_v20 = vshrl.u32 %v3960_v5, 16  ;;  %v4406_v5 = vpop.f32.mrf.mxu2 }
 0x679   : > { %7229 = vmatmul.msk.bf16.gmra.mxu3 %vm2533_vm13, %v4126_v31  ;;  %v3862_v24 = vsel %vm2386_vm10, %v3812_v56, %v3416_v23  ;;  %4604 = vst.msk [vmem:[%s12585_s8 + $0x110] sm:$0xff] %vm2190_vm6, %v13856_v25  ;;  %v5657_v35 = vshrl.u32 %v13829_v52, 16  ;;  %v5659_v26 = vmul.u32 43691, %v5656_v27  ;;  %v5660_v13 = vmul.u32 43690, %v5656_v27  ;;  %v4364_v56 = vpop.f32.mrf.mxu0 }
 0x67a   : > { %vm6075_vm9 = vcmp.ne.s32.totalorder %v5157_v45, 0  ;;  %vm6123_vm0 = vcmp.lt.s32.totalorder %v5157_v45, 0  ;;  %v6219_v8 = vadd.s32 24, %v5157_v45  ;;  %v3912_v34 = vsel %vm2435_vm11, %v3862_v24, %v3479_v2 }
 0x67b   : > { %vm6171_vm14 = vmand %vm6123_vm0, %vm6075_vm9  ;;  %v5183_v36 = vadd.s32 %v5182_v62, %v5173_v53  ;;  %v13871_v21 = vor.u32 %v4127_v20, %v4125_v40  ;;  %v5661_v49 = vmul.u32 43691, %v5657_v35  ;;  %v5663_v3 = vshll.u32 %v5660_v13, 16 }
 0x67c   : > { %v6267_v1 = vsel %vm6171_vm14, %v6219_v8, %v5157_v45  ;;  %v5662_v58 = vmul.u32 43690, %v5657_v35  ;;  %v5664_v55 = vshrl.u32 %v5660_v13, 16  ;;  %v13873_v30 = vadd.f32 %v4535_v6, %v4406_v5 }
 0x67d   : > { %vm6315_vm10 = vcmp.lt.s32.totalorder %v6267_v1, 16  ;;  %v5184_v4 = vshrl.u32 %v5183_v36, 4  ;;  %v5665_v60 = vshll.u32 %v5661_v49, 16  ;;  %v3962_v17 = vsel %vm2484_vm12, %v3912_v34, %v3562_v19 }
 0x67e   : > { %v7247_v9 = vsel %vm6315_vm10, 1.0, %v16437_v38  ;;  %v5666_v16 = vshrl.u32 %v5661_v49, 16  ;;  %vm5667_vm11 = vc.u32 %v5659_v26, %v5663_v3  ;;  %v5669_v40 = vadd.s32 %v5663_v3, %v5659_v26  ;;  %4605 = vst.msk [vmem:[%s12585_s8 + $0x118] sm:$0xff] %vm2190_vm6, %v13873_v30 }
 0x67f   : > { %v6459_v23 = vmul.f32 %v7247_v9, %v13745_v32  ;;  %v5185_v53 = vmul.u32 24, %v5184_v4  ;;  %v5668_v31 = vsel %vm5667_vm11, 1, %v16449_v18  ;;  %v13883_v27 = vadd.s32 280, %v12181_v42 }
 0x680   : > { %v5670_v45 = vadd.s32 %v5668_v31, %v5662_v58  ;;  %vm5671_vm12 = vc.u32 %v5669_v40, %v5665_v60  ;;  %v4130_v62 = vshll.u32 %v3962_v17, 16  ;;  %v13885_v20 = vadd.f32 %v4493_v14, %v4364_v56 }
 0x681   : > { %v6523_v2 = vsel %vm2190_vm6, %v6459_v23, 0.0  ;;  %v6613_v24 = vmul.f32 %v6459_v23, %v6459_v23  ;;  %v5186_v35 = vsub.s32 %v13797_v28, %v5185_v53  ;;  %v5672_v26 = vsel %vm5671_vm12, 1, %v16449_v18 }
 0x682   : > { %v6524_v32 = vadd.f32 %v6523_v2, %v13763_v54  ;;  %v5674_v13 = vadd.s32 %v5672_v26, %v5670_v45  ;;  %v5685_v6 = vand.u32 65535, %v13883_v27  ;;  %v5686_v8 = vshrl.u32 %v13883_v27, 16  ;;  %4588 = vst.msk [vmem:[%s12585_s8 + $0x90] sm:$0xff] %vm2190_vm6, %v13885_v20 }
 0x683   : > { %v6676_v34 = vsel %vm2190_vm6, %v6613_v24, 0.0  ;;  %vm6076_vm3 = vcmp.ne.s32.totalorder %v5186_v35, 0  ;;  %vm6124_vm7 = vcmp.lt.s32.totalorder %v5186_v35, 0  ;;  %v6220_v19 = vadd.s32 24, %v5186_v35 }
 0x684   : > { %v6677_v5 = vadd.f32 %v6676_v34, %v13769_v47  ;;  %vm6172_vm5 = vmand %vm6124_vm7, %vm6076_vm3  ;;  %v5675_v28 = vadd.s32 %v5674_v13, %v5664_v55  ;;  %v5688_v36 = vmul.u32 43691, %v5685_v6  ;;  %v5689_v49 = vmul.u32 43690, %v5685_v6 }
 0x685   : > { %v6268_v54 = vsel %vm6172_vm5, %v6220_v19, %v5186_v35  ;;  %v4132_v3 = vrot.slane %v4130_v62, 1  ;;  %v5690_v1 = vmul.u32 43691, %v5686_v8  ;;  %v13899_v58 = vadd.s32 144, %v12181_v42 }
 0x686   : > { %vm6316_vm2 = vcmp.lt.s32.totalorder %v6268_v54, 16  ;;  %v5676_v4 = vadd.s32 %v5675_v28, %v5666_v16  ;;  %v5691_v60 = vmul.u32 43690, %v5686_v8  ;;  %v5692_v17 = vshll.u32 %v5689_v49, 16 }
 0x687   : > { %v7248_v14 = vsel %vm6316_vm2, 1.0, %v16437_v38  ;;  %v5693_v9 = vshrl.u32 %v5689_v49, 16  ;;  %v5694_v40 = vshll.u32 %v5690_v1, 16  ;;  %v5192_v47 = vand.u32 65535, %v13899_v58 }
 0x688   : > { %v6460_v55 = vmul.f32 %v7248_v14, %v13784_v41  ;;  %v5677_v56 = vshrl.u32 %v5676_v4, 4  ;;  %vm5696_vm1 = vc.u32 %v5688_v36, %v5692_v17  ;;  %v5698_v23 = vadd.s32 %v5692_v17, %v5688_v36 }
 0x689   : > { %v5695_v53 = vshrl.u32 %v5690_v1, 16  ;;  %v5697_v31 = vsel %vm5696_vm1, 1, %v16449_v18  ;;  %v5193_v45 = vshrl.u32 %v13899_v58, 16  ;;  %v5196_v62 = vmul.u32 43690, %v5192_v47  ;;  %v4495_v1 = vpop.f32.mrf.mxu1 }
 0x68a   : > { %v6525_v16 = vsel %vm2190_vm6, %v6460_v55, 0.0  ;;  %v6614_v2 = vmul.f32 %v6460_v55, %v6460_v55  ;;  %v5678_v24 = vmul.u32 24, %v5677_v56  ;;  %v5699_v35 = vadd.s32 %v5697_v31, %v5691_v60 }
 0x68b   : > { %v13907_v26 = vadd.f32 %v6525_v16, %v6524_v32  ;;  %vm5700_vm15 = vc.u32 %v5698_v23, %v5694_v40  ;;  %v5195_v13 = vmul.u32 43691, %v5192_v47  ;;  %v5197_v6 = vmul.u32 43691, %v5193_v45 }
 0x68c   : > { %v6678_v41 = vsel %vm2190_vm6, %v6614_v2, 0.0  ;;  %v5679_v8 = vsub.s32 %v13829_v52, %v5678_v24  ;;  %v5701_v34 = vsel %vm5700_vm15, 1, %v16449_v18  ;;  %v5199_v19 = vshll.u32 %v5196_v62, 16 }
 0x68d   : > { %v13912_v28 = vadd.f32 %v6678_v41, %v6677_v5  ;;  %v5703_v36 = vadd.s32 %v5701_v34, %v5699_v35  ;;  %v5198_v49 = vmul.u32 43690, %v5193_v45  ;;  %v5201_v54 = vshll.u32 %v5197_v6, 16  ;;  %v4366_v5 = vpop.f32.mrf.mxu0  ;;  %v4409_v41 = vpop.f32.mrf.mxu2 }
 0x68e   : > { %v6628_v32 = vmul.f32 %v13816_v61, %v13816_v61  ;;  %v6475_v4 = vmul.f32 %v13851_v57, %v13688_v39  ;;  %vm13923_vm8 = vcmp.lt.s32.totalorder %v6284_v43, 16  ;;  %vm6093_vm9 = vcmp.ne.s32.totalorder %v5679_v8, 0 }
 0x68f   : > { %v5704_v60 = vadd.s32 %v5703_v36, %v5693_v9  ;;  %vm5203_vm0 = vc.u32 %v5195_v13, %v5199_v19  ;;  %v5205_v17 = vadd.s32 %v5199_v19, %v5195_v13  ;;  %vm16536_vm14 = vsmask.f32 7424 }
 0x690   : > { %v4133_v61 = vsel %vm16536_vm14, %v13871_v21, %v4132_v3  ;;  %vm6141_vm10 = vcmp.lt.s32.totalorder %v5679_v8, 0  ;;  %v5204_v39 = vsel %vm5203_vm0, 1, %v16449_v18  ;;  %v13931_v48 = vadd.f32 %v4495_v1, %v4366_v5 }
 0x691   : > { %7230 = vmatmul.msk.bf16.gmra.mxu3 %vm2533_vm13, %v4133_v61  ;;  %v13934_v0 = vadd.s32 152, %v12181_v42  ;;  %v5705_v59 = vadd.s32 %v5704_v60, %v5695_v53  ;;  %v5200_v57 = vshrl.u32 %v5196_v62, 16  ;;  %v5206_v43 = vadd.s32 %v5204_v39, %v5198_v49  ;;  %vm13947_vm13 = vmand %vm6141_vm10, %vm6093_vm9  ;;  %v4538_v62 = vpop.f32.mrf.mxu3 }
 0x692   : > { %vm5207_vm4 = vc.u32 %v5205_v17, %v5201_v54  ;;  %v6237_v14 = vadd.s32 24, %v5679_v8  ;;  %4589 = vst.msk [vmem:[%s12585_s8 + $0x98] sm:$0xff] %vm2190_vm6, %v13931_v48  ;;  %v7264_v40 = vsel %vm13923_vm8, 1.0, %v16437_v38  ;;  %v5202_v56 = vshrl.u32 %v5197_v6, 16 }
 0x693   : > { %v5208_v9 = vsel %vm5207_vm4, 1, %v16449_v18  ;;  %v5221_v21 = vand.u32 65535, %v13934_v0  ;;  %v5222_v3 = vshrl.u32 %v13934_v0, 16  ;;  %v5706_v55 = vshrl.u32 %v5705_v59, 4 }
 0x694   : > { %v5210_v23 = vadd.s32 %v5208_v9, %v5206_v43  ;;  %v13952_v16 = vadd.s32 288, %v12181_v42  ;;  %v13955_v2 = vsel %vm2190_vm6, %v6628_v32, 0.0  ;;  %v6629_v24 = vmul.f32 %v6475_v4, %v6475_v4 }
 0x695   : > { %v5224_v53 = vmul.u32 43691, %v5221_v21  ;;  %v5225_v31 = vmul.u32 43690, %v5221_v21  ;;  %v5226_v45 = vmul.u32 43691, %v5222_v3  ;;  %v5707_v35 = vmul.u32 24, %v5706_v55 }
 0x696   : > { %v5211_v13 = vadd.s32 %v5210_v23, %v5200_v57  ;;  %v13958_v34 = vsel %vm2190_vm6, %v6475_v4, 0.0  ;;  %v6285_v6 = vsel %vm13947_vm13, %v6237_v14, %v5679_v8  ;;  %v6476_v49 = vmul.f32 %v7264_v40, %v13728_v7  ;;  %v4498_v17 = vpop.f32.mrf.mxu1 }
 0x697   : > { %v5228_v19 = vshll.u32 %v5225_v31, 16  ;;  %v5230_v36 = vshll.u32 %v5226_v45, 16  ;;  %v5227_v1 = vmul.u32 43690, %v5222_v3  ;;  %v13963_v52 = vadd.f32 %v4538_v62, %v4409_v41 }
 0x698   : > { %v5212_v54 = vadd.s32 %v5211_v13, %v5202_v56  ;;  %v5714_v5 = vand.u32 65535, %v13952_v16  ;;  %v5715_v60 = vshrl.u32 %v13952_v16, 16  ;;  %v13968_v4 = vsel %vm2190_vm6, %v6629_v24, 0.0  ;;  %v4411_v13 = vpop.f32.mrf.mxu2 }
 0x699   : > { %vm5232_vm11 = vc.u32 %v5224_v53, %v5228_v19  ;;  %v5234_v32 = vadd.s32 %v5228_v19, %v5224_v53  ;;  %vm13970_vm12 = vcmp.lt.s32.totalorder %v6285_v6, 16  ;;  %v13975_v8 = vsub.s32 %v13883_v27, %v5707_v35  ;;  %4606 = vst.msk [vmem:[%s12585_s8 + $0x120] sm:$0xff] %vm2190_vm6, %v13963_v52  ;;  %v4540_v62 = vpop.f32.mrf.mxu3 }
 0x69a   : > { %v5213_v7 = vshrl.u32 %v5212_v54, 4  ;;  %v5233_v61 = vsel %vm5232_vm11, 1, %v16449_v18  ;;  %v5717_v39 = vmul.u32 43691, %v5714_v5  ;;  %v5718_v59 = vmul.u32 43690, %v5714_v5 }
 0x69b   : > { %vm5236_vm3 = vc.u32 %v5234_v32, %v5230_v36  ;;  %v5229_v43 = vshrl.u32 %v5225_v31, 16  ;;  %v5235_v14 = vadd.s32 %v5233_v61, %v5227_v1  ;;  %v13983_v21 = vsel %vm2190_vm6, %v6476_v49, 0.0  ;;  %v4369_v61 = vpop.f32.mrf.mxu0 }
 0x69c   : > { %v5214_v57 = vmul.u32 24, %v5213_v7  ;;  %v5237_v9 = vsel %vm5236_vm3, 1, %v16449_v18  ;;  %v13985_v3 = vmul.f32 %v6476_v49, %v6476_v49  ;;  %v5719_v27 = vmul.u32 43691, %v5715_v60 }
 0x69d   : > { %v5721_v40 = vshll.u32 %v5718_v59, 16  ;;  %v5231_v55 = vshrl.u32 %v5226_v45, 16  ;;  %v5239_v56 = vadd.s32 %v5237_v9, %v5235_v14  ;;  %v5720_v23 = vmul.u32 43690, %v5715_v60 }
 0x69e   : > { %v5215_v47 = vsub.s32 %v13899_v58, %v5214_v57  ;;  %v7265_v53 = vsel %vm13970_vm12, 1.0, %v16437_v38  ;;  %vm6094_vm7 = vcmp.ne.s32.totalorder %v13975_v8, 0  ;;  %v5723_v31 = vshll.u32 %v5719_v27, 16 }
 0x69f   : > { %vm5725_vm5 = vc.u32 %v5717_v39, %v5721_v40  ;;  %v5240_v35 = vadd.s32 %v5239_v56, %v5229_v43  ;;  %vm6142_vm15 = vcmp.lt.s32.totalorder %v13975_v8, 0  ;;  %v5722_v58 = vshrl.u32 %v5718_v59, 16 }
 0x6a0   : > { %vm6077_vm2 = vcmp.ne.s32.totalorder %v5215_v47, 0  ;;  %vm6125_vm1 = vcmp.lt.s32.totalorder %v5215_v47, 0  ;;  %v6221_v24 = vadd.s32 24, %v5215_v47  ;;  %v5726_v45 = vsel %vm5725_vm5, 1, %v16449_v18  ;;  %vm14028_vm14 = vmand %vm6142_vm15, %vm6094_vm7 }
 0x6a1   : > { %vm6173_vm8 = vmand %vm6125_vm1, %vm6077_vm2  ;;  %v5727_v41 = vadd.s32 %v5721_v40, %v5717_v39  ;;  %v5241_v19 = vadd.s32 %v5240_v35, %v5231_v55  ;;  %v5728_v36 = vadd.s32 %v5726_v45, %v5720_v23  ;;  %v13994_v49 = vadd.f32 %v4540_v62, %v4411_v13 }
 0x6a2   : > { %v6269_v6 = vsel %vm6173_vm8, %v6221_v24, %v5215_v47  ;;  %v5724_v54 = vshrl.u32 %v5719_v27, 16  ;;  %v13997_v1 = vadd.s32 296, %v12181_v42  ;;  %v14005_v7 = vadd.s32 160, %v12181_v42 }
 0x6a3   : > { %vm6317_vm9 = vcmp.lt.s32.totalorder %v6269_v6, 16  ;;  %vm5729_vm0 = vc.u32 %v5727_v41, %v5723_v31  ;;  %v5242_v5 = vshrl.u32 %v5241_v19, 4  ;;  %4607 = vst.msk [vmem:[%s12585_s8 + $0x128] sm:$0xff] %vm2190_vm6, %v13994_v49  ;;  %v6238_v14 = vadd.s32 24, %v13975_v8 }
 0x6a4   : > { %v7249_v32 = vsel %vm6317_vm9, 1.0, %v16437_v38  ;;  %v5730_v60 = vsel %vm5729_vm0, 1, %v16449_v18  ;;  %v5743_v57 = vand.u32 65535, %v13997_v1  ;;  %v5744_v43 = vshrl.u32 %v13997_v1, 16 }
 0x6a5   : > { %v6461_v39 = vmul.f32 %v7249_v32, %v13885_v20  ;;  %v5732_v59 = vadd.s32 %v5730_v60, %v5728_v36  ;;  %v5243_v9 = vmul.u32 24, %v5242_v5  ;;  %v14011_v27 = vadd.f32 %v4498_v17, %v4369_v61 }
 0x6a6   : > { %v5250_v40 = vand.u32 65535, %v14005_v7  ;;  %v5251_v23 = vshrl.u32 %v14005_v7, 16  ;;  %v5747_v62 = vmul.u32 43690, %v5743_v57  ;;  %v5748_v24 = vmul.u32 43691, %v5744_v43 }
 0x6a7   : > { %v6527_v47 = vsel %vm2190_vm6, %v6461_v39, 0.0  ;;  %v6615_v55 = vmul.f32 %v6461_v39, %v6461_v39  ;;  %v5733_v56 = vadd.s32 %v5732_v59, %v5722_v58  ;;  %v5244_v31 = vsub.s32 %v13934_v0, %v5243_v9  ;;  %4590 = vst.msk [vmem:[%s12585_s8 + $0xa0] sm:$0xff] %vm2190_vm6, %v14011_v27 }
 0x6a8   : > { %v6528_v20 = vadd.f32 %v6527_v47, %v13907_v26  ;;  %v14022_v35 = vmul.f32 %v7265_v53, %v13856_v25  ;;  %v5746_v0 = vmul.u32 43691, %v5743_v57  ;;  %v5749_v53 = vmul.u32 43690, %v5744_v43 }
 0x6a9   : > { %v6680_v26 = vsel %vm2190_vm6, %v6615_v55, 0.0  ;;  %v5734_v58 = vadd.s32 %v5733_v56, %v5724_v54  ;;  %vm6078_vm10 = vcmp.ne.s32.totalorder %v5244_v31, 0  ;;  %vm6126_vm4 = vcmp.lt.s32.totalorder %v5244_v31, 0  ;;  %v4500_v56 = vpop.f32.mrf.mxu1 }
 0x6aa   : > { %v6681_v45 = vadd.f32 %v6680_v26, %v13912_v28  ;;  %v6222_v41 = vadd.s32 24, %v5244_v31  ;;  %vm6174_vm13 = vmand %vm6126_vm4, %vm6078_vm10  ;;  %v5750_v6 = vshll.u32 %v5747_v62, 16  ;;  %v5752_v19 = vshll.u32 %v5748_v24, 16 }
 0x6ab   : > { %v5735_v25 = vshrl.u32 %v5734_v58, 4  ;;  %v6286_v36 = vsel %vm14028_vm14, %v6238_v14, %v13975_v8  ;;  %v5254_v5 = vmul.u32 43690, %v5250_v40  ;;  %v14037_v60 = vmul.u32 43691, %v5251_v23  ;;  %v4371_v58 = vpop.f32.mrf.mxu0 }
 0x6ac   : > { %v6270_v32 = vsel %vm6174_vm13, %v6222_v41, %v5244_v31  ;;  %vm5754_vm12 = vc.u32 %v5746_v0, %v5750_v6  ;;  %v5756_v28 = vadd.s32 %v5750_v6, %v5746_v0  ;;  %v5253_v39 = vmul.u32 43691, %v5250_v40 }
 0x6ad   : > { %vm6318_vm11 = vcmp.lt.s32.totalorder %v6270_v32, 16  ;;  %v5736_v54 = vmul.u32 24, %v5735_v25  ;;  %v5755_v61 = vsel %vm5754_vm12, 1, %v16449_v18  ;;  %v5257_v59 = vshll.u32 %v5254_v5, 16 }
 0x6ae   : > { %v7250_v17 = vsel %vm6318_vm11, 1.0, %v16437_v38  ;;  %vm14041_vm3 = vcmp.lt.s32.totalorder %v6286_v36, 16  ;;  %v5757_v43 = vadd.s32 %v5755_v61, %v5749_v53  ;;  %vm5758_vm7 = vc.u32 %v5756_v28, %v5752_v19 }
 0x6af   : > { %v6462_v8 = vmul.f32 %v7250_v17, %v13931_v48  ;;  %v14047_v14 = vsub.s32 %v13952_v16, %v5736_v54  ;;  %v5751_v9 = vshrl.u32 %v5747_v62, 16  ;;  %v5759_v47 = vsel %vm5758_vm7, 1, %v16449_v18 }
 0x6b0   : > { %v5256_v55 = vmul.u32 43690, %v5251_v23  ;;  %v5753_v13 = vshrl.u32 %v5748_v24, 16  ;;  %v5259_v26 = vshll.u32 %v14037_v60, 16  ;;  %v5761_v48 = vadd.s32 %v5759_v47, %v5757_v43  ;;  %v4414_v43 = vpop.f32.mrf.mxu2 }
 0x6b1   : > { %v6529_v31 = vsel %vm2190_vm6, %v6462_v8, 0.0  ;;  %v6616_v40 = vmul.f32 %v6462_v8, %v6462_v8  ;;  %v5258_v41 = vshrl.u32 %v5254_v5, 16  ;;  %vm5261_vm5 = vc.u32 %v5253_v39, %v5257_v59 }
 0x6b2   : > { %v14052_v0 = vadd.f32 %v6529_v31, %v6528_v20  ;;  %v5262_v62 = vsel %vm5261_vm5, 1, %v16449_v18  ;;  %v5263_v25 = vadd.s32 %v5257_v59, %v5253_v39  ;;  %v14056_v23 = vadd.f32 %v4500_v56, %v4371_v58 }
 0x6b3   : > { %v6682_v16 = vsel %vm2190_vm6, %v6616_v40, 0.0  ;;  %vm6095_vm2 = vcmp.ne.s32.totalorder %v14047_v14, 0  ;;  %v5762_v24 = vadd.s32 %v5761_v48, %v5751_v9  ;;  %v5264_v6 = vadd.s32 %v5262_v62, %v5256_v55 }
 0x6b4   : > { %v14058_v53 = vadd.f32 %v6682_v16, %v6681_v45  ;;  %vm6143_vm1 = vcmp.lt.s32.totalorder %v14047_v14, 0  ;;  %vm5265_vm15 = vc.u32 %v5263_v25, %v5259_v26  ;;  %4591 = vst.msk [vmem:[%s12585_s8 + $0xa8] sm:$0xff] %vm2190_vm6, %v14056_v23  ;;  %v14066_v20 = vadd.s32 168, %v12181_v42 }
 0x6b5   : > { %v14069_v19 = vadd.s32 304, %v12181_v42  ;;  %v7266_v45 = vsel %vm14041_vm3, 1.0, %v16437_v38  ;;  %v5763_v36 = vadd.s32 %v5762_v24, %v5753_v13  ;;  %v5260_v32 = vshrl.u32 %v14037_v60, 16  ;;  %vm14093_vm8 = vmand %vm6143_vm1, %vm6095_vm2  ;;  %v4543_v13 = vpop.f32.mrf.mxu3 }
 0x6b6   : > { %v5266_v5 = vsel %vm5265_vm15, 1, %v16449_v18  ;;  %v6239_v54 = vadd.s32 24, %v14047_v14  ;;  %v5279_v17 = vand.u32 65535, %v14066_v20  ;;  %v5280_v61 = vshrl.u32 %v14066_v20, 16 }
 0x6b7   : > { %v5268_v28 = vadd.s32 %v5266_v5, %v5264_v6  ;;  %v14081_v39 = vsel %vm2190_vm6, %v13985_v3, 0.0  ;;  %v14085_v59 = vsel %vm2190_vm6, %v14022_v35, 0.0  ;;  %v6631_v60 = vmul.f32 %v14022_v35, %v14022_v35 }
 0x6b8   : > { %v5764_v8 = vshrl.u32 %v5763_v36, 4  ;;  %v14098_v3 = vmul.f32 %v7266_v45, %v13873_v30  ;;  %v5772_v47 = vand.u32 65535, %v14069_v19  ;;  %v5773_v55 = vshrl.u32 %v14069_v19, 16 }
 0x6b9   : > { %v5269_v9 = vadd.s32 %v5268_v28, %v5258_v41  ;;  %v5282_v35 = vmul.u32 43691, %v5279_v17  ;;  %v5283_v31 = vmul.u32 43690, %v5279_v17  ;;  %v14102_v40 = vmul.u32 43691, %v5280_v61 }
 0x6ba   : > { %v5765_v56 = vmul.u32 24, %v5764_v8  ;;  %v6287_v26 = vsel %vm14093_vm8, %v6239_v54, %v14047_v14  ;;  %v14107_v48 = vadd.f32 %v4543_v13, %v4414_v43  ;;  %v14110_v30 = vadd.s32 312, %v12181_v42  ;;  %v4416_v13 = vpop.f32.mrf.mxu2 }
 0x6bb   : > { %v5270_v58 = vadd.s32 %v5269_v9, %v5260_v32  ;;  %v14113_v41 = vsel %vm2190_vm6, %v6631_v60, 0.0  ;;  %v5285_v62 = vmul.u32 43690, %v5280_v61  ;;  %v5286_v25 = vshll.u32 %v5283_v31, 16 }
 0x6bc   : > { %v14116_v16 = vsub.s32 %v13997_v1, %v5765_v56  ;;  %v14120_v24 = vmul.f32 %v14098_v3, %v14098_v3  ;;  %v5288_v14 = vshll.u32 %v14102_v40, 16  ;;  %4608 = vst.msk [vmem:[%s12585_s8 + $0x130] sm:$0xff] %vm2190_vm6, %v14107_v48  ;;  %v5776_v45 = vmul.u32 43690, %v5772_v47 }
 0x6bd   : > { %v5271_v6 = vshrl.u32 %v5270_v58, 4  ;;  %vm14126_vm9 = vcmp.lt.s32.totalorder %v6287_v26, 16  ;;  %vm5290_vm0 = vc.u32 %v5282_v35, %v5286_v25  ;;  %v5775_v1 = vmul.u32 43691, %v5772_v47 }
 0x6be   : > { %v14130_v32 = vmul.u32 43691, %v5773_v55  ;;  %v5291_v54 = vsel %vm5290_vm0, 1, %v16449_v18  ;;  %v5292_v28 = vadd.s32 %v5286_v25, %v5282_v35  ;;  %v5801_v17 = vand.u32 65535, %v14110_v30  ;;  %v4545_v35 = vpop.f32.mrf.mxu3 }
 0x6bf   : > { %v5272_v5 = vmul.u32 24, %v5271_v6  ;;  %vm6096_vm14 = vcmp.ne.s32.totalorder %v14116_v16, 0  ;;  %vm6144_vm10 = vcmp.lt.s32.totalorder %v14116_v16, 0  ;;  %v5293_v61 = vadd.s32 %v5291_v54, %v5285_v62 }
 0x6c0   : > { %v5779_v60 = vshll.u32 %v5776_v45, 16  ;;  %v5287_v8 = vshrl.u32 %v5283_v31, 16  ;;  %vm5294_vm4 = vc.u32 %v5292_v28, %v5288_v14  ;;  %v5778_v43 = vmul.u32 43690, %v5773_v55  ;;  %vm14140_vm11 = vmand %vm6144_vm10, %vm6096_vm14 }
 0x6c1   : > { %v5273_v57 = vsub.s32 %v14005_v7, %v5272_v5  ;;  %v5289_v9 = vshrl.u32 %v14102_v40, 16  ;;  %v5295_v47 = vsel %vm5294_vm4, 1, %v16449_v18  ;;  %v5781_v56 = vshll.u32 %v14130_v32, 16 }
 0x6c2   : > { %vm5783_vm13 = vc.u32 %v5775_v1, %v5779_v60  ;;  %v6240_v58 = vadd.s32 24, %v14116_v16  ;;  %v5297_v55 = vadd.s32 %v5295_v47, %v5293_v61  ;;  %v5785_v40 = vadd.s32 %v5779_v60, %v5775_v1 }
 0x6c3   : > { %vm6079_vm12 = vcmp.ne.s32.totalorder %v5273_v57, 0  ;;  %vm6127_vm3 = vcmp.lt.s32.totalorder %v5273_v57, 0  ;;  %v6223_v7 = vadd.s32 24, %v5273_v57  ;;  %v5784_v31 = vsel %vm5783_vm13, 1, %v16449_v18 }
 0x6c4   : > { %vm6175_vm7 = vmand %vm6127_vm3, %vm6079_vm12  ;;  %v14146_v62 = vadd.f32 %v4545_v35, %v4416_v13  ;;  %v14151_v25 = vsel %vm14126_vm9, 1.0, %v16437_v38  ;;  %v5780_v14 = vshrl.u32 %v5776_v45, 16  ;;  %v5786_v5 = vadd.s32 %v5784_v31, %v5778_v43  ;;  %v4374_v45 = vpop.f32.mrf.mxu0 }
 0x6c5   : > { %v6271_v6 = vsel %vm6175_vm7, %v6223_v7, %v5273_v57  ;;  %v5298_v54 = vadd.s32 %v5297_v55, %v5287_v8  ;;  %vm5787_vm2 = vc.u32 %v5785_v40, %v5781_v56  ;;  %v5802_v28 = vshrl.u32 %v14110_v30, 16  ;;  %v4503_v56 = vpop.f32.mrf.mxu1 }
 0x6c6   : > { %vm6319_vm5 = vcmp.lt.s32.totalorder %v6271_v6, 16  ;;  %4609 = vst.msk [vmem:[%s12585_s8 + $0x138] sm:$0xff] %vm2190_vm6, %v14146_v62  ;;  %v6288_v1 = vsel %vm14140_vm11, %v6240_v58, %v14116_v16  ;;  %v5782_v36 = vshrl.u32 %v14130_v32, 16  ;;  %v5788_v60 = vsel %vm5787_vm2, 1, %v16449_v18 }
 0x6c7   : > { %v7251_v61 = vsel %vm6319_vm5, 1.0, %v16437_v38  ;;  %v5299_v8 = vadd.s32 %v5298_v54, %v5289_v9  ;;  %v5790_v43 = vadd.s32 %v5788_v60, %v5786_v5  ;;  %v5805_v47 = vmul.u32 43690, %v5801_v17 }
 0x6c8   : > { %v6463_v57 = vmul.f32 %v7251_v61, %v14011_v27  ;;  %v5804_v35 = vmul.u32 43691, %v5801_v17  ;;  %v14164_v13 = vmul.u32 43691, %v5802_v28  ;;  %v14166_v7 = vadd.f32 %v4503_v56, %v4374_v45 }
 0x6c9   : > { %v14169_v16 = vadd.s32 176, %v12181_v42  ;;  %v5300_v58 = vshrl.u32 %v5299_v8, 4  ;;  %v5791_v55 = vadd.s32 %v5790_v43, %v5780_v14  ;;  %v5807_v9 = vmul.u32 43690, %v5802_v28 }
 0x6ca   : > { %v6531_v32 = vsel %vm2190_vm6, %v6463_v57, 0.0  ;;  %v6617_v26 = vmul.f32 %v6463_v57, %v6463_v57  ;;  %v5808_v31 = vshll.u32 %v5805_v47, 16  ;;  %v5810_v40 = vshll.u32 %v14164_v13, 16  ;;  %4592 = vst.msk [vmem:[%s12585_s8 + $0xb0] sm:$0xff] %vm2190_vm6, %v14166_v7 }
 0x6cb   : > { %v6532_v27 = vadd.f32 %v6531_v32, %v14052_v0  ;;  %vm14177_vm1 = vcmp.lt.s32.totalorder %v6288_v1, 16  ;;  %v5301_v5 = vmul.u32 24, %v5300_v58  ;;  %v5792_v54 = vadd.s32 %v5791_v55, %v5782_v36 }
 0x6cc   : > { %v6684_v6 = vsel %vm2190_vm6, %v6617_v26, 0.0  ;;  %vm5812_vm15 = vc.u32 %v5804_v35, %v5808_v31  ;;  %v5814_v14 = vadd.s32 %v5808_v31, %v5804_v35  ;;  %v5308_v0 = vand.u32 65535, %v14169_v16 }
 0x6cd   : > { %v6685_v61 = vadd.f32 %v6684_v6, %v14058_v53  ;;  %v5302_v28 = vsub.s32 %v14066_v20, %v5301_v5  ;;  %v5793_v60 = vshrl.u32 %v5792_v54, 4  ;;  %v5813_v45 = vsel %vm5812_vm15, 1, %v16449_v18  ;;  %v4505_v20 = vpop.f32.mrf.mxu1  ;;  %v4376_v54 = vpop.f32.mrf.mxu0 }
 0x6ce   : > { %v5309_v1 = vshrl.u32 %v14169_v16, 16  ;;  %v5815_v57 = vadd.s32 %v5813_v45, %v5807_v9  ;;  %vm5816_vm8 = vc.u32 %v5814_v14, %v5810_v40  ;;  %v5311_v8 = vmul.u32 43691, %v5308_v0 }
 0x6cf   : > { %v5312_v43 = vmul.u32 43690, %v5308_v0  ;;  %vm6080_vm9 = vcmp.ne.s32.totalorder %v5302_v28, 0  ;;  %vm6128_vm0 = vcmp.lt.s32.totalorder %v5302_v28, 0  ;;  %v6224_v36 = vadd.s32 24, %v5302_v28 }
 0x6d0   : > { %v5794_v56 = vmul.u32 24, %v5793_v60  ;;  %vm6176_vm14 = vmand %vm6128_vm0, %vm6080_vm9  ;;  %v5809_v53 = vshrl.u32 %v5805_v47, 16  ;;  %v5817_v35 = vsel %vm5816_vm8, 1, %v16449_v18  ;;  %v5313_v32 = vmul.u32 43691, %v5309_v1 }
 0x6d1   : > { %v5315_v26 = vshll.u32 %v5312_v43, 16  ;;  %v6272_v58 = vsel %vm6176_vm14, %v6224_v36, %v5302_v28  ;;  %v5819_v31 = vadd.s32 %v5817_v35, %v5815_v57  ;;  %v5314_v6 = vmul.u32 43690, %v5309_v1 }
 0x6d2   : > { %v5795_v55 = vsub.s32 %v14069_v19, %v5794_v56  ;;  %v7268_v9 = vsel %vm14177_vm1, 1.0, %v16437_v38  ;;  %vm6320_vm10 = vcmp.lt.s32.totalorder %v6272_v58, 16  ;;  %v5811_v40 = vshrl.u32 %v14164_v13, 16 }
 0x6d3   : > { %vm5319_vm4 = vc.u32 %v5311_v8, %v5315_v26  ;;  %v7252_v47 = vsel %vm6320_vm10, 1.0, %v16437_v38  ;;  %v5317_v5 = vshll.u32 %v5313_v32, 16  ;;  %v5321_v28 = vadd.s32 %v5315_v26, %v5311_v8 }
 0x6d4   : > { %vm6097_vm13 = vcmp.ne.s32.totalorder %v5795_v55, 0  ;;  %vm6145_vm11 = vcmp.lt.s32.totalorder %v5795_v55, 0  ;;  %v6464_v14 = vmul.f32 %v7252_v47, %v14056_v23  ;;  %v6241_v19 = vadd.s32 24, %v5795_v55 }
 0x6d5   : > { %v5320_v0 = vsel %vm5319_vm4, 1, %v16449_v18  ;;  %vm14196_vm12 = vmand %vm6145_vm11, %vm6097_vm13  ;;  %v5820_v60 = vadd.s32 %v5819_v31, %v5809_v53  ;;  %v14200_v45 = vadd.f32 %v4505_v20, %v4376_v54  ;;  %v14203_v1 = vadd.s32 184, %v12181_v42 }
 0x6d6   : > { %v5322_v13 = vadd.s32 %v5320_v0, %v5314_v6  ;;  %v6479_v57 = vmul.f32 %v14151_v25, %v13963_v52  ;;  %v6480_v23 = vmul.f32 %v7268_v9, %v13994_v49  ;;  %v6533_v36 = vsel %vm2190_vm6, %v6464_v14, 0.0 }
 0x6d7   : > { %v6618_v56 = vmul.f32 %v6464_v14, %v6464_v14  ;;  %v14209_v8 = vadd.f32 %v6533_v36, %v6532_v27  ;;  %v5316_v35 = vshrl.u32 %v5312_v43, 16  ;;  %vm5323_vm3 = vc.u32 %v5321_v28, %v5317_v5  ;;  %4593 = vst.msk [vmem:[%s12585_s8 + $0xb8] sm:$0xff] %vm2190_vm6, %v14200_v45  ;;  %v4508_v5 = vpop.f32.mrf.mxu1 }
 0x6d8   : > { %v5337_v53 = vand.u32 65535, %v14203_v1  ;;  %v6289_v20 = vsel %vm14196_vm12, %v6241_v19, %v5795_v55  ;;  %v5318_v52 = vshrl.u32 %v5313_v32, 16  ;;  %v5324_v49 = vsel %vm5323_vm3, 1, %v16449_v18 }
 0x6d9   : > { %v6686_v26 = vsel %vm2190_vm6, %v6618_v56, 0.0  ;;  %v5821_v58 = vadd.s32 %v5820_v60, %v5811_v40  ;;  %v5326_v27 = vadd.s32 %v5324_v49, %v5322_v13  ;;  %v5338_v43 = vshrl.u32 %v14203_v1, 16 }
 0x6da   : > { %v14219_v25 = vadd.f32 %v6686_v26, %v6685_v61  ;;  %v14224_v31 = vsel %vm2190_vm6, %v14098_v3, 0.0  ;;  %v6633_v6 = vmul.f32 %v6479_v57, %v6479_v57  ;;  %v5340_v9 = vmul.u32 43691, %v5337_v53 }
 0x6db   : > { %v5341_v47 = vmul.u32 43690, %v5337_v53  ;;  %v14228_v32 = vsel %vm2190_vm6, %v14120_v24, 0.0  ;;  %v5327_v55 = vadd.s32 %v5326_v27, %v5316_v35  ;;  %v5342_v61 = vmul.u32 43691, %v5338_v43 }
 0x6dc   : > { %v14231_v40 = vadd.f32 %v4508_v5, %v13067_v46  ;;  %v6634_v54 = vmul.f32 %v6480_v23, %v6480_v23  ;;  %vm14233_vm7 = vcmp.lt.s32.totalorder %v6289_v20, 16  ;;  %v5343_v3 = vmul.u32 43690, %v5338_v43 }
 0x6dd   : > { %v5344_v19 = vshll.u32 %v5341_v47, 16  ;;  %v5822_v0 = vshrl.u32 %v5821_v58, 4  ;;  %v5328_v28 = vadd.s32 %v5327_v55, %v5318_v52  ;;  %v5346_v17 = vshll.u32 %v5342_v61, 16 }
 0x6de   : > { %4594 = vst.msk [vmem:[%s12585_s8 + $0xc0] sm:$0xff] %vm2190_vm6, %v14231_v40  ;;  %v14241_v24 = vadd.s32 192, %v12181_v42  ;;  %v14244_v60 = vsel %vm2190_vm6, %v6479_v57, 0.0  ;;  %v14247_v46 = vsel %vm2190_vm6, %v6633_v6, 0.0  ;;  %v14250_v13 = vsel %vm2190_vm6, %v6480_v23, 0.0 }
 0x6df   : > { %vm5348_vm5 = vc.u32 %v5340_v9, %v5344_v19  ;;  %v5329_v36 = vshrl.u32 %v5328_v28, 4  ;;  %v5350_v35 = vadd.s32 %v5344_v19, %v5340_v9  ;;  %v14255_v26 = vsel %vm2190_vm6, %v6634_v54, 0.0 }
 0x6e0   : > { %v5349_v56 = vsel %vm5348_vm5, 1, %v16449_v18  ;;  %v5366_v53 = vand.u32 65535, %v14241_v24  ;;  %16557 = vst [vmem:[#allocation91_spill] sm:$0xff] %v14255_v26  ;;  %v7269_v57 = vsel %vm14233_vm7, 1.0, %v16437_v38  ;;  %v5367_v52 = vshrl.u32 %v14241_v24, 16 }
 0x6e1   : > { %v5351_v20 = vadd.s32 %v5349_v56, %v5343_v3  ;;  %v5823_v49 = vmul.u32 24, %v5822_v0  ;;  %v5330_v23 = vmul.u32 24, %v5329_v36  ;;  %v5345_v58 = vshrl.u32 %v5341_v47, 16  ;;  %v4548_v47 = vpop.f32.mrf.mxu3  ;;  %v4419_v56 = vpop.f32.mrf.mxu2 }
 0x6e2   : > { %vm5352_vm2 = vc.u32 %v5350_v35, %v5346_v17  ;;  %v5369_v43 = vmul.u32 43691, %v5366_v53  ;;  %v5370_v6 = vmul.u32 43690, %v5366_v53  ;;  %v5371_v9 = vmul.u32 43691, %v5367_v52 }
 0x6e3   : > { %v5353_v27 = vsel %vm5352_vm2, 1, %v16449_v18  ;;  %v14263_v5 = vmul.f32 %v7269_v57, %v14107_v48  ;;  %v5331_v55 = vsub.s32 %v14169_v16, %v5330_v23  ;;  %v14267_v14 = vadd.s32 320, %v12181_v42  ;;  %v4510_v23 = vpop.f32.mrf.mxu1 }
 0x6e4   : > { %v5355_v54 = vadd.s32 %v5353_v27, %v5351_v20  ;;  %v5347_v3 = vshrl.u32 %v5342_v61, 16  ;;  %v5372_v19 = vmul.u32 43690, %v5367_v52  ;;  %v5373_v0 = vshll.u32 %v5370_v6, 16 }
 0x6e5   : > { %v5375_v28 = vshll.u32 %v5371_v9, 16  ;;  %v14270_v17 = vsub.s32 %v14110_v30, %v5823_v49  ;;  %vm6081_vm1 = vcmp.ne.s32.totalorder %v5331_v55, 0  ;;  %vm6129_vm15 = vcmp.lt.s32.totalorder %v5331_v55, 0 }
 0x6e6   : > { %v5374_v36 = vshrl.u32 %v5370_v6, 16  ;;  %vm6177_vm8 = vmand %vm6129_vm15, %vm6081_vm1  ;;  %v6225_v48 = vadd.s32 24, %v5331_v55  ;;  %v5356_v16 = vadd.s32 %v5355_v54, %v5345_v58  ;;  %vm5377_vm9 = vc.u32 %v5369_v43, %v5373_v0 }
 0x6e7   : > { %v5379_v35 = vadd.s32 %v5373_v0, %v5369_v43  ;;  %v5376_v53 = vshrl.u32 %v5371_v9, 16  ;;  %v5378_v61 = vsel %vm5377_vm9, 1, %v16449_v18  ;;  %v14273_v57 = vadd.f32 %v4548_v47, %v4419_v56 }
 0x6e8   : > { %v5830_v20 = vand.u32 65535, %v14267_v14  ;;  %v6273_v52 = vsel %vm6177_vm8, %v6225_v48, %v5331_v55  ;;  %v5357_v30 = vadd.s32 %v5356_v16, %v5347_v3  ;;  %v5380_v49 = vadd.s32 %v5378_v61, %v5372_v19 }
 0x6e9   : > { %vm5381_vm0 = vc.u32 %v5379_v35, %v5375_v28  ;;  %vm6321_vm14 = vcmp.lt.s32.totalorder %v6273_v52, 16  ;;  %4610 = vst.msk [vmem:[%s12585_s8 + $0x140] sm:$0xff] %vm2190_vm6, %v14273_v57  ;;  %v5831_v58 = vshrl.u32 %v14267_v14, 16  ;;  %v14283_v55 = vadd.s32 24, %v14270_v17 }
 0x6ea   : > { %v5382_v27 = vsel %vm5381_vm0, 1, %v16449_v18  ;;  %v5833_v43 = vmul.u32 43691, %v5830_v20  ;;  %v7253_v6 = vsel %vm6321_vm14, 1.0, %v16437_v38  ;;  %v5358_v9 = vshrl.u32 %v5357_v30, 4 }
 0x6eb   : > { %v5384_v54 = vadd.s32 %v5382_v27, %v5380_v49  ;;  %v5834_v0 = vmul.u32 43690, %v5830_v20  ;;  %v6465_v3 = vmul.f32 %v7253_v6, %v14166_v7  ;;  %v5835_v19 = vmul.u32 43691, %v5831_v58 }
 0x6ec   : > { %v14287_v28 = vadd.f32 %v4510_v23, %v13118_v44  ;;  %v5359_v47 = vmul.u32 24, %v5358_v9  ;;  %v5836_v48 = vmul.u32 43690, %v5831_v58  ;;  %v14298_v27 = vadd.s32 200, %v12181_v42  ;;  %v4550_v9 = vpop.f32.mrf.mxu3 }
 0x6ed   : > { %v5385_v56 = vadd.s32 %v5384_v54, %v5374_v36  ;;  %v5837_v16 = vshll.u32 %v5834_v0, 16  ;;  %v6535_v35 = vsel %vm2190_vm6, %v6465_v3, 0.0  ;;  %v6619_v61 = vmul.f32 %v6465_v3, %v6465_v3 }
 0x6ee   : > { %v5838_v52 = vshrl.u32 %v5834_v0, 16  ;;  %v5839_v30 = vshll.u32 %v5835_v19, 16  ;;  %4595 = vst.msk [vmem:[%s12585_s8 + $0xc8] sm:$0xff] %vm2190_vm6, %v14287_v28  ;;  %v6536_v20 = vadd.f32 %v6535_v35, %v14209_v8  ;;  %v5360_v7 = vsub.s32 %v14203_v1, %v5359_v47  ;;  %v4421_v1 = vpop.f32.mrf.mxu2 }
 0x6ef   : > { %v5386_v49 = vadd.s32 %v5385_v56, %v5376_v53  ;;  %vm5841_vm10 = vc.u32 %v5833_v43, %v5837_v16  ;;  %v6688_v44 = vsel %vm2190_vm6, %v6619_v61, 0.0  ;;  %v5843_v23 = vadd.s32 %v5837_v16, %v5833_v43 }
 0x6f0   : > { %v5842_v36 = vsel %vm5841_vm10, 1, %v16449_v18  ;;  %vm6098_vm4 = vcmp.ne.s32.totalorder %v14270_v17, 0  ;;  %vm6146_vm13 = vcmp.lt.s32.totalorder %v14270_v17, 0  ;;  %v6689_v58 = vadd.f32 %v6688_v44, %v14219_v25 }
 0x6f1   : > { %vm6082_vm11 = vcmp.ne.s32.totalorder %v5360_v7, 0  ;;  %vm6130_vm12 = vcmp.lt.s32.totalorder %v5360_v7, 0  ;;  %v6226_v8 = vadd.s32 24, %v5360_v7  ;;  %v5387_v53 = vshrl.u32 %v5386_v49, 4  ;;  %vm14325_vm9 = vmand %vm6146_vm13, %vm6098_vm4 }
 0x6f2   : > { %vm6178_vm3 = vmand %vm6130_vm12, %vm6082_vm11  ;;  %v5844_v6 = vadd.s32 %v5842_v36, %v5836_v48  ;;  %vm5845_vm7 = vc.u32 %v5843_v23, %v5839_v30  ;;  %v5395_v43 = vand.u32 65535, %v14298_v27  ;;  %v5396_v3 = vshrl.u32 %v14298_v27, 16 }
 0x6f3   : > { %v6274_v54 = vsel %vm6178_vm3, %v6226_v8, %v5360_v7  ;;  %v5846_v0 = vsel %vm5845_vm7, 1, %v16449_v18  ;;  %v14306_v47 = vadd.f32 %v4550_v9, %v4421_v1  ;;  %v5388_v25 = vmul.u32 24, %v5387_v53 }
 0x6f4   : > { %vm6322_vm5 = vcmp.lt.s32.totalorder %v6274_v54, 16  ;;  %v5840_v56 = vshrl.u32 %v5835_v19, 16  ;;  %v5848_v16 = vadd.s32 %v5846_v0, %v5844_v6  ;;  %v5398_v61 = vmul.u32 43691, %v5395_v43 }
 0x6f5   : > { %v7254_v35 = vsel %vm6322_vm5, 1.0, %v16437_v38  ;;  %v5399_v48 = vmul.u32 43690, %v5395_v43  ;;  %v5400_v49 = vmul.u32 43691, %v5396_v3  ;;  %4611 = vst.msk [vmem:[%s12585_s8 + $0x148] sm:$0xff] %vm2190_vm6, %v14306_v47  ;;  %v5389_v7 = vsub.s32 %v14241_v24, %v5388_v25 }
 0x6f6   : > { %v6466_v30 = vmul.f32 %v7254_v35, %v14200_v45  ;;  %v5849_v44 = vadd.s32 %v5848_v16, %v5838_v52  ;;  %v14315_v36 = vadd.s32 328, %v12181_v42  ;;  %v5401_v23 = vmul.u32 43690, %v5396_v3 }
 0x6f7   : > { %v5402_v8 = vshll.u32 %v5399_v48, 16  ;;  %v5403_v19 = vshrl.u32 %v5399_v48, 16  ;;  %v5404_v1 = vshll.u32 %v5400_v49, 16  ;;  %vm6083_vm2 = vcmp.ne.s32.totalorder %v5389_v7, 0 }
 0x6f8   : > { %v6537_v53 = vsel %vm2190_vm6, %v6466_v30, 0.0  ;;  %v6620_v6 = vmul.f32 %v6466_v30, %v6466_v30  ;;  %vm6131_vm1 = vcmp.lt.s32.totalorder %v5389_v7, 0  ;;  %v6227_v9 = vadd.s32 24, %v5389_v7 }
 0x6f9   : > { %v6538_v43 = vadd.f32 %v6537_v53, %v6536_v20  ;;  %vm6179_vm15 = vmand %vm6131_vm1, %vm6083_vm2  ;;  %v5850_v54 = vadd.s32 %v5849_v44, %v5840_v56  ;;  %vm5406_vm8 = vc.u32 %v5398_v61, %v5402_v8  ;;  %v5408_v52 = vadd.s32 %v5402_v8, %v5398_v61  ;;  %v4553_v44 = vpop.f32.mrf.mxu3 }
 0x6fa   : > { %v6690_v45 = vsel %vm2190_vm6, %v6620_v6, 0.0  ;;  %v5407_v24 = vsel %vm5406_vm8, 1, %v16449_v18  ;;  %v5859_v0 = vand.u32 65535, %v14315_v36  ;;  %v6275_v25 = vsel %vm6179_vm15, %v6227_v9, %v5389_v7 }
 0x6fb   : > { %v6691_v3 = vadd.f32 %v6690_v45, %v6689_v58  ;;  %v5851_v16 = vshrl.u32 %v5850_v54, 4  ;;  %v5409_v35 = vadd.s32 %v5407_v24, %v5401_v23  ;;  %vm6323_vm0 = vcmp.lt.s32.totalorder %v6275_v25, 16  ;;  %v4424_v23 = vpop.f32.mrf.mxu2 }
 0x6fc   : > { %v5405_v56 = vshrl.u32 %v5400_v49, 16  ;;  %vm5410_vm14 = vc.u32 %v5408_v52, %v5404_v1  ;;  %v5860_v48 = vshrl.u32 %v14315_v36, 16  ;;  %v7255_v61 = vsel %vm6323_vm0, 1.0, %v16437_v38 }
 0x6fd   : > { %v5852_v30 = vmul.u32 24, %v5851_v16  ;;  %v5411_v58 = vsel %vm5410_vm14, 1, %v16449_v18  ;;  %v5863_v7 = vmul.u32 43690, %v5859_v0  ;;  %v6467_v8 = vmul.f32 %v7255_v61, %v14231_v40 }
 0x6fe   : > { %v5413_v53 = vadd.s32 %v5411_v58, %v5409_v35  ;;  %v5862_v6 = vmul.u32 43691, %v5859_v0  ;;  %v5864_v9 = vmul.u32 43691, %v5860_v48  ;;  %v6290_v49 = vsel %vm14325_vm9, %v14283_v55, %v14270_v17 }
 0x6ff   : > { %v5853_v1 = vsub.s32 %v14267_v14, %v5852_v30  ;;  %v5866_v54 = vshll.u32 %v5863_v7, 16  ;;  %v14338_v45 = vadd.f32 %v4553_v44, %v4424_v23  ;;  %v6539_v24 = vsel %vm2190_vm6, %v6467_v8, 0.0 }
 0x700   : > { %v6621_v52 = vmul.f32 %v6467_v8, %v6467_v8  ;;  %v5414_v25 = vadd.s32 %v5413_v53, %v5403_v19  ;;  %v5865_v16 = vmul.u32 43690, %v5860_v48  ;;  %v14341_v40 = vadd.f32 %v6539_v24, %v6538_v43 }
 0x701   : > { %vm6099_vm10 = vcmp.ne.s32.totalorder %v5853_v1, 0  ;;  %vm6147_vm4 = vcmp.lt.s32.totalorder %v5853_v1, 0  ;;  %v5868_v0 = vshll.u32 %v5864_v9, 16  ;;  %4612 = vst.msk [vmem:[%s12585_s8 + $0x150] sm:$0xff] %vm2190_vm6, %v14338_v45  ;;  %vm6338_vm13 = vcmp.lt.s32.totalorder %v6290_v49, 16 }
 0x702   : > { %v6692_v17 = vsel %vm2190_vm6, %v6621_v52, 0.0  ;;  %v5415_v14 = vadd.s32 %v5414_v25, %v5405_v56  ;;  %vm5870_vm11 = vc.u32 %v5862_v6, %v5866_v54  ;;  %v6243_v35 = vadd.s32 24, %v5853_v1  ;;  %vm14352_vm12 = vmand %vm6147_vm4, %vm6099_vm10 }
 0x703   : > { %v14347_v55 = vadd.f32 %v6692_v17, %v6691_v3  ;;  %v5871_v20 = vsel %vm5870_vm11, 1, %v16449_v18  ;;  %v5872_v19 = vadd.s32 %v5866_v54, %v5862_v6  ;;  %v6635_v43 = vmul.f32 %v14263_v5, %v14263_v5 }
 0x704   : > { %v5416_v61 = vshrl.u32 %v5415_v14, 4  ;;  %v5873_v30 = vadd.s32 %v5871_v20, %v5865_v16  ;;  %v14357_v58 = vadd.s32 336, %v12181_v42  ;;  %v7270_v56 = vsel %vm6338_vm13, 1.0, %v16437_v38 }
 0x705   : > { %v5867_v3 = vshrl.u32 %v5863_v7, 16  ;;  %vm5874_vm3 = vc.u32 %v5872_v19, %v5868_v0  ;;  %v14361_v44 = vadd.s32 344, %v12181_v42  ;;  %v14365_v23 = vsel %vm2190_vm6, %v14263_v5, 0.0  ;;  %v4555_v19 = vpop.f32.mrf.mxu3 }
 0x706   : > { %v5417_v8 = vmul.u32 24, %v5416_v61  ;;  %v5875_v53 = vsel %vm5874_vm3, 1, %v16449_v18  ;;  %v5888_v6 = vand.u32 65535, %v14357_v58  ;;  %v6291_v49 = vsel %vm14352_vm12, %v6243_v35, %v5853_v1  ;;  %v4426_v1 = vpop.f32.mrf.mxu2 }
 0x707   : > { %v5869_v54 = vshrl.u32 %v5864_v9, 16  ;;  %v5877_v24 = vadd.s32 %v5875_v53, %v5873_v30  ;;  %v5889_v7 = vshrl.u32 %v14357_v58, 16  ;;  %v14373_v52 = vsel %vm2190_vm6, %v6635_v43, 0.0 }
 0x708   : > { %16562 = vst [vmem:[#allocation109_spill] sm:$0xff] %v14373_v52  ;;  %v14376_v25 = vmul.f32 %v7270_v56, %v14146_v62  ;;  %v5418_v5 = vsub.s32 %v14298_v27, %v5417_v8  ;;  %v5917_v16 = vand.u32 65535, %v14361_v44  ;;  %v5891_v17 = vmul.u32 43691, %v5888_v6 }
 0x709   : > { %v5878_v0 = vadd.s32 %v5877_v24, %v5867_v3  ;;  %v5892_v14 = vmul.u32 43690, %v5888_v6  ;;  %v5893_v20 = vmul.u32 43691, %v5889_v7  ;;  %vm14380_vm7 = vcmp.lt.s32.totalorder %v6291_v49, 16 }
 0x70a   : > { %vm6084_vm5 = vcmp.ne.s32.totalorder %v5418_v5, 0  ;;  %vm6132_vm2 = vcmp.lt.s32.totalorder %v5418_v5, 0  ;;  %v6228_v35 = vadd.s32 24, %v5418_v5  ;;  %v5918_v62 = vshrl.u32 %v14361_v44, 16 }
 0x70b   : > { %vm6180_vm1 = vmand %vm6132_vm2, %vm6084_vm5  ;;  %v5879_v27 = vadd.s32 %v5878_v0, %v5869_v54  ;;  %v5894_v43 = vmul.u32 43690, %v5889_v7  ;;  %v5895_v48 = vshll.u32 %v5892_v14, 16  ;;  %v5897_v61 = vshll.u32 %v5893_v20, 16 }
 0x70c   : > { %v6276_v30 = vsel %vm6180_vm1, %v6228_v35, %v5418_v5  ;;  %v14385_v56 = vadd.f32 %v4555_v19, %v4426_v1  ;;  %v5920_v3 = vmul.u32 43691, %v5917_v16  ;;  %v14388_v8 = vadd.s32 352, %v12181_v42 }
 0x70d   : > { %vm6324_vm15 = vcmp.lt.s32.totalorder %v6276_v30, 16  ;;  %v5880_v53 = vshrl.u32 %v5879_v27, 4  ;;  %vm5899_vm8 = vc.u32 %v5891_v17, %v5895_v48  ;;  %v5901_v6 = vadd.s32 %v5895_v48, %v5891_v17 }
 0x70e   : > { %16565 = vst [vmem:[#allocation113_spill] sm:$0xff] %v14385_v56  ;;  %v7256_v49 = vsel %vm6324_vm15, 1.0, %v16437_v38  ;;  %v5900_v24 = vsel %vm5899_vm8, 1, %v16449_v18  ;;  %v14395_v54 = vmul.u32 43690, %v5917_v16  ;;  %v14397_v7 = vmul.u32 43691, %v5918_v62 }
 0x70f   : > { %4613 = vst.msk [vmem:[%s12585_s8 + $0x158] sm:$0xff] %vm2190_vm6, %v14385_v56  ;;  %v6468_v5 = vmul.f32 %v7256_v49, %v14287_v28  ;;  %v5881_v0 = vmul.u32 24, %v5880_v53  ;;  %v5902_v19 = vadd.s32 %v5900_v24, %v5894_v43  ;;  %vm5903_vm9 = vc.u32 %v5901_v6, %v5897_v61  ;;  %v4558_v43 = vpop.f32.mrf.mxu3  ;;  %v4429_v61 = vpop.f32.mrf.mxu2 }
 0x710   : > { %v5896_v1 = vshrl.u32 %v5892_v14, 16  ;;  %v5898_v35 = vshrl.u32 %v5893_v20, 16  ;;  %v5904_v17 = vsel %vm5903_vm9, 1, %v16449_v18  ;;  %v5924_v27 = vshll.u32 %v14395_v54, 16 }
 0x711   : > { %v6541_v48 = vsel %vm2190_vm6, %v6468_v5, 0.0  ;;  %v6622_v30 = vmul.f32 %v6468_v5, %v6468_v5  ;;  %v5882_v56 = vsub.s32 %v14315_v36, %v5881_v0  ;;  %v5906_v16 = vadd.s32 %v5904_v17, %v5902_v19 }
 0x712   : > { %v6542_v52 = vadd.f32 %v6541_v48, %v14341_v40  ;;  %v5923_v26 = vmul.u32 43690, %v5918_v62  ;;  %v5926_v28 = vshll.u32 %v14397_v7, 16  ;;  %vm5928_vm0 = vc.u32 %v5920_v3, %v5924_v27 }
 0x713   : > { %v6694_v14 = vsel %vm2190_vm6, %v6622_v30, 0.0  ;;  %vm6100_vm14 = vcmp.ne.s32.totalorder %v5882_v56, 0  ;;  %vm6148_vm10 = vcmp.lt.s32.totalorder %v5882_v56, 0  ;;  %v6244_v20 = vadd.s32 24, %v5882_v56 }
 0x714   : > { %v6544_v53 = vadd.f32 %v13300_v63, %v6542_v52  ;;  %v6695_v6 = vadd.f32 %v6694_v14, %v14347_v55  ;;  %vm14409_vm4 = vmand %vm6148_vm10, %vm6100_vm14  ;;  %v5907_v40 = vadd.s32 %v5906_v16, %v5896_v1  ;;  %v5929_v62 = vsel %vm5928_vm0, 1, %v16449_v18 }
 0x715   : > { %v14416_v49 = vsel %vm2190_vm6, %v14376_v25, 0.0  ;;  %v7271_v24 = vsel %vm14380_vm7, 1.0, %v16437_v38  ;;  %v5930_v5 = vadd.s32 %v5924_v27, %v5920_v3  ;;  %v14421_v0 = vadd.f32 %v4558_v43, %v4429_v61 }
 0x716   : > { %v6546_v63 = vadd.f32 %v13454_v33, %v6544_v53  ;;  %v6697_v55 = vadd.f32 %v13432_v37, %v6695_v6  ;;  %v6292_v52 = vsel %vm14409_vm4, %v6244_v20, %v5882_v56  ;;  %v5908_v19 = vadd.s32 %v5907_v40, %v5898_v35 }
 0x717   : > { %v5931_v1 = vadd.s32 %v5929_v62, %v5923_v26  ;;  %vm5932_vm13 = vc.u32 %v5930_v5, %v5926_v28  ;;  %4614 = vst.msk [vmem:[%s12585_s8 + $0x160] sm:$0xff] %vm2190_vm6, %v14421_v0  ;;  %v5946_v17 = vand.u32 65535, %v14388_v8  ;;  %v5947_v9 = vshrl.u32 %v14388_v8, 16  ;;  %v4560_v62 = vpop.f32.mrf.mxu3 }
 0x718   : > { %v6548_v3 = vadd.f32 %v13528_v15, %v6546_v63  ;;  %v6699_v27 = vadd.f32 %v13477_v10, %v6697_v55  ;;  %v5909_v33 = vshrl.u32 %v5908_v19, 4  ;;  %v5925_v37 = vshrl.u32 %v14395_v54, 16 }
 0x719   : > { %vm6340_vm11 = vcmp.lt.s32.totalorder %v6292_v52, 16  ;;  %v5933_v56 = vsel %vm5932_vm13, 1, %v16449_v18  ;;  %v5950_v35 = vmul.u32 43690, %v5946_v17  ;;  %v14436_v26 = vmul.u32 43691, %v5947_v9 }
 0x71a   : > { %v6636_v48 = vmul.f32 %v14376_v25, %v14376_v25  ;;  %v6550_v30 = vadd.f32 %v13634_v50, %v6548_v3  ;;  %v6701_v16 = vadd.f32 %v13607_v29, %v6699_v27  ;;  %v5949_v28 = vmul.u32 43691, %v5946_v17 }
 0x71b   : > { %v5910_v15 = vmul.u32 24, %v5909_v33  ;;  %v5927_v10 = vshrl.u32 %v14397_v7, 16  ;;  %v5935_v43 = vadd.s32 %v5933_v56, %v5931_v1  ;;  %v5953_v14 = vshll.u32 %v5950_v35, 16 }
 0x71c   : > { %v6483_v54 = vmul.f32 %v7271_v24, %v14273_v57  ;;  %v6552_v20 = vadd.f32 %v13782_v11, %v6550_v30  ;;  %v6703_v61 = vadd.f32 %v13777_v51, %v6701_v16  ;;  %v7272_v53 = vsel %vm6340_vm11, 1.0, %v16437_v38  ;;  %v4431_v51 = vpop.f32.mrf.mxu2 }
 0x71d   : > { %v5911_v25 = vsub.s32 %v14357_v58, %v5910_v15  ;;  %v5936_v6 = vadd.s32 %v5935_v43, %v5925_v37  ;;  %v5952_v50 = vmul.u32 43690, %v5947_v9  ;;  %v5955_v29 = vshll.u32 %v14436_v26, 16 }
 0x71e   : > { %v6554_v36 = vadd.f32 %v13838_v12, %v6552_v20  ;;  %v6705_v7 = vadd.f32 %v13805_v22, %v6703_v61  ;;  %vm5957_vm12 = vc.u32 %v5949_v28, %v5953_v14  ;;  %v5959_v40 = vadd.s32 %v5953_v14, %v5949_v28 }
 0x71f   : > { %vm6101_vm3 = vcmp.ne.s32.totalorder %v5911_v25, 0  ;;  %vm6149_vm7 = vcmp.lt.s32.totalorder %v5911_v25, 0  ;;  %v6245_v57 = vadd.s32 24, %v5911_v25  ;;  %v5937_v11 = vadd.s32 %v5936_v6, %v5927_v10 }
 0x720   : > { %v6556_v24 = vadd.f32 %v13958_v34, %v6554_v36  ;;  %v6707_v58 = vadd.f32 %v13955_v2, %v6705_v7  ;;  %vm6197_vm5 = vmand %vm6149_vm7, %vm6101_vm3  ;;  %v5958_v5 = vsel %vm5957_vm12, 1, %v16449_v18  ;;  %vm5961_vm2 = vc.u32 %v5959_v40, %v5955_v29 }
 0x721   : > { %v6293_v63 = vsel %vm6197_vm5, %v6245_v57, %v5911_v25  ;;  %v5938_v12 = vshrl.u32 %v5937_v11, 4  ;;  %v5960_v22 = vadd.s32 %v5958_v5, %v5952_v50  ;;  %v5962_v55 = vsel %vm5961_vm2, 1, %v16449_v18  ;;  %v16568_v50 = vld [vmem:[#allocation91_spill] sm:$0xff] }
 0x722   : > { %v6709_v52 = vadd.f32 %v13968_v4, %v6707_v58  ;;  %v6558_v19 = vadd.f32 %v13983_v21, %v6556_v24  ;;  %vm6341_vm1 = vcmp.lt.s32.totalorder %v6293_v63, 16  ;;  %v14457_v1 = vadd.f32 %v4560_v62, %v4431_v51  ;;  %v16569_v62 = vld [vmem:[#allocation109_spill] sm:$0xff] }
 0x723   : > { %v5939_v34 = vmul.u32 24, %v5938_v12  ;;  %v5954_v17 = vshrl.u32 %v5950_v35, 16  ;;  %v5964_v2 = vadd.s32 %v5962_v55, %v5960_v22  ;;  %v14460_v9 = vadd.s32 360, %v12181_v42  ;;  %v16570_v24 = vld [vmem:[#allocation113_spill] sm:$0xff] }
 0x724   : > { %v6722_v3 = vsel %vm2190_vm6, %v6636_v48, 0.0  ;;  %v6637_v27 = vmul.f32 %v6483_v54, %v6483_v54  ;;  %v6560_v33 = vadd.f32 %v14085_v59, %v6558_v19  ;;  %v6711_v37 = vadd.f32 %v14081_v39, %v6709_v52  ;;  %4615 = vst.msk [vmem:[%s12585_s8 + $0x168] sm:$0xff] %vm2190_vm6, %v14457_v1  ;;  %v4434_v61 = vpop.f32.mrf.mxu2 }
 0x725   : > { %v7273_v4 = vsel %vm6341_vm1, 1.0, %v16437_v38  ;;  %v5940_v21 = vsub.s32 %v14361_v44, %v5939_v34  ;;  %v5975_v56 = vand.u32 65535, %v14460_v9  ;;  %v5976_v35 = vshrl.u32 %v14460_v9, 16 }
 0x726   : > { %v6484_v30 = vmul.f32 %v7272_v53, %v14306_v47  ;;  %v6562_v48 = vadd.f32 %v14224_v31, %v6560_v33  ;;  %v6713_v16 = vadd.f32 %v14113_v41, %v6711_v37  ;;  %v5956_v59 = vshrl.u32 %v14436_v26, 16  ;;  %v4563_v41 = vpop.f32.mrf.mxu3 }
 0x727   : > { %vm6102_vm15 = vcmp.ne.s32.totalorder %v5940_v21, 0  ;;  %vm6150_vm8 = vcmp.lt.s32.totalorder %v5940_v21, 0  ;;  %v6246_v39 = vadd.s32 24, %v5940_v21  ;;  %v5965_v28 = vadd.s32 %v5964_v2, %v5954_v17 }
 0x728   : > { %v6571_v15 = vsel %vm2190_vm6, %v6483_v54, 0.0  ;;  %v6564_v44 = vadd.f32 %v14244_v60, %v6562_v48  ;;  %v6715_v10 = vadd.f32 %v14228_v32, %v6713_v16  ;;  %v6485_v43 = vmul.f32 %v7273_v4, %v14338_v45  ;;  %vm6198_vm9 = vmand %vm6150_vm8, %vm6102_vm15 }
 0x729   : > { %v6294_v47 = vsel %vm6198_vm9, %v6246_v39, %v5940_v21  ;;  %v5978_v14 = vmul.u32 43691, %v5975_v56  ;;  %v5979_v31 = vmul.u32 43690, %v5975_v56  ;;  %v5980_v20 = vmul.u32 43691, %v5976_v35 }
 0x72a   : > { %v6724_v26 = vsel %vm2190_vm6, %v6637_v27, 0.0  ;;  %v6566_v53 = vadd.f32 %v14250_v13, %v6564_v44  ;;  %v6717_v25 = vadd.f32 %v14247_v46, %v6715_v10  ;;  %vm6342_vm0 = vcmp.lt.s32.totalorder %v6294_v47, 16 }
 0x72b   : > { %v6638_v54 = vmul.f32 %v6484_v30, %v6484_v30  ;;  %v7274_v60 = vsel %vm6342_vm0, 1.0, %v16437_v38  ;;  %v5966_v32 = vadd.s32 %v5965_v28, %v5956_v59  ;;  %v5982_v6 = vshll.u32 %v5979_v31, 16 }
 0x72c   : > { %v6568_v45 = vadd.f32 %v14365_v23, %v6566_v53  ;;  %v6719_v29 = vadd.f32 %v16568_v50, %v6717_v25  ;;  %v6639_v36 = vmul.f32 %v6485_v43, %v6485_v43  ;;  %v5981_v7 = vmul.u32 43690, %v5976_v35 }
 0x72d   : > { %v5984_v40 = vshll.u32 %v5980_v20, 16  ;;  %vm5986_vm14 = vc.u32 %v5978_v14, %v5982_v6  ;;  %v5988_v57 = vadd.s32 %v5982_v6, %v5978_v14  ;;  %v14487_v11 = vadd.s32 368, %v12181_v42 }
 0x72e   : > { %v6570_v46 = vadd.f32 %v14416_v49, %v6568_v45  ;;  %v6573_v13 = vsel %vm2190_vm6, %v6484_v30, 0.0  ;;  %v6721_v51 = vadd.f32 %v16569_v62, %v6719_v29  ;;  %v6486_v58 = vmul.f32 %v7274_v60, %v16570_v24  ;;  %v4565_v35 = vpop.f32.mrf.mxu3  ;;  %v4436_v30 = vpop.f32.mrf.mxu2 }
 0x72f   : > { %v6726_v23 = vsel %vm2190_vm6, %v6638_v54, 0.0  ;;  %v6575_v5 = vsel %vm2190_vm6, %v6485_v43, 0.0  ;;  %v5967_v63 = vshrl.u32 %v5966_v32, 4  ;;  %v5987_v12 = vsel %vm5986_vm14, 1, %v16449_v18 }
 0x730   : > { %v6572_v22 = vadd.f32 %v6571_v15, %v6570_v46  ;;  %v6723_v55 = vadd.f32 %v6722_v3, %v6721_v51  ;;  %v6728_v52 = vsel %vm2190_vm6, %v6639_v36, 0.0  ;;  %v5989_v19 = vadd.s32 %v5987_v12, %v5981_v7 }
 0x731   : > { %v5983_v49 = vshrl.u32 %v5979_v31, 16  ;;  %vm5990_vm10 = vc.u32 %v5988_v57, %v5984_v40  ;;  %v14497_v34 = vadd.f32 %v4563_v41, %v4434_v61  ;;  %v6004_v17 = vand.u32 65535, %v14487_v11 }
 0x732   : > { %v6574_v2 = vadd.f32 %v6573_v13, %v6572_v22  ;;  %v6725_v27 = vadd.f32 %v6724_v26, %v6723_v55  ;;  %v6640_v33 = vmul.f32 %v6486_v58, %v6486_v58  ;;  %v5991_v37 = vsel %vm5990_vm10, 1, %v16449_v18 }
 0x733   : > { %v5968_v4 = vmul.u32 24, %v5967_v63  ;;  %v5985_v21 = vshrl.u32 %v5980_v20, 16  ;;  %v5993_v56 = vadd.s32 %v5991_v37, %v5989_v19  ;;  %4616 = vst.msk [vmem:[%s12585_s8 + $0x170] sm:$0xff] %vm2190_vm6, %v14497_v34  ;;  %v6005_v3 = vshrl.u32 %v14487_v11, 16 }
 0x734   : > { %v6727_v48 = vadd.f32 %v6726_v23, %v6725_v27  ;;  %v6576_v16 = vadd.f32 %v6575_v5, %v6574_v2  ;;  %v6577_v59 = vsel %vm2190_vm6, %v6486_v58, 0.0  ;;  %v6008_v39 = vmul.u32 43690, %v6004_v17 }
 0x735   : > { %v5994_v28 = vadd.s32 %v5993_v56, %v5983_v49  ;;  %v6007_v15 = vmul.u32 43691, %v6004_v17  ;;  %v6009_v44 = vmul.u32 43691, %v6005_v3  ;;  %v14506_v10 = vadd.f32 %v4565_v35, %v4436_v30 }
 0x736   : > { %v6729_v43 = vadd.f32 %v6728_v52, %v6727_v48  ;;  %v14508_v47 = vadd.f32 %v6577_v59, %v6576_v16  ;;  %v6730_v14 = vsel %vm2190_vm6, %v6640_v33, 0.0  ;;  %v6010_v20 = vmul.u32 43690, %v6005_v3 }
 0x737   : > { %v5995_v31 = vadd.s32 %v5994_v28, %v5985_v21  ;;  %v6011_v41 = vshll.u32 %v6008_v39, 16  ;;  %v6013_v61 = vshll.u32 %v6009_v44, 16  ;;  %4617 = vst.msk [vmem:[%s12585_s8 + $0x178] sm:$0xff] %vm2190_vm6, %v14506_v10  ;;  %v5969_v53 = vsub.s32 %v14388_v8, %v5968_v4 }
 0x738   : > { %v14514_v26 = vadd.f32 %v6730_v14, %v6729_v43  ;;  %v4666_v60 = vadd.s32 376, %v12181_v42  ;;  %v6012_v32 = vshrl.u32 %v6008_v39, 16  ;;  %v6014_v8 = vshrl.u32 %v6009_v44, 16 }
 0x739   : > { %v5996_v25 = vshrl.u32 %v5995_v31, 4  ;;  %vm6015_vm4 = vc.u32 %v6007_v15, %v6011_v41  ;;  %v6017_v54 = vadd.s32 %v6011_v41, %v6007_v15  ;;  %vm6103_vm11 = vcmp.ne.s32.totalorder %v5969_v53, 0 }
 0x73a   : > { %v6016_v6 = vsel %vm6015_vm4, 1, %v16449_v18  ;;  %v6033_v29 = vand.u32 65535, %v4666_v60  ;;  %vm6151_vm12 = vcmp.lt.s32.totalorder %v5969_v53, 0  ;;  %v6034_v7 = vshrl.u32 %v4666_v60, 16 }
 0x73b   : > { %v5997_v45 = vmul.u32 24, %v5996_v25  ;;  %v6018_v50 = vadd.s32 %v6016_v6, %v6010_v20  ;;  %vm6019_vm13 = vc.u32 %v6017_v54, %v6013_v61  ;;  %v6247_v13 = vadd.s32 24, %v5969_v53  ;;  %vm14521_vm3 = vmand %vm6151_vm12, %vm6103_vm11 }
 0x73c   : > { %v6020_v36 = vsel %vm6019_vm13, 1, %v16449_v18  ;;  %v6037_v46 = vmul.u32 43690, %v6033_v29  ;;  %v6036_v62 = vmul.u32 43691, %v6033_v29  ;;  %v6038_v42 = vmul.u32 43691, %v6034_v7 }
 0x73d   : > { %v5998_v40 = vsub.s32 %v14460_v9, %v5997_v45  ;;  %v6022_v57 = vadd.s32 %v6020_v36, %v6018_v50  ;;  %v6039_v58 = vmul.u32 43690, %v6034_v7  ;;  %v6295_v9 = vsel %vm14521_vm3, %v6247_v13, %v5969_v53 }
 0x73e   : > { %v6040_v23 = vshll.u32 %v6037_v46, 16  ;;  %v6042_v5 = vshll.u32 %v6038_v42, 16  ;;  %v6041_v19 = vshrl.u32 %v6037_v46, 16  ;;  %vm6343_vm8 = vcmp.lt.s32.totalorder %v6295_v9, 16 }
 0x73f   : > { %v6023_v24 = vadd.s32 %v6022_v57, %v6012_v32  ;;  %vm6104_vm7 = vcmp.ne.s32.totalorder %v5998_v40, 0  ;;  %vm6152_vm5 = vcmp.lt.s32.totalorder %v5998_v40, 0  ;;  %v6248_v12 = vadd.s32 24, %v5998_v40 }
 0x740   : > { %vm6044_vm2 = vc.u32 %v6036_v62, %v6040_v23  ;;  %v6046_v22 = vadd.s32 %v6040_v23, %v6036_v62  ;;  %vm6200_vm1 = vmand %vm6152_vm5, %vm6104_vm7  ;;  %v6043_v33 = vshrl.u32 %v6038_v42, 16  ;;  %v7275_v21 = vsel %vm6343_vm8, 1.0, %v16437_v38 }
 0x741   : > { %v6024_v63 = vadd.s32 %v6023_v24, %v6014_v8  ;;  %v6045_v52 = vsel %vm6044_vm2, 1, %v16449_v18  ;;  %v6296_v27 = vsel %vm6200_vm1, %v6248_v12, %v5998_v40  ;;  %v6487_v30 = vmul.f32 %v7275_v21, %v14421_v0 }
 0x742   : > { %v6047_v49 = vadd.s32 %v6045_v52, %v6039_v58  ;;  %vm6048_vm15 = vc.u32 %v6046_v22, %v6042_v5  ;;  %vm6344_vm9 = vcmp.lt.s32.totalorder %v6296_v27, 16  ;;  %vm6594_vm7 = vcmask 122880   ;;  %v6596_v5 = vld [vmem:[#allocation4] sm:$0x1] }
 0x743   : > { %v6025_v55 = vshrl.u32 %v6024_v63, 4  ;;  %v6049_v2 = vsel %vm6048_vm15, 1, %v16449_v18  ;;  %v7276_v16 = vsel %vm6344_vm9, 1.0, %v16437_v38  ;;  %v6579_v43 = vsel %vm2190_vm6, %v6487_v30, 0.0 }
 0x744   : > { %v6051_v37 = vadd.s32 %v6049_v2, %v6047_v49  ;;  %v6488_v28 = vmul.f32 %v7276_v16, %v14457_v1  ;;  %v6580_v14 = vadd.f32 %v6579_v43, %v14508_v47 }
 0x745   : > { %v6026_v17 = vmul.u32 24, %v6025_v55 }
 0x746   : > { %v6052_v56 = vadd.s32 %v6051_v37, %v6041_v19  ;;  %v6642_v20 = vmul.f32 %v6488_v28, %v6488_v28  ;;  %v6581_v1 = vsel %vm2190_vm6, %v6488_v28, 0.0 }
 0x747   : > { %v6027_v4 = vsub.s32 %v14487_v11, %v6026_v17  ;;  %v6641_v11 = vmul.f32 %v6487_v30, %v6487_v30  ;;  %v6582_v25 = vadd.f32 %v6581_v1, %v6580_v14 }
 0x748   : > { %v6053_v35 = vadd.s32 %v6052_v56, %v6043_v33  ;;  %v6734_v47 = vsel %vm2190_vm6, %v6642_v20, 0.0 }
 0x749   : > { %vm6105_vm0 = vcmp.ne.s32.totalorder %v6027_v4, 0  ;;  %vm6153_vm14 = vcmp.lt.s32.totalorder %v6027_v4, 0  ;;  %v6249_v3 = vadd.s32 24, %v6027_v4  ;;  %v6732_v31 = vsel %vm2190_vm6, %v6641_v11, 0.0 }
 0x74a   : > { %vm6201_vm10 = vmand %vm6153_vm14, %vm6105_vm0  ;;  %v6054_v18 = vshrl.u32 %v6053_v35, 4  ;;  %v6733_v61 = vadd.f32 %v6732_v31, %v14514_v26 }
 0x74b   : > { %v6297_v48 = vsel %vm6201_vm10, %v6249_v3, %v6027_v4 }
 0x74c   : > { %vm6345_vm4 = vcmp.lt.s32.totalorder %v6297_v48, 16  ;;  %v6055_v39 = vmul.u32 24, %v6054_v18  ;;  %v6735_v6 = vadd.f32 %v6734_v47, %v6733_v61 }
 0x74d   : > { %v7277_v59 = vsel %vm6345_vm4, 1.0, %v16437_v38 }
 0x74e   : > { %v6489_v15 = vmul.f32 %v7277_v59, %v14497_v34  ;;  %v6056_v44 = vsub.s32 %v4666_v60, %v6055_v39 }
 0x750   : > { %vm6106_vm13 = vcmp.ne.s32.totalorder %v6056_v44, 0  ;;  %vm6154_vm11 = vcmp.lt.s32.totalorder %v6056_v44, 0  ;;  %v6250_v0 = vadd.s32 24, %v6056_v44  ;;  %v6643_v41 = vmul.f32 %v6489_v15, %v6489_v15 }
 0x751   : > { %vm6202_vm12 = vmand %vm6154_vm11, %vm6106_vm13  ;;  %v6583_v34 = vsel %vm2190_vm6, %v6489_v15, 0.0 }
 0x752   : > { %v6298_v53 = vsel %vm6202_vm12, %v6250_v0, %v6056_v44  ;;  %v6736_v60 = vsel %vm2190_vm6, %v6643_v41, 0.0  ;;  %v6584_v45 = vadd.f32 %v6583_v34, %v6582_v25 }
 0x753   : > { %vm6346_vm3 = vcmp.lt.s32.totalorder %v6298_v53, 16  ;;  %v6737_v29 = vadd.f32 %v6736_v60, %v6735_v6 }
 0x754   : > { %v7278_v54 = vsel %vm6346_vm3, 1.0, %v16437_v38 }
 0x755   : > { %v6490_v32 = vmul.f32 %v7278_v54, %v14506_v10  ;;  %v6491_v10 = vld [vmem:[#allocation3] sm:$0x1] }
 0x757   : > { %v6585_v50 = vsel %vm2190_vm6, %v6490_v32, 0.0  ;;  %v6644_v26 = vmul.f32 %v6490_v32, %v6490_v32 }
 0x758   : > { %v6586_v36 = vadd.f32 %v6585_v50, %v6584_v45 }
 0x759   : > { %v6738_v7 = vsel %vm2190_vm6, %v6644_v26, 0.0 }
 0x75a   : > { %v6587_v40 = vrot.slane %v6586_v36, 4  ;;  %v6739_v8 = vadd.f32 %v6738_v7, %v6737_v29 }
 0x75c   : > { %v6588_v57 = vadd.f32 %v6587_v40, %v6586_v36  ;;  %v6740_v46 = vrot.slane %v6739_v8, 4 }
 0x75e   : > { %v6589_v38 = vrot.slane %v6588_v57, 2  ;;  %v6741_v13 = vadd.f32 %v6740_v46, %v6739_v8 }
 0x760   : > { %v6590_v62 = vadd.f32 %v6589_v38, %v6588_v57  ;;  %v6742_v42 = vrot.slane %v6741_v13, 2 }
 0x762   : > { %v6591_v51 = vrot.slane %v6590_v62, 1  ;;  %v6743_v24 = vadd.f32 %v6742_v42, %v6741_v13 }
 0x764   : > { %v6592_v58 = vadd.f32 %v6591_v51, %v6590_v62  ;;  %v6744_v23 = vrot.slane %v6743_v24, 1 }
 0x766   : > { %v6593_v63 = vadd.f32 %v6592_v58, %v6491_v10  ;;  %v6745_v9 = vadd.f32 %v6744_v23, %v6743_v24 }
 0x768   : > { %6595 = vst.msk [vmem:[#allocation3] sm:$0x1] %vm6594_vm7, %v6593_v63  ;;  %v6746_v12 = vadd.f32 %v6745_v9, %v6596_v5 }
 0x76a   : > { %6747 = vst.msk [vmem:[#allocation4] sm:$0x1] %vm6594_vm7, %v6746_v12 }
 0x76b PF: > { %p7279_p9 = scmp.ne.s32.totalorder %s7775_s16, 1 }
 0x76c   : > { %s6775_s7 = smul.u32 (!%p7279_p9), 384, %s7771_s15 }
 0x76d   : > { %6751 = sbr.rel (%p7279_p9) target bundleno = 1997 (0x7cd), region = 48 }
 0x76e   : > { %s14556_s13 = scalar_lea.vmem (!%p7279_p9), [#allocation2], %s6775_s7 }
 0x772   : > { %v6752_v22 = vld [vmem:[#allocation3] sm:$0x1]  ;;  %v6754_v55 = vld [vmem:[#allocation4] sm:$0x1]  ;;  %v6778_v59 = vld [vmem:[%s14556_s13 + $0x8] sm:$0xff]  ;;  %vm7023_vm1 = vcmask 125952  }
 0x773   : > { %v6753_v52 = vmul.f32 0.001953125, %v6752_v22  ;;  %v6755_v19 = vmul.f32 0.001953125, %v6754_v55  ;;  %v6770_v35 = vld [vmem:[%s14819_s2] sm:$0x1]  ;;  %v6779_v39 = vld [vmem:[%s14556_s13 + $0x10] sm:$0xff]  ;;  %v6780_v11 = vld [vmem:[%s14556_s13 + $0x18] sm:$0xff] }
 0x774   : > { %v6772_v16 = vld [vmem:[%s14820_s3] sm:$0x1]  ;;  %v6782_v43 = vld [vmem:[%s14556_s13 + $0x28] sm:$0xff]  ;;  %v6783_v14 = vld [vmem:[%s14556_s13 + $0x30] sm:$0xff] }
 0x775   : > { %v6756_v49 = vmul.f32 %v6753_v52, %v6753_v52  ;;  %v6777_v18 = vld [vmem:[%s14556_s13] sm:$0xff]  ;;  %v6784_v0 = vld [vmem:[%s14556_s13 + $0x38] sm:$0xff]  ;;  %v6786_v20 = vld [vmem:[%s14556_s13 + $0x48] sm:$0xff] }
 0x776   : > { %v6781_v28 = vld [vmem:[%s14556_s13 + $0x20] sm:$0xff]  ;;  %v6787_v41 = vld [vmem:[%s14556_s13 + $0x50] sm:$0xff]  ;;  %v6788_v25 = vld [vmem:[%s14556_s13 + $0x58] sm:$0xff] }
 0x777   : > { %v6757_v17 = vsub.f32 %v6755_v19, %v6756_v49  ;;  %v6785_v31 = vld [vmem:[%s14556_s13 + $0x40] sm:$0xff]  ;;  %v6790_v47 = vld [vmem:[%s14556_s13 + $0x68] sm:$0xff] }
 0x778   : > { %v6789_v54 = vld [vmem:[%s14556_s13 + $0x60] sm:$0xff] }
 0x779   : > { %v6758_v2 = vmax.f32 %v6757_v17, 0.0 }
 0x77b   : > { %v6759_v27 = vadd.f32 1e-05, %v6758_v2  ;;  %v6791_v2 = vld [vmem:[%s14556_s13 + $0x70] sm:$0xff] }
 0x77d   : > { %7740 = vrsqrt.f32 %v6759_v27  ;;  %vm6766_vm6 = vweird.f32 %v6759_v27 }
 0x783   : > { %v7741_v33 = vpop.eup %7740 }
 0x784   : > { %v6761_v37 = vmul.f32 %v7741_v33, %v6759_v27  ;;  %vm6767_vm5 = vweird.f32 %v7741_v33  ;;  %v6792_v27 = vld [vmem:[%s14556_s13 + $0x78] sm:$0xff] }
 0x785   : > { %vm6768_vm2 = vmor %vm6766_vm6, %vm6767_vm5 }
 0x786   : > { %v6762_v4 = vmul.f32 %v7741_v33, %v6761_v37 }
 0x788   : > { %v6763_v21 = vmul.f32 0.5, %v6762_v4 }
 0x78a   : > { %v6764_v56 = vsub.f32 1.5, %v6763_v21 }
 0x78c   : > { %v6765_v3 = vmul.f32 %v7741_v33, %v6764_v56 }
 0x78e   : > { %v6769_v30 = vsel %vm6768_vm2, %v7741_v33, %v6765_v3 }
 0x78f   : > { %v6771_v48 = vmul.f32 %v6770_v35, %v6769_v30 }
 0x791   : > { %v6773_v15 = vmul.f32 %v6771_v48, %v6753_v52  ;;  %v14563_v44 = vperm.slane %v6771_v48, 0 }
 0x793   : > { %v6774_v61 = vsub.f32 %v6772_v16, %v6773_v15  ;;  %v6828_v53 = vmul.f32 %v14563_v44, %v6777_v18  ;;  %v6829_v1 = vmul.f32 %v14563_v44, %v6778_v59  ;;  %v6830_v34 = vmul.f32 %v14563_v44, %v6779_v39  ;;  %v6793_v39 = vld [vmem:[%s14556_s13 + $0x80] sm:$0xff] }
 0x794   : > { %v6831_v60 = vmul.f32 %v14563_v44, %v6780_v11  ;;  %v6832_v32 = vmul.f32 %v14563_v44, %v6781_v28  ;;  %v6833_v6 = vmul.f32 %v14563_v44, %v6782_v43  ;;  %v6834_v45 = vmul.f32 %v14563_v44, %v6783_v14  ;;  %v6794_v11 = vld [vmem:[%s14556_s13 + $0x88] sm:$0xff] }
 0x795   : > { %v14581_v50 = vperm.slane %v6774_v61, 0  ;;  %v6835_v26 = vmul.f32 %v14563_v44, %v6784_v0  ;;  %v6836_v29 = vmul.f32 %v14563_v44, %v6785_v31  ;;  %v6837_v36 = vmul.f32 %v14563_v44, %v6786_v20  ;;  %v6795_v61 = vld [vmem:[%s14556_s13 + $0x90] sm:$0xff] }
 0x796   : > { %v6838_v7 = vmul.f32 %v14563_v44, %v6787_v41  ;;  %v6839_v40 = vmul.f32 %v14563_v44, %v6788_v25  ;;  %v6840_v8 = vmul.f32 %v14563_v44, %v6789_v54  ;;  %v6841_v57 = vmul.f32 %v14563_v44, %v6790_v47  ;;  %v6797_v47 = vld [vmem:[%s14556_s13 + $0xa0] sm:$0xff] }
 0x797   : > { %v6879_v46 = vadd.f32 %v14581_v50, %v6828_v53  ;;  %v6880_v38 = vadd.f32 %v14581_v50, %v6829_v1  ;;  %v6881_v13 = vadd.f32 %v14581_v50, %v6830_v34  ;;  %v6882_v62 = vadd.f32 %v14581_v50, %v6831_v60  ;;  %v6796_v53 = vld [vmem:[%s14556_s13 + $0x98] sm:$0xff]  ;;  %v6798_v60 = vld [vmem:[%s14556_s13 + $0xa8] sm:$0xff] }
 0x798   : > { %v6883_v42 = vadd.f32 %v14581_v50, %v6832_v32  ;;  %v6884_v51 = vadd.f32 %v14581_v50, %v6833_v6  ;;  %v6885_v24 = vadd.f32 %v14581_v50, %v6834_v45  ;;  %v6886_v10 = vadd.f32 %v14581_v50, %v6835_v26 }
 0x799   : > { %v6927_v58 = vmax.f32 %v6879_v46, 0.0  ;;  %v6928_v23 = vmax.f32 %v6880_v38, 0.0  ;;  %v6929_v5 = vmax.f32 %v6881_v13, 0.0  ;;  %v6930_v63 = vmax.f32 %v6882_v62, 0.0 }
 0x79a   : > { %v6931_v9 = vmax.f32 %v6883_v42, 0.0  ;;  %v6932_v12 = vmax.f32 %v6884_v51, 0.0  ;;  %v6933_v22 = vmax.f32 %v6885_v24, 0.0  ;;  %v6934_v55 = vmax.f32 %v6886_v10, 0.0 }
 0x79b   : > { %v6975_v52 = vpack.c.bf16 %v6927_v58, %v6927_v58  ;;  %v6976_v19 = vpack.c.bf16 %v6928_v23, %v6928_v23  ;;  %v6977_v49 = vpack.c.bf16 %v6929_v5, %v6929_v5  ;;  %v6978_v17 = vpack.c.bf16 %v6930_v63, %v6930_v63 }
 0x79c   : > { %v6979_v33 = vpack.c.bf16 %v6931_v9, %v6931_v9  ;;  %v6980_v37 = vpack.c.bf16 %v6932_v12, %v6932_v12  ;;  %v6981_v4 = vpack.c.bf16 %v6933_v22, %v6933_v22  ;;  %v6982_v21 = vpack.c.bf16 %v6934_v55, %v6934_v55  ;;  %v6801_v9 = vld [vmem:[%s14556_s13 + $0xc0] sm:$0xff]  ;;  %v6802_v12 = vld [vmem:[%s14556_s13 + $0xc8] sm:$0xff] }
 0x79d   : > { %7024 = vst.msk [vmem:[%s7874_s30] sm:$0xf] %vm7023_vm1, %v6975_v52  ;;  %v6887_v56 = vadd.f32 %v14581_v50, %v6836_v29  ;;  %v6888_v3 = vadd.f32 %v14581_v50, %v6837_v36  ;;  %v6889_v35 = vadd.f32 %v14581_v50, %v6838_v7  ;;  %v6890_v30 = vadd.f32 %v14581_v50, %v6839_v40 }
 0x79e   : > { %7025 = vst.msk [vmem:[%s7874_s30 + $0x4] sm:$0xf] %vm7023_vm1, %v6976_v19  ;;  %v6891_v48 = vadd.f32 %v14581_v50, %v6840_v8  ;;  %v6892_v16 = vadd.f32 %v14581_v50, %v6841_v57  ;;  %v6842_v18 = vmul.f32 %v14563_v44, %v6791_v2  ;;  %v6843_v59 = vmul.f32 %v14563_v44, %v6792_v27  ;;  %v6799_v8 = vld [vmem:[%s14556_s13 + $0xb0] sm:$0xff]  ;;  %v6800_v57 = vld [vmem:[%s14556_s13 + $0xb8] sm:$0xff] }
 0x79f   : > { %7026 = vst.msk [vmem:[%s7874_s30 + $0x8] sm:$0xf] %vm7023_vm1, %v6977_v49  ;;  %v6935_v28 = vmax.f32 %v6887_v56, 0.0  ;;  %v6936_v15 = vmax.f32 %v6888_v3, 0.0  ;;  %v6937_v43 = vmax.f32 %v6889_v35, 0.0  ;;  %v6938_v14 = vmax.f32 %v6890_v30, 0.0 }
 0x7a0   : > { %7027 = vst.msk [vmem:[%s7874_s30 + $0xc] sm:$0xf] %vm7023_vm1, %v6978_v17  ;;  %v6939_v0 = vmax.f32 %v6891_v48, 0.0  ;;  %v6940_v31 = vmax.f32 %v6892_v16, 0.0  ;;  %v6893_v20 = vadd.f32 %v14581_v50, %v6842_v18  ;;  %v6894_v41 = vadd.f32 %v14581_v50, %v6843_v59  ;;  %v6805_v35 = vld [vmem:[%s14556_s13 + $0xe0] sm:$0xff]  ;;  %v6806_v30 = vld [vmem:[%s14556_s13 + $0xe8] sm:$0xff] }
 0x7a1   : > { %7028 = vst.msk [vmem:[%s7874_s30 + $0x10] sm:$0xf] %vm7023_vm1, %v6979_v33  ;;  %v6983_v1 = vpack.c.bf16 %v6935_v28, %v6935_v28  ;;  %v6984_v34 = vpack.c.bf16 %v6936_v15, %v6936_v15  ;;  %v6985_v25 = vpack.c.bf16 %v6937_v43, %v6937_v43  ;;  %v6986_v54 = vpack.c.bf16 %v6938_v14, %v6938_v14  ;;  %v6803_v33 = vld [vmem:[%s14556_s13 + $0xd0] sm:$0xff]  ;;  %v6808_v14 = vld [vmem:[%s14556_s13 + $0xf8] sm:$0xff] }
 0x7a2   : > { %7029 = vst.msk [vmem:[%s7874_s30 + $0x14] sm:$0xf] %vm7023_vm1, %v6980_v37  ;;  %v6987_v32 = vpack.c.bf16 %v6939_v0, %v6939_v0  ;;  %v6988_v6 = vpack.c.bf16 %v6940_v31, %v6940_v31  ;;  %v6941_v45 = vmax.f32 %v6893_v20, 0.0  ;;  %v6942_v26 = vmax.f32 %v6894_v41, 0.0  ;;  %v6804_v37 = vld [vmem:[%s14556_s13 + $0xd8] sm:$0xff]  ;;  %v6807_v43 = vld [vmem:[%s14556_s13 + $0xf0] sm:$0xff] }
 0x7a3   : > { %7030 = vst.msk [vmem:[%s7874_s30 + $0x18] sm:$0xf] %vm7023_vm1, %v6981_v4  ;;  %v6844_v29 = vmul.f32 %v14563_v44, %v6793_v39  ;;  %v6845_v36 = vmul.f32 %v14563_v44, %v6794_v11  ;;  %v6846_v7 = vmul.f32 %v14563_v44, %v6795_v61  ;;  %v6847_v40 = vmul.f32 %v14563_v44, %v6796_v53 }
 0x7a4   : > { %7031 = vst.msk [vmem:[%s7874_s30 + $0x1c] sm:$0xf] %vm7023_vm1, %v6982_v21  ;;  %v6989_v46 = vpack.c.bf16 %v6941_v45, %v6941_v45  ;;  %v6990_v38 = vpack.c.bf16 %v6942_v26, %v6942_v26  ;;  %v6848_v13 = vmul.f32 %v14563_v44, %v6797_v47  ;;  %v6849_v62 = vmul.f32 %v14563_v44, %v6798_v60 }
 0x7a5   : > { %7032 = vst.msk [vmem:[%s7874_s30 + $0x20] sm:$0xf] %vm7023_vm1, %v6983_v1  ;;  %v6895_v42 = vadd.f32 %v14581_v50, %v6844_v29  ;;  %v6896_v51 = vadd.f32 %v14581_v50, %v6845_v36  ;;  %v6897_v24 = vadd.f32 %v14581_v50, %v6846_v7  ;;  %v6898_v10 = vadd.f32 %v14581_v50, %v6847_v40 }
 0x7a6   : > { %7033 = vst.msk [vmem:[%s7874_s30 + $0x24] sm:$0xf] %vm7023_vm1, %v6984_v34  ;;  %v6899_v58 = vadd.f32 %v14581_v50, %v6848_v13  ;;  %v6900_v23 = vadd.f32 %v14581_v50, %v6849_v62  ;;  %v6850_v5 = vmul.f32 %v14563_v44, %v6799_v8  ;;  %v6851_v63 = vmul.f32 %v14563_v44, %v6800_v57 }
 0x7a7   : > { %7034 = vst.msk [vmem:[%s7874_s30 + $0x28] sm:$0xf] %vm7023_vm1, %v6985_v25  ;;  %v6943_v22 = vmax.f32 %v6895_v42, 0.0  ;;  %v6944_v55 = vmax.f32 %v6896_v51, 0.0  ;;  %v6945_v52 = vmax.f32 %v6897_v24, 0.0  ;;  %v6946_v19 = vmax.f32 %v6898_v10, 0.0 }
 0x7a8   : > { %7035 = vst.msk [vmem:[%s7874_s30 + $0x2c] sm:$0xf] %vm7023_vm1, %v6986_v54  ;;  %v6947_v49 = vmax.f32 %v6899_v58, 0.0  ;;  %v6948_v17 = vmax.f32 %v6900_v23, 0.0  ;;  %v6901_v2 = vadd.f32 %v14581_v50, %v6850_v5  ;;  %v6902_v27 = vadd.f32 %v14581_v50, %v6851_v63  ;;  %v6813_v24 = vld [vmem:[%s14556_s13 + $0x120] sm:$0xff]  ;;  %v6814_v10 = vld [vmem:[%s14556_s13 + $0x128] sm:$0xff] }
 0x7a9   : > { %7036 = vst.msk [vmem:[%s7874_s30 + $0x30] sm:$0xf] %vm7023_vm1, %v6987_v32  ;;  %v6991_v4 = vpack.c.bf16 %v6943_v22, %v6943_v22  ;;  %v6992_v21 = vpack.c.bf16 %v6944_v55, %v6944_v55  ;;  %v6993_v56 = vpack.c.bf16 %v6945_v52, %v6945_v52  ;;  %v6994_v3 = vpack.c.bf16 %v6946_v19, %v6946_v19  ;;  %v6809_v32 = vld [vmem:[%s14556_s13 + $0x100] sm:$0xff]  ;;  %v6815_v52 = vld [vmem:[%s14556_s13 + $0x130] sm:$0xff]  ;;  %v6816_v19 = vld [vmem:[%s14556_s13 + $0x138] sm:$0xff] }
 0x7aa   : > { %7037 = vst.msk [vmem:[%s7874_s30 + $0x34] sm:$0xf] %vm7023_vm1, %v6988_v6  ;;  %v6995_v48 = vpack.c.bf16 %v6947_v49, %v6947_v49  ;;  %v6996_v16 = vpack.c.bf16 %v6948_v17, %v6948_v17  ;;  %v6949_v18 = vmax.f32 %v6901_v2, 0.0  ;;  %v6950_v59 = vmax.f32 %v6902_v27, 0.0  ;;  %v6810_v6 = vld [vmem:[%s14556_s13 + $0x108] sm:$0xff] }
 0x7ab   : > { %7038 = vst.msk [vmem:[%s7874_s30 + $0x38] sm:$0xf] %vm7023_vm1, %v6989_v46  ;;  %v6852_v39 = vmul.f32 %v14563_v44, %v6801_v9  ;;  %v6853_v11 = vmul.f32 %v14563_v44, %v6802_v12  ;;  %v6854_v28 = vmul.f32 %v14563_v44, %v6803_v33  ;;  %v6855_v15 = vmul.f32 %v14563_v44, %v6804_v37  ;;  %v6811_v46 = vld [vmem:[%s14556_s13 + $0x110] sm:$0xff] }
 0x7ac   : > { %7039 = vst.msk [vmem:[%s7874_s30 + $0x3c] sm:$0xf] %vm7023_vm1, %v6990_v38  ;;  %v6997_v0 = vpack.c.bf16 %v6949_v18, %v6949_v18  ;;  %v6998_v31 = vpack.c.bf16 %v6950_v59, %v6950_v59  ;;  %v6856_v20 = vmul.f32 %v14563_v44, %v6805_v35  ;;  %v6857_v41 = vmul.f32 %v14563_v44, %v6806_v30  ;;  %v6812_v38 = vld [vmem:[%s14556_s13 + $0x118] sm:$0xff] }
 0x7ad   : > { %7040 = vst.msk [vmem:[%s7874_s30 + $0x40] sm:$0xf] %vm7023_vm1, %v6991_v4  ;;  %v6903_v61 = vadd.f32 %v14581_v50, %v6852_v39  ;;  %v6904_v53 = vadd.f32 %v14581_v50, %v6853_v11  ;;  %v6905_v1 = vadd.f32 %v14581_v50, %v6854_v28  ;;  %v6906_v34 = vadd.f32 %v14581_v50, %v6855_v15 }
 0x7ae   : > { %7041 = vst.msk [vmem:[%s7874_s30 + $0x44] sm:$0xf] %vm7023_vm1, %v6992_v21  ;;  %v6907_v25 = vadd.f32 %v14581_v50, %v6856_v20  ;;  %v6908_v54 = vadd.f32 %v14581_v50, %v6857_v41  ;;  %v6858_v47 = vmul.f32 %v14563_v44, %v6807_v43  ;;  %v6859_v60 = vmul.f32 %v14563_v44, %v6808_v14 }
 0x7af   : > { %7042 = vst.msk [vmem:[%s7874_s30 + $0x48] sm:$0xf] %vm7023_vm1, %v6993_v56  ;;  %v6951_v45 = vmax.f32 %v6903_v61, 0.0  ;;  %v6952_v26 = vmax.f32 %v6904_v53, 0.0  ;;  %v6953_v29 = vmax.f32 %v6905_v1, 0.0  ;;  %v6954_v36 = vmax.f32 %v6906_v34, 0.0 }
 0x7b0   : > { %7043 = vst.msk [vmem:[%s7874_s30 + $0x4c] sm:$0xf] %vm7023_vm1, %v6994_v3  ;;  %v6955_v7 = vmax.f32 %v6907_v25, 0.0  ;;  %v6956_v40 = vmax.f32 %v6908_v54, 0.0  ;;  %v6909_v8 = vadd.f32 %v14581_v50, %v6858_v47  ;;  %v6910_v57 = vadd.f32 %v14581_v50, %v6859_v60  ;;  %v6821_v61 = vld [vmem:[%s14556_s13 + $0x160] sm:$0xff]  ;;  %v6822_v53 = vld [vmem:[%s14556_s13 + $0x168] sm:$0xff] }
 0x7b1   : > { %7044 = vst.msk [vmem:[%s7874_s30 + $0x50] sm:$0xf] %vm7023_vm1, %v6995_v48  ;;  %v6999_v13 = vpack.c.bf16 %v6951_v45, %v6951_v45  ;;  %v7000_v62 = vpack.c.bf16 %v6952_v26, %v6952_v26  ;;  %v7001_v42 = vpack.c.bf16 %v6953_v29, %v6953_v29  ;;  %v7002_v51 = vpack.c.bf16 %v6954_v36, %v6954_v36  ;;  %v6817_v48 = vld [vmem:[%s14556_s13 + $0x140] sm:$0xff]  ;;  %v6823_v45 = vld [vmem:[%s14556_s13 + $0x170] sm:$0xff]  ;;  %v6824_v26 = vld [vmem:[%s14556_s13 + $0x178] sm:$0xff] }
 0x7b2   : > { %7045 = vst.msk [vmem:[%s7874_s30 + $0x54] sm:$0xf] %vm7023_vm1, %v6996_v16  ;;  %v7003_v58 = vpack.c.bf16 %v6955_v7, %v6955_v7  ;;  %v7004_v23 = vpack.c.bf16 %v6956_v40, %v6956_v40  ;;  %v6957_v5 = vmax.f32 %v6909_v8, 0.0  ;;  %v6958_v63 = vmax.f32 %v6910_v57, 0.0  ;;  %v6818_v16 = vld [vmem:[%s14556_s13 + $0x148] sm:$0xff] }
 0x7b3   : > { %7046 = vst.msk [vmem:[%s7874_s30 + $0x58] sm:$0xf] %vm7023_vm1, %v6997_v0  ;;  %v6860_v9 = vmul.f32 %v14563_v44, %v6809_v32  ;;  %v6861_v12 = vmul.f32 %v14563_v44, %v6810_v6  ;;  %v6862_v22 = vmul.f32 %v14563_v44, %v6811_v46  ;;  %v6863_v55 = vmul.f32 %v14563_v44, %v6812_v38  ;;  %v6819_v0 = vld [vmem:[%s14556_s13 + $0x150] sm:$0xff] }
 0x7b4   : > { %7047 = vst.msk [vmem:[%s7874_s30 + $0x5c] sm:$0xf] %vm7023_vm1, %v6998_v31  ;;  %v7005_v49 = vpack.c.bf16 %v6957_v5, %v6957_v5  ;;  %v7006_v17 = vpack.c.bf16 %v6958_v63, %v6958_v63  ;;  %v6864_v2 = vmul.f32 %v14563_v44, %v6813_v24  ;;  %v6865_v27 = vmul.f32 %v14563_v44, %v6814_v10  ;;  %v6820_v31 = vld [vmem:[%s14556_s13 + $0x158] sm:$0xff] }
 0x7b5   : > { %7048 = vst.msk [vmem:[%s7874_s30 + $0x60] sm:$0xf] %vm7023_vm1, %v6999_v13  ;;  %v6911_v33 = vadd.f32 %v14581_v50, %v6860_v9  ;;  %v6912_v37 = vadd.f32 %v14581_v50, %v6861_v12  ;;  %v6913_v4 = vadd.f32 %v14581_v50, %v6862_v22  ;;  %v6914_v21 = vadd.f32 %v14581_v50, %v6863_v55 }
 0x7b6   : > { %7049 = vst.msk [vmem:[%s7874_s30 + $0x64] sm:$0xf] %vm7023_vm1, %v7000_v62  ;;  %v6915_v56 = vadd.f32 %v14581_v50, %v6864_v2  ;;  %v6916_v3 = vadd.f32 %v14581_v50, %v6865_v27  ;;  %v6866_v35 = vmul.f32 %v14563_v44, %v6815_v52  ;;  %v6867_v30 = vmul.f32 %v14563_v44, %v6816_v19 }
 0x7b7   : > { %7050 = vst.msk [vmem:[%s7874_s30 + $0x68] sm:$0xf] %vm7023_vm1, %v7001_v42  ;;  %v6959_v18 = vmax.f32 %v6911_v33, 0.0  ;;  %v6960_v59 = vmax.f32 %v6912_v37, 0.0  ;;  %v6961_v39 = vmax.f32 %v6913_v4, 0.0  ;;  %v6962_v11 = vmax.f32 %v6914_v21, 0.0 }
 0x7b8   : > { %7051 = vst.msk [vmem:[%s7874_s30 + $0x6c] sm:$0xf] %vm7023_vm1, %v7002_v51  ;;  %v6963_v28 = vmax.f32 %v6915_v56, 0.0  ;;  %v6964_v15 = vmax.f32 %v6916_v3, 0.0  ;;  %v6917_v43 = vadd.f32 %v14581_v50, %v6866_v35  ;;  %v6918_v14 = vadd.f32 %v14581_v50, %v6867_v30 }
 0x7b9   : > { %7052 = vst.msk [vmem:[%s7874_s30 + $0x70] sm:$0xf] %vm7023_vm1, %v7003_v58  ;;  %v7007_v20 = vpack.c.bf16 %v6959_v18, %v6959_v18  ;;  %v7008_v41 = vpack.c.bf16 %v6960_v59, %v6960_v59  ;;  %v7009_v1 = vpack.c.bf16 %v6961_v39, %v6961_v39  ;;  %v7010_v34 = vpack.c.bf16 %v6962_v11, %v6962_v11 }
 0x7ba   : > { %7053 = vst.msk [vmem:[%s7874_s30 + $0x74] sm:$0xf] %vm7023_vm1, %v7004_v23  ;;  %v7011_v25 = vpack.c.bf16 %v6963_v28, %v6963_v28  ;;  %v6965_v54 = vmax.f32 %v6917_v43, 0.0  ;;  %v6868_v47 = vmul.f32 %v14563_v44, %v6817_v48  ;;  %v6869_v60 = vmul.f32 %v14563_v44, %v6818_v16 }
 0x7bb   : > { %7054 = vst.msk [vmem:[%s7874_s30 + $0x78] sm:$0xf] %vm7023_vm1, %v7005_v49  ;;  %v6870_v32 = vmul.f32 %v14563_v44, %v6819_v0  ;;  %v6871_v6 = vmul.f32 %v14563_v44, %v6820_v31  ;;  %v7012_v29 = vpack.c.bf16 %v6964_v15, %v6964_v15  ;;  %v6966_v36 = vmax.f32 %v6918_v14, 0.0 }
 0x7bc   : > { %7055 = vst.msk [vmem:[%s7874_s30 + $0x7c] sm:$0xf] %vm7023_vm1, %v7006_v17  ;;  %v6872_v7 = vmul.f32 %v14563_v44, %v6821_v61  ;;  %v6873_v40 = vmul.f32 %v14563_v44, %v6822_v53  ;;  %v6919_v8 = vadd.f32 %v14581_v50, %v6868_v47  ;;  %v6920_v57 = vadd.f32 %v14581_v50, %v6869_v60 }
 0x7bd   : > { %7056 = vst.msk [vmem:[%s7874_s30 + $0x80] sm:$0xf] %vm7023_vm1, %v7007_v20  ;;  %v6921_v46 = vadd.f32 %v14581_v50, %v6870_v32  ;;  %v6922_v38 = vadd.f32 %v14581_v50, %v6871_v6  ;;  %v6874_v42 = vmul.f32 %v14563_v44, %v6823_v45  ;;  %v6875_v51 = vmul.f32 %v14563_v44, %v6824_v26 }
 0x7be   : > { %7057 = vst.msk [vmem:[%s7874_s30 + $0x84] sm:$0xf] %vm7023_vm1, %v7008_v41  ;;  %v6923_v13 = vadd.f32 %v14581_v50, %v6872_v7  ;;  %v6924_v62 = vadd.f32 %v14581_v50, %v6873_v40  ;;  %v7013_v24 = vpack.c.bf16 %v6965_v54, %v6965_v54  ;;  %v6967_v10 = vmax.f32 %v6919_v8, 0.0 }
 0x7bf   : > { %7058 = vst.msk [vmem:[%s7874_s30 + $0x88] sm:$0xf] %vm7023_vm1, %v7009_v1  ;;  %v6968_v58 = vmax.f32 %v6920_v57, 0.0  ;;  %v6969_v23 = vmax.f32 %v6921_v46, 0.0  ;;  %v7014_v5 = vpack.c.bf16 %v6966_v36, %v6966_v36  ;;  %v6970_v63 = vmax.f32 %v6922_v38, 0.0 }
 0x7c0   : > { %7059 = vst.msk [vmem:[%s7874_s30 + $0x8c] sm:$0xf] %vm7023_vm1, %v7010_v34  ;;  %v6925_v9 = vadd.f32 %v14581_v50, %v6874_v42  ;;  %v6926_v12 = vadd.f32 %v14581_v50, %v6875_v51  ;;  %v7015_v44 = vpack.c.bf16 %v6967_v10, %v6967_v10  ;;  %v6971_v22 = vmax.f32 %v6923_v13, 0.0 }
 0x7c1   : > { %7060 = vst.msk [vmem:[%s7874_s30 + $0x90] sm:$0xf] %vm7023_vm1, %v7011_v25  ;;  %v7016_v55 = vpack.c.bf16 %v6968_v58, %v6968_v58  ;;  %v6972_v52 = vmax.f32 %v6924_v62, 0.0  ;;  %v7017_v19 = vpack.c.bf16 %v6969_v23, %v6969_v23  ;;  %v7018_v50 = vpack.c.bf16 %v6970_v63, %v6970_v63 }
 0x7c2   : > { %7061 = vst.msk [vmem:[%s7874_s30 + $0x94] sm:$0xf] %vm7023_vm1, %v7012_v29  ;;  %v6973_v49 = vmax.f32 %v6925_v9, 0.0  ;;  %v6974_v17 = vmax.f32 %v6926_v12, 0.0  ;;  %v7019_v2 = vpack.c.bf16 %v6971_v22, %v6971_v22 }
 0x7c3   : > { %7062 = vst.msk [vmem:[%s7874_s30 + $0x98] sm:$0xf] %vm7023_vm1, %v7013_v24  ;;  %v7020_v27 = vpack.c.bf16 %v6972_v52, %v6972_v52 }
 0x7c4   : > { %7063 = vst.msk [vmem:[%s7874_s30 + $0x9c] sm:$0xf] %vm7023_vm1, %v7014_v5  ;;  %v7021_v33 = vpack.c.bf16 %v6973_v49, %v6973_v49  ;;  %v7022_v37 = vpack.c.bf16 %v6974_v17, %v6974_v17 }
 0x7c5   : > { %7064 = vst.msk [vmem:[%s7874_s30 + $0xa0] sm:$0xf] %vm7023_vm1, %v7015_v44 }
 0x7c6   : > { %7065 = vst.msk [vmem:[%s7874_s30 + $0xa4] sm:$0xf] %vm7023_vm1, %v7016_v55 }
 0x7c7   : > { %7066 = vst.msk [vmem:[%s7874_s30 + $0xa8] sm:$0xf] %vm7023_vm1, %v7017_v19 }
 0x7c8   : > { %7067 = vst.msk [vmem:[%s7874_s30 + $0xac] sm:$0xf] %vm7023_vm1, %v7018_v50 }
 0x7c9   : > { %7068 = vst.msk [vmem:[%s7874_s30 + $0xb0] sm:$0xf] %vm7023_vm1, %v7019_v2 }
 0x7ca   : > { %7069 = vst.msk [vmem:[%s7874_s30 + $0xb4] sm:$0xf] %vm7023_vm1, %v7020_v27 }
 0x7cb   : > { %7070 = vst.msk [vmem:[%s7874_s30 + $0xb8] sm:$0xf] %vm7023_vm1, %v7021_v33 }
 0x7cc   : > { %7071 = vst.msk [vmem:[%s7874_s30 + $0xbc] sm:$0xf] %vm7023_vm1, %v7022_v37 }
 0x7cd PF: > { %s14_s19 = sadd.s32 1, %s7787_s19   ;;  %s16573_s15 = smov %s7779_s17 }
 0x7ce   : > { %p11_p10 = scmp.ge.s32.totalorder %s14_s19, 6   ;;  %s16574_s16 = smov %s7783_s18 }
 0x7cf   : > { %s16575_s17 = smov %s16578_s20  ;;  %s16576_s18 = smov %s16582_s21 }
 0x7d0   :  { %13 = sbr.rel (!%p11_p10) target bundleno = 3 (0x3), region = 80 }

</bundles_post_ra>
